<compile_context>
chip_gen: v5e
topology: v5e:2x2
jax: 0.10.0
libtpu: 0.0.40
codegen_flags: <defaults>
</compile_context>

<pallas_src>
from functools import partial

import numpy as np

import jax
import jax.numpy as jnp
from jax.experimental import pallas as pl
from jax.experimental.pallas import tpu as pltpu


def _round_up(x, m):
    return (x + m - 1) // m * m


def hypernet_kernel(ctx_ref, w1_ref, b1_ref, w2_ref, b2_ref, o_ref):
    """One grid step produces one lane-dense (B, tile_n) tile of the flat output."""
    tile_n = o_ref.shape[1]

    # ---- Layer 1: (B, C) @ (C, 512) + b1, ReLU.  All f32, tiny (B*C*512 MACs);
    # recomputed per tile so the 1-D grid stays fully parallel (no scratch carry).
    h = jnp.dot(ctx_ref[...], w1_ref[...], preferred_element_type=jnp.float32)
    h = jnp.maximum(h + b1_ref[...], 0.0)

    # ---- Layer 2: (B, 512) @ (512, tile_n) slab of the big projection.
    # bf16 operands (halves the dominant HBM weight stream), f32 accumulation.
    out = jnp.dot(h.astype(jnp.bfloat16), w2_ref[...],
                  preferred_element_type=jnp.float32)

    # b2 is resident full-width; pick this tile's slice (128-aligned offset).
    off = pl.multiple_of(pl.program_id(0) * tile_n, 128)
    out = out + b2_ref[:, pl.ds(off, tile_n)]

    o_ref[...] = out.astype(o_ref.dtype)


def unflatten(flat, batch_size, d):
    """Mirrors HyperNet.unflatten: slice the flat vector into named tensors."""
    idx = 0
    out = {}

    def take(name, shape):
        nonlocal idx
        numel = int(np.prod(shape))
        out[name] = flat[:, idx:idx + numel].reshape(batch_size, *shape)
        idx += numel

    take('attn_proj_weight', (3 * d, d))
    take('attn_proj_bias', (3 * d,))
    take('ff1_weight', (4 * d, d))
    take('ff1_bias', (4 * d,))
    take('ff2_weight', (d, 4 * d))
    take('ff2_bias', (d,))
    return out


def prepare_hypernet_params(fc1_w, fc1_b, fc2_w, fc2_b, *, tile_n=5760):
    """One-time parameter preparation (hoisted out of the per-call path).

    fc*_w / fc*_b are in PyTorch nn.Linear layout: weight (out, in), bias (out,).
    Returns matmul-ready arrays: W1 f32 (C, H), b1 f32 (1, H),
    W2 bf16 (H, n_pad) zero-padded to a multiple of tile_n, b2 f32 (1, n_pad).
    """
    H, C = fc1_w.shape
    total = fc2_w.shape[0]
    n_pad = _round_up(total, tile_n)

    w1 = fc1_w.T.astype(jnp.float32)                 # (C, H)   tiny, kept f32
    b1 = fc1_b.reshape(1, H).astype(jnp.float32)     # (1, H)
    w2 = fc2_w.T.astype(jnp.bfloat16)                # (H, total)
    b2 = fc2_b.astype(jnp.float32)                   # (total,)
    if n_pad != total:
        w2 = jnp.pad(w2, ((0, 0), (0, n_pad - total)))
        b2 = jnp.pad(b2, (0, n_pad - total))
    b2 = b2.reshape(1, n_pad)

    return {"w1": w1, "b1": b1, "w2": w2, "b2": b2}


@partial(jax.jit, static_argnames=("model_dim", "tile_n"))
def hypernet_forward(context, params, *, model_dim, tile_n=5760):
    """HyperNet forward using prepared params (see prepare_hypernet_params)."""
    B, C = context.shape
    w1, b1, w2, b2 = params["w1"], params["b1"], params["w2"], params["b2"]
    H = w1.shape[1]
    n_pad = w2.shape[1]
    total = 11 * model_dim * model_dim + 8 * model_dim
    assert n_pad % tile_n == 0 and n_pad >= total

    grid = (n_pad // tile_n,)

    flat = pl.pallas_call(
        hypernet_kernel,
        out_shape=jax.ShapeDtypeStruct((B, n_pad), jnp.float32),
        grid_spec=pltpu.PrefetchScalarGridSpec(
            num_scalar_prefetch=0,
            grid=grid,
            in_specs=[
                pl.BlockSpec((B, C), lambda j: (0, 0)),        # context (resident)
                pl.BlockSpec((C, H), lambda j: (0, 0)),        # W1      (resident)
                pl.BlockSpec((1, H), lambda j: (0, 0)),        # b1      (resident)
                pl.BlockSpec((H, tile_n), lambda j: (0, j)),   # W2 slab (streamed)
                pl.BlockSpec((1, n_pad), lambda j: (0, 0)),    # b2      (resident)
            ],
            out_specs=pl.BlockSpec((B, tile_n), lambda j: (0, j)),
        ),
        compiler_params=pltpu.CompilerParams(
            dimension_semantics=("parallel",),
            vmem_limit_bytes=32 * 1024 * 1024,
        ),
    )(context.astype(jnp.float32), w1, b1, w2, b2)

    flat = flat[:, :total]
    return unflatten(flat, B, model_dim)


def _reference(context, fc1_w, fc1_b, fc2_w, fc2_b, model_dim):
    """Pure-JAX reference reproducing the kernel's numerics:
    f32 layer 1, bf16-rounded h and W2 for layer 2, f32 accumulation."""
    h = jnp.maximum(context @ fc1_w.T + fc1_b, 0.0)
    h = h.astype(jnp.bfloat16).astype(jnp.float32)
    w2 = fc2_w.T.astype(jnp.bfloat16).astype(jnp.float32)
    flat = h @ w2 + fc2_b
    return unflatten(flat, context.shape[0], model_dim)


if __name__ == "__main__":
    B, C, D = 2, 16, 32           # batch, context_dim, model_dim
    HID = 512
    TOTAL = 11 * D * D + 8 * D    # 11520
    TILE_N = 5760                 # 2 grid steps for TOTAL=11520 (1 per TC on v7x)

    key = jax.random.PRNGKey(0)
    k = jax.random.split(key, 5)
    # Synthetic parameters in PyTorch nn.Linear layout: weight (out, in), bias (out,).
    fc1_w = 0.05 * jax.random.normal(k[0], (HID, C), jnp.float32)
    fc1_b = 0.01 * jax.random.normal(k[1], (HID,), jnp.float32)
    fc2_w = 0.05 * jax.random.normal(k[2], (TOTAL, HID), jnp.float32)
    fc2_b = 0.01 * jax.random.normal(k[3], (TOTAL,), jnp.float32)
    context = jax.random.normal(k[4], (B, C), jnp.float32)

    # One-time preparation (parameter-load time), not part of the per-call path.
    params = prepare_hypernet_params(fc1_w, fc1_b, fc2_w, fc2_b, tile_n=TILE_N)
    params = jax.tree_util.tree_map(jax.block_until_ready, params)

    out = hypernet_forward(context, params, model_dim=D, tile_n=TILE_N)
    out = jax.tree_util.tree_map(jax.block_until_ready, out)

    ref = _reference(context, fc1_w, fc1_b, fc2_w, fc2_b, D)

    expected_shapes = {
        'attn_proj_weight': (B, 3 * D, D),
        'attn_proj_bias': (B, 3 * D),
        'ff1_weight': (B, 4 * D, D),
        'ff1_bias': (B, 4 * D),
        'ff2_weight': (B, D, 4 * D),
        'ff2_bias': (B, D),
    }
    for name, shape in expected_shapes.items():
        assert out[name].shape == shape, (name, out[name].shape, shape)
        err = float(jnp.max(jnp.abs(out[name] - ref[name])))
        assert err < 5e-3, f"mismatch for {name}: max abs err {err}"

    print("KERNEL_OK")
</pallas_src>

<mosaic_0001>
module attributes {stable_mosaic.version = 11 : i64} {
  func.func @hypernet_kernel(%arg0: i32, %arg1: memref<2x16xf32, #tpu.memory_space<vmem>>, %arg2: memref<16x512xf32, #tpu.memory_space<vmem>>, %arg3: memref<1x512xf32, #tpu.memory_space<vmem>>, %arg4: memref<512x5760xbf16, #tpu.memory_space<vmem>>, %arg5: memref<1x11520xf32, #tpu.memory_space<vmem>>, %arg6: memref<2x5760xf32, #tpu.memory_space<vmem>>) attributes {dimension_semantics = [#tpu.dimension_semantics<parallel>], iteration_bounds = array<i64: 2>, scalar_prefetch = 0 : i64, scratch_operands = 0 : i64, tpu.core_type = #tpu.core_type<tc>, window_params = [{pipeline_mode = #tpu.pipeline_mode<synchronous>, transform_indices = @transform_0, window_bounds = array<i64: 2, 16>}, {pipeline_mode = #tpu.pipeline_mode<synchronous>, transform_indices = @transform_1, window_bounds = array<i64: 16, 512>}, {pipeline_mode = #tpu.pipeline_mode<synchronous>, transform_indices = @transform_2, window_bounds = array<i64: 1, 512>}, {transform_indices = @transform_3, window_bounds = array<i64: 512, 5760>}, {pipeline_mode = #tpu.pipeline_mode<synchronous>, transform_indices = @transform_4, window_bounds = array<i64: 1, 11520>}, {transform_indices = @transform_5, window_bounds = array<i64: 2, 5760>}]} {
    %c0 = arith.constant 0 : index
    %c0_0 = arith.constant 0 : index
    %0 = vector.load %arg1[%c0, %c0_0] : memref<2x16xf32, #tpu.memory_space<vmem>>, vector<2x16xf32>
    %c0_1 = arith.constant 0 : index
    %c0_2 = arith.constant 0 : index
    %1 = vector.load %arg2[%c0_1, %c0_2] : memref<16x512xf32, #tpu.memory_space<vmem>>, vector<16x512xf32>
    %cst = arith.constant dense<0.000000e+00> : vector<2x512xf32>
    %2 = tpu.matmul %0, %1, %cst {dimension_numbers = #tpu.dot_dimension_numbers<[1], [0], [0], [1], [0, 0, 1, 1], [], []>} : vector<2x16xf32>, vector<16x512xf32>, vector<2x512xf32> -> vector<2x512xf32>
    %c0_3 = arith.constant 0 : index
    %c0_4 = arith.constant 0 : index
    %3 = vector.load %arg3[%c0_3, %c0_4] : memref<1x512xf32, #tpu.memory_space<vmem>>, vector<1x512xf32>
    %4 = vector.broadcast %3 : vector<1x512xf32> to vector<2x512xf32>
    %5 = arith.addf %2, %4 : vector<2x512xf32>
    %cst_5 = arith.constant 0.000000e+00 : f32
    %6 = vector.broadcast %cst_5 : f32 to vector<2x512xf32>
    %7 = arith.maximumf %5, %6 : vector<2x512xf32>
    %8 = arith.truncf %7 : vector<2x512xf32> to vector<2x512xbf16>
    %c0_6 = arith.constant 0 : index
    %c0_7 = arith.constant 0 : index
    %9 = vector.load %arg4[%c0_6, %c0_7] : memref<512x5760xbf16, #tpu.memory_space<vmem>>, vector<512x5760xbf16>
    %cst_8 = arith.constant dense<0.000000e+00> : vector<2x5760xf32>
    %10 = tpu.matmul %8, %9, %cst_8 {dimension_numbers = #tpu.dot_dimension_numbers<[1], [0], [0], [1], [0, 0, 1, 1], [], []>} : vector<2x512xbf16>, vector<512x5760xbf16>, vector<2x5760xf32> -> vector<2x5760xf32>
    %c5760_i32 = arith.constant 5760 : i32
    %11 = arith.muli %arg0, %c5760_i32 : i32
    %12 = tpu.assume_multiple %11, 128 : i32
    %c0_9 = arith.constant 0 : index
    %13 = arith.index_cast %12 : i32 to index
    %14 = vector.load %arg5[%c0_9, %13] : memref<1x11520xf32, #tpu.memory_space<vmem>>, vector<1x5760xf32>
    %15 = vector.broadcast %14 : vector<1x5760xf32> to vector<2x5760xf32>
    %16 = arith.addf %10, %15 : vector<2x5760xf32>
    %c0_10 = arith.constant 0 : index
    %c0_11 = arith.constant 0 : index
    %17 = vector.load %arg6[%c0_10, %c0_11] : memref<2x5760xf32, #tpu.memory_space<vmem>>, vector<2x5760xf32>
    tpu.vector_store %arg6[%c0_10, %c0_11], %16 {strides = array<i32>} : memref<2x5760xf32, #tpu.memory_space<vmem>>, vector<2x5760xf32>,
    return
  }
  func.func @transform_0(%arg0: i32) -> (i32, i32) {
    %c0_i32 = arith.constant 0 : i32
    %c0_i32_0 = arith.constant 0 : i32
    %c0_i32_1 = arith.constant 0 : i32
    return %c0_i32, %c0_i32_0 : i32, i32
  }
  func.func @transform_1(%arg0: i32) -> (i32, i32) {
    %c0_i32 = arith.constant 0 : i32
    %c0_i32_0 = arith.constant 0 : i32
    %c0_i32_1 = arith.constant 0 : i32
    return %c0_i32, %c0_i32_0 : i32, i32
  }
  func.func @transform_2(%arg0: i32) -> (i32, i32) {
    %c0_i32 = arith.constant 0 : i32
    %c0_i32_0 = arith.constant 0 : i32
    %c0_i32_1 = arith.constant 0 : i32
    return %c0_i32, %c0_i32_0 : i32, i32
  }
  func.func @transform_3(%arg0: i32) -> (i32, i32) {
    %c0_i32 = arith.constant 0 : i32
    %c0_i32_0 = arith.constant 0 : i32
    return %c0_i32, %arg0 : i32, i32
  }
  func.func @transform_4(%arg0: i32) -> (i32, i32) {
    %c0_i32 = arith.constant 0 : i32
    %c0_i32_0 = arith.constant 0 : i32
    %c0_i32_1 = arith.constant 0 : i32
    return %c0_i32, %c0_i32_0 : i32, i32
  }
  func.func @transform_5(%arg0: i32) -> (i32, i32) {
    %c0_i32 = arith.constant 0 : i32
    %c0_i32_0 = arith.constant 0 : i32
    return %c0_i32, %arg0 : i32, i32
  }
}

</mosaic_0001>

<bundles_post_ra>
// kernel: hypernet_forward.1
= control target key start
LH: loop header
LB: loop body
LE: loop exit
PB: predicated region body
PF: predicated region fallthrough
CT: control target
= control target key end

     0   :  { %10 = vsyncpa [#allocation3], 0  ;;  %s22914_s0 = inlined_call_operand.hbm [shape: f32[2,16], index: 0, kind: input, shape index: {}]   ;;  %s22915_s1 = inlined_call_operand.hbm [shape: f32[16,512], index: 1, kind: input, shape index: {}]   ;;  %s22916_s2 = inlined_call_operand.hbm [shape: f32[1,512], index: 2, kind: input, shape index: {}]   ;;  %s22917_s3 = inlined_call_operand.hbm [shape: bf16[512,11520], index: 3, kind: input, shape index: {}]   ;;  %s22918_s4 = inlined_call_operand.hbm [shape: f32[1,11520], index: 4, kind: input, shape index: {}]   ;;  %s22919_s5 = inlined_call_operand.vmem [shape: f32[2,11520], index: 5, kind: output, shape index: {}]  }
   0x1   :  { %11 = vsyncpa [#allocation5], 0 }
   0x2   :  { %12 = vsyncpa [#allocation8], 0 }
   0x3   :  { %14 = vsyncpa [#allocation8 + $0x1], 0  ;;  %s19365_s18 = smov 0   ;;  %s19367_s19 = smov 0  }
   0x4   :  { %s19369_s20 = smov 0   ;;  %s19371_s21 = smov 0  }
   0x5 LB: > { %s19384_s22 = sadd.s32 4294967295, %s19324_s21   ;;  %s19387_s23 = sadd.s32 1, %s19324_s21   ;;  %s19324_s21 = sphi %s19371_s21, %s22929_s21   ;;  %s19320_s20 = sphi %s19369_s20, %s22928_s20   ;;  %s19316_s19 = sphi %s19367_s19, %s22927_s19   ;;  %s19312_s18 = sphi %s19365_s18, %s22926_s18  }
   0x6   : > { %s87_s24 = ssub.s32 %s19324_s21, %s19387_s23  ;;  %s90_s25 = sadd.s32 1, %s19320_s20 }
   0x7   : > { %p88_p0 = scmp.eq.s32.totalorder %s87_s24, 0  ;;  %p97_p1 = scmp.ne.s32.totalorder %s19320_s20, %s19316_s19 }
   0x8   : > { %p98_p2 = scmp.eq.s32.totalorder %s19324_s21, 0  ;;  %p103_p3 = scmp.ne.s32.totalorder %s19316_s19, %s19312_s18 }
   0x9   : > { %s19397_s26 = scalar_select %p88_p0, %s19320_s20, %s90_s25  }
   0xa   : > { %p19399_p4 = por %p98_p2, %p97_p1  ;;  %p104_p5 = scmp.eq.s32.totalorder %s19384_s22, 0 }
   0xb   : > { %p11816_p6 = scmp.ge.s32.totalorder %s19324_s21, 1  ;;  %p161_p7 = scmp.lt.s32.totalorder %s19324_s21, 3 }
   0xc   : > { %p19408_p8 = por %p104_p5, %p103_p3  ;;  %s184_s7 = sshll.u32 %s22915_s1, 4  ;;  %s185_s7 = int_to_ptr.hbm [resolvable:$true] %s184_s7 }
   0xd   : > { %p19412_p9 = pnand %p11816_p6, %p161_p7  ;;  %s19326_s8 = smov [#allocation4]  }
   0xe   : > { %s186_s9 = sshll.u32 %s19326_s8, 4  ;;  %p19077_p12 = scmp.lt.s32.totalorder %s19324_s21, 2  ;;  %s187_s9 = int_to_ptr.vmem [resolvable:$true] %s186_s9 }
   0xf   : > { %p19056_p10 = pneg %p19412_p9  ;;  %s211_s13 = sshll.u32 %s22918_s4, 4  ;;  %s212_s13 = int_to_ptr.hbm [resolvable:$true] %s211_s13 }
  0x10   : > { %s19327_s14 = smov 512   ;;  %s19328_s15 = smov 32  }
  0x11   : > { %p19423_p11 = pnand %p19056_p10, %p104_p5  ;;  %p19435_p13 = pnand %p19077_p12, %p19399_p4 }
  0x12   : > { %s173_s24 = sshll.u32 %s22914_s0, 4  ;;  %s19329_s25 = smov [#allocation9]   ;;  %s174_s24 = int_to_ptr.hbm [resolvable:$true] %s173_s24 }
  0x13   : > { %19062 = dma.hbm_to_vmem [thread:$0]  (!%p19423_p11), %s185_s7, 1024, %s187_s9, [#allocation5], %s19327_s14, %s19327_s14, %s19328_s15  }
  0x14   : > { %s213_s30 = sshll.u32 %s19329_s25, 4  ;;  %s199_s7 = sshll.u32 %s22916_s2, 4  ;;  %s214_s30 = int_to_ptr.vmem [resolvable:$true] %s213_s30  ;;  %s200_s7 = int_to_ptr.hbm [resolvable:$true] %s199_s7 }
  0x15   : > { %19068 = dma.hbm_to_vmem [thread:$0]  (!%p19423_p11), %s212_s13, 1440, %s214_s30, [#allocation8]  }
  0x16   : > { %s19330_s8 = smov [#allocation2]   ;;  %s19331_s11 = smov [#allocation6]  }
  0x17   : > { %s175_s9 = sshll.u32 %s19330_s8, 4  ;;  %s201_s12 = sshll.u32 %s19331_s11, 4  ;;  %s176_s9 = int_to_ptr.vmem [resolvable:$true] %s175_s9  ;;  %s202_s12 = int_to_ptr.vmem [resolvable:$true] %s201_s12 }
  0x18   : > { %19059 = dma.hbm_to_vmem [thread:$0]  (!%p19423_p11), %s174_s24, 32, %s176_s9, [#allocation3]  }
  0x19   : > { %s224_s14 = sand.u32 1, %s19324_s21   ;;  %s226_s15 = sand.u32 1, %s19320_s20  }
  0x1a   : > { %19065 = dma.hbm_to_vmem [thread:$0]  (!%p19423_p11), %s200_s7, 64, %s202_s12, [#allocation5]  }
  0x1b   : > { %s17595_s17 = smul.u32 180, %s19324_s21  ;;  %s225_s24 = scalar_lea.sflag [#allocation8], %s224_s14 }
  0x1c   : > { %s19036_s13 = smul.u32 11520, %s226_s15  ;;  %p19252_p1 = pneg %p19435_p13 }
  0x1d   : > { %s233_s30 = scalar_lea.hbm %s22917_s3, %s17595_s17  ;;  %s19255_s7 = scalar_lea.hbm %s22917_s3, 23040 }
  0x1e   : > { %s234_s27 = sshll.u32 %s233_s30, 4  ;;  %s228_s6 = scalar_lea.vmem [#allocation7], %s19036_s13  ;;  %s235_s27 = int_to_ptr.hbm [resolvable:$true] %s234_s27 }
  0x1f   : > { %s236_s8 = sshll.u32 %s228_s6, 4  ;;  %s19248_s9 = sshra.s32 %s235_s27, 4  ;;  %s237_s8 = int_to_ptr.vmem [resolvable:$true] %s236_s8  ;;  %s19249_s9 = int_to_ptr.hbm [resolvable:$true] %s19248_s9 }
  0x20   : > { %s19250_s11 = scalar_lea.hbm %s19249_s9, 11520  ;;  %p19256_p4 = scmp.lt.s32.totalorder %s19249_s9, %s22917_s3 }
  0x21   : > { %p19251_p0 = scmp.ne.s32.totalorder %s19249_s9, %s19250_s11  ;;  %p19257_p6 = scmp.lt.s32.totalorder %s19255_s7, %s19250_s11 }
  0x23   : > { %p19253_p2 = pnand %p19252_p1, %p19251_p0  ;;  %p19258_p7 = por %p19257_p6, %p19256_p4 }
  0x25   : > { %p19254_p3 = pneg %p19253_p2 }
  0x27   : > { %p19259_p10 = pnand %p19258_p7, %p19254_p3 }
  0x29   : > { %19262 = shalt.err (!%p19259_p10)
}
  0x2a   : > { %s19332_s14 = smov 5760   ;;  %s19333_s17 = smov 2880  }
  0x2b   : > { %s19334_s13 = smov 180   ;;  %248 = sbr.rel (%p19412_p9) target bundleno = 1718 (0x6b6), region = 40 }
  0x2c   : > { %19072 = dma.hbm_to_vmem [thread:$0]  (!%p19435_p13), %s235_s27, 184320, %s237_s8, %s225_s24, %s19332_s14, %s19333_s17, %s19334_s13  }
  0x30   : > { %19295 = dma.done.wait (%p104_p5), [#allocation3], 32  }
  0x31   : > { %19297 = vsyncadd (%p104_p5), [#allocation3], 4294967264 }
  0x32   : > { %19299 = dma.done.wait (%p104_p5), [#allocation5], 1088  }
  0x33   : > { %19301 = vsyncadd (%p104_p5), [#allocation5], 4294966208  ;;  %s265_s16 = sand.u32 1, %s19384_s22   ;;  %s267_s18 = sand.u32 1, %s19316_s19  }
  0x34   : > { %s19037_s25 = smul.u32 11520, %s267_s18  ;;  %s266_s29 = scalar_lea.sflag [#allocation8], %s265_s16 }
  0x36   : > { %s19479_s30 = scalar_lea.vmem [#allocation7], %s19037_s25 }
  0x37   : > { %19303 = dma.done.wait (%p19408_p8), %s266_s29, 184320  }
  0x38   : > { %19305 = vsyncadd (%p19408_p8), %s266_s29, 4294782976 }
  0x39   : > { %19307 = dma.done.wait (%p104_p5), [#allocation8], 1440  }
  0x3a   : > { %19309 = vsyncadd (%p104_p5), [#allocation8], 4294965856  ;;  %v314_v0 = vld [vmem:[#allocation4 + $0x20] sm:$0xff]  ;;  %v315_v1 = vld [vmem:[#allocation4 + $0x28] sm:$0xff]  ;;  %vm328_vm0 = vcmask 130048   ;;  %s1892_s28 = smul.u32 5760, %s19384_s22 }
  0x3b   : > { %v316_v2 = vld [vmem:[#allocation4 + $0x30] sm:$0xff]  ;;  %346 = vmatpush.msra.mxu0 %v314_v0  ;;  %366 = vmatpush.msra.mxu1 %v315_v1  ;;  %v317_v3 = vld [vmem:[#allocation4 + $0x38] sm:$0xff]  ;;  %v310_v4 = vld [vmem:[#allocation4] sm:$0xff]  ;;  %s303_s8 = smul.u32 45, %s19384_s22  ;;  %vm11647_vm1 = vcmask 1041408   ;;  %vm11649_vm2 = vcmask 1045508  }
  0x3c   : > { %v311_v5 = vld [vmem:[#allocation4 + $0x8] sm:$0xff]  ;;  %386 = vmatpush.msra.mxu2 %v316_v2  ;;  %406 = vmatpush.msra.mxu3 %v317_v3  ;;  %v312_v6 = vld [vmem:[#allocation4 + $0x10] sm:$0xff]  ;;  %v313_v7 = vld [vmem:[#allocation4 + $0x18] sm:$0xff]  ;;  %s19894_s27 = sshra.s32 %s1892_s28, 7  ;;  %vm11651_vm3 = vcmask 1043456  }
  0x3d   : > { %v309_v8 = vld [vmem:[#allocation2] sm:$0x3]  ;;  %347 = vmatpush.msra.mxu0 %v310_v4  ;;  %367 = vmatpush.msra.mxu1 %v311_v5  ;;  %v17933_v10 = vld [vmem:[%s19479_s30 + $0xa88] sm:$0xf0]  ;;  %v12915_v14 = vld [vmem:[%s19479_s30 + $0x870] sm:$0xf] }
  0x3e   : > { %v13095_v9 = vld [vmem:[%s19479_s30 + $0x9d8] sm:$0xf]  ;;  %387 = vmatpush.msra.mxu2 %v312_v6  ;;  %407 = vmatpush.msra.mxu3 %v313_v7  ;;  %v18293_v13 = vld [vmem:[%s19479_s30 + $0x15c8] sm:$0xf0]  ;;  %v17888_v15 = vld [vmem:[%s19479_s30 + $0x920] sm:$0xf0] }
  0x3f   : > { %v14535_v11 = vld [vmem:[%s19479_s30 + $0x1518] sm:$0xf]  ;;  %v13096_v12 = vor.u32 %v17933_v10, %v13095_v9  ;;  %11829 = vmatmul.msk.f32.vlgmr.msra.gmra.mxu0 %vm328_vm0, %v309_v8  ;;  %11830 = vmatmul.msk.f32.vlgmr.msra.gmra.mxu1 %vm328_vm0, %v309_v8  ;;  %v14355_v17 = vld [vmem:[%s19479_s30 + $0x13b0] sm:$0xf]  ;;  %v18248_v18 = vld [vmem:[%s19479_s30 + $0x1460] sm:$0xf0]  ;;  %v12916_v20 = vor.u32 %v17888_v15, %v12915_v14 }
  0x40   : > { %v14536_v16 = vor.u32 %v18293_v13, %v14535_v11  ;;  %v15975_v19 = vld [vmem:[%s19479_s30 + $0x2058] sm:$0xf]  ;;  %11831 = vmatmul.msk.f32.vlgmr.msra.gmra.mxu2 %vm328_vm0, %v309_v8  ;;  %11832 = vmatmul.msk.f32.vlgmr.msra.gmra.mxu3 %vm328_vm0, %v309_v8  ;;  %v18653_v21 = vld [vmem:[%s19479_s30 + $0x2108] sm:$0xf0]  ;;  %v14356_v24 = vor.u32 %v18248_v18, %v14355_v17  ;;  %v12735_v27 = vld [vmem:[%s19479_s30 + $0x708] sm:$0xf] }
  0x41   : > { %v17415_v22 = vld [vmem:[%s19479_s30 + $0x2b98] sm:$0xf]  ;;  %v19013_v23 = vld [vmem:[%s19479_s30 + $0x2c48] sm:$0xf0]  ;;  %9230 = vmatpush.bf16.msrb.mxu0 %v13096_v12  ;;  %v15976_v25 = vor.u32 %v18653_v21, %v15975_v19  ;;  %v17843_v28 = vld [vmem:[%s19479_s30 + $0x7b8] sm:$0xf0] }
  0x42   : > { %9243 = vmatpush.bf16.msrb.mxu1 %v14536_v16  ;;  %v17416_v26 = vor.u32 %v19013_v23, %v17415_v22  ;;  %v14175_v29 = vld [vmem:[%s19479_s30 + $0x1248] sm:$0xf]  ;;  %v18203_v30 = vld [vmem:[%s19479_s30 + $0x12f8] sm:$0xf0]  ;;  %v15795_v31 = vld [vmem:[%s19479_s30 + $0x1ef0] sm:$0xf]  ;;  %v12736_v39 = vor.u32 %v17843_v28, %v12735_v27 }
  0x43   : > { %v18608_v32 = vld [vmem:[%s19479_s30 + $0x1fa0] sm:$0xf0]  ;;  %9256 = vmatpush.bf16.msrb.mxu2 %v15976_v25  ;;  %v17235_v34 = vld [vmem:[%s19479_s30 + $0x2a30] sm:$0xf]  ;;  %v12555_v37 = vld [vmem:[%s19479_s30 + $0x5a0] sm:$0xf]  ;;  %v14176_v40 = vor.u32 %v18203_v30, %v14175_v29 }
  0x44   : > { %9269 = vmatpush.bf16.msrb.mxu3 %v17416_v26  ;;  %v15796_v33 = vor.u32 %v18608_v32, %v15795_v31  ;;  %v18968_v35 = vld [vmem:[%s19479_s30 + $0x2ae0] sm:$0xf0]  ;;  %v17798_v38 = vld [vmem:[%s19479_s30 + $0x650] sm:$0xf0]  ;;  %v15615_v41 = vld [vmem:[%s19479_s30 + $0x1d88] sm:$0xf] }
  0x45   : > { %v17236_v36 = vor.u32 %v18968_v35, %v17235_v34  ;;  %9231 = vmatpush.bf16.msrb.mxu0 %v12916_v20  ;;  %v18563_v42 = vld [vmem:[%s19479_s30 + $0x1e38] sm:$0xf0]  ;;  %v17055_v43 = vld [vmem:[%s19479_s30 + $0x28c8] sm:$0xf]  ;;  %v13995_v44 = vld [vmem:[%s19479_s30 + $0x10e0] sm:$0xf]  ;;  %v12556_v53 = vor.u32 %v17798_v38, %v12555_v37 }
  0x46   : > { %9244 = vmatpush.bf16.msrb.mxu1 %v14356_v24  ;;  %v18158_v45 = vld [vmem:[%s19479_s30 + $0x1190] sm:$0xf0]  ;;  %v18923_v46 = vld [vmem:[%s19479_s30 + $0x2978] sm:$0xf0]  ;;  %v15616_v47 = vor.u32 %v18563_v42, %v15615_v41  ;;  %v15435_v49 = vld [vmem:[%s19479_s30 + $0x1c20] sm:$0xf] }
  0x47   : > { %9257 = vmatpush.bf16.msrb.mxu2 %v15796_v33  ;;  %v17056_v48 = vor.u32 %v18923_v46, %v17055_v43  ;;  %v18518_v50 = vld [vmem:[%s19479_s30 + $0x1cd0] sm:$0xf0]  ;;  %v16875_v51 = vld [vmem:[%s19479_s30 + $0x2760] sm:$0xf]  ;;  %v13996_v54 = vor.u32 %v18158_v45, %v13995_v44  ;;  %v12375_v55 = vld [vmem:[%s19479_s30 + $0x438] sm:$0xf] }
  0x48   : > { %9270 = vmatpush.bf16.msrb.mxu3 %v17236_v36  ;;  %v18878_v52 = vld [vmem:[%s19479_s30 + $0x2810] sm:$0xf0]  ;;  %v17753_v56 = vld [vmem:[%s19479_s30 + $0x4e8] sm:$0xf0]  ;;  %v13815_v57 = vld [vmem:[%s19479_s30 + $0xf78] sm:$0xf]  ;;  %v15436_v59 = vor.u32 %v18518_v50, %v15435_v49 }
  0x49   : > { %9232 = vmatpush.bf16.msrb.mxu0 %v12736_v39  ;;  %v18113_v58 = vld [vmem:[%s19479_s30 + $0x1028] sm:$0xf0]  ;;  %v16876_v60 = vor.u32 %v18878_v52, %v16875_v51  ;;  %v15255_v61 = vld [vmem:[%s19479_s30 + $0x1ab8] sm:$0xf]  ;;  %v12376_v1 = vor.u32 %v17753_v56, %v12375_v55  ;;  %v12195_v3 = vld [vmem:[%s19479_s30 + $0x2d0] sm:$0xf] }
  0x4a   : > { %9245 = vmatpush.bf16.msrb.mxu1 %v14176_v40  ;;  %v18473_v62 = vld [vmem:[%s19479_s30 + $0x1b68] sm:$0xf0]  ;;  %v16695_v63 = vld [vmem:[%s19479_s30 + $0x25f8] sm:$0xf]  ;;  %v13816_v2 = vor.u32 %v18113_v58, %v13815_v57  ;;  %v17708_v4 = vld [vmem:[%s19479_s30 + $0x380] sm:$0xf0] }
  0x4b   : > { %9258 = vmatpush.bf16.msrb.mxu2 %v15616_v47  ;;  %v18833_v0 = vld [vmem:[%s19479_s30 + $0x26a8] sm:$0xf0]  ;;  %v13635_v5 = vld [vmem:[%s19479_s30 + $0xe10] sm:$0xf]  ;;  %v18068_v6 = vld [vmem:[%s19479_s30 + $0xec0] sm:$0xf0]  ;;  %v15256_v7 = vor.u32 %v18473_v62, %v15255_v61  ;;  %v12196_v13 = vor.u32 %v17708_v4, %v12195_v3 }
  0x4c   : > { %9271 = vmatpush.bf16.msrb.mxu3 %v17056_v48  ;;  %v16696_v8 = vor.u32 %v18833_v0, %v16695_v63  ;;  %v15075_v9 = vld [vmem:[%s19479_s30 + $0x1950] sm:$0xf]  ;;  %v18428_v10 = vld [vmem:[%s19479_s30 + $0x1a00] sm:$0xf0]  ;;  %v13636_v14 = vor.u32 %v18068_v6, %v13635_v5  ;;  %v12015_v15 = vld [vmem:[%s19479_s30 + $0x168] sm:$0xf] }
  0x4d   : > { %9233 = vmatpush.bf16.msrb.mxu0 %v12556_v53  ;;  %v16515_v11 = vld [vmem:[%s19479_s30 + $0x2490] sm:$0xf]  ;;  %v18788_v12 = vld [vmem:[%s19479_s30 + $0x2540] sm:$0xf0]  ;;  %v17663_v16 = vld [vmem:[%s19479_s30 + $0x218] sm:$0xf0]  ;;  %v15076_v19 = vor.u32 %v18428_v10, %v15075_v9 }
  0x4e   : > { %9246 = vmatpush.bf16.msrb.mxu1 %v13996_v54  ;;  %v13455_v17 = vld [vmem:[%s19479_s30 + $0xca8] sm:$0xf]  ;;  %v18023_v18 = vld [vmem:[%s19479_s30 + $0xd58] sm:$0xf0]  ;;  %v16516_v20 = vor.u32 %v18788_v12, %v16515_v11  ;;  %v11835_v22 = vld [vmem:[%s19479_s30] sm:$0xf]  ;;  %v12016_v26 = vor.u32 %v17663_v16, %v12015_v15 }
  0x4f   : > { %9259 = vmatpush.bf16.msrb.mxu2 %v15436_v59  ;;  %v14895_v21 = vld [vmem:[%s19479_s30 + $0x17e8] sm:$0xf]  ;;  %v18383_v23 = vld [vmem:[%s19479_s30 + $0x1898] sm:$0xf0]  ;;  %v13456_v27 = vor.u32 %v18023_v18, %v13455_v17  ;;  %v17618_v28 = vld [vmem:[%s19479_s30 + $0xb0] sm:$0xf0] }
  0x50   : > { %9272 = vmatpush.bf16.msrb.mxu3 %v16876_v60  ;;  %v16335_v24 = vld [vmem:[%s19479_s30 + $0x2328] sm:$0xf]  ;;  %v18743_v25 = vld [vmem:[%s19479_s30 + $0x23d8] sm:$0xf0]  ;;  %v13275_v29 = vld [vmem:[%s19479_s30 + $0xb40] sm:$0xf]  ;;  %v14896_v35 = vor.u32 %v18383_v23, %v14895_v21  ;;  %v11836_v42 = vor.u32 %v17618_v28, %v11835_v22 }
  0x51   : > { %9234 = vmatpush.bf16.msrb.mxu0 %v12376_v1  ;;  %v17978_v30 = vld [vmem:[%s19479_s30 + $0xbf0] sm:$0xf0]  ;;  %v17911_v31 = vld [vmem:[%s19479_s30 + $0x9dc] sm:$0xf]  ;;  %v13097_v32 = vld [vmem:[%s19479_s30 + $0xa8c] sm:$0xf0]  ;;  %v16336_v36 = vor.u32 %v18743_v25, %v16335_v24 }
  0x52   : > { %9247 = vmatpush.bf16.msrb.mxu1 %v13816_v2  ;;  %v18271_v33 = vld [vmem:[%s19479_s30 + $0x151c] sm:$0xf]  ;;  %v14537_v34 = vld [vmem:[%s19479_s30 + $0x15cc] sm:$0xf0]  ;;  %v14715_v37 = vld [vmem:[%s19479_s30 + $0x1680] sm:$0xf]  ;;  %v13276_v43 = vor.u32 %v17978_v30, %v13275_v29  ;;  %v13100_v47 = vor.u32 %v17911_v31, %v13097_v32 }
  0x53   : > { %9260 = vmatpush.bf16.msrb.mxu2 %v15256_v7  ;;  %v18338_v38 = vld [vmem:[%s19479_s30 + $0x1730] sm:$0xf0]  ;;  %v16155_v39 = vld [vmem:[%s19479_s30 + $0x21c0] sm:$0xf]  ;;  %v18631_v41 = vld [vmem:[%s19479_s30 + $0x205c] sm:$0xf]  ;;  %v14540_v48 = vor.u32 %v18271_v33, %v14537_v34 }
  0x54   : > { %9273 = vmatpush.bf16.msrb.mxu3 %v16696_v8  ;;  %v18698_v40 = vld [vmem:[%s19479_s30 + $0x2270] sm:$0xf0]  ;;  %v15977_v44 = vld [vmem:[%s19479_s30 + $0x210c] sm:$0xf0]  ;;  %v18991_v45 = vld [vmem:[%s19479_s30 + $0x2b9c] sm:$0xf]  ;;  %v14716_v53 = vor.u32 %v18338_v38, %v14715_v37 }
  0x55   : > { %9235 = vmatpush.bf16.msrb.mxu0 %v12196_v13  ;;  %v17417_v46 = vld [vmem:[%s19479_s30 + $0x2c4c] sm:$0xf0]  ;;  %v17866_v49 = vld [vmem:[%s19479_s30 + $0x874] sm:$0xf]  ;;  %v12917_v50 = vld [vmem:[%s19479_s30 + $0x924] sm:$0xf0]  ;;  %v16156_v54 = vor.u32 %v18698_v40, %v16155_v39  ;;  %v15980_v55 = vor.u32 %v18631_v41, %v15977_v44 }
  0x56   : > { %9248 = vmatpush.bf16.msrb.mxu1 %v13636_v14  ;;  %v18226_v51 = vld [vmem:[%s19479_s30 + $0x13b4] sm:$0xf]  ;;  %v14357_v52 = vld [vmem:[%s19479_s30 + $0x1464] sm:$0xf0]  ;;  %v17420_v56 = vor.u32 %v18991_v45, %v17417_v46  ;;  %v12920_v61 = vor.u32 %v17866_v49, %v12917_v50  ;;  %v17821_v63 = vld [vmem:[%s19479_s30 + $0x70c] sm:$0xf] }
  0x57   : > { %9261 = vmatpush.bf16.msrb.mxu2 %v15076_v19  ;;  %v18586_v57 = vld [vmem:[%s19479_s30 + $0x1ef4] sm:$0xf]  ;;  %v15797_v58 = vld [vmem:[%s19479_s30 + $0x1fa4] sm:$0xf0]  ;;  %v14360_v62 = vor.u32 %v18226_v51, %v14357_v52  ;;  %v12737_v0 = vld [vmem:[%s19479_s30 + $0x7bc] sm:$0xf0] }
  0x58   : > { %9274 = vmatpush.bf16.msrb.mxu3 %v16516_v20  ;;  %v18946_v59 = vld [vmem:[%s19479_s30 + $0x2a34] sm:$0xf]  ;;  %v17237_v60 = vld [vmem:[%s19479_s30 + $0x2ae4] sm:$0xf0]  ;;  %v18181_v1 = vld [vmem:[%s19479_s30 + $0x124c] sm:$0xf]  ;;  %v15800_v3 = vor.u32 %v18586_v57, %v15797_v58  ;;  %v12740_v9 = vor.u32 %v17821_v63, %v12737_v0 }
  0x59   : > { %9236 = vmatpush.bf16.msrb.mxu0 %v12016_v26  ;;  %v14177_v2 = vld [vmem:[%s19479_s30 + $0x12fc] sm:$0xf0]  ;;  %v17240_v4 = vor.u32 %v18946_v59, %v17237_v60  ;;  %v18541_v5 = vld [vmem:[%s19479_s30 + $0x1d8c] sm:$0xf]  ;;  %v17776_v11 = vld [vmem:[%s19479_s30 + $0x5a4] sm:$0xf] }
  0x5a   : > { %9249 = vmatpush.bf16.msrb.mxu1 %v13456_v27  ;;  %v15617_v6 = vld [vmem:[%s19479_s30 + $0x1e3c] sm:$0xf0]  ;;  %v18901_v7 = vld [vmem:[%s19479_s30 + $0x28cc] sm:$0xf]  ;;  %v14180_v10 = vor.u32 %v18181_v1, %v14177_v2  ;;  %v12557_v12 = vld [vmem:[%s19479_s30 + $0x654] sm:$0xf0] }
  0x5b   : > { %9262 = vmatpush.bf16.msrb.mxu2 %v14896_v35  ;;  %v17057_v8 = vld [vmem:[%s19479_s30 + $0x297c] sm:$0xf0]  ;;  %v18136_v13 = vld [vmem:[%s19479_s30 + $0x10e4] sm:$0xf]  ;;  %v13997_v14 = vld [vmem:[%s19479_s30 + $0x1194] sm:$0xf0]  ;;  %v15620_v15 = vor.u32 %v18541_v5, %v15617_v6  ;;  %v12560_v21 = vor.u32 %v17776_v11, %v12557_v12 }
  0x5c   : > { %9275 = vmatpush.bf16.msrb.mxu3 %v16336_v36  ;;  %v17060_v16 = vor.u32 %v18901_v7, %v17057_v8  ;;  %v18496_v17 = vld [vmem:[%s19479_s30 + $0x1c24] sm:$0xf]  ;;  %v15437_v18 = vld [vmem:[%s19479_s30 + $0x1cd4] sm:$0xf0]  ;;  %v14000_v22 = vor.u32 %v18136_v13, %v13997_v14  ;;  %v17731_v23 = vld [vmem:[%s19479_s30 + $0x43c] sm:$0xf] }
  0x5d   : > { %9237 = vmatpush.bf16.msrb.mxu0 %v11836_v42  ;;  %v18856_v19 = vld [vmem:[%s19479_s30 + $0x2764] sm:$0xf]  ;;  %v16877_v20 = vld [vmem:[%s19479_s30 + $0x2814] sm:$0xf0]  ;;  %v12377_v24 = vld [vmem:[%s19479_s30 + $0x4ec] sm:$0xf0]  ;;  %v15440_v27 = vor.u32 %v18496_v17, %v15437_v18 }
  0x5e   : > { %9250 = vmatpush.bf16.msrb.mxu1 %v13276_v43  ;;  %v18091_v25 = vld [vmem:[%s19479_s30 + $0xf7c] sm:$0xf]  ;;  %v13817_v26 = vld [vmem:[%s19479_s30 + $0x102c] sm:$0xf0]  ;;  %v16880_v28 = vor.u32 %v18856_v19, %v16877_v20  ;;  %v12380_v29 = vor.u32 %v17731_v23, %v12377_v24  ;;  %v17686_v31 = vld [vmem:[%s19479_s30 + $0x2d4] sm:$0xf] }
  0x5f   : > { %9263 = vmatpush.bf16.msrb.mxu2 %v14716_v53  ;;  %v13820_v30 = vor.u32 %v18091_v25, %v13817_v26  ;;  %v12197_v32 = vld [vmem:[%s19479_s30 + $0x384] sm:$0xf0]  ;;  %v18046_v33 = vld [vmem:[%s19479_s30 + $0xe14] sm:$0xf]  ;;  %v18451_v37 = vld [vmem:[%s19479_s30 + $0x1abc] sm:$0xf] }
  0x60   : > { %9276 = vmatpush.bf16.msrb.mxu3 %v16156_v54  ;;  %v13637_v34 = vld [vmem:[%s19479_s30 + $0xec4] sm:$0xf0]  ;;  %v12200_v35 = vor.u32 %v17686_v31, %v12197_v32  ;;  %v15257_v38 = vld [vmem:[%s19479_s30 + $0x1b6c] sm:$0xf0]  ;;  %v18811_v39 = vld [vmem:[%s19479_s30 + $0x25fc] sm:$0xf] }
  0x61   : > { %9282 = vmatpush.bf16.msra.mxu0 %v13100_v47  ;;  %v13640_v36 = vor.u32 %v18046_v33, %v13637_v34  ;;  %v15260_v40 = vor.u32 %v18451_v37, %v15257_v38  ;;  %v16697_v41 = vld [vmem:[%s19479_s30 + $0x26ac] sm:$0xf0]  ;;  %v17641_v43 = vld [vmem:[%s19479_s30 + $0x16c] sm:$0xf]  ;;  %v12017_v44 = vld [vmem:[%s19479_s30 + $0x21c] sm:$0xf0] }
  0x62   : > { %9295 = vmatpush.bf16.msra.mxu1 %v14540_v48  ;;  %v16700_v42 = vor.u32 %v18811_v39, %v16697_v41  ;;  %v12020_v45 = vor.u32 %v17641_v43, %v12017_v44  ;;  %v18001_v46 = vld [vmem:[%s19479_s30 + $0xcac] sm:$0xf]  ;;  %v13457_v47 = vld [vmem:[%s19479_s30 + $0xd5c] sm:$0xf0]  ;;  %v18406_v49 = vld [vmem:[%s19479_s30 + $0x1954] sm:$0xf] }
  0x63   : > { %9308 = vmatpush.bf16.msra.mxu2 %v15980_v55  ;;  %v13460_v48 = vor.u32 %v18001_v46, %v13457_v47  ;;  %v15077_v50 = vld [vmem:[%s19479_s30 + $0x1a04] sm:$0xf0]  ;;  %v18766_v51 = vld [vmem:[%s19479_s30 + $0x2494] sm:$0xf]  ;;  %v17596_v55 = vld [vmem:[%s19479_s30 + $0x4] sm:$0xf] }
  0x64   : > { %9321 = vmatpush.bf16.msra.mxu3 %v17420_v56  ;;  %v15080_v52 = vor.u32 %v18406_v49, %v15077_v50  ;;  %v16517_v53 = vld [vmem:[%s19479_s30 + $0x2544] sm:$0xf0]  ;;  %v11837_v56 = vld [vmem:[%s19479_s30 + $0xb4] sm:$0xf0]  ;;  %v17956_v57 = vld [vmem:[%s19479_s30 + $0xb44] sm:$0xf] }
  0x65   : > { %9283 = vmatpush.bf16.msra.mxu0 %v12920_v61  ;;  %v16520_v54 = vor.u32 %v18766_v51, %v16517_v53  ;;  %v11840_v58 = vor.u32 %v17596_v55, %v11837_v56  ;;  %v13277_v59 = vld [vmem:[%s19479_s30 + $0xbf4] sm:$0xf0]  ;;  %v18361_v61 = vld [vmem:[%s19479_s30 + $0x17ec] sm:$0xf]  ;;  %v16337_v1 = vld [vmem:[%s19479_s30 + $0x23dc] sm:$0xf0] }
  0x66   : > { %9296 = vmatpush.bf16.msra.mxu1 %v14360_v62  ;;  %v13280_v60 = vor.u32 %v17956_v57, %v13277_v59  ;;  %v14897_v62 = vld [vmem:[%s19479_s30 + $0x189c] sm:$0xf0]  ;;  %v18721_v0 = vld [vmem:[%s19479_s30 + $0x232c] sm:$0xf]  ;;  %v18676_v6 = vld [vmem:[%s19479_s30 + $0x21c4] sm:$0xf] }
  0x67   : > { %9309 = vmatpush.bf16.msra.mxu2 %v15800_v3  ;;  %v14900_v63 = vor.u32 %v18361_v61, %v14897_v62  ;;  %v16340_v2 = vor.u32 %v18721_v0, %v16337_v1  ;;  %v18316_v3 = vld [vmem:[%s19479_s30 + $0x1684] sm:$0xf]  ;;  %v16157_v7 = vld [vmem:[%s19479_s30 + $0x2274] sm:$0xf0]  ;;  %v13103_v14 = vld [vmem:[%s19479_s30 + $0x9e0] sm:$0xf] }
  0x68   : > { %9322 = vmatpush.bf16.msra.mxu3 %v17240_v4  ;;  %v14717_v4 = vld [vmem:[%s19479_s30 + $0x1734] sm:$0xf0]  ;;  %v16160_v8 = vor.u32 %v18676_v6, %v16157_v7  ;;  %v17934_v17 = vld [vmem:[%s19479_s30 + $0xa90] sm:$0xf0]  ;;  %v14543_v18 = vld [vmem:[%s19479_s30 + $0x1520] sm:$0xf] }
  0x69   : > { %9284 = vmatpush.bf16.msra.mxu0 %v12740_v9  ;;  %v14720_v5 = vor.u32 %v18316_v3, %v14717_v4  ;;  %v318_v9 = vld [vmem:[#allocation6] sm:$0xf]  ;;  %v18294_v19 = vld [vmem:[%s19479_s30 + $0x15d0] sm:$0xf0]  ;;  %v13104_v24 = vor.u32 %v17934_v17, %v13103_v14  ;;  %v12923_v26 = vld [vmem:[%s19479_s30 + $0x878] sm:$0xf] }
  0x6a   : > { %9297 = vmatpush.bf16.msra.mxu1 %v14180_v10  ;;  %v320_v10 = vperm.slane %v318_v9, 0  ;;  %v321_v11 = vperm.slane %v318_v9, 1  ;;  %v323_v23 = vperm.slane %v318_v9, 3  ;;  %v14544_v25 = vor.u32 %v18294_v19, %v14543_v18  ;;  %v18249_v31 = vld [vmem:[%s19479_s30 + $0x1468] sm:$0xf0]  ;;  %s19921_s6 = scalar_lea.vmem [#allocation9], %s19894_s27 }
  0x6b   : > { %9310 = vmatpush.bf16.msra.mxu2 %v15620_v15  ;;  %v17423_v37 = vld [vmem:[%s19479_s30 + $0x2ba0] sm:$0xf]  ;;  %v19014_v41 = vld [vmem:[%s19479_s30 + $0x2c50] sm:$0xf0]  ;;  %v17844_v43 = vld [vmem:[%s19479_s30 + $0x7c0] sm:$0xf0] }
  0x6c   : > { %9323 = vmatpush.bf16.msra.mxu3 %v17060_v16  ;;  %v14183_v44 = vld [vmem:[%s19479_s30 + $0x1250] sm:$0xf]  ;;  %v17424_v49 = vor.u32 %v19014_v41, %v17423_v37  ;;  %v15803_v51 = vld [vmem:[%s19479_s30 + $0x1ef8] sm:$0xf]  ;;  %v18969_v57 = vld [vmem:[%s19479_s30 + $0x2ae8] sm:$0xf0] }
  0x6d   : > { %9285 = vmatpush.bf16.msra.mxu0 %v12560_v21  ;;  %v17243_v56 = vld [vmem:[%s19479_s30 + $0x2a38] sm:$0xf]  ;;  %v17799_v59 = vld [vmem:[%s19479_s30 + $0x658] sm:$0xf0]  ;;  %v15623_v0 = vld [vmem:[%s19479_s30 + $0x1d90] sm:$0xf] }
  0x6e   : > { %9298 = vmatpush.bf16.msra.mxu1 %v14000_v22  ;;  %v322_v22 = vperm.slane %v318_v9, 2  ;;  %v18159_v61 = vld [vmem:[%s19479_s30 + $0x1198] sm:$0xf0]  ;;  %v18564_v3 = vld [vmem:[%s19479_s30 + $0x1e40] sm:$0xf0]  ;;  %p20122_p5 = scmp.lt.s32.totalorder %s303_s8, 89 }
  0x6f   : > { %9311 = vmatpush.bf16.msra.mxu2 %v15440_v27  ;;  %v17889_v27 = vld [vmem:[%s19479_s30 + $0x928] sm:$0xf0]  ;;  %v17063_v4 = vld [vmem:[%s19479_s30 + $0x28d0] sm:$0xf]  ;;  %v12383_v6 = vld [vmem:[%s19479_s30 + $0x440] sm:$0xf] }
  0x70   : > { %9324 = vmatpush.bf16.msra.mxu3 %v16880_v28  ;;  %v12924_v34 = vor.u32 %v17889_v27, %v12923_v26  ;;  %v17754_v7 = vld [vmem:[%s19479_s30 + $0x4f0] sm:$0xf0]  ;;  %v16883_v14 = vld [vmem:[%s19479_s30 + $0x2768] sm:$0xf]  ;;  %v12203_v18 = vld [vmem:[%s19479_s30 + $0x2d8] sm:$0xf] }
  0x71   : > { %9286 = vmatpush.bf16.msra.mxu0 %v12380_v29  ;;  %v18114_v9 = vld [vmem:[%s19479_s30 + $0x1030] sm:$0xf0]  ;;  %v17709_v19 = vld [vmem:[%s19479_s30 + $0x388] sm:$0xf0]  ;;  %v16703_v26 = vld [vmem:[%s19479_s30 + $0x2600] sm:$0xf] }
  0x72   : > { %9299 = vmatpush.bf16.msra.mxu1 %v13820_v30  ;;  %v14363_v30 = vld [vmem:[%s19479_s30 + $0x13b8] sm:$0xf]  ;;  %v18834_v27 = vld [vmem:[%s19479_s30 + $0x26b0] sm:$0xf0]  ;;  %v18789_v41 = vld [vmem:[%s19479_s30 + $0x2548] sm:$0xf0] }
  0x73   : > { %9312 = vmatpush.bf16.msra.mxu2 %v15260_v40  ;;  %v14364_v40 = vor.u32 %v18249_v31, %v14363_v30  ;;  %v12204_v30 = vor.u32 %v17709_v19, %v12203_v18  ;;  %v16704_v37 = vor.u32 %v18834_v27, %v16703_v26  ;;  %v12745_v19 = vld [vmem:[%s19479_s30 + $0x7c4] sm:$0xf0]  ;;  %v18947_v26 = vld [vmem:[%s19479_s30 + $0x2a3c] sm:$0xf]  ;;  %v17245_v27 = vld [vmem:[%s19479_s30 + $0x2aec] sm:$0xf0] }
  0x74   : > { %9325 = vmatpush.bf16.msra.mxu3 %v16700_v42  ;;  %v12743_v42 = vld [vmem:[%s19479_s30 + $0x710] sm:$0xf]  ;;  %s22931_s8 = smov (!%p20122_p5, %s303_s8), 89 }
  0x75   : > { %9287 = vmatpush.bf16.msra.mxu0 %v12200_v35  ;;  %v15983_v35 = vld [vmem:[%s19479_s30 + $0x2060] sm:$0xf]  ;;  %v12744_v50 = vor.u32 %v17844_v43, %v12743_v42  ;;  %s11828_s22 = sshll.u32 %s22931_s8, 1 }
  0x76   : > { %9300 = vmatpush.bf16.msra.mxu1 %v13640_v36  ;;  %v18654_v36 = vld [vmem:[%s19479_s30 + $0x2110] sm:$0xf0]  ;;  %s20170_s21 = scalar_lea.vmem %s22919_s5, %s11828_s22 }
  0x77   : > { %9313 = vmatpush.bf16.msra.mxu2 %v15080_v52  ;;  %v18609_v52 = vld [vmem:[%s19479_s30 + $0x1fa8] sm:$0xf0] }
  0x78   : > { %9326 = vmatpush.bf16.msra.mxu3 %v16520_v54  ;;  %v15804_v62 = vor.u32 %v18609_v52, %v15803_v51  ;;  %v18272_v52 = vld [vmem:[%s19479_s30 + $0x1524] sm:$0xf] }
  0x79   : > { %9288 = vmatpush.bf16.msra.mxu0 %v12020_v45  ;;  %v18204_v45 = vld [vmem:[%s19479_s30 + $0x1300] sm:$0xf0] }
  0x7a   : > { %9301 = vmatpush.bf16.msra.mxu1 %v13460_v48  ;;  %v15984_v48 = vor.u32 %v18654_v36, %v15983_v35  ;;  %v14184_v55 = vor.u32 %v18204_v45, %v14183_v44  ;;  %v18024_v35 = vld [vmem:[%s19479_s30 + $0xd60] sm:$0xf0]  ;;  %v11843_v44 = vld [vmem:[%s19479_s30 + $0x8] sm:$0xf]  ;;  %v17619_v45 = vld [vmem:[%s19479_s30 + $0xb8] sm:$0xf0] }
  0x7b   : > { %9314 = vmatpush.bf16.msra.mxu2 %v14900_v63  ;;  %v17244_v63 = vor.u32 %v18969_v57, %v17243_v56  ;;  %v14903_v56 = vld [vmem:[%s19479_s30 + $0x17f0] sm:$0xf]  ;;  %v18384_v57 = vld [vmem:[%s19479_s30 + $0x18a0] sm:$0xf0] }
  0x7c   : > { %9327 = vmatpush.bf16.msra.mxu3 %v16340_v2 }
  0x7d   : > { %9289 = vmatpush.bf16.msra.mxu0 %v11840_v58  ;;  %v12563_v58 = vld [vmem:[%s19479_s30 + $0x5a8] sm:$0xf] }
  0x7e   : > { %9302 = vmatpush.bf16.msra.mxu1 %v13280_v60  ;;  %v14003_v60 = vld [vmem:[%s19479_s30 + $0x10e8] sm:$0xf]  ;;  %v12564_v1 = vor.u32 %v17799_v59, %v12563_v58  ;;  %v16343_v58 = vld [vmem:[%s19479_s30 + $0x2330] sm:$0xf]  ;;  %v18744_v59 = vld [vmem:[%s19479_s30 + $0x23e0] sm:$0xf0] }
  0x7f   : > { %9315 = vmatpush.bf16.msra.mxu2 %v14720_v5  ;;  %v14004_v2 = vor.u32 %v18159_v61, %v14003_v60  ;;  %v18924_v5 = vld [vmem:[%s19479_s30 + $0x2980] sm:$0xf0]  ;;  %v11844_v60 = vor.u32 %v17619_v45, %v11843_v44  ;;  %v12385_v45 = vld [vmem:[%s19479_s30 + $0x4f4] sm:$0xf0] }
  0x80   : > { %9328 = vmatpush.bf16.msra.mxu3 %v16160_v8  ;;  %v13823_v8 = vld [vmem:[%s19479_s30 + $0xf80] sm:$0xf]  ;;  %v17732_v44 = vld [vmem:[%s19479_s30 + $0x444] sm:$0xf] }
  0x81   : > { %v13824_v17 = vor.u32 %v18114_v9, %v13823_v8  ;;  %v16163_v8 = vld [vmem:[%s19479_s30 + $0x21c8] sm:$0xf]  ;;  %v18699_v9 = vld [vmem:[%s19479_s30 + $0x2278] sm:$0xf0] }
  0x82   : > { %v16164_v18 = vor.u32 %v18699_v9, %v16163_v8  ;;  %v18002_v8 = vld [vmem:[%s19479_s30 + $0xcb4] sm:$0xf]  ;;  %v13465_v9 = vld [vmem:[%s19479_s30 + $0xd64] sm:$0xf0] }
  0xbc   : > { %v349_v12 = vpop.f32.mrf.mxu0  ;;  %v369_v13 = vpop.f32.mrf.mxu1 }
  0xbd   : > { %v350_v15 = vadd.f32 %v349_v12, %v320_v10  ;;  %v370_v16 = vadd.f32 %v369_v13, %v321_v11  ;;  %v15624_v10 = vor.u32 %v18564_v3, %v15623_v0  ;;  %v17064_v11 = vor.u32 %v18924_v5, %v17063_v4  ;;  %v15443_v12 = vld [vmem:[%s19479_s30 + $0x1c28] sm:$0xf]  ;;  %v18519_v13 = vld [vmem:[%s19479_s30 + $0x1cd8] sm:$0xf0]  ;;  %v14365_v5 = vld [vmem:[%s19479_s30 + $0x146c] sm:$0xf0] }
  0xbe   : > { %v17867_v0 = vld [vmem:[%s19479_s30 + $0x87c] sm:$0xf]  ;;  %v14904_v3 = vor.u32 %v18384_v57, %v14903_v56  ;;  %v16344_v4 = vor.u32 %v18744_v59, %v16343_v58  ;;  %v12388_v56 = vor.u32 %v17732_v44, %v12385_v45  ;;  %v12205_v59 = vld [vmem:[%s19479_s30 + $0x38c] sm:$0xf0]  ;;  %v18317_v44 = vld [vmem:[%s19479_s30 + $0x168c] sm:$0xf] }
  0xbf   : > { %v412_v20 = vmax.f32 %v350_v15, 0.0  ;;  %v413_v21 = vmax.f32 %v370_v16, 0.0  ;;  %v18879_v15 = vld [vmem:[%s19479_s30 + $0x2818] sm:$0xf0]  ;;  %v12384_v16 = vor.u32 %v17754_v7, %v12383_v6  ;;  %v14723_v6 = vld [vmem:[%s19479_s30 + $0x1688] sm:$0xf] }
  0xc0   : > { %v18339_v7 = vld [vmem:[%s19479_s30 + $0x1738] sm:$0xf0]  ;;  %v14725_v45 = vld [vmem:[%s19479_s30 + $0x173c] sm:$0xf0] }
  0xc1   : > { %v19627_v28 = vpack.c.bf16 %v412_v20, %v412_v20  ;;  %v19629_v29 = vpack.c.bf16 %v413_v21, %v413_v21  ;;  %v13643_v20 = vld [vmem:[%s19479_s30 + $0xe18] sm:$0xf]  ;;  %v18069_v21 = vld [vmem:[%s19479_s30 + $0xec8] sm:$0xf0]  ;;  %v17687_v58 = vld [vmem:[%s19479_s30 + $0x2dc] sm:$0xf] }
  0xc2   : > { %v13644_v31 = vor.u32 %v18069_v21, %v13643_v20  ;;  %v18182_v20 = vld [vmem:[%s19479_s30 + $0x1254] sm:$0xf]  ;;  %v14185_v21 = vld [vmem:[%s19479_s30 + $0x1304] sm:$0xf0] }
  0xc3   : > { %v389_v32 = vpop.f32.mrf.mxu2  ;;  %v409_v33 = vpop.f32.mrf.mxu3  ;;  %9238 = vmatmul.bf16.vlgmr.msrb.gmra.mxu0 %v19627_v28  ;;  %9251 = vmatmul.bf16.vlgmr.msrb.gmra.mxu1 %v19629_v29 }
  0xc4   : > { %v390_v38 = vadd.f32 %v389_v32, %v322_v22  ;;  %v410_v39 = vadd.f32 %v409_v33, %v323_v23  ;;  %9334 = vmatpush.bf16.msrb.mxu0 %v13104_v24  ;;  %9347 = vmatpush.bf16.msrb.mxu1 %v14544_v25  ;;  %v15444_v22 = vor.u32 %v18519_v13, %v15443_v12  ;;  %v15263_v24 = vld [vmem:[%s19479_s30 + $0x1ac0] sm:$0xf]  ;;  %v18474_v25 = vld [vmem:[%s19479_s30 + $0x1b70] sm:$0xf0]  ;;  %v12023_v32 = vld [vmem:[%s19479_s30 + $0x170] sm:$0xf] }
  0xc5   : > { %v16884_v23 = vor.u32 %v18879_v15, %v16883_v14  ;;  %v17664_v33 = vld [vmem:[%s19479_s30 + $0x220] sm:$0xf0]  ;;  %v15264_v36 = vor.u32 %v18474_v25, %v15263_v24  ;;  %v17425_v13 = vld [vmem:[%s19479_s30 + $0x2c54] sm:$0xf0]  ;;  %v18587_v24 = vld [vmem:[%s19479_s30 + $0x1efc] sm:$0xf] }
  0xc6   : > { %v414_v46 = vmax.f32 %v390_v38, 0.0  ;;  %v415_v47 = vmax.f32 %v410_v39, 0.0  ;;  %v15083_v38 = vld [vmem:[%s19479_s30 + $0x1958] sm:$0xf]  ;;  %v18429_v39 = vld [vmem:[%s19479_s30 + $0x1a08] sm:$0xf0]  ;;  %v12024_v42 = vor.u32 %v17664_v33, %v12023_v32 }
  0xc7   : > { %v18992_v12 = vld [vmem:[%s19479_s30 + $0x2ba4] sm:$0xf]  ;;  %v15805_v25 = vld [vmem:[%s19479_s30 + $0x1fac] sm:$0xf0]  ;;  %v17777_v32 = vld [vmem:[%s19479_s30 + $0x5ac] sm:$0xf] }
  0xc8   : > { %v19645_v53 = vpack.c.bf16 %v414_v46, %v414_v46  ;;  %v19647_v54 = vpack.c.bf16 %v415_v47, %v415_v47  ;;  %9335 = vmatpush.bf16.msrb.mxu0 %v12924_v34  ;;  %9348 = vmatpush.bf16.msrb.mxu1 %v14364_v40  ;;  %v13463_v34 = vld [vmem:[%s19479_s30 + $0xcb0] sm:$0xf]  ;;  %v16523_v40 = vld [vmem:[%s19479_s30 + $0x2498] sm:$0xf]  ;;  %v13283_v46 = vld [vmem:[%s19479_s30 + $0xb48] sm:$0xf] }
  0xc9   : > { %v13464_v43 = vor.u32 %v18024_v35, %v13463_v34  ;;  %v17979_v47 = vld [vmem:[%s19479_s30 + $0xbf8] sm:$0xf0]  ;;  %v16524_v51 = vor.u32 %v18789_v41, %v16523_v40  ;;  %v12565_v33 = vld [vmem:[%s19479_s30 + $0x65c] sm:$0xf0]  ;;  %v18137_v34 = vld [vmem:[%s19479_s30 + $0x10ec] sm:$0xf] }
  0xca   : > { %9264 = vmatmul.bf16.vlgmr.msrb.gmra.mxu2 %v19645_v53  ;;  %9277 = vmatmul.bf16.vlgmr.msrb.gmra.mxu3 %v19647_v54  ;;  %v13284_v61 = vor.u32 %v17979_v47, %v13283_v46  ;;  %v14005_v35 = vld [vmem:[%s19479_s30 + $0x119c] sm:$0xf0]  ;;  %v18902_v40 = vld [vmem:[%s19479_s30 + $0x28d4] sm:$0xf]  ;;  %v17065_v41 = vld [vmem:[%s19479_s30 + $0x2984] sm:$0xf0] }
  0xcb   : > { %9360 = vmatpush.bf16.msrb.mxu2 %v15984_v48  ;;  %9373 = vmatpush.bf16.msrb.mxu3 %v17424_v49  ;;  %v17912_v48 = vld [vmem:[%s19479_s30 + $0x9e4] sm:$0xf]  ;;  %v13105_v49 = vld [vmem:[%s19479_s30 + $0xa94] sm:$0xf0] }
  0xcc   : > { %9336 = vmatpush.bf16.msrb.mxu0 %v12744_v50  ;;  %9349 = vmatpush.bf16.msrb.mxu1 %v14184_v55  ;;  %v15084_v50 = vor.u32 %v18429_v39, %v15083_v38  ;;  %v14545_v55 = vld [vmem:[%s19479_s30 + $0x15d4] sm:$0xf0]  ;;  %v18542_v38 = vld [vmem:[%s19479_s30 + $0x1d94] sm:$0xf]  ;;  %v15625_v39 = vld [vmem:[%s19479_s30 + $0x1e44] sm:$0xf0] }
  0xcd   : > { %v18092_v46 = vld [vmem:[%s19479_s30 + $0xf84] sm:$0xf]  ;;  %v13825_v47 = vld [vmem:[%s19479_s30 + $0x1034] sm:$0xf0] }
  0xce   : > { %v13828_v57 = vor.u32 %v18092_v46, %v13825_v47  ;;  %v18677_v46 = vld [vmem:[%s19479_s30 + $0x21cc] sm:$0xf]  ;;  %v16165_v47 = vld [vmem:[%s19479_s30 + $0x227c] sm:$0xf0] }
  0xcf   : > { %9361 = vmatpush.bf16.msrb.mxu2 %v15804_v62  ;;  %9374 = vmatpush.bf16.msrb.mxu3 %v17244_v63  ;;  %v13108_v62 = vor.u32 %v17912_v48, %v13105_v49  ;;  %v14548_v63 = vor.u32 %v18272_v52, %v14545_v55  ;;  %v15628_v48 = vor.u32 %v18542_v38, %v15625_v39  ;;  %v18857_v52 = vld [vmem:[%s19479_s30 + $0x276c] sm:$0xf]  ;;  %v16885_v55 = vld [vmem:[%s19479_s30 + $0x281c] sm:$0xf0]  ;;  %v17890_v39 = vld [vmem:[%s19479_s30 + $0x930] sm:$0xf0] }
  0xd0   : > { %9337 = vmatpush.bf16.msrb.mxu0 %v12564_v1  ;;  %9350 = vmatpush.bf16.msrb.mxu1 %v14004_v2  ;;  %v12925_v1 = vld [vmem:[%s19479_s30 + $0x92c] sm:$0xf0]  ;;  %v18227_v2 = vld [vmem:[%s19479_s30 + $0x13bc] sm:$0xf]  ;;  %v17068_v49 = vor.u32 %v18902_v40, %v17065_v41  ;;  %v12931_v38 = vld [vmem:[%s19479_s30 + $0x880] sm:$0xf] }
  0xd1   : > { %v12928_v14 = vor.u32 %v17867_v0, %v12925_v1  ;;  %v14368_v15 = vor.u32 %v18227_v2, %v14365_v5  ;;  %v18452_v0 = vld [vmem:[%s19479_s30 + $0x1ac4] sm:$0xf]  ;;  %v15265_v1 = vld [vmem:[%s19479_s30 + $0x1b74] sm:$0xf0]  ;;  %v14371_v40 = vld [vmem:[%s19479_s30 + $0x13c0] sm:$0xf] }
  0xd2   : > { %v18812_v2 = vld [vmem:[%s19479_s30 + $0x2604] sm:$0xf] }
  0xd3   : > { %9362 = vmatpush.bf16.msrb.mxu2 %v15624_v10  ;;  %9375 = vmatpush.bf16.msrb.mxu3 %v17064_v11  ;;  %v18632_v10 = vld [vmem:[%s19479_s30 + $0x2064] sm:$0xf]  ;;  %v15985_v11 = vld [vmem:[%s19479_s30 + $0x2114] sm:$0xf0] }
  0xd4   : > { %9290 = vmatmul.bf16.vlgmr.msra.gmra.mxu0 %v19627_v28  ;;  %9303 = vmatmul.bf16.vlgmr.msra.gmra.mxu1 %v19629_v29 }
  0xd5   : > { %9338 = vmatpush.bf16.msrb.mxu0 %v12384_v16  ;;  %9351 = vmatpush.bf16.msrb.mxu1 %v13824_v17  ;;  %v17822_v16 = vld [vmem:[%s19479_s30 + $0x714] sm:$0xf]  ;;  %v14724_v17 = vor.u32 %v18339_v7, %v14723_v6  ;;  %v12025_v7 = vld [vmem:[%s19479_s30 + $0x224] sm:$0xf0] }
  0xd6   : > { %v17642_v6 = vld [vmem:[%s19479_s30 + $0x174] sm:$0xf] }
  0xd7   : > { %9363 = vmatpush.bf16.msrb.mxu2 %v15444_v22  ;;  %9376 = vmatpush.bf16.msrb.mxu3 %v16884_v23  ;;  %v15988_v22 = vor.u32 %v18632_v10, %v15985_v11  ;;  %v17428_v23 = vor.u32 %v18992_v12, %v17425_v13  ;;  %v15268_v10 = vor.u32 %v18452_v0, %v15265_v1  ;;  %v18407_v12 = vld [vmem:[%s19479_s30 + $0x195c] sm:$0xf]  ;;  %v15085_v13 = vld [vmem:[%s19479_s30 + $0x1a0c] sm:$0xf0]  ;;  %v15811_v0 = vld [vmem:[%s19479_s30 + $0x1f00] sm:$0xf] }
  0xd8   : > { %v18610_v1 = vld [vmem:[%s19479_s30 + $0x1fb0] sm:$0xf0] }
  0xd9   : > { %9339 = vmatpush.bf16.msrb.mxu0 %v12204_v30  ;;  %9352 = vmatpush.bf16.msrb.mxu1 %v13644_v31  ;;  %v12748_v30 = vor.u32 %v17822_v16, %v12745_v19  ;;  %v14188_v31 = vor.u32 %v18182_v20, %v14185_v21  ;;  %v12028_v16 = vor.u32 %v17642_v6, %v12025_v7  ;;  %v11845_v19 = vld [vmem:[%s19479_s30 + $0xbc] sm:$0xf0]  ;;  %v17957_v20 = vld [vmem:[%s19479_s30 + $0xb4c] sm:$0xf]  ;;  %v12571_v6 = vld [vmem:[%s19479_s30 + $0x5b0] sm:$0xf] }
  0xda   : > { %9316 = vmatmul.bf16.vlgmr.msra.gmra.mxu2 %v19645_v53  ;;  %9329 = vmatmul.bf16.vlgmr.msra.gmra.mxu3 %v19647_v54  ;;  %v13285_v21 = vld [vmem:[%s19479_s30 + $0xbfc] sm:$0xf0]  ;;  %v17800_v7 = vld [vmem:[%s19479_s30 + $0x660] sm:$0xf0] }
  0xdb   : > { %9364 = vmatpush.bf16.msrb.mxu2 %v15264_v36  ;;  %9377 = vmatpush.bf16.msrb.mxu3 %v16704_v37  ;;  %v15808_v36 = vor.u32 %v18587_v24, %v15805_v25  ;;  %v17248_v37 = vor.u32 %v18947_v26, %v17245_v27  ;;  %v15088_v24 = vor.u32 %v18407_v12, %v15085_v13  ;;  %v14551_v26 = vld [vmem:[%s19479_s30 + $0x1528] sm:$0xf]  ;;  %v18295_v27 = vld [vmem:[%s19479_s30 + $0x15d8] sm:$0xf0]  ;;  %v15631_v12 = vld [vmem:[%s19479_s30 + $0x1d98] sm:$0xf] }
  0xdc   : > { %v18565_v13 = vld [vmem:[%s19479_s30 + $0x1e48] sm:$0xf0] }
  0xdd   : > { %9340 = vmatpush.bf16.msrb.mxu0 %v12024_v42  ;;  %9353 = vmatpush.bf16.msrb.mxu1 %v13464_v43  ;;  %v12568_v42 = vor.u32 %v17777_v32, %v12565_v33  ;;  %v14008_v43 = vor.u32 %v18137_v34, %v14005_v35  ;;  %v18722_v32 = vld [vmem:[%s19479_s30 + $0x2334] sm:$0xf]  ;;  %v16345_v33 = vld [vmem:[%s19479_s30 + $0x23e4] sm:$0xf0]  ;;  %v13288_v35 = vor.u32 %v17957_v20, %v13285_v21 }
  0xde   : > { %v15632_v20 = vor.u32 %v18565_v13, %v15631_v12  ;;  %v17868_v12 = vld [vmem:[%s19479_s30 + $0x884] sm:$0xf]  ;;  %v12933_v13 = vld [vmem:[%s19479_s30 + $0x934] sm:$0xf0] }
  0xdf   : > { %9365 = vmatpush.bf16.msrb.mxu2 %v15084_v50  ;;  %9378 = vmatpush.bf16.msrb.mxu3 %v16524_v51  ;;  %v18497_v50 = vld [vmem:[%s19479_s30 + $0x1c2c] sm:$0xf]  ;;  %v15445_v51 = vld [vmem:[%s19479_s30 + $0x1cdc] sm:$0xf0] }
  0xe1   : > { %9341 = vmatpush.bf16.msrb.mxu0 %v11844_v60  ;;  %9354 = vmatpush.bf16.msrb.mxu1 %v13284_v61  ;;  %v18047_v60 = vld [vmem:[%s19479_s30 + $0xe1c] sm:$0xf]  ;;  %v13645_v61 = vld [vmem:[%s19479_s30 + $0xecc] sm:$0xf0] }
  0xe2   : > { %v13648_v5 = vor.u32 %v18047_v60, %v13645_v61 }
  0xe3   : > { %9366 = vmatpush.bf16.msrb.mxu2 %v14904_v3  ;;  %9379 = vmatpush.bf16.msrb.mxu3 %v16344_v4  ;;  %v16705_v3 = vld [vmem:[%s19479_s30 + $0x26b4] sm:$0xf0]  ;;  %v12208_v4 = vor.u32 %v17687_v58, %v12205_v59  ;;  %v17845_v59 = vld [vmem:[%s19479_s30 + $0x7c8] sm:$0xf0] }
  0xe4   : > { %9342 = vmatmul.bf16.vlgmr.msrb.gmra.mxu0 %v19627_v28  ;;  %9355 = vmatmul.bf16.vlgmr.msrb.gmra.mxu1 %v19629_v29  ;;  %v16708_v11 = vor.u32 %v18812_v2, %v16705_v3  ;;  %v12751_v58 = vld [vmem:[%s19479_s30 + $0x718] sm:$0xf]  ;;  %v17251_v2 = vld [vmem:[%s19479_s30 + $0x2a40] sm:$0xf]  ;;  %v18970_v3 = vld [vmem:[%s19479_s30 + $0x2af0] sm:$0xf0] }
  0xe5   : > { %9386 = vmatpush.bf16.msra.mxu0 %v13108_v62  ;;  %9399 = vmatpush.bf16.msra.mxu1 %v14548_v63  ;;  %v15448_v62 = vor.u32 %v18497_v50, %v15445_v51  ;;  %v16888_v63 = vor.u32 %v18857_v52, %v16885_v55  ;;  %v17431_v50 = vld [vmem:[%s19479_s30 + $0x2ba8] sm:$0xf]  ;;  %v19015_v51 = vld [vmem:[%s19479_s30 + $0x2c58] sm:$0xf0]  ;;  %v12932_v52 = vor.u32 %v17890_v39, %v12931_v38 }
  0xe6   : > { %v17432_v61 = vor.u32 %v19015_v51, %v17431_v50  ;;  %v15271_v38 = vld [vmem:[%s19479_s30 + $0x1ac8] sm:$0xf]  ;;  %v18475_v39 = vld [vmem:[%s19479_s30 + $0x1b78] sm:$0xf0]  ;;  %v15091_v50 = vld [vmem:[%s19479_s30 + $0x1960] sm:$0xf] }
  0xe7   : > { %9367 = vmatpush.bf16.msrb.mxu2 %v14724_v17  ;;  %9380 = vmatpush.bf16.msrb.mxu3 %v16164_v18  ;;  %v13468_v17 = vor.u32 %v18002_v8, %v13465_v9  ;;  %v17597_v18 = vld [vmem:[%s19479_s30 + $0xc] sm:$0xf]  ;;  %v15812_v8 = vor.u32 %v18610_v1, %v15811_v0  ;;  %v17252_v9 = vor.u32 %v18970_v3, %v17251_v2  ;;  %v18430_v51 = vld [vmem:[%s19479_s30 + $0x1a10] sm:$0xf0]  ;;  %v13113_v1 = vld [vmem:[%s19479_s30 + $0xa9c] sm:$0xf0] }
  0xe8   : > { %v11848_v34 = vor.u32 %v17597_v18, %v11845_v19  ;;  %v12391_v18 = vld [vmem:[%s19479_s30 + $0x448] sm:$0xf]  ;;  %v17755_v19 = vld [vmem:[%s19479_s30 + $0x4f8] sm:$0xf0]  ;;  %v17913_v0 = vld [vmem:[%s19479_s30 + $0x9ec] sm:$0xf] }
  0xe9   : > { %9387 = vmatpush.bf16.msra.mxu0 %v12928_v14  ;;  %9400 = vmatpush.bf16.msra.mxu1 %v14368_v15  ;;  %v18767_v14 = vld [vmem:[%s19479_s30 + $0x249c] sm:$0xf]  ;;  %v16525_v15 = vld [vmem:[%s19479_s30 + $0x254c] sm:$0xf0]  ;;  %v18273_v2 = vld [vmem:[%s19479_s30 + $0x152c] sm:$0xf] }
  0xea   : > { %9368 = vmatmul.bf16.vlgmr.msrb.gmra.mxu2 %v19645_v53  ;;  %9381 = vmatmul.bf16.vlgmr.msrb.gmra.mxu3 %v19647_v54  ;;  %v16528_v25 = vor.u32 %v18767_v14, %v16525_v15  ;;  %v17071_v14 = vld [vmem:[%s19479_s30 + $0x28d8] sm:$0xf]  ;;  %v18925_v15 = vld [vmem:[%s19479_s30 + $0x2988] sm:$0xf0]  ;;  %v14553_v3 = vld [vmem:[%s19479_s30 + $0x15dc] sm:$0xf0] }
  0xeb   : > { %9412 = vmatpush.bf16.msra.mxu2 %v15988_v22  ;;  %9425 = vmatpush.bf16.msra.mxu3 %v17428_v23  ;;  %v13111_v22 = vld [vmem:[%s19479_s30 + $0x9e8] sm:$0xf]  ;;  %v17935_v23 = vld [vmem:[%s19479_s30 + $0xa98] sm:$0xf0]  ;;  %v17072_v21 = vor.u32 %v18925_v15, %v17071_v14  ;;  %v18228_v14 = vld [vmem:[%s19479_s30 + $0x13c4] sm:$0xf] }
  0xed   : > { %9388 = vmatpush.bf16.msra.mxu0 %v12748_v30  ;;  %9401 = vmatpush.bf16.msra.mxu1 %v14188_v31  ;;  %v18362_v30 = vld [vmem:[%s19479_s30 + $0x17f4] sm:$0xf]  ;;  %v14905_v31 = vld [vmem:[%s19479_s30 + $0x18a4] sm:$0xf0] }
  0xee   : > { %v14908_v41 = vor.u32 %v18362_v30, %v14905_v31  ;;  %v12392_v30 = vor.u32 %v17755_v19, %v12391_v18  ;;  %v14731_v18 = vld [vmem:[%s19479_s30 + $0x1690] sm:$0xf]  ;;  %v18340_v19 = vld [vmem:[%s19479_s30 + $0x1740] sm:$0xf0] }
  0xef   : > { %9413 = vmatpush.bf16.msra.mxu2 %v15808_v36  ;;  %9426 = vmatpush.bf16.msra.mxu3 %v17248_v37  ;;  %v13112_v36 = vor.u32 %v17935_v23, %v13111_v22  ;;  %v14552_v37 = vor.u32 %v18295_v27, %v14551_v26  ;;  %v13831_v22 = vld [vmem:[%s19479_s30 + $0xf88] sm:$0xf]  ;;  %v18115_v23 = vld [vmem:[%s19479_s30 + $0x1038] sm:$0xf0]  ;;  %v16891_v26 = vld [vmem:[%s19479_s30 + $0x2770] sm:$0xf] }
  0xf0   : > { %v18880_v27 = vld [vmem:[%s19479_s30 + $0x2820] sm:$0xf0]  ;;  %v13832_v31 = vor.u32 %v18115_v23, %v13831_v22  ;;  %v18633_v22 = vld [vmem:[%s19479_s30 + $0x206c] sm:$0xf]  ;;  %v15993_v23 = vld [vmem:[%s19479_s30 + $0x211c] sm:$0xf0] }
  0xf1   : > { %9389 = vmatpush.bf16.msra.mxu0 %v12568_v42  ;;  %9402 = vmatpush.bf16.msra.mxu1 %v14008_v43  ;;  %v16348_v42 = vor.u32 %v18722_v32, %v16345_v33  ;;  %v18250_v43 = vld [vmem:[%s19479_s30 + $0x1470] sm:$0xf0]  ;;  %v12211_v32 = vld [vmem:[%s19479_s30 + $0x2e0] sm:$0xf] }
  0xf2   : > { %v14372_v55 = vor.u32 %v18250_v43, %v14371_v40  ;;  %v17710_v33 = vld [vmem:[%s19479_s30 + $0x390] sm:$0xf0]  ;;  %v16711_v40 = vld [vmem:[%s19479_s30 + $0x2608] sm:$0xf] }
  0xf3   : > { %9414 = vmatpush.bf16.msra.mxu2 %v15628_v48  ;;  %9427 = vmatpush.bf16.msra.mxu3 %v17068_v49  ;;  %v15991_v48 = vld [vmem:[%s19479_s30 + $0x2068] sm:$0xf]  ;;  %v18655_v49 = vld [vmem:[%s19479_s30 + $0x2118] sm:$0xf0] }
  0xf4   : > { %v15992_v60 = vor.u32 %v18655_v49, %v15991_v48  ;;  %v13471_v48 = vld [vmem:[%s19479_s30 + $0xcb8] sm:$0xf]  ;;  %v18025_v49 = vld [vmem:[%s19479_s30 + $0xd68] sm:$0xf0] }
  0xf5   : > { %9390 = vmatpush.bf16.msra.mxu0 %v12388_v56  ;;  %9403 = vmatpush.bf16.msra.mxu1 %v13828_v57  ;;  %v14728_v56 = vor.u32 %v18317_v44, %v14725_v45  ;;  %v16168_v57 = vor.u32 %v18677_v46, %v16165_v47  ;;  %v12031_v44 = vld [vmem:[%s19479_s30 + $0x178] sm:$0xf]  ;;  %v17665_v45 = vld [vmem:[%s19479_s30 + $0x228] sm:$0xf0]  ;;  %v15272_v46 = vor.u32 %v18475_v39, %v15271_v38  ;;  %v18588_v38 = vld [vmem:[%s19479_s30 + $0x1f04] sm:$0xf] }
  0xf6   : > { %v15813_v39 = vld [vmem:[%s19479_s30 + $0x1fb4] sm:$0xf0] }
  0xf7   : > { %9415 = vmatpush.bf16.msra.mxu2 %v15448_v62  ;;  %9428 = vmatpush.bf16.msra.mxu3 %v16888_v63  ;;  %v14191_v62 = vld [vmem:[%s19479_s30 + $0x1258] sm:$0xf]  ;;  %v18205_v63 = vld [vmem:[%s19479_s30 + $0x1308] sm:$0xf0] }
  0xf9   : > { %9391 = vmatpush.bf16.msra.mxu0 %v12208_v4  ;;  %9404 = vmatpush.bf16.msra.mxu1 %v13648_v5  ;;  %v12752_v4 = vor.u32 %v17845_v59, %v12751_v58  ;;  %v14192_v5 = vor.u32 %v18205_v63, %v14191_v62  ;;  %v11851_v58 = vld [vmem:[%s19479_s30 + $0x10] sm:$0xf]  ;;  %v17620_v59 = vld [vmem:[%s19479_s30 + $0xc0] sm:$0xf0] }
  0xfa   : > { %v17980_v63 = vld [vmem:[%s19479_s30 + $0xc00] sm:$0xf0] }
  0xfb   : > { %9416 = vmatpush.bf16.msra.mxu2 %v15268_v10  ;;  %9429 = vmatpush.bf16.msra.mxu3 %v16708_v11  ;;  %v14011_v10 = vld [vmem:[%s19479_s30 + $0x10f0] sm:$0xf]  ;;  %v18160_v11 = vld [vmem:[%s19479_s30 + $0x11a0] sm:$0xf0] }
  0xfd   : > { %9392 = vmatpush.bf16.msra.mxu0 %v12028_v16  ;;  %9405 = vmatpush.bf16.msra.mxu1 %v13468_v17  ;;  %v12572_v16 = vor.u32 %v17800_v7, %v12571_v6  ;;  %v14012_v17 = vor.u32 %v18160_v11, %v14011_v10  ;;  %v16351_v6 = vld [vmem:[%s19479_s30 + $0x2338] sm:$0xf]  ;;  %v18745_v7 = vld [vmem:[%s19479_s30 + $0x23e8] sm:$0xf0]  ;;  %v13116_v10 = vor.u32 %v17913_v0, %v13113_v1  ;;  %v18498_v0 = vld [vmem:[%s19479_s30 + $0x1c34] sm:$0xf] }
  0xfe   : > { %v14556_v11 = vor.u32 %v18273_v2, %v14553_v3  ;;  %v15453_v1 = vld [vmem:[%s19479_s30 + $0x1ce4] sm:$0xf0]  ;;  %v18858_v2 = vld [vmem:[%s19479_s30 + $0x2774] sm:$0xf] }
  0xff   : > { %9417 = vmatpush.bf16.msra.mxu2 %v15088_v24  ;;  %9430 = vmatpush.bf16.msra.mxu3 %v16528_v25  ;;  %v15451_v24 = vld [vmem:[%s19479_s30 + $0x1c30] sm:$0xf]  ;;  %v18520_v25 = vld [vmem:[%s19479_s30 + $0x1ce0] sm:$0xf0]  ;;  %v16893_v3 = vld [vmem:[%s19479_s30 + $0x2824] sm:$0xf0] }
 0x101   : > { %9393 = vmatpush.bf16.msra.mxu0 %v11848_v34  ;;  %9406 = vmatpush.bf16.msra.mxu1 %v13288_v35  ;;  %v15452_v34 = vor.u32 %v18520_v25, %v15451_v24  ;;  %v16892_v35 = vor.u32 %v18880_v27, %v16891_v26  ;;  %v18993_v24 = vld [vmem:[%s19479_s30 + $0x2bac] sm:$0xf]  ;;  %v17433_v25 = vld [vmem:[%s19479_s30 + $0x2c5c] sm:$0xf0]  ;;  %v12936_v26 = vor.u32 %v17868_v12, %v12933_v13 }
 0x102   : > { %v18453_v12 = vld [vmem:[%s19479_s30 + $0x1acc] sm:$0xf]  ;;  %v15273_v13 = vld [vmem:[%s19479_s30 + $0x1b7c] sm:$0xf0] }
 0x103   : > { %9418 = vmatpush.bf16.msra.mxu2 %v14908_v41  ;;  %9431 = vmatpush.bf16.msra.mxu3 %v16348_v42  ;;  %v18835_v41 = vld [vmem:[%s19479_s30 + $0x26b8] sm:$0xf0]  ;;  %v12212_v42 = vor.u32 %v17710_v33, %v12211_v32  ;;  %v12753_v33 = vld [vmem:[%s19479_s30 + $0x7cc] sm:$0xf0] }
 0x104   : > { %9394 = vmatmul.bf16.vlgmr.msra.gmra.mxu0 %v19627_v28  ;;  %9407 = vmatmul.bf16.vlgmr.msra.gmra.mxu1 %v19629_v29  ;;  %v16712_v47 = vor.u32 %v18835_v41, %v16711_v40  ;;  %v17823_v32 = vld [vmem:[%s19479_s30 + $0x71c] sm:$0xf]  ;;  %v18948_v40 = vld [vmem:[%s19479_s30 + $0x2a44] sm:$0xf]  ;;  %v17253_v41 = vld [vmem:[%s19479_s30 + $0x2af4] sm:$0xf0] }
 0x105   : > { %9438 = vmatpush.bf16.msrb.mxu0 %v13112_v36  ;;  %9451 = vmatpush.bf16.msrb.mxu1 %v14552_v37  ;;  %v13651_v36 = vld [vmem:[%s19479_s30 + $0xe20] sm:$0xf]  ;;  %v18070_v37 = vld [vmem:[%s19479_s30 + $0xed0] sm:$0xf0] }
 0x106   : > { %v13652_v43 = vor.u32 %v18070_v37, %v13651_v36  ;;  %v18183_v36 = vld [vmem:[%s19479_s30 + $0x125c] sm:$0xf]  ;;  %v14193_v37 = vld [vmem:[%s19479_s30 + $0x130c] sm:$0xf0] }
 0x107   : > { %9419 = vmatpush.bf16.msra.mxu2 %v14728_v56  ;;  %9432 = vmatpush.bf16.msra.mxu3 %v16168_v57  ;;  %v12032_v56 = vor.u32 %v17665_v45, %v12031_v44  ;;  %v13472_v57 = vor.u32 %v18025_v49, %v13471_v48  ;;  %v17778_v44 = vld [vmem:[%s19479_s30 + $0x5b4] sm:$0xf]  ;;  %v12573_v45 = vld [vmem:[%s19479_s30 + $0x664] sm:$0xf0] }
 0x108   : > { %v18138_v48 = vld [vmem:[%s19479_s30 + $0x10f4] sm:$0xf]  ;;  %v14013_v49 = vld [vmem:[%s19479_s30 + $0x11a4] sm:$0xf0] }
 0x109   : > { %9439 = vmatpush.bf16.msrb.mxu0 %v12932_v52  ;;  %9452 = vmatpush.bf16.msrb.mxu1 %v14372_v55  ;;  %v16531_v52 = vld [vmem:[%s19479_s30 + $0x24a0] sm:$0xf]  ;;  %v18790_v55 = vld [vmem:[%s19479_s30 + $0x2550] sm:$0xf0] }
 0x10a   : > { %9420 = vmatmul.bf16.vlgmr.msra.gmra.mxu2 %v19645_v53  ;;  %9433 = vmatmul.bf16.vlgmr.msra.gmra.mxu3 %v19647_v54  ;;  %v16532_v62 = vor.u32 %v18790_v55, %v16531_v52  ;;  %v18903_v52 = vld [vmem:[%s19479_s30 + $0x28dc] sm:$0xf]  ;;  %v17073_v55 = vld [vmem:[%s19479_s30 + $0x298c] sm:$0xf0] }
 0x10b   : > { %9464 = vmatpush.bf16.msrb.mxu2 %v15992_v60  ;;  %9477 = vmatpush.bf16.msrb.mxu3 %v17432_v61  ;;  %v13291_v60 = vld [vmem:[%s19479_s30 + $0xb50] sm:$0xf]  ;;  %v15092_v61 = vor.u32 %v18430_v51, %v15091_v50  ;;  %v18543_v50 = vld [vmem:[%s19479_s30 + $0x1d9c] sm:$0xf] }
 0x10c   : > { %v15633_v51 = vld [vmem:[%s19479_s30 + $0x1e4c] sm:$0xf0] }
 0x10d   : > { %9440 = vmatpush.bf16.msrb.mxu0 %v12752_v4  ;;  %9453 = vmatpush.bf16.msrb.mxu1 %v14192_v5  ;;  %v14911_v4 = vld [vmem:[%s19479_s30 + $0x17f8] sm:$0xf]  ;;  %v18385_v5 = vld [vmem:[%s19479_s30 + $0x18a8] sm:$0xf0] }
 0x10e   : > { %v14912_v15 = vor.u32 %v18385_v5, %v14911_v4 }
 0x10f   : > { %9465 = vmatpush.bf16.msrb.mxu2 %v15812_v8  ;;  %9478 = vmatpush.bf16.msrb.mxu3 %v17252_v9  ;;  %v11852_v8 = vor.u32 %v17620_v59, %v11851_v58  ;;  %v13292_v9 = vor.u32 %v17980_v63, %v13291_v60  ;;  %v17733_v58 = vld [vmem:[%s19479_s30 + $0x44c] sm:$0xf]  ;;  %v12393_v59 = vld [vmem:[%s19479_s30 + $0x4fc] sm:$0xf0]  ;;  %v15636_v60 = vor.u32 %v18543_v50, %v15633_v51  ;;  %v17891_v51 = vld [vmem:[%s19479_s30 + $0x938] sm:$0xf0] }
 0x110   : > { %v13833_v63 = vld [vmem:[%s19479_s30 + $0x103c] sm:$0xf0]  ;;  %v12396_v4 = vor.u32 %v17733_v58, %v12393_v59  ;;  %v18318_v58 = vld [vmem:[%s19479_s30 + $0x1694] sm:$0xf]  ;;  %v14733_v59 = vld [vmem:[%s19479_s30 + $0x1744] sm:$0xf0] }
 0x111   : > { %9441 = vmatpush.bf16.msrb.mxu0 %v12572_v16  ;;  %9454 = vmatpush.bf16.msrb.mxu1 %v14012_v17  ;;  %v16352_v16 = vor.u32 %v18745_v7, %v16351_v6  ;;  %v14373_v17 = vld [vmem:[%s19479_s30 + $0x1474] sm:$0xf0]  ;;  %v17688_v6 = vld [vmem:[%s19479_s30 + $0x2e4] sm:$0xf] }
 0x112   : > { %v14376_v27 = vor.u32 %v18228_v14, %v14373_v17  ;;  %v12213_v7 = vld [vmem:[%s19479_s30 + $0x394] sm:$0xf0]  ;;  %v18813_v14 = vld [vmem:[%s19479_s30 + $0x260c] sm:$0xf] }
 0x113   : > { %9466 = vmatpush.bf16.msrb.mxu2 %v15632_v20  ;;  %9479 = vmatpush.bf16.msrb.mxu3 %v17072_v21  ;;  %v16171_v20 = vld [vmem:[%s19479_s30 + $0x21d0] sm:$0xf]  ;;  %v18700_v21 = vld [vmem:[%s19479_s30 + $0x2280] sm:$0xf0] }
 0x115   : > { %9442 = vmatpush.bf16.msrb.mxu0 %v12392_v30  ;;  %9455 = vmatpush.bf16.msrb.mxu1 %v13832_v31  ;;  %v14732_v30 = vor.u32 %v18340_v19, %v14731_v18  ;;  %v16172_v31 = vor.u32 %v18700_v21, %v16171_v20  ;;  %v17643_v18 = vld [vmem:[%s19479_s30 + $0x17c] sm:$0xf]  ;;  %v12033_v19 = vld [vmem:[%s19479_s30 + $0x22c] sm:$0xf0]  ;;  %v15276_v20 = vor.u32 %v18453_v12, %v15273_v13  ;;  %v18206_v12 = vld [vmem:[%s19479_s30 + $0x1310] sm:$0xf0] }
 0x117   : > { %9467 = vmatpush.bf16.msrb.mxu2 %v15452_v34  ;;  %9480 = vmatpush.bf16.msrb.mxu3 %v16892_v35  ;;  %v15996_v34 = vor.u32 %v18633_v22, %v15993_v23  ;;  %v17436_v35 = vor.u32 %v18993_v24, %v17433_v25  ;;  %v18003_v22 = vld [vmem:[%s19479_s30 + $0xcbc] sm:$0xf]  ;;  %v13473_v23 = vld [vmem:[%s19479_s30 + $0xd6c] sm:$0xf0]  ;;  %v18408_v24 = vld [vmem:[%s19479_s30 + $0x1964] sm:$0xf] }
 0x118   : > { %v15093_v25 = vld [vmem:[%s19479_s30 + $0x1a14] sm:$0xf0] }
 0x119   : > { %9443 = vmatpush.bf16.msrb.mxu0 %v12212_v42  ;;  %9456 = vmatpush.bf16.msrb.mxu1 %v13652_v43  ;;  %v12756_v42 = vor.u32 %v17823_v32, %v12753_v33  ;;  %v14196_v43 = vor.u32 %v18183_v36, %v14193_v37  ;;  %v17598_v32 = vld [vmem:[%s19479_s30 + $0x14] sm:$0xf]  ;;  %v11853_v33 = vld [vmem:[%s19479_s30 + $0xc4] sm:$0xf0] }
 0x11a   : > { %v13293_v37 = vld [vmem:[%s19479_s30 + $0xc04] sm:$0xf0] }
 0x11b   : > { %9468 = vmatpush.bf16.msrb.mxu2 %v15272_v46  ;;  %9481 = vmatpush.bf16.msrb.mxu3 %v16712_v47  ;;  %v15816_v46 = vor.u32 %v18588_v38, %v15813_v39  ;;  %v17256_v47 = vor.u32 %v18948_v40, %v17253_v41  ;;  %v13119_v38 = vld [vmem:[%s19479_s30 + $0x9f0] sm:$0xf]  ;;  %v17936_v39 = vld [vmem:[%s19479_s30 + $0xaa0] sm:$0xf0] }
 0x11c   : > { %v14559_v40 = vld [vmem:[%s19479_s30 + $0x1530] sm:$0xf]  ;;  %v18296_v41 = vld [vmem:[%s19479_s30 + $0x15e0] sm:$0xf0] }
 0x11d   : > { %9444 = vmatpush.bf16.msrb.mxu0 %v12032_v56  ;;  %9457 = vmatpush.bf16.msrb.mxu1 %v13472_v57  ;;  %v12576_v56 = vor.u32 %v17778_v44, %v12573_v45  ;;  %v14016_v57 = vor.u32 %v18138_v48, %v14013_v49  ;;  %v18723_v44 = vld [vmem:[%s19479_s30 + $0x233c] sm:$0xf]  ;;  %v16353_v45 = vld [vmem:[%s19479_s30 + $0x23ec] sm:$0xf0]  ;;  %v12939_v48 = vld [vmem:[%s19479_s30 + $0x888] sm:$0xf]  ;;  %v13120_v49 = vor.u32 %v17936_v39, %v13119_v38 }
 0x11e   : > { %v14560_v50 = vor.u32 %v18296_v41, %v14559_v40  ;;  %v12399_v38 = vld [vmem:[%s19479_s30 + $0x450] sm:$0xf]  ;;  %v17756_v39 = vld [vmem:[%s19479_s30 + $0x500] sm:$0xf0] }
 0x11f   : > { %9469 = vmatpush.bf16.msrb.mxu2 %v15092_v61  ;;  %9482 = vmatpush.bf16.msrb.mxu3 %v16532_v62  ;;  %v17076_v61 = vor.u32 %v18903_v52, %v17073_v55  ;;  %v18093_v62 = vld [vmem:[%s19479_s30 + $0xf8c] sm:$0xf]  ;;  %v14379_v52 = vld [vmem:[%s19479_s30 + $0x13c8] sm:$0xf]  ;;  %v18251_v55 = vld [vmem:[%s19479_s30 + $0x1478] sm:$0xf0] }
 0x120   : > { %v13836_v5 = vor.u32 %v18093_v62, %v13833_v63  ;;  %v15999_v62 = vld [vmem:[%s19479_s30 + $0x2070] sm:$0xf]  ;;  %v18656_v63 = vld [vmem:[%s19479_s30 + $0x2120] sm:$0xf0] }
 0x121   : > { %9445 = vmatpush.bf16.msrb.mxu0 %v11852_v8  ;;  %9458 = vmatpush.bf16.msrb.mxu1 %v13292_v9  ;;  %v15456_v8 = vor.u32 %v18498_v0, %v15453_v1  ;;  %v16896_v9 = vor.u32 %v18858_v2, %v16893_v3  ;;  %v17439_v0 = vld [vmem:[%s19479_s30 + $0x2bb0] sm:$0xf]  ;;  %v19016_v1 = vld [vmem:[%s19479_s30 + $0x2c60] sm:$0xf0]  ;;  %v19924_v2 = vld [vmem:[%s19921_s6] sm:$0xff]  ;;  %v12940_v3 = vor.u32 %v17891_v51, %v12939_v48 }
 0x122   : > { %v1908_v13 = vperm.slane %v19924_v2, 0  ;;  %v12400_v48 = vor.u32 %v17756_v39, %v12399_v38 }
 0x123   : > { %9470 = vmatpush.bf16.msrb.mxu2 %v14912_v15  ;;  %9483 = vmatpush.bf16.msrb.mxu3 %v16352_v16  ;;  %v16713_v15 = vld [vmem:[%s19479_s30 + $0x26bc] sm:$0xf0]  ;;  %v12216_v16 = vor.u32 %v17688_v6, %v12213_v7 }
 0x124   : > { %9446 = vmatmul.bf16.vlgmr.msrb.gmra.mxu0 %v19627_v28  ;;  %9459 = vmatmul.bf16.vlgmr.msrb.gmra.mxu1 %v19629_v29  ;;  %v16716_v21 = vor.u32 %v18813_v14, %v16713_v15  ;;  %v12759_v7 = vld [vmem:[%s19479_s30 + $0x720] sm:$0xf]  ;;  %v15819_v14 = vld [vmem:[%s19479_s30 + $0x1f08] sm:$0xf]  ;;  %v18611_v15 = vld [vmem:[%s19479_s30 + $0x1fb8] sm:$0xf0] }
 0x125   : > { %9490 = vmatpush.bf16.msra.mxu0 %v13116_v10  ;;  %9503 = vmatpush.bf16.msra.mxu1 %v14556_v11  ;;  %v18048_v10 = vld [vmem:[%s19479_s30 + $0xe24] sm:$0xf]  ;;  %v13653_v11 = vld [vmem:[%s19479_s30 + $0xed4] sm:$0xf0] }
 0x126   : > { %v13656_v17 = vor.u32 %v18048_v10, %v13653_v11  ;;  %v16000_v10 = vor.u32 %v18656_v63, %v15999_v62  ;;  %v17440_v11 = vor.u32 %v19016_v1, %v17439_v0  ;;  %v16719_v62 = vld [vmem:[%s19479_s30 + $0x2610] sm:$0xf]  ;;  %v18836_v63 = vld [vmem:[%s19479_s30 + $0x26c0] sm:$0xf0] }
 0x127   : > { %9471 = vmatpush.bf16.msrb.mxu2 %v14732_v30  ;;  %9484 = vmatpush.bf16.msrb.mxu3 %v16172_v31  ;;  %v12036_v30 = vor.u32 %v17643_v18, %v12033_v19  ;;  %v13476_v31 = vor.u32 %v18003_v22, %v13473_v23  ;;  %v12579_v22 = vld [vmem:[%s19479_s30 + $0x5b8] sm:$0xf]  ;;  %v17801_v23 = vld [vmem:[%s19479_s30 + $0x668] sm:$0xf0] }
 0x129   : > { %9491 = vmatpush.bf16.msra.mxu0 %v12936_v26  ;;  %9504 = vmatpush.bf16.msra.mxu1 %v14376_v27  ;;  %v18768_v26 = vld [vmem:[%s19479_s30 + $0x24a4] sm:$0xf]  ;;  %v16533_v27 = vld [vmem:[%s19479_s30 + $0x2554] sm:$0xf0] }
 0x12a   : > { %9472 = vmatmul.bf16.vlgmr.msrb.gmra.mxu2 %v19645_v53  ;;  %9485 = vmatmul.bf16.vlgmr.msrb.gmra.mxu3 %v19647_v54  ;;  %v16536_v36 = vor.u32 %v18768_v26, %v16533_v27  ;;  %v14019_v27 = vld [vmem:[%s19479_s30 + $0x10f8] sm:$0xf] }
 0x12b   : > { %9516 = vmatpush.bf16.msra.mxu2 %v15996_v34  ;;  %9529 = vmatpush.bf16.msra.mxu3 %v17436_v35  ;;  %v17958_v34 = vld [vmem:[%s19479_s30 + $0xb54] sm:$0xf]  ;;  %v15096_v35 = vor.u32 %v18408_v24, %v15093_v25  ;;  %v15820_v25 = vor.u32 %v18611_v15, %v15819_v14  ;;  %v16539_v14 = vld [vmem:[%s19479_s30 + $0x24a8] sm:$0xf]  ;;  %v18791_v15 = vld [vmem:[%s19479_s30 + $0x2558] sm:$0xf0] }
 0x12d   : > { %9492 = vmatpush.bf16.msra.mxu0 %v12756_v42  ;;  %9505 = vmatpush.bf16.msra.mxu1 %v14196_v43  ;;  %v18363_v42 = vld [vmem:[%s19479_s30 + $0x17fc] sm:$0xf]  ;;  %v14913_v43 = vld [vmem:[%s19479_s30 + $0x18ac] sm:$0xf0] }
 0x12f   : > { %9517 = vmatpush.bf16.msra.mxu2 %v15816_v46  ;;  %9530 = vmatpush.bf16.msra.mxu3 %v17256_v47  ;;  %v11856_v46 = vor.u32 %v17598_v32, %v11853_v33  ;;  %v13296_v47 = vor.u32 %v17958_v34, %v13293_v37  ;;  %v18566_v32 = vld [vmem:[%s19479_s30 + $0x1e50] sm:$0xf0]  ;;  %v17079_v33 = vld [vmem:[%s19479_s30 + $0x28e0] sm:$0xf] }
 0x130   : > { %v18926_v34 = vld [vmem:[%s19479_s30 + $0x2990] sm:$0xf0] }
 0x131   : > { %9493 = vmatpush.bf16.msra.mxu0 %v12576_v56  ;;  %9506 = vmatpush.bf16.msra.mxu1 %v14016_v57  ;;  %v14916_v56 = vor.u32 %v18363_v42, %v14913_v43  ;;  %v16356_v57 = vor.u32 %v18723_v44, %v16353_v45  ;;  %v17080_v41 = vor.u32 %v18926_v34, %v17079_v33  ;;  %v13839_v42 = vld [vmem:[%s19479_s30 + $0xf90] sm:$0xf]  ;;  %v18116_v43 = vld [vmem:[%s19479_s30 + $0x1040] sm:$0xf0]  ;;  %v15459_v44 = vld [vmem:[%s19479_s30 + $0x1c38] sm:$0xf] }
 0x132   : > { %v18521_v45 = vld [vmem:[%s19479_s30 + $0x1ce8] sm:$0xf0]  ;;  %v14919_v33 = vld [vmem:[%s19479_s30 + $0x1800] sm:$0xf]  ;;  %v18386_v34 = vld [vmem:[%s19479_s30 + $0x18b0] sm:$0xf0] }
 0x133   : > { %9518 = vmatpush.bf16.msra.mxu2 %v15636_v60  ;;  %9531 = vmatpush.bf16.msra.mxu3 %v17076_v61  ;;  %v18678_v60 = vld [vmem:[%s19479_s30 + $0x21d4] sm:$0xf]  ;;  %v16173_v61 = vld [vmem:[%s19479_s30 + $0x2284] sm:$0xf0] }
 0x134   : > { %v16176_v6 = vor.u32 %v18678_v60, %v16173_v61  ;;  %v15279_v60 = vld [vmem:[%s19479_s30 + $0x1ad0] sm:$0xf]  ;;  %v18476_v61 = vld [vmem:[%s19479_s30 + $0x1b80] sm:$0xf0] }
 0x135   : > { %9494 = vmatpush.bf16.msra.mxu0 %v12396_v4  ;;  %9507 = vmatpush.bf16.msra.mxu1 %v13836_v5  ;;  %v14380_v4 = vor.u32 %v18251_v55, %v14379_v52  ;;  %v14736_v5 = vor.u32 %v18318_v58, %v14733_v59  ;;  %v12219_v52 = vld [vmem:[%s19479_s30 + $0x2e8] sm:$0xf]  ;;  %v17711_v55 = vld [vmem:[%s19479_s30 + $0x398] sm:$0xf0] }
 0x136   : > { %v13659_v58 = vld [vmem:[%s19479_s30 + $0xe28] sm:$0xf]  ;;  %v18071_v59 = vld [vmem:[%s19479_s30 + $0xed8] sm:$0xf0]  ;;  %v12220_v0 = vor.u32 %v17711_v55, %v12219_v52  ;;  %v18701_v52 = vld [vmem:[%s19479_s30 + $0x2288] sm:$0xf0] }
 0x137   : > { %9519 = vmatpush.bf16.msra.mxu2 %v15456_v8  ;;  %9532 = vmatpush.bf16.msra.mxu3 %v16896_v9  ;;  %v17846_v8 = vld [vmem:[%s19479_s30 + $0x7d0] sm:$0xf0]  ;;  %v14199_v9 = vld [vmem:[%s19479_s30 + $0x1260] sm:$0xf]  ;;  %v13660_v1 = vor.u32 %v18071_v59, %v13659_v58  ;;  %v17441_v58 = vld [vmem:[%s19479_s30 + $0x2c64] sm:$0xf0] }
 0x138   : > { %v12760_v18 = vor.u32 %v17846_v8, %v12759_v7  ;;  %v14200_v19 = vor.u32 %v18206_v12, %v14199_v9  ;;  %v15280_v7 = vor.u32 %v18476_v61, %v15279_v60  ;;  %v16720_v8 = vor.u32 %v18836_v63, %v16719_v62  ;;  %v13479_v9 = vld [vmem:[%s19479_s30 + $0xcc0] sm:$0xf]  ;;  %v18634_v55 = vld [vmem:[%s19479_s30 + $0x2074] sm:$0xf] }
 0x139   : > { %9495 = vmatpush.bf16.msra.mxu0 %v12216_v16  ;;  %9508 = vmatpush.bf16.msra.mxu1 %v13656_v17  ;;  %v17259_v16 = vld [vmem:[%s19479_s30 + $0x2a48] sm:$0xf]  ;;  %v18971_v17 = vld [vmem:[%s19479_s30 + $0x2af8] sm:$0xf0] }
 0x13a   : > { %v17260_v26 = vor.u32 %v18971_v17, %v17259_v16 }
 0x13b   : > { %9520 = vmatpush.bf16.msra.mxu2 %v15276_v20  ;;  %9533 = vmatpush.bf16.msra.mxu3 %v16716_v21 }
 0x13d   : > { %9496 = vmatpush.bf16.msra.mxu0 %v12036_v30  ;;  %9509 = vmatpush.bf16.msra.mxu1 %v13476_v31  ;;  %v18161_v30 = vld [vmem:[%s19479_s30 + $0x11a8] sm:$0xf0]  ;;  %v15639_v31 = vld [vmem:[%s19479_s30 + $0x1da0] sm:$0xf] }
 0x13e   : > { %v14020_v37 = vor.u32 %v18161_v30, %v14019_v27  ;;  %v15640_v40 = vor.u32 %v18566_v32, %v15639_v31  ;;  %v17914_v27 = vld [vmem:[%s19479_s30 + $0x9f4] sm:$0xf]  ;;  %v13121_v30 = vld [vmem:[%s19479_s30 + $0xaa4] sm:$0xf0] }
 0x13f   : > { %9521 = vmatpush.bf16.msra.mxu2 %v15096_v35  ;;  %9534 = vmatpush.bf16.msra.mxu3 %v16536_v36  ;;  %v12580_v36 = vor.u32 %v17801_v23, %v12579_v22  ;;  %v18274_v31 = vld [vmem:[%s19479_s30 + $0x1534] sm:$0xf]  ;;  %v14561_v32 = vld [vmem:[%s19479_s30 + $0x15e4] sm:$0xf0] }
 0x140   : > { %v9239_v20 = vpop.f32.mrf.mxu0  ;;  %v9252_v21 = vpop.f32.mrf.mxu1 }
 0x141   : > { %9497 = vmatpush.bf16.msra.mxu0 %v11856_v46  ;;  %9510 = vmatpush.bf16.msra.mxu1 %v13296_v47  ;;  %v9240_v24 = vadd.f32 %v9239_v20, %v1908_v13  ;;  %v16899_v46 = vld [vmem:[%s19479_s30 + $0x2778] sm:$0xf]  ;;  %v18881_v47 = vld [vmem:[%s19479_s30 + $0x2828] sm:$0xf0]  ;;  %v18431_v13 = vld [vmem:[%s19479_s30 + $0x1a18] sm:$0xf0] }
 0x142   : > { %v17621_v20 = vld [vmem:[%s19479_s30 + $0xc8] sm:$0xf0] }
 0x143   : > { %9522 = vmatpush.bf16.msra.mxu2 %v14916_v56  ;;  %9535 = vmatpush.bf16.msra.mxu3 %v16356_v57  ;;  %v9253_v35 = vadd.f32 %v9252_v21, %v9240_v24  ;;  %v15460_v56 = vor.u32 %v18521_v45, %v15459_v44  ;;  %v16900_v57 = vor.u32 %v18881_v47, %v16899_v46  ;;  %v13299_v21 = vld [vmem:[%s19479_s30 + $0xb58] sm:$0xf]  ;;  %v12941_v44 = vld [vmem:[%s19479_s30 + $0x93c] sm:$0xf0]  ;;  %v18229_v45 = vld [vmem:[%s19479_s30 + $0x13cc] sm:$0xf] }
 0x144   : > { %9498 = vmatmul.bf16.vlgmr.msra.gmra.mxu0 %v19627_v28  ;;  %9511 = vmatmul.bf16.vlgmr.msra.gmra.mxu1 %v19629_v29  ;;  %v14920_v46 = vor.u32 %v18386_v34, %v14919_v33 }
 0x145   : > { %9542 = vmatpush.bf16.msrb.mxu0 %v13120_v49  ;;  %9555 = vmatpush.bf16.msrb.mxu1 %v14560_v50  ;;  %v13840_v49 = vor.u32 %v18116_v43, %v13839_v42  ;;  %v14564_v42 = vor.u32 %v18274_v31, %v14561_v32  ;;  %v17869_v43 = vld [vmem:[%s19479_s30 + $0x88c] sm:$0xf] }
 0x146   : > { %v12944_v61 = vor.u32 %v17869_v43, %v12941_v44  ;;  %v18859_v43 = vld [vmem:[%s19479_s30 + $0x277c] sm:$0xf]  ;;  %v16901_v44 = vld [vmem:[%s19479_s30 + $0x282c] sm:$0xf0] }
 0x147   : > { %9523 = vmatpush.bf16.msra.mxu2 %v14736_v5  ;;  %9536 = vmatpush.bf16.msra.mxu3 %v16176_v6 }
 0x148   : > { %v9241_v50 = vpop.f32.mrf.mxu0  ;;  %v9254_v51 = vpop.f32.mrf.mxu1 }
 0x149   : > { %9543 = vmatpush.bf16.msrb.mxu0 %v12940_v3  ;;  %9556 = vmatpush.bf16.msrb.mxu1 %v14380_v4  ;;  %v12039_v3 = vld [vmem:[%s19479_s30 + $0x180] sm:$0xf]  ;;  %v17666_v4 = vld [vmem:[%s19479_s30 + $0x230] sm:$0xf0]  ;;  %v18341_v50 = vld [vmem:[%s19479_s30 + $0x1748] sm:$0xf0] }
 0x14a   : > { %9524 = vmatmul.bf16.vlgmr.msra.gmra.mxu2 %v19645_v53  ;;  %9537 = vmatmul.bf16.vlgmr.msra.gmra.mxu3 %v19647_v54  ;;  %v12040_v17 = vor.u32 %v17666_v4, %v12039_v3  ;;  %v16179_v51 = vld [vmem:[%s19479_s30 + $0x21d8] sm:$0xf] }
 0x14b   : > { %9568 = vmatpush.bf16.msrb.mxu2 %v16000_v10  ;;  %9581 = vmatpush.bf16.msrb.mxu3 %v17440_v11  ;;  %v18026_v10 = vld [vmem:[%s19479_s30 + $0xd70] sm:$0xf0]  ;;  %v15099_v11 = vld [vmem:[%s19479_s30 + $0x1968] sm:$0xf]  ;;  %v12761_v3 = vld [vmem:[%s19479_s30 + $0x7d4] sm:$0xf0] }
 0x14c   : > { %v15100_v24 = vor.u32 %v18431_v13, %v15099_v11  ;;  %v17261_v11 = vld [vmem:[%s19479_s30 + $0x2afc] sm:$0xf0] }
 0x14d   : > { %9544 = vmatpush.bf16.msrb.mxu0 %v12760_v18  ;;  %9557 = vmatpush.bf16.msrb.mxu1 %v14200_v19  ;;  %v9265_v5 = vpop.f32.mrf.mxu2  ;;  %v9278_v6 = vpop.f32.mrf.mxu3  ;;  %v13480_v18 = vor.u32 %v18026_v10, %v13479_v9  ;;  %v11859_v19 = vld [vmem:[%s19479_s30 + $0x18] sm:$0xf]  ;;  %v15821_v9 = vld [vmem:[%s19479_s30 + $0x1fbc] sm:$0xf0]  ;;  %v18949_v10 = vld [vmem:[%s19479_s30 + $0x2a4c] sm:$0xf] }
 0x14e   : > { %v9266_v12 = vadd.f32 %v9265_v5, %v9253_v35  ;;  %v16359_v35 = vld [vmem:[%s19479_s30 + $0x2340] sm:$0xf] }
 0x14f   : > { %9569 = vmatpush.bf16.msrb.mxu2 %v15820_v25  ;;  %9582 = vmatpush.bf16.msrb.mxu3 %v17260_v26  ;;  %v16540_v25 = vor.u32 %v18791_v15, %v16539_v14  ;;  %v17981_v26 = vld [vmem:[%s19479_s30 + $0xc08] sm:$0xf0] }
 0x150   : > { %v19971_v16 = vadd.f32 %v9278_v6, %v9266_v12  ;;  %v13300_v38 = vor.u32 %v17981_v26, %v13299_v21  ;;  %v18184_v6 = vld [vmem:[%s19479_s30 + $0x1264] sm:$0xf]  ;;  %v18139_v21 = vld [vmem:[%s19479_s30 + $0x10fc] sm:$0xf]  ;;  %v15641_v26 = vld [vmem:[%s19479_s30 + $0x1e54] sm:$0xf0] }
 0x151   : > { %9545 = vmatpush.bf16.msrb.mxu0 %v12580_v36  ;;  %9558 = vmatpush.bf16.msrb.mxu1 %v14020_v37  ;;  %v19976_v22 = vpop.f32.mrf.mxu0  ;;  %v19978_v23 = vpop.f32.mrf.mxu1  ;;  %v18746_v36 = vld [vmem:[%s19479_s30 + $0x23f0] sm:$0xf0]  ;;  %v11860_v37 = vor.u32 %v17621_v20, %v11859_v19  ;;  %v17264_v20 = vor.u32 %v18949_v10, %v17261_v11  ;;  %v18769_v10 = vld [vmem:[%s19479_s30 + $0x24ac] sm:$0xf]  ;;  %v16541_v11 = vld [vmem:[%s19479_s30 + $0x255c] sm:$0xf0] }
 0x152   : > { %v16360_v47 = vor.u32 %v18746_v36, %v16359_v35  ;;  %v17734_v35 = vld [vmem:[%s19479_s30 + $0x454] sm:$0xf]  ;;  %v12401_v36 = vld [vmem:[%s19479_s30 + $0x504] sm:$0xf0] }
 0x153   : > { %9570 = vmatpush.bf16.msrb.mxu2 %v15640_v40  ;;  %9583 = vmatpush.bf16.msrb.mxu3 %v17080_v41  ;;  %v13124_v41 = vor.u32 %v17914_v27, %v13121_v30  ;;  %v18904_v27 = vld [vmem:[%s19479_s30 + $0x28e4] sm:$0xf]  ;;  %v17081_v30 = vld [vmem:[%s19479_s30 + $0x2994] sm:$0xf0] }
 0x155   : > { %9546 = vmatpush.bf16.msrb.mxu0 %v12400_v48  ;;  %9559 = vmatpush.bf16.msrb.mxu1 %v13840_v49  ;;  %v9267_v39 = vpop.f32.mrf.mxu2  ;;  %v9280_v40 = vpop.f32.mrf.mxu3  ;;  %v14381_v48 = vld [vmem:[%s19479_s30 + $0x147c] sm:$0xf0]  ;;  %v14739_v49 = vld [vmem:[%s19479_s30 + $0x1698] sm:$0xf] }
 0x156   : > { %v14384_v62 = vor.u32 %v18229_v45, %v14381_v48  ;;  %v14740_v63 = vor.u32 %v18341_v50, %v14739_v49  ;;  %v18094_v39 = vld [vmem:[%s19479_s30 + $0xf94] sm:$0xf]  ;;  %v13841_v40 = vld [vmem:[%s19479_s30 + $0x1044] sm:$0xf0]  ;;  %v17689_v49 = vld [vmem:[%s19479_s30 + $0x2ec] sm:$0xf] }
 0x157   : > { %9571 = vmatpush.bf16.msrb.mxu2 %v15460_v56  ;;  %9584 = vmatpush.bf16.msrb.mxu3 %v16900_v57  ;;  %v16001_v56 = vld [vmem:[%s19479_s30 + $0x2124] sm:$0xf0]  ;;  %v18994_v57 = vld [vmem:[%s19479_s30 + $0x2bb4] sm:$0xf]  ;;  %v13844_v48 = vor.u32 %v18094_v39, %v13841_v40  ;;  %v12221_v50 = vld [vmem:[%s19479_s30 + $0x39c] sm:$0xf0] }
 0x158   : > { %v16004_v4 = vor.u32 %v18634_v55, %v16001_v56  ;;  %v17444_v5 = vor.u32 %v18994_v57, %v17441_v58  ;;  %v18049_v55 = vld [vmem:[%s19479_s30 + $0xe2c] sm:$0xf]  ;;  %v13661_v56 = vld [vmem:[%s19479_s30 + $0xedc] sm:$0xf0]  ;;  %v18454_v57 = vld [vmem:[%s19479_s30 + $0x1ad4] sm:$0xf] }
 0x159   : > { %9547 = vmatpush.bf16.msrb.mxu0 %v12220_v0  ;;  %9560 = vmatpush.bf16.msrb.mxu1 %v13660_v1  ;;  %v9293_v59 = vpop.f32.mrf.mxu0  ;;  %v9306_v60 = vpop.f32.mrf.mxu1  ;;  %v16180_v0 = vor.u32 %v18701_v52, %v16179_v51  ;;  %v17824_v1 = vld [vmem:[%s19479_s30 + $0x724] sm:$0xf]  ;;  %v16904_v52 = vor.u32 %v18859_v43, %v16901_v44  ;;  %v15281_v58 = vld [vmem:[%s19479_s30 + $0x1b84] sm:$0xf0]  ;;  %v1909_v39 = vperm.slane %v19924_v2, 1 }
 0x15a   : > { %v12764_v14 = vor.u32 %v17824_v1, %v12761_v3  ;;  %v18814_v59 = vld [vmem:[%s19479_s30 + $0x2614] sm:$0xf]  ;;  %v16721_v60 = vld [vmem:[%s19479_s30 + $0x26c4] sm:$0xf0]  ;;  %v17644_v1 = vld [vmem:[%s19479_s30 + $0x184] sm:$0xf] }
 0x15b   : > { %9572 = vmatpush.bf16.msrb.mxu2 %v15280_v7  ;;  %9585 = vmatpush.bf16.msrb.mxu3 %v16720_v8  ;;  %v14201_v7 = vld [vmem:[%s19479_s30 + $0x1314] sm:$0xf0]  ;;  %v18589_v8 = vld [vmem:[%s19479_s30 + $0x1f0c] sm:$0xf]  ;;  %v12947_v44 = vld [vmem:[%s19479_s30 + $0x890] sm:$0xf] }
 0x15c   : > { %v14204_v15 = vor.u32 %v18184_v6, %v14201_v7  ;;  %v15824_v19 = vor.u32 %v18589_v8, %v15821_v9  ;;  %v12041_v3 = vld [vmem:[%s19479_s30 + $0x234] sm:$0xf0]  ;;  %v18004_v6 = vld [vmem:[%s19479_s30 + $0xcc4] sm:$0xf]  ;;  %v18409_v8 = vld [vmem:[%s19479_s30 + $0x196c] sm:$0xf] }
 0x15d   : > { %9548 = vmatpush.bf16.msrb.mxu0 %v12040_v17  ;;  %9561 = vmatpush.bf16.msrb.mxu1 %v13480_v18  ;;  %v20011_v12 = vpop.f32.mrf.mxu2  ;;  %v20013_v13 = vpop.f32.mrf.mxu3  ;;  %v17779_v17 = vld [vmem:[%s19479_s30 + $0x5bc] sm:$0xf]  ;;  %v12581_v18 = vld [vmem:[%s19479_s30 + $0x66c] sm:$0xf0]  ;;  %v13481_v7 = vld [vmem:[%s19479_s30 + $0xd74] sm:$0xf0] }
 0x15e   : > { %v12584_v33 = vor.u32 %v17779_v17, %v12581_v18  ;;  %v15101_v9 = vld [vmem:[%s19479_s30 + $0x1a1c] sm:$0xf0]  ;;  %v12044_v17 = vor.u32 %v17644_v1, %v12041_v3  ;;  %v13484_v18 = vor.u32 %v18004_v6, %v13481_v7  ;;  %v12767_v3 = vld [vmem:[%s19479_s30 + $0x728] sm:$0xf] }
 0x15f   : > { %9573 = vmatpush.bf16.msrb.mxu2 %v15100_v24  ;;  %9586 = vmatpush.bf16.msrb.mxu3 %v16540_v25  ;;  %v14021_v24 = vld [vmem:[%s19479_s30 + $0x11ac] sm:$0xf0]  ;;  %v18544_v25 = vld [vmem:[%s19479_s30 + $0x1da4] sm:$0xf] }
 0x160   : > { %v14024_v34 = vor.u32 %v18139_v21, %v14021_v24  ;;  %v17959_v21 = vld [vmem:[%s19479_s30 + $0xb5c] sm:$0xf]  ;;  %v15104_v24 = vor.u32 %v18409_v8, %v15101_v9  ;;  %v14207_v8 = vld [vmem:[%s19479_s30 + $0x1268] sm:$0xf] }
 0x161   : > { %9549 = vmatpush.bf16.msrb.mxu0 %v11860_v37  ;;  %9562 = vmatpush.bf16.msrb.mxu1 %v13300_v38  ;;  %v20025_v31 = vpop.f32.mrf.mxu0  ;;  %v20027_v32 = vpop.f32.mrf.mxu1  ;;  %v15644_v37 = vor.u32 %v18544_v25, %v15641_v26  ;;  %v17084_v38 = vor.u32 %v18904_v27, %v17081_v30  ;;  %v16544_v25 = vor.u32 %v18769_v10, %v16541_v11  ;;  %v13301_v26 = vld [vmem:[%s19479_s30 + $0xc0c] sm:$0xf0]  ;;  %v13127_v27 = vld [vmem:[%s19479_s30 + $0x9f8] sm:$0xf]  ;;  %v17937_v30 = vld [vmem:[%s19479_s30 + $0xaa8] sm:$0xf0] }
 0x162   : > { %v18207_v9 = vld [vmem:[%s19479_s30 + $0x1318] sm:$0xf0]  ;;  %v15827_v10 = vld [vmem:[%s19479_s30 + $0x1f10] sm:$0xf]  ;;  %v18612_v11 = vld [vmem:[%s19479_s30 + $0x1fc0] sm:$0xf0] }
 0x163   : > { %9574 = vmatpush.bf16.msrb.mxu2 %v14920_v46  ;;  %9587 = vmatpush.bf16.msrb.mxu3 %v16360_v47  ;;  %v12404_v47 = vor.u32 %v17734_v35, %v12401_v36  ;;  %v18364_v35 = vld [vmem:[%s19479_s30 + $0x1804] sm:$0xf]  ;;  %v14921_v36 = vld [vmem:[%s19479_s30 + $0x18b4] sm:$0xf0] }
 0x164   : > { %9550 = vmatmul.bf16.vlgmr.msrb.gmra.mxu0 %v19627_v28  ;;  %9563 = vmatmul.bf16.vlgmr.msrb.gmra.mxu1 %v19629_v29 }
 0x165   : > { %9594 = vmatpush.bf16.msra.mxu0 %v13124_v41  ;;  %9607 = vmatpush.bf16.msra.mxu1 %v14564_v42  ;;  %v18499_v41 = vld [vmem:[%s19479_s30 + $0x1c3c] sm:$0xf]  ;;  %v15461_v42 = vld [vmem:[%s19479_s30 + $0x1cec] sm:$0xf0]  ;;  %v9319_v45 = vpop.f32.mrf.mxu2  ;;  %v9332_v46 = vpop.f32.mrf.mxu3 }
 0x166   : > { %v15464_v51 = vor.u32 %v18499_v41, %v15461_v42  ;;  %v13304_v41 = vor.u32 %v17959_v21, %v13301_v26  ;;  %v13128_v42 = vor.u32 %v17937_v30, %v13127_v27  ;;  %v17892_v45 = vld [vmem:[%s19479_s30 + $0x940] sm:$0xf0]  ;;  %v14387_v46 = vld [vmem:[%s19479_s30 + $0x13d0] sm:$0xf]  ;;  %v12587_v21 = vld [vmem:[%s19479_s30 + $0x5c0] sm:$0xf]  ;;  %v15828_v26 = vor.u32 %v18612_v11, %v15827_v10 }
 0x167   : > { %9575 = vmatpush.bf16.msrb.mxu2 %v14740_v63  ;;  %9588 = vmatpush.bf16.msrb.mxu3 %v16180_v0  ;;  %v12224_v63 = vor.u32 %v17689_v49, %v12221_v50  ;;  %v13664_v0 = vor.u32 %v18049_v55, %v13661_v56  ;;  %v18252_v49 = vld [vmem:[%s19479_s30 + $0x1480] sm:$0xf0]  ;;  %v18319_v50 = vld [vmem:[%s19479_s30 + $0x169c] sm:$0xf]  ;;  %v16181_v55 = vld [vmem:[%s19479_s30 + $0x228c] sm:$0xf0] }
 0x168   : > { %v16007_v56 = vld [vmem:[%s19479_s30 + $0x2078] sm:$0xf]  ;;  %v14027_v30 = vld [vmem:[%s19479_s30 + $0x1100] sm:$0xf]  ;;  %v12047_v10 = vld [vmem:[%s19479_s30 + $0x188] sm:$0xf] }
 0x169   : > { %9595 = vmatpush.bf16.msra.mxu0 %v12944_v61  ;;  %9608 = vmatpush.bf16.msra.mxu1 %v14384_v62  ;;  %v9345_v61 = vpop.f32.mrf.mxu0  ;;  %v9358_v62 = vpop.f32.mrf.mxu1  ;;  %v17667_v11 = vld [vmem:[%s19479_s30 + $0x238] sm:$0xf0] }
 0x16a   : > { %9576 = vmatmul.bf16.vlgmr.msrb.gmra.mxu2 %v19645_v53  ;;  %9589 = vmatmul.bf16.vlgmr.msrb.gmra.mxu3 %v19647_v54  ;;  %v19017_v61 = vld [vmem:[%s19479_s30 + $0x2c68] sm:$0xf0]  ;;  %v12948_v62 = vor.u32 %v17892_v45, %v12947_v44 }
 0x16b   : > { %9620 = vmatpush.bf16.msra.mxu2 %v16004_v4  ;;  %9633 = vmatpush.bf16.msra.mxu3 %v17444_v5  ;;  %v15284_v4 = vor.u32 %v18454_v57, %v15281_v58  ;;  %v16724_v5 = vor.u32 %v18814_v59, %v16721_v60  ;;  %v18657_v59 = vld [vmem:[%s19479_s30 + $0x2128] sm:$0xf0]  ;;  %v17447_v60 = vld [vmem:[%s19479_s30 + $0x2bb8] sm:$0xf] }
 0x16c   : > { %v16008_v6 = vor.u32 %v18657_v59, %v16007_v56  ;;  %v17448_v7 = vor.u32 %v19017_v61, %v17447_v60  ;;  %v17757_v44 = vld [vmem:[%s19479_s30 + $0x508] sm:$0xf0] }
 0x16d   : > { %9596 = vmatpush.bf16.msra.mxu0 %v12764_v14  ;;  %9609 = vmatpush.bf16.msra.mxu1 %v14204_v15  ;;  %v20053_v14 = vpop.f32.mrf.mxu2  ;;  %v20055_v15 = vpop.f32.mrf.mxu3 }
 0x16f   : > { %9621 = vmatpush.bf16.msra.mxu2 %v15824_v19  ;;  %9634 = vmatpush.bf16.msra.mxu3 %v17264_v20  ;;  %v17599_v19 = vld [vmem:[%s19479_s30 + $0x1c] sm:$0xf]  ;;  %v11861_v20 = vld [vmem:[%s19479_s30 + $0xcc] sm:$0xf0] }
 0x170   : > { %v11864_v40 = vor.u32 %v17599_v19, %v11861_v20  ;;  %v14208_v20 = vor.u32 %v18207_v9, %v14207_v8 }
 0x171   : > { %9597 = vmatpush.bf16.msra.mxu0 %v12584_v33  ;;  %9610 = vmatpush.bf16.msra.mxu1 %v14024_v34  ;;  %v14567_v33 = vld [vmem:[%s19479_s30 + $0x1538] sm:$0xf]  ;;  %v18297_v34 = vld [vmem:[%s19479_s30 + $0x15e8] sm:$0xf0] }
 0x172   : > { %v14568_v43 = vor.u32 %v18297_v34, %v14567_v33  ;;  %v18162_v33 = vld [vmem:[%s19479_s30 + $0x11b0] sm:$0xf0]  ;;  %v15647_v34 = vld [vmem:[%s19479_s30 + $0x1da8] sm:$0xf] }
 0x173   : > { %9622 = vmatpush.bf16.msra.mxu2 %v15644_v37  ;;  %9635 = vmatpush.bf16.msra.mxu3 %v17084_v38  ;;  %v18724_v37 = vld [vmem:[%s19479_s30 + $0x2344] sm:$0xf]  ;;  %v16361_v38 = vld [vmem:[%s19479_s30 + $0x23f4] sm:$0xf0] }
 0x175   : > { %9598 = vmatpush.bf16.msra.mxu0 %v12404_v47  ;;  %9611 = vmatpush.bf16.msra.mxu1 %v13844_v48  ;;  %v14924_v47 = vor.u32 %v18364_v35, %v14921_v36  ;;  %v16364_v48 = vor.u32 %v18724_v37, %v16361_v38  ;;  %v9371_v57 = vpop.f32.mrf.mxu2  ;;  %v9384_v58 = vpop.f32.mrf.mxu3  ;;  %v18567_v37 = vld [vmem:[%s19479_s30 + $0x1e58] sm:$0xf0]  ;;  %v17087_v38 = vld [vmem:[%s19479_s30 + $0x28e8] sm:$0xf] }
 0x176   : > { %v15648_v45 = vor.u32 %v18567_v37, %v15647_v34  ;;  %v12227_v58 = vld [vmem:[%s19479_s30 + $0x2f0] sm:$0xf]  ;;  %v11867_v34 = vld [vmem:[%s19479_s30 + $0x20] sm:$0xf]  ;;  %v17622_v37 = vld [vmem:[%s19479_s30 + $0xd0] sm:$0xf0] }
 0x177   : > { %9623 = vmatpush.bf16.msra.mxu2 %v15464_v51  ;;  %9636 = vmatpush.bf16.msra.mxu3 %v16904_v52  ;;  %v14741_v51 = vld [vmem:[%s19479_s30 + $0x174c] sm:$0xf0]  ;;  %v18679_v52 = vld [vmem:[%s19479_s30 + $0x21dc] sm:$0xf] }
 0x178   : > { %v16184_v1 = vor.u32 %v18679_v52, %v16181_v55 }
 0x179   : > { %9599 = vmatpush.bf16.msra.mxu0 %v12224_v63  ;;  %9612 = vmatpush.bf16.msra.mxu1 %v13664_v0  ;;  %v14388_v63 = vor.u32 %v18252_v49, %v14387_v46  ;;  %v14744_v0 = vor.u32 %v18319_v50, %v14741_v51  ;;  %v18522_v49 = vld [vmem:[%s19479_s30 + $0x1cf0] sm:$0xf0]  ;;  %v16907_v50 = vld [vmem:[%s19479_s30 + $0x2780] sm:$0xf] }
 0x17a   : > { %v18882_v51 = vld [vmem:[%s19479_s30 + $0x2830] sm:$0xf0] }
 0x17b   : > { %9624 = vmatpush.bf16.msra.mxu2 %v15284_v4  ;;  %9637 = vmatpush.bf16.msra.mxu3 %v16724_v5  ;;  %v17847_v4 = vld [vmem:[%s19479_s30 + $0x7d8] sm:$0xf0]  ;;  %v9292_v5 = vadd.f32 %v19976_v22, %v1909_v39  ;;  %v1910_v22 = vperm.slane %v19924_v2, 2  ;;  %v16908_v61 = vor.u32 %v18882_v51, %v16907_v50  ;;  %v11868_v50 = vor.u32 %v17622_v37, %v11867_v34  ;;  %v17780_v34 = vld [vmem:[%s19479_s30 + $0x5c4] sm:$0xf] }
 0x17c   : > { %v12768_v19 = vor.u32 %v17847_v4, %v12767_v3  ;;  %v18927_v39 = vld [vmem:[%s19479_s30 + $0x2998] sm:$0xf0]  ;;  %v18477_v3 = vld [vmem:[%s19479_s30 + $0x1b88] sm:$0xf0]  ;;  %v16727_v4 = vld [vmem:[%s19479_s30 + $0x2618] sm:$0xf] }
 0x17d   : > { %9600 = vmatpush.bf16.msra.mxu0 %v12044_v17  ;;  %9613 = vmatpush.bf16.msra.mxu1 %v13484_v18  ;;  %v17267_v17 = vld [vmem:[%s19479_s30 + $0x2a50] sm:$0xf]  ;;  %v18972_v18 = vld [vmem:[%s19479_s30 + $0x2b00] sm:$0xf0]  ;;  %v17088_v46 = vor.u32 %v18927_v39, %v17087_v38  ;;  %v13307_v38 = vld [vmem:[%s19479_s30 + $0xb60] sm:$0xf] }
 0x17e   : > { %v17268_v27 = vor.u32 %v18972_v18, %v17267_v17 }
 0x17f   : > { %9625 = vmatpush.bf16.msra.mxu2 %v15104_v24  ;;  %9638 = vmatpush.bf16.msra.mxu3 %v16544_v25  ;;  %v17802_v24 = vld [vmem:[%s19479_s30 + $0x670] sm:$0xf0]  ;;  %v9305_v25 = vadd.f32 %v19978_v23, %v9292_v5  ;;  %v9344_v23 = vadd.f32 %v20025_v31, %v1910_v22  ;;  %v15467_v31 = vld [vmem:[%s19479_s30 + $0x1c40] sm:$0xf]  ;;  %v18837_v5 = vld [vmem:[%s19479_s30 + $0x26c8] sm:$0xf0] }
 0x180   : > { %v15468_v60 = vor.u32 %v18522_v49, %v15467_v31  ;;  %v16728_v18 = vor.u32 %v18837_v5, %v16727_v4  ;;  %v13487_v22 = vld [vmem:[%s19479_s30 + $0xcc8] sm:$0xf]  ;;  %v18747_v31 = vld [vmem:[%s19479_s30 + $0x23f8] sm:$0xf0]  ;;  %v16009_v5 = vld [vmem:[%s19479_s30 + $0x212c] sm:$0xf0] }
 0x181   : > { %9601 = vmatpush.bf16.msra.mxu0 %v11864_v40  ;;  %9614 = vmatpush.bf16.msra.mxu1 %v13304_v41  ;;  %v9395_v35 = vpop.f32.mrf.mxu0  ;;  %v9408_v36 = vpop.f32.mrf.mxu1  ;;  %v9318_v40 = vadd.f32 %v20011_v12, %v9305_v25  ;;  %v1911_v41 = vperm.slane %v19924_v2, 3  ;;  %v14028_v12 = vor.u32 %v18162_v33, %v14027_v30  ;;  %v9357_v55 = vadd.f32 %v20027_v32, %v9344_v23  ;;  %v15287_v32 = vld [vmem:[%s19479_s30 + $0x1ad8] sm:$0xf]  ;;  %v18432_v25 = vld [vmem:[%s19479_s30 + $0x1a20] sm:$0xf0] }
 0x182   : > { %v15288_v17 = vor.u32 %v18477_v3, %v15287_v32  ;;  %v14747_v32 = vld [vmem:[%s19479_s30 + $0x16a0] sm:$0xf]  ;;  %v18702_v3 = vld [vmem:[%s19479_s30 + $0x2290] sm:$0xf0]  ;;  %v18635_v4 = vld [vmem:[%s19479_s30 + $0x207c] sm:$0xf] }
 0x183   : > { %9626 = vmatpush.bf16.msra.mxu2 %v14924_v47  ;;  %9639 = vmatpush.bf16.msra.mxu3 %v16364_v48  ;;  %v13847_v47 = vld [vmem:[%s19479_s30 + $0xf98] sm:$0xf]  ;;  %v18117_v48 = vld [vmem:[%s19479_s30 + $0x1048] sm:$0xf0]  ;;  %v20118_v52 = vadd.f32 %v20013_v13, %v9318_v40  ;;  %v17712_v13 = vld [vmem:[%s19479_s30 + $0x3a0] sm:$0xf0]  ;;  %v9396_v59 = vadd.f32 %v9395_v35, %v1911_v41  ;;  %v12048_v35 = vor.u32 %v17667_v11, %v12047_v10 }
 0x184   : > { %9602 = vmatmul.bf16.vlgmr.msra.gmra.mxu0 %v19627_v28  ;;  %9615 = vmatmul.bf16.vlgmr.msra.gmra.mxu1 %v19629_v29  ;;  %v13848_v57 = vor.u32 %v18117_v48, %v13847_v47  ;;  %v12228_v8 = vor.u32 %v17712_v13, %v12227_v58  ;;  %v17915_v41 = vld [vmem:[%s19479_s30 + $0x9fc] sm:$0xf]  ;;  %v16367_v48 = vld [vmem:[%s19479_s30 + $0x2348] sm:$0xf]  ;;  %v18230_v58 = vld [vmem:[%s19479_s30 + $0x13d4] sm:$0xf] }
 0x185   : > { %9646 = vmatpush.bf16.msrb.mxu0 %v13128_v42  ;;  %9659 = vmatpush.bf16.msrb.mxu1 %v14568_v43  ;;  %v12588_v42 = vor.u32 %v17802_v24, %v12587_v21  ;;  %v12407_v43 = vld [vmem:[%s19479_s30 + $0x458] sm:$0xf] }
 0x186   : > { %v12408_v56 = vor.u32 %v17757_v44, %v12407_v43  ;;  %v14569_v43 = vld [vmem:[%s19479_s30 + $0x15ec] sm:$0xf0]  ;;  %v14927_v44 = vld [vmem:[%s19479_s30 + $0x1808] sm:$0xf] }
 0x187   : > { %9627 = vmatpush.bf16.msra.mxu2 %v14744_v0  ;;  %9640 = vmatpush.bf16.msra.mxu3 %v16184_v1 }
 0x189   : > { %9647 = vmatpush.bf16.msrb.mxu0 %v12948_v62  ;;  %9660 = vmatpush.bf16.msrb.mxu1 %v14388_v63  ;;  %v13667_v62 = vld [vmem:[%s19479_s30 + $0xe30] sm:$0xf]  ;;  %v18072_v63 = vld [vmem:[%s19479_s30 + $0xee0] sm:$0xf0]  ;;  %v9397_v0 = vpop.f32.mrf.mxu0  ;;  %v9410_v1 = vpop.f32.mrf.mxu1 }
 0x18a   : > { %9628 = vmatmul.bf16.vlgmr.msra.gmra.mxu2 %v19645_v53  ;;  %9641 = vmatmul.bf16.vlgmr.msra.gmra.mxu3 %v19647_v54  ;;  %v13668_v9 = vor.u32 %v18072_v63, %v13667_v62  ;;  %v14389_v63 = vld [vmem:[%s19479_s30 + $0x1484] sm:$0xf0]  ;;  %v18342_v0 = vld [vmem:[%s19479_s30 + $0x1750] sm:$0xf0]  ;;  %v16187_v1 = vld [vmem:[%s19479_s30 + $0x21e0] sm:$0xf] }
 0x18b   : > { %9672 = vmatpush.bf16.msrb.mxu2 %v16008_v6  ;;  %9685 = vmatpush.bf16.msrb.mxu3 %v17448_v7  ;;  %v9370_v6 = vadd.f32 %v20053_v14, %v9357_v55  ;;  %v11614_v7 = vrot.slane %v20118_v52, 6  ;;  %v9409_v14 = vadd.f32 %v9408_v36, %v9396_v59  ;;  %v14748_v10 = vor.u32 %v18342_v0, %v14747_v32 }
 0x18c   : > { %v16188_v11 = vor.u32 %v18702_v3, %v16187_v1  ;;  %v15289_v1 = vld [vmem:[%s19479_s30 + $0x1b8c] sm:$0xf0]  ;;  %v18815_v3 = vld [vmem:[%s19479_s30 + $0x261c] sm:$0xf] }
 0x18d   : > { %9648 = vmatpush.bf16.msrb.mxu0 %v12768_v19  ;;  %9661 = vmatpush.bf16.msrb.mxu1 %v14208_v20  ;;  %v18027_v19 = vld [vmem:[%s19479_s30 + $0xd78] sm:$0xf0]  ;;  %v15107_v20 = vld [vmem:[%s19479_s30 + $0x1970] sm:$0xf]  ;;  %v9421_v21 = vpop.f32.mrf.mxu2  ;;  %v9434_v24 = vpop.f32.mrf.mxu3  ;;  %v9383_v30 = vadd.f32 %v20055_v15, %v9370_v6  ;;  %v17982_v15 = vld [vmem:[%s19479_s30 + $0xc10] sm:$0xf0]  ;;  %v11648_v49 = vsel %vm11647_vm1, %v19971_v16, %v11614_v7 }
 0x18e   : > { %v9422_v33 = vadd.f32 %v9421_v21, %v9409_v14  ;;  %v13488_v36 = vor.u32 %v18027_v19, %v13487_v22  ;;  %v15108_v40 = vor.u32 %v18432_v25, %v15107_v20  ;;  %v13308_v51 = vor.u32 %v17982_v15, %v13307_v38  ;;  %v18995_v6 = vld [vmem:[%s19479_s30 + $0x2bbc] sm:$0xf]  ;;  %v17449_v7 = vld [vmem:[%s19479_s30 + $0x2c6c] sm:$0xf0]  ;;  %v17825_v14 = vld [vmem:[%s19479_s30 + $0x72c] sm:$0xf] }
 0x18f   : > { %9673 = vmatpush.bf16.msrb.mxu2 %v15828_v26  ;;  %9686 = vmatpush.bf16.msrb.mxu3 %v17268_v27  ;;  %v16547_v26 = vld [vmem:[%s19479_s30 + $0x24b0] sm:$0xf]  ;;  %v18792_v27 = vld [vmem:[%s19479_s30 + $0x2560] sm:$0xf0]  ;;  %v17452_v22 = vor.u32 %v18995_v6, %v17449_v7  ;;  %v18185_v19 = vld [vmem:[%s19479_s30 + $0x126c] sm:$0xf] }
 0x190   : > { %v9435_v39 = vadd.f32 %v9434_v24, %v9422_v33  ;;  %v16548_v23 = vor.u32 %v18792_v27, %v16547_v26  ;;  %v14209_v20 = vld [vmem:[%s19479_s30 + $0x131c] sm:$0xf0]  ;;  %v18590_v21 = vld [vmem:[%s19479_s30 + $0x1f14] sm:$0xf]  ;;  %v15829_v24 = vld [vmem:[%s19479_s30 + $0x1fc4] sm:$0xf0] }
 0x191   : > { %9649 = vmatpush.bf16.msrb.mxu0 %v12588_v42  ;;  %9662 = vmatpush.bf16.msrb.mxu1 %v14028_v12  ;;  %v13129_v42 = vld [vmem:[%s19479_s30 + $0xaac] sm:$0xf0]  ;;  %v18275_v12 = vld [vmem:[%s19479_s30 + $0x153c] sm:$0xf]  ;;  %v18950_v25 = vld [vmem:[%s19479_s30 + $0x2a54] sm:$0xf]  ;;  %v14212_v33 = vor.u32 %v18185_v19, %v14209_v20 }
 0x192   : > { %v11616_v47 = vrot.slane %v9435_v39, 2  ;;  %v13132_v16 = vor.u32 %v17915_v41, %v13129_v42  ;;  %v14572_v55 = vor.u32 %v18275_v12, %v14569_v43  ;;  %v17269_v26 = vld [vmem:[%s19479_s30 + $0x2b04] sm:$0xf0]  ;;  %v1912_v27 = vperm.slane %v19924_v2, 4  ;;  %v18140_v38 = vld [vmem:[%s19479_s30 + $0x1104] sm:$0xf] }
 0x193   : > { %9674 = vmatpush.bf16.msrb.mxu2 %v15648_v45  ;;  %9687 = vmatpush.bf16.msrb.mxu3 %v17088_v46  ;;  %v18387_v45 = vld [vmem:[%s19479_s30 + $0x18b8] sm:$0xf0]  ;;  %v11615_v46 = vrot.slane %v9383_v30, 4  ;;  %v17272_v37 = vor.u32 %v18950_v25, %v17269_v26  ;;  %v14029_v15 = vld [vmem:[%s19479_s30 + $0x11b4] sm:$0xf0] }
 0x194   : > { %v14928_v59 = vor.u32 %v18387_v45, %v14927_v44  ;;  %v18545_v39 = vld [vmem:[%s19479_s30 + $0x1dac] sm:$0xf]  ;;  %v17089_v42 = vld [vmem:[%s19479_s30 + $0x299c] sm:$0xf0]  ;;  %v14032_v44 = vor.u32 %v18140_v38, %v14029_v15  ;;  %v17735_v45 = vld [vmem:[%s19479_s30 + $0x45c] sm:$0xf] }
 0x195   : > { %9650 = vmatpush.bf16.msrb.mxu0 %v12408_v56  ;;  %9663 = vmatpush.bf16.msrb.mxu1 %v13848_v57  ;;  %v11650_v52 = vsel %vm11649_vm2, %v11615_v46, %v11616_v47  ;;  %v17870_v56 = vld [vmem:[%s19479_s30 + $0x894] sm:$0xf]  ;;  %v12949_v57 = vld [vmem:[%s19479_s30 + $0x944] sm:$0xf0]  ;;  %v9436_v62 = vpop.f32.mrf.mxu3  ;;  %v18905_v41 = vld [vmem:[%s19479_s30 + $0x28ec] sm:$0xf] }
 0x196   : > { %v11652_v13 = vsel %vm11651_vm3, %v11648_v49, %v11650_v52  ;;  %v12409_v46 = vld [vmem:[%s19479_s30 + $0x50c] sm:$0xf0]  ;;  %v18095_v49 = vld [vmem:[%s19479_s30 + $0xf9c] sm:$0xf]  ;;  %v15469_v52 = vld [vmem:[%s19479_s30 + $0x1cf4] sm:$0xf0] }
 0x197   : > { %9675 = vmatpush.bf16.msrb.mxu2 %v15468_v60  ;;  %9688 = vmatpush.bf16.msrb.mxu3 %v16908_v61  ;;  %v16368_v60 = vor.u32 %v18747_v31, %v16367_v48  ;;  %v9423_v61 = vpop.f32.mrf.mxu2  ;;  %11694 = vst [vmem:[%s20170_s21] sm:$0xff] %v11652_v13  ;;  %v17092_v31 = vor.u32 %v18905_v41, %v17089_v42  ;;  %v12229_v13 = vld [vmem:[%s19479_s30 + $0x3a4] sm:$0xf0]  ;;  %v17645_v7 = vld [vmem:[%s19479_s30 + $0x18c] sm:$0xf]  ;;  %v18770_v20 = vld [vmem:[%s19479_s30 + $0x24b4] sm:$0xf] }
 0x198   : > { %v18050_v61 = vld [vmem:[%s19479_s30 + $0xe34] sm:$0xf]  ;;  %v13669_v62 = vld [vmem:[%s19479_s30 + $0xee4] sm:$0xf0]  ;;  %v13135_v38 = vld [vmem:[%s19479_s30 + $0xa00] sm:$0xf] }
 0x199   : > { %9651 = vmatpush.bf16.msrb.mxu0 %v12228_v8  ;;  %9664 = vmatpush.bf16.msrb.mxu1 %v13668_v9  ;;  %v12952_v8 = vor.u32 %v17870_v56, %v12949_v57  ;;  %v14392_v9 = vor.u32 %v18230_v58, %v14389_v63  ;;  %v12412_v56 = vor.u32 %v17735_v45, %v12409_v46  ;;  %v17690_v58 = vld [vmem:[%s19479_s30 + $0x2f4] sm:$0xf]  ;;  %v18455_v63 = vld [vmem:[%s19479_s30 + $0x1adc] sm:$0xf]  ;;  %v15109_v19 = vld [vmem:[%s19479_s30 + $0x1a24] sm:$0xf0] }
 0x19a   : > { %v13672_v6 = vor.u32 %v18050_v61, %v13669_v62  ;;  %v17938_v15 = vld [vmem:[%s19479_s30 + $0xab0] sm:$0xf0]  ;;  %v18725_v41 = vld [vmem:[%s19479_s30 + $0x234c] sm:$0xf]  ;;  %v16369_v42 = vld [vmem:[%s19479_s30 + $0x23fc] sm:$0xf0] }
 0x19b   : > { %9676 = vmatpush.bf16.msrb.mxu2 %v15288_v17  ;;  %9689 = vmatpush.bf16.msrb.mxu3 %v16728_v18  ;;  %v12769_v17 = vld [vmem:[%s19479_s30 + $0x7dc] sm:$0xf0]  ;;  %v16012_v18 = vor.u32 %v18635_v4, %v16009_v5  ;;  %v16729_v4 = vld [vmem:[%s19479_s30 + $0x26cc] sm:$0xf0]  ;;  %v12232_v5 = vor.u32 %v17690_v58, %v12229_v13  ;;  %v12955_v46 = vld [vmem:[%s19479_s30 + $0x898] sm:$0xf] }
 0x19c   : > { %v12772_v30 = vor.u32 %v17825_v14, %v12769_v17  ;;  %v13489_v14 = vld [vmem:[%s19479_s30 + $0xd7c] sm:$0xf0]  ;;  %v18410_v17 = vld [vmem:[%s19479_s30 + $0x1974] sm:$0xf] }
 0x19d   : > { %9652 = vmatpush.bf16.msrb.mxu0 %v12048_v35  ;;  %9665 = vmatpush.bf16.msrb.mxu1 %v13488_v36  ;;  %v12589_v35 = vld [vmem:[%s19479_s30 + $0x674] sm:$0xf0]  ;;  %v15832_v36 = vor.u32 %v18590_v21, %v15829_v24  ;;  %v16549_v21 = vld [vmem:[%s19479_s30 + $0x2564] sm:$0xf0]  ;;  %v16015_v58 = vld [vmem:[%s19479_s30 + $0x2080] sm:$0xf] }
 0x19e   : > { %v12592_v43 = vor.u32 %v17780_v34, %v12589_v35  ;;  %v15112_v35 = vor.u32 %v18410_v17, %v15109_v19  ;;  %v18658_v13 = vld [vmem:[%s19479_s30 + $0x2130] sm:$0xf0]  ;;  %v17803_v19 = vld [vmem:[%s19479_s30 + $0x678] sm:$0xf0] }
 0x19f   : > { %9677 = vmatpush.bf16.msrb.mxu2 %v15108_v40  ;;  %9690 = vmatpush.bf16.msrb.mxu3 %v16548_v23  ;;  %v15649_v23 = vld [vmem:[%s19479_s30 + $0x1e5c] sm:$0xf0] }
 0x1a0   : > { %v15652_v48 = vor.u32 %v18545_v39, %v15649_v23  ;;  %v14575_v39 = vld [vmem:[%s19479_s30 + $0x1540] sm:$0xf] }
 0x1a1   : > { %9653 = vmatpush.bf16.msrb.mxu0 %v11868_v50  ;;  %9666 = vmatpush.bf16.msrb.mxu1 %v13308_v51  ;;  %v9447_v40 = vpop.f32.mrf.mxu0  ;;  %v9460_v2 = vpop.f32.mrf.mxu1  ;;  %v13849_v50 = vld [vmem:[%s19479_s30 + $0x104c] sm:$0xf0]  ;;  %v18500_v51 = vld [vmem:[%s19479_s30 + $0x1c44] sm:$0xf]  ;;  %v14929_v23 = vld [vmem:[%s19479_s30 + $0x18bc] sm:$0xf0] }
 0x1a2   : > { %v9448_v12 = vadd.f32 %v9447_v40, %v1912_v27  ;;  %v13852_v57 = vor.u32 %v18095_v49, %v13849_v50  ;;  %v17600_v27 = vld [vmem:[%s19479_s30 + $0x24] sm:$0xf]  ;;  %v18298_v40 = vld [vmem:[%s19479_s30 + $0x15f0] sm:$0xf0]  ;;  %v16372_v49 = vor.u32 %v18725_v41, %v16369_v42  ;;  %v13855_v42 = vld [vmem:[%s19479_s30 + $0xfa0] sm:$0xf] }
 0x1a3   : > { %9678 = vmatpush.bf16.msrb.mxu2 %v14928_v59  ;;  %9691 = vmatpush.bf16.msrb.mxu3 %v16368_v60  ;;  %v15472_v59 = vor.u32 %v18500_v51, %v15469_v52  ;;  %v14576_v45 = vor.u32 %v18298_v40, %v14575_v39  ;;  %v18253_v52 = vld [vmem:[%s19479_s30 + $0x1488] sm:$0xf0]  ;;  %v12415_v39 = vld [vmem:[%s19479_s30 + $0x460] sm:$0xf]  ;;  %v17758_v40 = vld [vmem:[%s19479_s30 + $0x510] sm:$0xf0] }
 0x1a4   : > { %9654 = vmatmul.bf16.vlgmr.msrb.gmra.mxu0 %v19627_v28  ;;  %9667 = vmatmul.bf16.vlgmr.msrb.gmra.mxu1 %v19629_v29  ;;  %v9461_v47 = vadd.f32 %v9460_v2, %v9448_v12  ;;  %v18365_v2 = vld [vmem:[%s19479_s30 + $0x180c] sm:$0xf] }
 0x1a5   : > { %9698 = vmatpush.bf16.msra.mxu0 %v13132_v16  ;;  %9711 = vmatpush.bf16.msra.mxu1 %v14572_v55  ;;  %v18860_v16 = vld [vmem:[%s19479_s30 + $0x2784] sm:$0xf]  ;;  %v16909_v55 = vld [vmem:[%s19479_s30 + $0x2834] sm:$0xf0] }
 0x1a6   : > { %v16912_v60 = vor.u32 %v18860_v16, %v16909_v55  ;;  %v18320_v16 = vld [vmem:[%s19479_s30 + $0x16a4] sm:$0xf]  ;;  %v14749_v55 = vld [vmem:[%s19479_s30 + $0x1754] sm:$0xf0] }
 0x1a7   : > { %9679 = vmatpush.bf16.msrb.mxu2 %v14748_v10  ;;  %9692 = vmatpush.bf16.msrb.mxu3 %v16188_v11  ;;  %v16732_v10 = vor.u32 %v18815_v3, %v16729_v4  ;;  %v18005_v11 = vld [vmem:[%s19479_s30 + $0xccc] sm:$0xf]  ;;  %v16016_v3 = vor.u32 %v18658_v13, %v16015_v58  ;;  %v18478_v58 = vld [vmem:[%s19479_s30 + $0x1b90] sm:$0xf0]  ;;  %v16735_v13 = vld [vmem:[%s19479_s30 + $0x2620] sm:$0xf] }
 0x1a8   : > { %v13492_v26 = vor.u32 %v18005_v11, %v13489_v14  ;;  %v20269_v11 = vld [vmem:[%s19921_s6] sm:$0xff] }
 0x1a9   : > { %9699 = vmatpush.bf16.msra.mxu0 %v12952_v8  ;;  %9712 = vmatpush.bf16.msra.mxu1 %v14392_v9  ;;  %v9449_v32 = vpop.f32.mrf.mxu0  ;;  %v9462_v0 = vpop.f32.mrf.mxu1  ;;  %v12049_v8 = vld [vmem:[%s19479_s30 + $0x23c] sm:$0xf0]  ;;  %v15292_v9 = vor.u32 %v18455_v63, %v15289_v1  ;;  %v14752_v63 = vor.u32 %v18320_v16, %v14749_v55  ;;  %v17848_v1 = vld [vmem:[%s19479_s30 + $0x7e0] sm:$0xf0]  ;;  %v1913_v14 = vperm.slane %v20269_v11, 5 }
 0x1aa   : > { %9680 = vmatmul.bf16.vlgmr.msrb.gmra.mxu2 %v19645_v53  ;;  %9693 = vmatmul.bf16.vlgmr.msrb.gmra.mxu3 %v19647_v54  ;;  %v12052_v25 = vor.u32 %v17645_v7, %v12049_v8  ;;  %v12775_v0 = vld [vmem:[%s19479_s30 + $0x730] sm:$0xf]  ;;  %v15835_v7 = vld [vmem:[%s19479_s30 + $0x1f18] sm:$0xf]  ;;  %v18613_v8 = vld [vmem:[%s19479_s30 + $0x1fc8] sm:$0xf0] }
 0x1ab   : > { %9724 = vmatpush.bf16.msra.mxu2 %v16012_v18  ;;  %9737 = vmatpush.bf16.msra.mxu3 %v17452_v22  ;;  %v12776_v17 = vor.u32 %v17848_v1, %v12775_v0  ;;  %v18073_v16 = vld [vmem:[%s19479_s30 + $0xee8] sm:$0xf0]  ;;  %v15295_v55 = vld [vmem:[%s19479_s30 + $0x1ae0] sm:$0xf]  ;;  %v13495_v1 = vld [vmem:[%s19479_s30 + $0xcd0] sm:$0xf] }
 0x1ad   : > { %9700 = vmatpush.bf16.msra.mxu0 %v12772_v30  ;;  %9713 = vmatpush.bf16.msra.mxu1 %v14212_v33  ;;  %v9473_v18 = vpop.f32.mrf.mxu2  ;;  %v9486_v22 = vpop.f32.mrf.mxu3  ;;  %v11869_v30 = vld [vmem:[%s19479_s30 + $0xd4] sm:$0xf0]  ;;  %v17960_v33 = vld [vmem:[%s19479_s30 + $0xb64] sm:$0xf] }
 0x1ae   : > { %v9474_v24 = vadd.f32 %v9473_v18, %v9461_v47  ;;  %v11872_v12 = vor.u32 %v17600_v27, %v11869_v30  ;;  %v17893_v47 = vld [vmem:[%s19479_s30 + $0x948] sm:$0xf0] }
 0x1af   : > { %9725 = vmatpush.bf16.msra.mxu2 %v15832_v36  ;;  %9738 = vmatpush.bf16.msra.mxu3 %v17272_v37  ;;  %v16552_v36 = vor.u32 %v18770_v20, %v16549_v21  ;;  %v13309_v37 = vld [vmem:[%s19479_s30 + $0xc14] sm:$0xf0]  ;;  %v12956_v61 = vor.u32 %v17893_v47, %v12955_v46  ;;  %v15836_v20 = vor.u32 %v18613_v8, %v15835_v7  ;;  %v18883_v46 = vld [vmem:[%s19479_s30 + $0x2838] sm:$0xf0]  ;;  %v18433_v7 = vld [vmem:[%s19479_s30 + $0x1a28] sm:$0xf0] }
 0x1b0   : > { %v20235_v34 = vadd.f32 %v9486_v22, %v9474_v24  ;;  %v12595_v22 = vld [vmem:[%s19479_s30 + $0x5c8] sm:$0xf]  ;;  %v12416_v47 = vor.u32 %v17758_v40, %v12415_v39  ;;  %v16555_v8 = vld [vmem:[%s19479_s30 + $0x24b8] sm:$0xf] }
 0x1b1   : > { %9701 = vmatpush.bf16.msra.mxu0 %v12592_v43  ;;  %9714 = vmatpush.bf16.msra.mxu1 %v14032_v44  ;;  %v13312_v43 = vor.u32 %v17960_v33, %v13309_v37  ;;  %v13136_v44 = vor.u32 %v17938_v15, %v13135_v38  ;;  %v14035_v24 = vld [vmem:[%s19479_s30 + $0x1108] sm:$0xf]  ;;  %v18568_v33 = vld [vmem:[%s19479_s30 + $0x1e60] sm:$0xf0]  ;;  %v12596_v38 = vor.u32 %v17803_v19, %v12595_v22  ;;  %v17623_v22 = vld [vmem:[%s19479_s30 + $0xd8] sm:$0xf0] }
 0x1b2   : > { %v13315_v19 = vld [vmem:[%s19479_s30 + $0xb68] sm:$0xf] }
 0x1b3   : > { %9726 = vmatpush.bf16.msra.mxu2 %v15652_v48  ;;  %9739 = vmatpush.bf16.msra.mxu3 %v17092_v31  ;;  %v14395_v48 = vld [vmem:[%s19479_s30 + $0x13d8] sm:$0xf]  ;;  %v14932_v31 = vor.u32 %v18365_v2, %v14929_v23 }
 0x1b4   : > { %v14396_v62 = vor.u32 %v18253_v52, %v14395_v48  ;;  %v13675_v52 = vld [vmem:[%s19479_s30 + $0xe38] sm:$0xf] }
 0x1b5   : > { %9702 = vmatpush.bf16.msra.mxu0 %v12412_v56  ;;  %9715 = vmatpush.bf16.msra.mxu1 %v13852_v57  ;;  %v9475_v50 = vpop.f32.mrf.mxu2  ;;  %v9488_v51 = vpop.f32.mrf.mxu3  ;;  %v18680_v56 = vld [vmem:[%s19479_s30 + $0x21e4] sm:$0xf]  ;;  %v16189_v57 = vld [vmem:[%s19479_s30 + $0x2294] sm:$0xf0] }
 0x1b6   : > { %v16192_v32 = vor.u32 %v18680_v56, %v16189_v57 }
 0x1b7   : > { %9727 = vmatpush.bf16.msra.mxu2 %v15472_v59  ;;  %9740 = vmatpush.bf16.msra.mxu3 %v16912_v60  ;;  %v17455_v59 = vld [vmem:[%s19479_s30 + $0x2bc0] sm:$0xf]  ;;  %v19018_v60 = vld [vmem:[%s19479_s30 + $0x2c70] sm:$0xf0] }
 0x1b8   : > { %v17456_v4 = vor.u32 %v19018_v60, %v17455_v59  ;;  %v18838_v59 = vld [vmem:[%s19479_s30 + $0x26d0] sm:$0xf0] }
 0x1b9   : > { %9703 = vmatpush.bf16.msra.mxu0 %v12232_v5  ;;  %9716 = vmatpush.bf16.msra.mxu1 %v13672_v6  ;;  %v14215_v5 = vld [vmem:[%s19479_s30 + $0x1270] sm:$0xf]  ;;  %v18208_v6 = vld [vmem:[%s19479_s30 + $0x1320] sm:$0xf0]  ;;  %v16736_v0 = vor.u32 %v18838_v59, %v16735_v13  ;;  %v17826_v59 = vld [vmem:[%s19479_s30 + $0x734] sm:$0xf] }
 0x1ba   : > { %v14216_v18 = vor.u32 %v18208_v6, %v14215_v5 }
 0x1bb   : > { %9728 = vmatpush.bf16.msra.mxu2 %v15292_v9  ;;  %9741 = vmatpush.bf16.msra.mxu3 %v16732_v10  ;;  %v17275_v9 = vld [vmem:[%s19479_s30 + $0x2a58] sm:$0xf]  ;;  %v18973_v10 = vld [vmem:[%s19479_s30 + $0x2b08] sm:$0xf0] }
 0x1bc   : > { %v17276_v21 = vor.u32 %v18973_v10, %v17275_v9  ;;  %v18793_v9 = vld [vmem:[%s19479_s30 + $0x2568] sm:$0xf0] }
 0x1bd   : > { %9704 = vmatpush.bf16.msra.mxu0 %v12052_v25  ;;  %9717 = vmatpush.bf16.msra.mxu1 %v13492_v26  ;;  %v18163_v25 = vld [vmem:[%s19479_s30 + $0x11b8] sm:$0xf0]  ;;  %v15655_v26 = vld [vmem:[%s19479_s30 + $0x1db0] sm:$0xf] }
 0x1be   : > { %v14036_v15 = vor.u32 %v18163_v25, %v14035_v24  ;;  %v15656_v23 = vor.u32 %v18568_v33, %v15655_v26  ;;  %v16556_v25 = vor.u32 %v18793_v9, %v16555_v8  ;;  %v17916_v26 = vld [vmem:[%s19479_s30 + $0xa04] sm:$0xf]  ;;  %v14577_v33 = vld [vmem:[%s19479_s30 + $0x15f4] sm:$0xf0]  ;;  %v12597_v8 = vld [vmem:[%s19479_s30 + $0x67c] sm:$0xf0] }
 0x1bf   : > { %9729 = vmatpush.bf16.msra.mxu2 %v15112_v35  ;;  %9742 = vmatpush.bf16.msra.mxu3 %v16552_v36  ;;  %v17095_v35 = vld [vmem:[%s19479_s30 + $0x28f0] sm:$0xf]  ;;  %v18928_v36 = vld [vmem:[%s19479_s30 + $0x29a0] sm:$0xf0] }
 0x1c0   : > { %v17096_v41 = vor.u32 %v18928_v36, %v17095_v35  ;;  %v14935_v35 = vld [vmem:[%s19479_s30 + $0x1810] sm:$0xf]  ;;  %v18388_v36 = vld [vmem:[%s19479_s30 + $0x18c0] sm:$0xf0] }
 0x1c1   : > { %9705 = vmatpush.bf16.msra.mxu0 %v11872_v12  ;;  %9718 = vmatpush.bf16.msra.mxu1 %v13312_v43  ;;  %v9499_v27 = vpop.f32.mrf.mxu0  ;;  %v9512_v30 = vpop.f32.mrf.mxu1  ;;  %v18118_v12 = vld [vmem:[%s19479_s30 + $0x1050] sm:$0xf0]  ;;  %v15475_v43 = vld [vmem:[%s19479_s30 + $0x1c48] sm:$0xf] }
 0x1c2   : > { %v9500_v37 = vadd.f32 %v9499_v27, %v1913_v14  ;;  %v13856_v48 = vor.u32 %v18118_v12, %v13855_v42  ;;  %v11875_v14 = vld [vmem:[%s19479_s30 + $0x28] sm:$0xf]  ;;  %v13137_v27 = vld [vmem:[%s19479_s30 + $0xab4] sm:$0xf0]  ;;  %v17871_v42 = vld [vmem:[%s19479_s30 + $0x89c] sm:$0xf] }
 0x1c3   : > { %9730 = vmatpush.bf16.msra.mxu2 %v14932_v31  ;;  %9743 = vmatpush.bf16.msra.mxu3 %v16372_v49  ;;  %v12235_v31 = vld [vmem:[%s19479_s30 + $0x2f8] sm:$0xf]  ;;  %v17713_v49 = vld [vmem:[%s19479_s30 + $0x3a8] sm:$0xf0]  ;;  %v11876_v39 = vor.u32 %v17623_v22, %v11875_v14  ;;  %v12957_v12 = vld [vmem:[%s19479_s30 + $0x94c] sm:$0xf0] }
 0x1c4   : > { %9706 = vmatmul.bf16.vlgmr.msra.gmra.mxu0 %v19627_v28  ;;  %9719 = vmatmul.bf16.vlgmr.msra.gmra.mxu1 %v19629_v29  ;;  %v9513_v2 = vadd.f32 %v9512_v30, %v9500_v37  ;;  %v12236_v60 = vor.u32 %v17713_v49, %v12235_v31  ;;  %v18276_v30 = vld [vmem:[%s19479_s30 + $0x1544] sm:$0xf]  ;;  %v14755_v31 = vld [vmem:[%s19479_s30 + $0x16a8] sm:$0xf]  ;;  %v18141_v14 = vld [vmem:[%s19479_s30 + $0x110c] sm:$0xf] }
 0x1c5   : > { %9750 = vmatpush.bf16.msrb.mxu0 %v13136_v44  ;;  %9763 = vmatpush.bf16.msrb.mxu1 %v14576_v45  ;;  %v18523_v44 = vld [vmem:[%s19479_s30 + $0x1cf8] sm:$0xf0]  ;;  %v16915_v45 = vld [vmem:[%s19479_s30 + $0x2788] sm:$0xf] }
 0x1c6   : > { %v15476_v50 = vor.u32 %v18523_v44, %v15475_v43  ;;  %v16916_v51 = vor.u32 %v18883_v46, %v16915_v45  ;;  %v18231_v43 = vld [vmem:[%s19479_s30 + $0x13dc] sm:$0xf]  ;;  %v14936_v44 = vor.u32 %v18388_v36, %v14935_v35  ;;  %v16195_v49 = vld [vmem:[%s19479_s30 + $0x21e8] sm:$0xf]  ;;  %v18096_v36 = vld [vmem:[%s19479_s30 + $0xfa4] sm:$0xf] }
 0x1c7   : > { %9731 = vmatpush.bf16.msra.mxu2 %v14752_v63  ;;  %9744 = vmatpush.bf16.msra.mxu3 %v16192_v32  ;;  %v17668_v63 = vld [vmem:[%s19479_s30 + $0x240] sm:$0xf0]  ;;  %v15296_v32 = vor.u32 %v18478_v58, %v15295_v55  ;;  %v17457_v55 = vld [vmem:[%s19479_s30 + $0x2c74] sm:$0xf0] }
 0x1c9   : > { %9751 = vmatpush.bf16.msrb.mxu0 %v12956_v61  ;;  %9764 = vmatpush.bf16.msrb.mxu1 %v14396_v62  ;;  %v9501_v56 = vpop.f32.mrf.mxu0  ;;  %v9514_v57 = vpop.f32.mrf.mxu1  ;;  %v13676_v61 = vor.u32 %v18073_v16, %v13675_v52  ;;  %v12055_v62 = vld [vmem:[%s19479_s30 + $0x190] sm:$0xf]  ;;  %v16017_v52 = vld [vmem:[%s19479_s30 + $0x2134] sm:$0xf0]  ;;  %v18996_v16 = vld [vmem:[%s19479_s30 + $0x2bc4] sm:$0xf] }
 0x1ca   : > { %9732 = vmatmul.bf16.vlgmr.msra.gmra.mxu2 %v19645_v53  ;;  %9745 = vmatmul.bf16.vlgmr.msra.gmra.mxu3 %v19647_v54  ;;  %v12960_v56 = vor.u32 %v17871_v42, %v12957_v12  ;;  %v17691_v42 = vld [vmem:[%s19479_s30 + $0x2fc] sm:$0xf]  ;;  %v12237_v12 = vld [vmem:[%s19479_s30 + $0x3ac] sm:$0xf0] }
 0x1cb   : > { %9776 = vmatpush.bf16.msrb.mxu2 %v16016_v3  ;;  %9789 = vmatpush.bf16.msrb.mxu3 %v17456_v4  ;;  %v18028_v3 = vld [vmem:[%s19479_s30 + $0xd80] sm:$0xf0]  ;;  %v15115_v4 = vld [vmem:[%s19479_s30 + $0x1978] sm:$0xf] }
 0x1cc   : > { %v15116_v24 = vor.u32 %v18433_v7, %v15115_v4  ;;  %v17277_v4 = vld [vmem:[%s19479_s30 + $0x2b0c] sm:$0xf0]  ;;  %v17781_v7 = vld [vmem:[%s19479_s30 + $0x5cc] sm:$0xf] }
 0x1cd   : > { %9752 = vmatpush.bf16.msrb.mxu0 %v12776_v17  ;;  %9765 = vmatpush.bf16.msrb.mxu1 %v14216_v18  ;;  %v9525_v5 = vpop.f32.mrf.mxu2  ;;  %v9538_v6 = vpop.f32.mrf.mxu3  ;;  %v12056_v17 = vor.u32 %v17668_v63, %v12055_v62  ;;  %v13496_v18 = vor.u32 %v18028_v3, %v13495_v1  ;;  %v17460_v62 = vor.u32 %v18996_v16, %v17457_v55  ;;  %v18186_v63 = vld [vmem:[%s19479_s30 + $0x1274] sm:$0xf]  ;;  %v15837_v1 = vld [vmem:[%s19479_s30 + $0x1fcc] sm:$0xf0]  ;;  %v18951_v3 = vld [vmem:[%s19479_s30 + $0x2a5c] sm:$0xf] }
 0x1ce   : > { %v9526_v10 = vadd.f32 %v9525_v5, %v9513_v2  ;;  %v17646_v16 = vld [vmem:[%s19479_s30 + $0x194] sm:$0xf]  ;;  %v12057_v55 = vld [vmem:[%s19479_s30 + $0x244] sm:$0xf0] }
 0x1cf   : > { %9777 = vmatpush.bf16.msrb.mxu2 %v15836_v20  ;;  %9790 = vmatpush.bf16.msrb.mxu3 %v17276_v21  ;;  %v17983_v20 = vld [vmem:[%s19479_s30 + $0xc18] sm:$0xf0] }
 0x1d0   : > { %v9539_v21 = vadd.f32 %v9538_v6, %v9526_v10  ;;  %v13316_v40 = vor.u32 %v17983_v20, %v13315_v19  ;;  %v17280_v10 = vor.u32 %v18951_v3, %v17277_v4  ;;  %v15657_v20 = vld [vmem:[%s19479_s30 + $0x1e64] sm:$0xf0]  ;;  %v17601_v3 = vld [vmem:[%s19479_s30 + $0x2c] sm:$0xf]  ;;  %v11877_v4 = vld [vmem:[%s19479_s30 + $0xdc] sm:$0xf0] }
 0x1d1   : > { %9753 = vmatpush.bf16.msrb.mxu0 %v12596_v38  ;;  %9766 = vmatpush.bf16.msrb.mxu1 %v14036_v15  ;;  %v16375_v38 = vld [vmem:[%s19479_s30 + $0x2350] sm:$0xf]  ;;  %v18748_v15 = vld [vmem:[%s19479_s30 + $0x2400] sm:$0xf0] }
 0x1d2   : > { %v11617_v37 = vrot.slane %v9539_v21, 6  ;;  %v16376_v45 = vor.u32 %v18748_v15, %v16375_v38  ;;  %v18906_v21 = vld [vmem:[%s19479_s30 + $0x28f4] sm:$0xf]  ;;  %v18501_v38 = vld [vmem:[%s19479_s30 + $0x1c4c] sm:$0xf] }
 0x1d3   : > { %9778 = vmatpush.bf16.msrb.mxu2 %v15656_v23  ;;  %9791 = vmatpush.bf16.msrb.mxu3 %v17096_v41  ;;  %v13140_v23 = vor.u32 %v17916_v26, %v13137_v27  ;;  %v14580_v41 = vor.u32 %v18276_v30, %v14577_v33  ;;  %v17736_v27 = vld [vmem:[%s19479_s30 + $0x464] sm:$0xf]  ;;  %v12417_v30 = vld [vmem:[%s19479_s30 + $0x514] sm:$0xf0]  ;;  %v15477_v15 = vld [vmem:[%s19479_s30 + $0x1cfc] sm:$0xf0] }
 0x1d4   : > { %v20320_v2 = vsel %vm11647_vm1, %v20235_v34, %v11617_v37  ;;  %v18343_v34 = vld [vmem:[%s19479_s30 + $0x1758] sm:$0xf0]  ;;  %v13857_v37 = vld [vmem:[%s19479_s30 + $0x1054] sm:$0xf0] }
 0x1d5   : > { %9754 = vmatpush.bf16.msrb.mxu0 %v12416_v47  ;;  %9767 = vmatpush.bf16.msrb.mxu1 %v13856_v48  ;;  %v9527_v46 = vpop.f32.mrf.mxu2  ;;  %v9540_v47 = vpop.f32.mrf.mxu3  ;;  %v14397_v48 = vld [vmem:[%s19479_s30 + $0x148c] sm:$0xf0]  ;;  %v14756_v58 = vor.u32 %v18343_v34, %v14755_v31  ;;  %v15297_v34 = vld [vmem:[%s19479_s30 + $0x1b94] sm:$0xf0] }
 0x1d6   : > { %v14400_v57 = vor.u32 %v18231_v43, %v14397_v48  ;;  %v15480_v43 = vor.u32 %v18501_v38, %v15477_v15  ;;  %v13677_v46 = vld [vmem:[%s19479_s30 + $0xeec] sm:$0xf0]  ;;  %v18456_v47 = vld [vmem:[%s19479_s30 + $0x1ae4] sm:$0xf] }
 0x1d7   : > { %9779 = vmatpush.bf16.msrb.mxu2 %v15476_v50  ;;  %9792 = vmatpush.bf16.msrb.mxu3 %v16916_v51  ;;  %v18703_v50 = vld [vmem:[%s19479_s30 + $0x2298] sm:$0xf0]  ;;  %v18636_v51 = vld [vmem:[%s19479_s30 + $0x2084] sm:$0xf] }
 0x1d8   : > { %v16196_v13 = vor.u32 %v18703_v50, %v16195_v49  ;;  %v18816_v49 = vld [vmem:[%s19479_s30 + $0x2624] sm:$0xf]  ;;  %v16737_v50 = vld [vmem:[%s19479_s30 + $0x26d4] sm:$0xf0] }
 0x1d9   : > { %9755 = vmatpush.bf16.msrb.mxu0 %v12236_v60  ;;  %9768 = vmatpush.bf16.msrb.mxu1 %v13676_v61  ;;  %v12777_v60 = vld [vmem:[%s19479_s30 + $0x7e4] sm:$0xf0]  ;;  %v16020_v61 = vor.u32 %v18636_v51, %v16017_v52  ;;  %v12240_v51 = vor.u32 %v17691_v42, %v12237_v12  ;;  %v18681_v42 = vld [vmem:[%s19479_s30 + $0x21ec] sm:$0xf]  ;;  %v16197_v12 = vld [vmem:[%s19479_s30 + $0x229c] sm:$0xf0] }
 0x1da   : > { %v12780_v5 = vor.u32 %v17826_v59, %v12777_v60  ;;  %v18411_v59 = vld [vmem:[%s19479_s30 + $0x197c] sm:$0xf] }
 0x1db   : > { %9780 = vmatpush.bf16.msrb.mxu2 %v15296_v32  ;;  %9793 = vmatpush.bf16.msrb.mxu3 %v16736_v0  ;;  %v14217_v32 = vld [vmem:[%s19479_s30 + $0x1324] sm:$0xf0]  ;;  %v18591_v0 = vld [vmem:[%s19479_s30 + $0x1f1c] sm:$0xf] }
 0x1dc   : > { %v14220_v6 = vor.u32 %v18186_v63, %v14217_v32  ;;  %v15840_v9 = vor.u32 %v18591_v0, %v15837_v1  ;;  %v18771_v63 = vld [vmem:[%s19479_s30 + $0x24bc] sm:$0xf]  ;;  %v16557_v32 = vld [vmem:[%s19479_s30 + $0x256c] sm:$0xf0]  ;;  %v12060_v0 = vor.u32 %v17646_v16, %v12057_v55  ;;  %v14223_v16 = vld [vmem:[%s19479_s30 + $0x1278] sm:$0xf] }
 0x1dd   : > { %9756 = vmatpush.bf16.msrb.mxu0 %v12056_v17  ;;  %9769 = vmatpush.bf16.msrb.mxu1 %v13496_v18  ;;  %v14037_v17 = vld [vmem:[%s19479_s30 + $0x11bc] sm:$0xf0]  ;;  %v18546_v18 = vld [vmem:[%s19479_s30 + $0x1db4] sm:$0xf]  ;;  %v18209_v55 = vld [vmem:[%s19479_s30 + $0x1328] sm:$0xf0] }
 0x1de   : > { %v14040_v26 = vor.u32 %v18141_v14, %v14037_v17  ;;  %v15660_v33 = vor.u32 %v18546_v18, %v15657_v20  ;;  %v14583_v14 = vld [vmem:[%s19479_s30 + $0x1548] sm:$0xf]  ;;  %v18299_v17 = vld [vmem:[%s19479_s30 + $0x15f8] sm:$0xf0]  ;;  %v18366_v18 = vld [vmem:[%s19479_s30 + $0x1814] sm:$0xf] }
 0x1df   : > { %9781 = vmatpush.bf16.msrb.mxu2 %v15116_v24  ;;  %9794 = vmatpush.bf16.msrb.mxu3 %v16556_v25  ;;  %v17097_v24 = vld [vmem:[%s19479_s30 + $0x29a4] sm:$0xf0]  ;;  %v12600_v25 = vor.u32 %v17781_v7, %v12597_v8  ;;  %v16560_v7 = vor.u32 %v18771_v63, %v16557_v32  ;;  %v13317_v8 = vld [vmem:[%s19479_s30 + $0xc1c] sm:$0xf0]  ;;  %v14224_v63 = vor.u32 %v18209_v55, %v14223_v16  ;;  %v12603_v32 = vld [vmem:[%s19479_s30 + $0x5d0] sm:$0xf] }
 0x1e0   : > { %v17100_v35 = vor.u32 %v18906_v21, %v17097_v24  ;;  %v14937_v20 = vld [vmem:[%s19479_s30 + $0x18c4] sm:$0xf0]  ;;  %v18726_v21 = vld [vmem:[%s19479_s30 + $0x2354] sm:$0xf] }
 0x1e1   : > { %9757 = vmatpush.bf16.msrb.mxu0 %v11876_v39  ;;  %9770 = vmatpush.bf16.msrb.mxu1 %v13316_v40  ;;  %v20349_v22 = vpop.f32.mrf.mxu0  ;;  %v20351_v19 = vpop.f32.mrf.mxu1  ;;  %v18861_v39 = vld [vmem:[%s19479_s30 + $0x278c] sm:$0xf]  ;;  %v16917_v40 = vld [vmem:[%s19479_s30 + $0x283c] sm:$0xf0]  ;;  %v16377_v24 = vld [vmem:[%s19479_s30 + $0x2404] sm:$0xf0] }
 0x1e2   : > { %v16380_v38 = vor.u32 %v18726_v21, %v16377_v24  ;;  %v12423_v24 = vld [vmem:[%s19479_s30 + $0x468] sm:$0xf] }
 0x1e3   : > { %9782 = vmatpush.bf16.msrb.mxu2 %v14936_v44  ;;  %9795 = vmatpush.bf16.msrb.mxu3 %v16376_v45  ;;  %v16920_v44 = vor.u32 %v18861_v39, %v16917_v40  ;;  %v18051_v45 = vld [vmem:[%s19479_s30 + $0xe3c] sm:$0xf]  ;;  %v18254_v40 = vld [vmem:[%s19479_s30 + $0x1490] sm:$0xf0] }
 0x1e4   : > { %9758 = vmatmul.bf16.vlgmr.msrb.gmra.mxu0 %v19627_v28  ;;  %9771 = vmatmul.bf16.vlgmr.msrb.gmra.mxu1 %v19629_v29  ;;  %v13680_v52 = vor.u32 %v18051_v45, %v13677_v46  ;;  %v17463_v45 = vld [vmem:[%s19479_s30 + $0x2bc8] sm:$0xf]  ;;  %v19019_v46 = vld [vmem:[%s19479_s30 + $0x2c78] sm:$0xf0] }
 0x1e5   : > { %9802 = vmatpush.bf16.msra.mxu0 %v13140_v23  ;;  %9815 = vmatpush.bf16.msra.mxu1 %v14580_v41  ;;  %v12420_v23 = vor.u32 %v17736_v27, %v12417_v30  ;;  %v13860_v41 = vor.u32 %v18096_v36, %v13857_v37  ;;  %v14584_v30 = vor.u32 %v18299_v17, %v14583_v14  ;;  %v14403_v36 = vld [vmem:[%s19479_s30 + $0x13e0] sm:$0xf]  ;;  %v18929_v14 = vld [vmem:[%s19479_s30 + $0x29a8] sm:$0xf0] }
 0x1e6   : > { %v14940_v37 = vor.u32 %v18366_v18, %v14937_v20  ;;  %v1915_v18 = vperm.slane %v20269_v11, 7 }
 0x1e7   : > { %9783 = vmatpush.bf16.msrb.mxu2 %v14756_v58  ;;  %9796 = vmatpush.bf16.msrb.mxu3 %v16196_v13  ;;  %v18006_v58 = vld [vmem:[%s19479_s30 + $0xcd4] sm:$0xf]  ;;  %v13497_v13 = vld [vmem:[%s19479_s30 + $0xd84] sm:$0xf0] }
 0x1e8   : > { %v13500_v1 = vor.u32 %v18006_v58, %v13497_v13  ;;  %v17283_v58 = vld [vmem:[%s19479_s30 + $0x2a60] sm:$0xf]  ;;  %v18974_v13 = vld [vmem:[%s19479_s30 + $0x2b10] sm:$0xf0] }
 0x1e9   : > { %9803 = vmatpush.bf16.msra.mxu0 %v12960_v56  ;;  %9816 = vmatpush.bf16.msra.mxu1 %v14400_v57  ;;  %v9553_v48 = vpop.f32.mrf.mxu0  ;;  %v9566_v31 = vpop.f32.mrf.mxu1  ;;  %v15300_v56 = vor.u32 %v18456_v47, %v15297_v34  ;;  %v16740_v57 = vor.u32 %v18816_v49, %v16737_v50  ;;  %v16200_v34 = vor.u32 %v18681_v42, %v16197_v12  ;;  %v12783_v49 = vld [vmem:[%s19479_s30 + $0x738] sm:$0xf]  ;;  %v17849_v50 = vld [vmem:[%s19479_s30 + $0x7e8] sm:$0xf0]  ;;  %v13683_v12 = vld [vmem:[%s19479_s30 + $0xe40] sm:$0xf] }
 0x1ea   : > { %9784 = vmatmul.bf16.vlgmr.msrb.gmra.mxu2 %v19645_v53  ;;  %9797 = vmatmul.bf16.vlgmr.msrb.gmra.mxu3 %v19647_v54  ;;  %v14404_v48 = vor.u32 %v18254_v40, %v14403_v36  ;;  %v16923_v36 = vld [vmem:[%s19479_s30 + $0x2790] sm:$0xf]  ;;  %v17714_v40 = vld [vmem:[%s19479_s30 + $0x3b0] sm:$0xf0] }
 0x1eb   : > { %9828 = vmatpush.bf16.msra.mxu2 %v16020_v61  ;;  %9841 = vmatpush.bf16.msra.mxu3 %v17460_v62  ;;  %v15117_v62 = vld [vmem:[%s19479_s30 + $0x1a2c] sm:$0xf0] }
 0x1ed   : > { %9804 = vmatpush.bf16.msra.mxu0 %v12780_v5  ;;  %9817 = vmatpush.bf16.msra.mxu1 %v14220_v6  ;;  %v20379_v60 = vpop.f32.mrf.mxu2  ;;  %v20381_v61 = vpop.f32.mrf.mxu3  ;;  %v17961_v5 = vld [vmem:[%s19479_s30 + $0xb6c] sm:$0xf]  ;;  %v15120_v6 = vor.u32 %v18411_v59, %v15117_v62  ;;  %v1914_v59 = vperm.slane %v20269_v11, 6  ;;  %v12784_v62 = vor.u32 %v17849_v50, %v12783_v49  ;;  %v12063_v50 = vld [vmem:[%s19479_s30 + $0x198] sm:$0xf] }
 0x1ef   : > { %9829 = vmatpush.bf16.msra.mxu2 %v15840_v9  ;;  %9842 = vmatpush.bf16.msra.mxu3 %v17280_v10  ;;  %v13143_v9 = vld [vmem:[%s19479_s30 + $0xa08] sm:$0xf]  ;;  %v17939_v10 = vld [vmem:[%s19479_s30 + $0xab8] sm:$0xf0]  ;;  %v9552_v17 = vadd.f32 %v20349_v22, %v1914_v59  ;;  %v18524_v22 = vld [vmem:[%s19479_s30 + $0x1d00] sm:$0xf0] }
 0x1f0   : > { %v13144_v27 = vor.u32 %v17939_v10, %v13143_v9  ;;  %v18569_v9 = vld [vmem:[%s19479_s30 + $0x1e68] sm:$0xf0]  ;;  %v17103_v10 = vld [vmem:[%s19479_s30 + $0x28f8] sm:$0xf]  ;;  %v18434_v59 = vld [vmem:[%s19479_s30 + $0x1a30] sm:$0xf0] }
 0x1f1   : > { %9805 = vmatpush.bf16.msra.mxu0 %v12600_v25  ;;  %9818 = vmatpush.bf16.msra.mxu1 %v14040_v26  ;;  %v11880_v25 = vor.u32 %v17601_v3, %v11877_v4  ;;  %v13320_v26 = vor.u32 %v17961_v5, %v13317_v8  ;;  %v17284_v3 = vor.u32 %v18974_v13, %v17283_v58  ;;  %v14043_v4 = vld [vmem:[%s19479_s30 + $0x1110] sm:$0xf]  ;;  %v18164_v5 = vld [vmem:[%s19479_s30 + $0x11c0] sm:$0xf0] }
 0x1f2   : > { %v14044_v21 = vor.u32 %v18164_v5, %v14043_v4  ;;  %v9565_v11 = vadd.f32 %v20351_v19, %v9552_v17  ;;  %v17624_v5 = vld [vmem:[%s19479_s30 + $0xe0] sm:$0xf0]  ;;  %v18277_v17 = vld [vmem:[%s19479_s30 + $0x154c] sm:$0xf] }
 0x1f3   : > { %9830 = vmatpush.bf16.msra.mxu2 %v15660_v33  ;;  %9843 = vmatpush.bf16.msra.mxu3 %v17100_v35  ;;  %v12963_v33 = vld [vmem:[%s19479_s30 + $0x8a0] sm:$0xf]  ;;  %v17894_v35 = vld [vmem:[%s19479_s30 + $0x950] sm:$0xf0] }
 0x1f4   : > { %v12964_v47 = vor.u32 %v17894_v35, %v12963_v33  ;;  %v18119_v33 = vld [vmem:[%s19479_s30 + $0x1058] sm:$0xf0]  ;;  %v15483_v35 = vld [vmem:[%s19479_s30 + $0x1c50] sm:$0xf] }
 0x1f5   : > { %9806 = vmatpush.bf16.msra.mxu0 %v12420_v23  ;;  %9819 = vmatpush.bf16.msra.mxu1 %v13860_v41  ;;  %v9579_v15 = vpop.f32.mrf.mxu2  ;;  %v9592_v39 = vpop.f32.mrf.mxu3  ;;  %v18321_v23 = vld [vmem:[%s19479_s30 + $0x16ac] sm:$0xf]  ;;  %v14757_v41 = vld [vmem:[%s19479_s30 + $0x175c] sm:$0xf0] }
 0x1f6   : > { %v14760_v31 = vor.u32 %v18321_v23, %v14757_v41  ;;  %v12243_v39 = vld [vmem:[%s19479_s30 + $0x300] sm:$0xf]  ;;  %v15484_v41 = vor.u32 %v18524_v22, %v15483_v35  ;;  %v17872_v35 = vld [vmem:[%s19479_s30 + $0x8a4] sm:$0xf] }
 0x1f7   : > { %9831 = vmatpush.bf16.msra.mxu2 %v15480_v43  ;;  %9844 = vmatpush.bf16.msra.mxu3 %v16920_v44  ;;  %v16023_v43 = vld [vmem:[%s19479_s30 + $0x2088] sm:$0xf]  ;;  %v18659_v44 = vld [vmem:[%s19479_s30 + $0x2138] sm:$0xf0] }
 0x1f9   : > { %9807 = vmatpush.bf16.msra.mxu0 %v12240_v51  ;;  %9820 = vmatpush.bf16.msra.mxu1 %v13680_v52  ;;  %v16024_v51 = vor.u32 %v18659_v44, %v16023_v43  ;;  %v17464_v52 = vor.u32 %v19019_v46, %v17463_v45  ;;  %v18074_v43 = vld [vmem:[%s19479_s30 + $0xef0] sm:$0xf0]  ;;  %v15303_v44 = vld [vmem:[%s19479_s30 + $0x1ae8] sm:$0xf]  ;;  %v18479_v46 = vld [vmem:[%s19479_s30 + $0x1b98] sm:$0xf0] }
 0x1fa   : > { %v13684_v49 = vor.u32 %v18074_v43, %v13683_v12  ;;  %v15304_v16 = vor.u32 %v18479_v46, %v15303_v44  ;;  %v14763_v12 = vld [vmem:[%s19479_s30 + $0x16b0] sm:$0xf]  ;;  %v18344_v43 = vld [vmem:[%s19479_s30 + $0x1760] sm:$0xf0]  ;;  %v16025_v46 = vld [vmem:[%s19479_s30 + $0x213c] sm:$0xf0] }
 0x1fb   : > { %9832 = vmatpush.bf16.msra.mxu2 %v15300_v56  ;;  %9845 = vmatpush.bf16.msra.mxu3 %v16740_v57  ;;  %v15843_v56 = vld [vmem:[%s19479_s30 + $0x1f20] sm:$0xf]  ;;  %v18614_v57 = vld [vmem:[%s19479_s30 + $0x1fd0] sm:$0xf0]  ;;  %v16203_v44 = vld [vmem:[%s19479_s30 + $0x21f0] sm:$0xf] }
 0x1fd   : > { %9808 = vmatpush.bf16.msra.mxu0 %v12060_v0  ;;  %9821 = vmatpush.bf16.msra.mxu1 %v13500_v1  ;;  %v17804_v0 = vld [vmem:[%s19479_s30 + $0x680] sm:$0xf0]  ;;  %v15844_v1 = vor.u32 %v18614_v57, %v15843_v56  ;;  %v13503_v56 = vld [vmem:[%s19479_s30 + $0xcd8] sm:$0xf]  ;;  %v18029_v57 = vld [vmem:[%s19479_s30 + $0xd88] sm:$0xf0] }
 0x1fe   : > { %v12604_v20 = vor.u32 %v17804_v0, %v12603_v32  ;;  %v13504_v4 = vor.u32 %v18029_v57, %v13503_v56  ;;  %v18187_v56 = vld [vmem:[%s19479_s30 + $0x127c] sm:$0xf]  ;;  %v14225_v57 = vld [vmem:[%s19479_s30 + $0x132c] sm:$0xf0] }
 0x1ff   : > { %9833 = vmatpush.bf16.msra.mxu2 %v15120_v6  ;;  %9846 = vmatpush.bf16.msra.mxu3 %v16560_v7  ;;  %v15663_v6 = vld [vmem:[%s19479_s30 + $0x1db8] sm:$0xf] }
 0x201   : > { %9809 = vmatpush.bf16.msra.mxu0 %v11880_v25  ;;  %9822 = vmatpush.bf16.msra.mxu1 %v13320_v26  ;;  %v9603_v7 = vpop.f32.mrf.mxu0  ;;  %v9616_v8 = vpop.f32.mrf.mxu1  ;;  %v17759_v25 = vld [vmem:[%s19479_s30 + $0x518] sm:$0xf0]  ;;  %v15664_v26 = vor.u32 %v18569_v9, %v15663_v6  ;;  %v13323_v6 = vld [vmem:[%s19479_s30 + $0xb70] sm:$0xf] }
 0x202   : > { %v9604_v23 = vadd.f32 %v9603_v7, %v1915_v18  ;;  %v17984_v7 = vld [vmem:[%s19479_s30 + $0xc20] sm:$0xf0]  ;;  %v14585_v18 = vld [vmem:[%s19479_s30 + $0x15fc] sm:$0xf0] }
 0x203   : > { %9834 = vmatpush.bf16.msra.mxu2 %v14940_v37  ;;  %9847 = vmatpush.bf16.msra.mxu3 %v16380_v38  ;;  %v18884_v37 = vld [vmem:[%s19479_s30 + $0x2840] sm:$0xf0]  ;;  %v12424_v38 = vor.u32 %v17759_v25, %v12423_v24 }
 0x204   : > { %9810 = vmatmul.bf16.vlgmr.msra.gmra.mxu0 %v19627_v28  ;;  %9823 = vmatmul.bf16.vlgmr.msra.gmra.mxu1 %v19629_v29  ;;  %v16924_v42 = vor.u32 %v18884_v37, %v16923_v36  ;;  %v14588_v37 = vor.u32 %v18277_v17, %v14585_v18 }
 0x205   : > { %9854 = vmatpush.bf16.msrb.mxu0 %v13144_v27  ;;  %9867 = vmatpush.bf16.msrb.mxu1 %v14584_v30  ;;  %v17104_v27 = vor.u32 %v18929_v14, %v17103_v10  ;;  %v13863_v30 = vld [vmem:[%s19479_s30 + $0xfa8] sm:$0xf]  ;;  %v17917_v10 = vld [vmem:[%s19479_s30 + $0xa0c] sm:$0xf]  ;;  %v13145_v14 = vld [vmem:[%s19479_s30 + $0xabc] sm:$0xf0] }
 0x206   : > { %v13864_v15 = vor.u32 %v18119_v33, %v13863_v30  ;;  %v13324_v33 = vor.u32 %v17984_v7, %v13323_v6  ;;  %v13148_v36 = vor.u32 %v17917_v10, %v13145_v14  ;;  %v14045_v6 = vld [vmem:[%s19479_s30 + $0x11c4] sm:$0xf0]  ;;  %v18547_v7 = vld [vmem:[%s19479_s30 + $0x1dbc] sm:$0xf]  ;;  %v17105_v14 = vld [vmem:[%s19479_s30 + $0x29ac] sm:$0xf0] }
 0x207   : > { %9835 = vmatpush.bf16.msra.mxu2 %v14760_v31  ;;  %9848 = vmatpush.bf16.msra.mxu3 %v16200_v34  ;;  %v9578_v31 = vadd.f32 %v20379_v60, %v9565_v11  ;;  %v12244_v34 = vor.u32 %v17714_v40, %v12243_v39  ;;  %v15123_v60 = vld [vmem:[%s19479_s30 + $0x1980] sm:$0xf]  ;;  %v12965_v11 = vld [vmem:[%s19479_s30 + $0x954] sm:$0xf0]  ;;  %v18907_v10 = vld [vmem:[%s19479_s30 + $0x28fc] sm:$0xf] }
 0x209   : > { %9855 = vmatpush.bf16.msrb.mxu0 %v12964_v47  ;;  %9868 = vmatpush.bf16.msrb.mxu1 %v14404_v48  ;;  %v9605_v19 = vpop.f32.mrf.mxu0  ;;  %v9618_v45 = vpop.f32.mrf.mxu1  ;;  %v16743_v47 = vld [vmem:[%s19479_s30 + $0x2628] sm:$0xf]  ;;  %v18839_v48 = vld [vmem:[%s19479_s30 + $0x26d8] sm:$0xf0]  ;;  %v9591_v32 = vadd.f32 %v20381_v61, %v9578_v31  ;;  %v15124_v61 = vor.u32 %v18434_v59, %v15123_v60  ;;  %v18592_v60 = vld [vmem:[%s19479_s30 + $0x1f24] sm:$0xf] }
 0x20a   : > { %9836 = vmatmul.bf16.vlgmr.msra.gmra.mxu2 %v19645_v53  ;;  %9849 = vmatmul.bf16.vlgmr.msra.gmra.mxu3 %v19647_v54  ;;  %v16744_v55 = vor.u32 %v18839_v48, %v16743_v47  ;;  %v18704_v19 = vld [vmem:[%s19479_s30 + $0x22a0] sm:$0xf0]  ;;  %v18637_v45 = vld [vmem:[%s19479_s30 + $0x208c] sm:$0xf]  ;;  %v17465_v48 = vld [vmem:[%s19479_s30 + $0x2c7c] sm:$0xf0] }
 0x20b   : > { %9880 = vmatpush.bf16.msrb.mxu2 %v16024_v51  ;;  %9893 = vmatpush.bf16.msrb.mxu3 %v17464_v52  ;;  %v17669_v51 = vld [vmem:[%s19479_s30 + $0x248] sm:$0xf0]  ;;  %v9617_v52 = vadd.f32 %v9616_v8, %v9604_v23  ;;  %v11618_v24 = vrot.slane %v9591_v32, 4  ;;  %v17285_v59 = vld [vmem:[%s19479_s30 + $0x2b14] sm:$0xf0]  ;;  %v14228_v32 = vor.u32 %v18187_v56, %v14225_v57 }
 0x20c   : > { %v18997_v47 = vld [vmem:[%s19479_s30 + $0x2bcc] sm:$0xf]  ;;  %v15125_v57 = vld [vmem:[%s19479_s30 + $0x1a34] sm:$0xf0] }
 0x20d   : > { %9856 = vmatpush.bf16.msrb.mxu0 %v12784_v62  ;;  %9869 = vmatpush.bf16.msrb.mxu1 %v14224_v63  ;;  %v9629_v58 = vpop.f32.mrf.mxu2  ;;  %v9642_v13 = vpop.f32.mrf.mxu3  ;;  %v16563_v62 = vld [vmem:[%s19479_s30 + $0x24c0] sm:$0xf]  ;;  %v18794_v63 = vld [vmem:[%s19479_s30 + $0x2570] sm:$0xf0] }
 0x20e   : > { %v9630_v0 = vadd.f32 %v9629_v58, %v9617_v52  ;;  %v16564_v9 = vor.u32 %v18794_v63, %v16563_v62  ;;  %v20491_v52 = vld [vmem:[%s19921_s6 + $0x8] sm:$0xff]  ;;  %v15845_v58 = vld [vmem:[%s19479_s30 + $0x1fd4] sm:$0xf0] }
 0x20f   : > { %9881 = vmatpush.bf16.msrb.mxu2 %v15844_v1  ;;  %9894 = vmatpush.bf16.msrb.mxu3 %v17284_v3  ;;  %v11883_v1 = vld [vmem:[%s19479_s30 + $0x30] sm:$0xf]  ;;  %v12064_v3 = vor.u32 %v17669_v51, %v12063_v50  ;;  %v17827_v50 = vld [vmem:[%s19479_s30 + $0x73c] sm:$0xf]  ;;  %v1916_v62 = vperm.slane %v20491_v52, 0 }
 0x210   : > { %v9643_v8 = vadd.f32 %v9642_v13, %v9630_v0  ;;  %v11884_v30 = vor.u32 %v17624_v5, %v11883_v1  ;;  %v12785_v51 = vld [vmem:[%s19479_s30 + $0x7ec] sm:$0xf0]  ;;  %v18952_v13 = vld [vmem:[%s19479_s30 + $0x2a64] sm:$0xf]  ;;  %v17782_v0 = vld [vmem:[%s19479_s30 + $0x5d4] sm:$0xf] }
 0x211   : > { %9857 = vmatpush.bf16.msrb.mxu0 %v12604_v20  ;;  %9870 = vmatpush.bf16.msrb.mxu1 %v14044_v21  ;;  %v14943_v20 = vld [vmem:[%s19479_s30 + $0x1818] sm:$0xf]  ;;  %v18389_v21 = vld [vmem:[%s19479_s30 + $0x18c8] sm:$0xf0]  ;;  %v12788_v63 = vor.u32 %v17827_v50, %v12785_v51  ;;  %v12605_v1 = vld [vmem:[%s19479_s30 + $0x684] sm:$0xf0] }
 0x212   : > { %v11619_v25 = vrot.slane %v9643_v8, 2  ;;  %v14944_v40 = vor.u32 %v18389_v21, %v14943_v20  ;;  %v18142_v5 = vld [vmem:[%s19479_s30 + $0x1114] sm:$0xf]  ;;  %v12608_v18 = vor.u32 %v17782_v0, %v12605_v1  ;;  %v17737_v21 = vld [vmem:[%s19479_s30 + $0x46c] sm:$0xf] }
 0x213   : > { %9882 = vmatpush.bf16.msrb.mxu2 %v15664_v26  ;;  %9895 = vmatpush.bf16.msrb.mxu3 %v17104_v27  ;;  %v16383_v26 = vld [vmem:[%s19479_s30 + $0x2358] sm:$0xf]  ;;  %v18749_v27 = vld [vmem:[%s19479_s30 + $0x2408] sm:$0xf0]  ;;  %v14048_v20 = vor.u32 %v18142_v5, %v14045_v6  ;;  %v18007_v50 = vld [vmem:[%s19479_s30 + $0xcdc] sm:$0xf] }
 0x214   : > { %v11654_v22 = vsel %vm11649_vm2, %v11618_v24, %v11619_v25  ;;  %v16384_v23 = vor.u32 %v18749_v27, %v16383_v26  ;;  %v12425_v24 = vld [vmem:[%s19479_s30 + $0x51c] sm:$0xf0]  ;;  %v17108_v27 = vor.u32 %v18907_v10, %v17105_v14  ;;  %v13505_v51 = vld [vmem:[%s19479_s30 + $0xd8c] sm:$0xf0]  ;;  %v17962_v0 = vld [vmem:[%s19479_s30 + $0xb74] sm:$0xf] }
 0x215   : > { %9858 = vmatpush.bf16.msrb.mxu0 %v12424_v38  ;;  %9871 = vmatpush.bf16.msrb.mxu1 %v13864_v15  ;;  %v18232_v38 = vld [vmem:[%s19479_s30 + $0x13e4] sm:$0xf]  ;;  %v14405_v15 = vld [vmem:[%s19479_s30 + $0x1494] sm:$0xf0]  ;;  %v11655_v39 = vsel %vm11651_vm3, %v20320_v2, %v11654_v22  ;;  %v12968_v2 = vor.u32 %v17872_v35, %v12965_v11  ;;  %v18502_v35 = vld [vmem:[%s19479_s30 + $0x1c54] sm:$0xf]  ;;  %v12428_v11 = vor.u32 %v17737_v21, %v12425_v24 }
 0x216   : > { %11695 = vst [vmem:[%s20170_s21 + $0x8] sm:$0xff] %v11655_v39  ;;  %v14408_v31 = vor.u32 %v18232_v38, %v14405_v15  ;;  %v15485_v22 = vld [vmem:[%s19479_s30 + $0x1d04] sm:$0xf0]  ;;  %v17692_v15 = vld [vmem:[%s19479_s30 + $0x304] sm:$0xf] }
 0x217   : > { %9883 = vmatpush.bf16.msrb.mxu2 %v15484_v41  ;;  %9896 = vmatpush.bf16.msrb.mxu3 %v16924_v42  ;;  %v9631_v41 = vpop.f32.mrf.mxu2  ;;  %v9644_v42 = vpop.f32.mrf.mxu3  ;;  %v12245_v39 = vld [vmem:[%s19479_s30 + $0x3b4] sm:$0xf0]  ;;  %v13325_v5 = vld [vmem:[%s19479_s30 + $0xc24] sm:$0xf0]  ;;  %v13151_v6 = vld [vmem:[%s19479_s30 + $0xa10] sm:$0xf] }
 0x218   : > { %v18052_v41 = vld [vmem:[%s19479_s30 + $0xe44] sm:$0xf]  ;;  %v13685_v42 = vld [vmem:[%s19479_s30 + $0xef4] sm:$0xf0]  ;;  %v14945_v10 = vld [vmem:[%s19479_s30 + $0x18cc] sm:$0xf0] }
 0x219   : > { %9859 = vmatpush.bf16.msrb.mxu0 %v12244_v34  ;;  %9872 = vmatpush.bf16.msrb.mxu1 %v13684_v49  ;;  %v14764_v34 = vor.u32 %v18344_v43, %v14763_v12  ;;  %v16204_v49 = vor.u32 %v18704_v19, %v16203_v44  ;;  %v18457_v12 = vld [vmem:[%s19479_s30 + $0x1aec] sm:$0xf]  ;;  %v15305_v19 = vld [vmem:[%s19479_s30 + $0x1b9c] sm:$0xf0]  ;;  %v18727_v14 = vld [vmem:[%s19479_s30 + $0x235c] sm:$0xf] }
 0x21b   : > { %9884 = vmatpush.bf16.msrb.mxu2 %v15304_v16  ;;  %9897 = vmatpush.bf16.msrb.mxu3 %v16744_v55  ;;  %v16028_v16 = vor.u32 %v18637_v45, %v16025_v46  ;;  %v17468_v55 = vor.u32 %v18997_v47, %v17465_v48  ;;  %v18817_v45 = vld [vmem:[%s19479_s30 + $0x262c] sm:$0xf]  ;;  %v16745_v46 = vld [vmem:[%s19479_s30 + $0x26dc] sm:$0xf0]  ;;  %v12248_v47 = vor.u32 %v17692_v15, %v12245_v39  ;;  %v16205_v15 = vld [vmem:[%s19479_s30 + $0x22a4] sm:$0xf0] }
 0x21c   : > { %v13688_v48 = vor.u32 %v18052_v41, %v13685_v42  ;;  %v16031_v39 = vld [vmem:[%s19479_s30 + $0x2090] sm:$0xf]  ;;  %v19020_v41 = vld [vmem:[%s19479_s30 + $0x2c80] sm:$0xf0] }
 0x21d   : > { %9860 = vmatpush.bf16.msrb.mxu0 %v12064_v3  ;;  %9873 = vmatpush.bf16.msrb.mxu1 %v13504_v4  ;;  %v15848_v3 = vor.u32 %v18592_v60, %v15845_v58  ;;  %v17288_v4 = vor.u32 %v18952_v13, %v17285_v59  ;;  %v18772_v60 = vld [vmem:[%s19479_s30 + $0x24c4] sm:$0xf]  ;;  %v16565_v58 = vld [vmem:[%s19479_s30 + $0x2574] sm:$0xf0] }
 0x21f   : > { %9885 = vmatpush.bf16.msrb.mxu2 %v15124_v61  ;;  %9898 = vmatpush.bf16.msrb.mxu3 %v16564_v9  ;;  %v15665_v9 = vld [vmem:[%s19479_s30 + $0x1e6c] sm:$0xf0] }
 0x220   : > { %v15668_v26 = vor.u32 %v18547_v7, %v15665_v9  ;;  %v17940_v7 = vld [vmem:[%s19479_s30 + $0xac0] sm:$0xf0]  ;;  %v18367_v9 = vld [vmem:[%s19479_s30 + $0x181c] sm:$0xf] }
 0x221   : > { %9861 = vmatpush.bf16.msrb.mxu0 %v11884_v30  ;;  %9874 = vmatpush.bf16.msrb.mxu1 %v13324_v33  ;;  %v9655_v8 = vpop.f32.mrf.mxu0  ;;  %v9668_v61 = vpop.f32.mrf.mxu1  ;;  %v18097_v30 = vld [vmem:[%s19479_s30 + $0xfac] sm:$0xf]  ;;  %v13865_v33 = vld [vmem:[%s19479_s30 + $0x105c] sm:$0xf0]  ;;  %v13152_v21 = vor.u32 %v17940_v7, %v13151_v6 }
 0x222   : > { %v9656_v17 = vadd.f32 %v9655_v8, %v1916_v62  ;;  %v13868_v38 = vor.u32 %v18097_v30, %v13865_v33  ;;  %v13508_v62 = vor.u32 %v18007_v50, %v13505_v51  ;;  %v14591_v8 = vld [vmem:[%s19479_s30 + $0x1550] sm:$0xf]  ;;  %v14948_v30 = vor.u32 %v18367_v9, %v14945_v10  ;;  %v18975_v50 = vld [vmem:[%s19479_s30 + $0x2b18] sm:$0xf0] }
 0x223   : > { %9886 = vmatpush.bf16.msrb.mxu2 %v14944_v40  ;;  %9899 = vmatpush.bf16.msrb.mxu3 %v16384_v23  ;;  %v15488_v40 = vor.u32 %v18502_v35, %v15485_v22  ;;  %v1917_v51 = vperm.slane %v20491_v52, 1 }
 0x224   : > { %9862 = vmatmul.bf16.vlgmr.msrb.gmra.mxu0 %v19627_v28  ;;  %9875 = vmatmul.bf16.vlgmr.msrb.gmra.mxu1 %v19629_v29  ;;  %v9669_v25 = vadd.f32 %v9668_v61, %v9656_v17  ;;  %v18300_v61 = vld [vmem:[%s19479_s30 + $0x1600] sm:$0xf0]  ;;  %v16385_v17 = vld [vmem:[%s19479_s30 + $0x240c] sm:$0xf0] }
 0x225   : > { %9906 = vmatpush.bf16.msra.mxu0 %v13148_v36  ;;  %9919 = vmatpush.bf16.msra.mxu1 %v14588_v37  ;;  %v18862_v36 = vld [vmem:[%s19479_s30 + $0x2794] sm:$0xf]  ;;  %v16925_v37 = vld [vmem:[%s19479_s30 + $0x2844] sm:$0xf0]  ;;  %v14592_v24 = vor.u32 %v18300_v61, %v14591_v8  ;;  %v16388_v33 = vor.u32 %v18727_v14, %v16385_v17  ;;  %v12431_v8 = vld [vmem:[%s19479_s30 + $0x470] sm:$0xf] }
 0x226   : > { %v16928_v23 = vor.u32 %v18862_v36, %v16925_v37  ;;  %v18255_v36 = vld [vmem:[%s19479_s30 + $0x1498] sm:$0xf0]  ;;  %v18322_v37 = vld [vmem:[%s19479_s30 + $0x16b4] sm:$0xf]  ;;  %v17760_v61 = vld [vmem:[%s19479_s30 + $0x520] sm:$0xf0] }
 0x227   : > { %9887 = vmatpush.bf16.msrb.mxu2 %v14764_v34  ;;  %9900 = vmatpush.bf16.msrb.mxu3 %v16204_v49  ;;  %v15308_v34 = vor.u32 %v18457_v12, %v15305_v19  ;;  %v16748_v49 = vor.u32 %v18817_v45, %v16745_v46  ;;  %v12791_v19 = vld [vmem:[%s19479_s30 + $0x740] sm:$0xf]  ;;  %v17850_v45 = vld [vmem:[%s19479_s30 + $0x7f0] sm:$0xf0]  ;;  %v13871_v17 = vld [vmem:[%s19479_s30 + $0xfb0] sm:$0xf] }
 0x229   : > { %9907 = vmatpush.bf16.msra.mxu0 %v12968_v2  ;;  %9920 = vmatpush.bf16.msra.mxu1 %v14408_v31  ;;  %v9657_v43 = vpop.f32.mrf.mxu0  ;;  %v9670_v44 = vpop.f32.mrf.mxu1  ;;  %v17647_v2 = vld [vmem:[%s19479_s30 + $0x19c] sm:$0xf]  ;;  %v12065_v31 = vld [vmem:[%s19479_s30 + $0x24c] sm:$0xf0] }
 0x22a   : > { %9888 = vmatmul.bf16.vlgmr.msrb.gmra.mxu2 %v19645_v53  ;;  %9901 = vmatmul.bf16.vlgmr.msrb.gmra.mxu3 %v19647_v54  ;;  %v12068_v59 = vor.u32 %v17647_v2, %v12065_v31  ;;  %v18210_v2 = vld [vmem:[%s19479_s30 + $0x1330] sm:$0xf0]  ;;  %v15851_v31 = vld [vmem:[%s19479_s30 + $0x1f28] sm:$0xf] }
 0x22b   : > { %9932 = vmatpush.bf16.msra.mxu2 %v16028_v16  ;;  %9945 = vmatpush.bf16.msra.mxu3 %v17468_v55  ;;  %v18412_v16 = vld [vmem:[%s19479_s30 + $0x1984] sm:$0xf] }
 0x22d   : > { %9908 = vmatpush.bf16.msra.mxu0 %v12788_v63  ;;  %9921 = vmatpush.bf16.msra.mxu1 %v14228_v32  ;;  %v9681_v55 = vpop.f32.mrf.mxu2  ;;  %v9694_v56 = vpop.f32.mrf.mxu3  ;;  %v17602_v63 = vld [vmem:[%s19479_s30 + $0x34] sm:$0xf]  ;;  %v11885_v32 = vld [vmem:[%s19479_s30 + $0xe4] sm:$0xf0] }
 0x22e   : > { %v9682_v13 = vadd.f32 %v9681_v55, %v9669_v25  ;;  %v12971_v25 = vld [vmem:[%s19479_s30 + $0x8a8] sm:$0xf] }
 0x22f   : > { %9933 = vmatpush.bf16.msra.mxu2 %v15848_v3  ;;  %9946 = vmatpush.bf16.msra.mxu3 %v17288_v4  ;;  %v15128_v3 = vor.u32 %v18412_v16, %v15125_v57  ;;  %v16568_v4 = vor.u32 %v18772_v60, %v16565_v58  ;;  %v12792_v16 = vor.u32 %v17850_v45, %v12791_v19  ;;  %v17805_v57 = vld [vmem:[%s19479_s30 + $0x688] sm:$0xf0]  ;;  %v13511_v45 = vld [vmem:[%s19479_s30 + $0xce0] sm:$0xf] }
 0x230   : > { %v20539_v1 = vadd.f32 %v9694_v56, %v9682_v13  ;;  %v12611_v56 = vld [vmem:[%s19479_s30 + $0x5d8] sm:$0xf] }
 0x231   : > { %9909 = vmatpush.bf16.msra.mxu0 %v12608_v18  ;;  %9922 = vmatpush.bf16.msra.mxu1 %v14048_v20  ;;  %v11888_v18 = vor.u32 %v17602_v63, %v11885_v32  ;;  %v13328_v20 = vor.u32 %v17962_v0, %v13325_v5  ;;  %v14051_v13 = vld [vmem:[%s19479_s30 + $0x1118] sm:$0xf]  ;;  %v18570_v0 = vld [vmem:[%s19479_s30 + $0x1e70] sm:$0xf0]  ;;  %v12612_v6 = vor.u32 %v17805_v57, %v12611_v56  ;;  %v17625_v56 = vld [vmem:[%s19479_s30 + $0xe8] sm:$0xf0] }
 0x232   : > { %v13331_v57 = vld [vmem:[%s19479_s30 + $0xb78] sm:$0xf] }
 0x233   : > { %9934 = vmatpush.bf16.msra.mxu2 %v15668_v26  ;;  %9947 = vmatpush.bf16.msra.mxu3 %v17108_v27  ;;  %v17895_v26 = vld [vmem:[%s19479_s30 + $0x958] sm:$0xf0]  ;;  %v14411_v27 = vld [vmem:[%s19479_s30 + $0x13e8] sm:$0xf] }
 0x234   : > { %v12972_v42 = vor.u32 %v17895_v26, %v12971_v25  ;;  %v14412_v12 = vor.u32 %v18255_v36, %v14411_v27  ;;  %v18885_v25 = vld [vmem:[%s19479_s30 + $0x2848] sm:$0xf0]  ;;  %v12432_v26 = vor.u32 %v17760_v61, %v12431_v8  ;;  %v13691_v36 = vld [vmem:[%s19479_s30 + $0xe48] sm:$0xf] }
 0x235   : > { %9910 = vmatpush.bf16.msra.mxu0 %v12428_v11  ;;  %9923 = vmatpush.bf16.msra.mxu1 %v13868_v38  ;;  %v9683_v35 = vpop.f32.mrf.mxu2  ;;  %v9696_v22 = vpop.f32.mrf.mxu3  ;;  %v14765_v11 = vld [vmem:[%s19479_s30 + $0x1764] sm:$0xf0]  ;;  %v18682_v38 = vld [vmem:[%s19479_s30 + $0x21f4] sm:$0xf] }
 0x236   : > { %v14768_v43 = vor.u32 %v18322_v37, %v14765_v11  ;;  %v16208_v44 = vor.u32 %v18682_v38, %v16205_v15  ;;  %v18075_v37 = vld [vmem:[%s19479_s30 + $0xef8] sm:$0xf0]  ;;  %v15311_v11 = vld [vmem:[%s19479_s30 + $0x1af0] sm:$0xf] }
 0x237   : > { %9935 = vmatpush.bf16.msra.mxu2 %v15488_v40  ;;  %9948 = vmatpush.bf16.msra.mxu3 %v16928_v23  ;;  %v18660_v40 = vld [vmem:[%s19479_s30 + $0x2140] sm:$0xf0]  ;;  %v17471_v23 = vld [vmem:[%s19479_s30 + $0x2bd0] sm:$0xf] }
 0x238   : > { %v16032_v46 = vor.u32 %v18660_v40, %v16031_v39  ;;  %v18480_v39 = vld [vmem:[%s19479_s30 + $0x1ba0] sm:$0xf0]  ;;  %v16751_v40 = vld [vmem:[%s19479_s30 + $0x2630] sm:$0xf] }
 0x239   : > { %9911 = vmatpush.bf16.msra.mxu0 %v12248_v47  ;;  %9924 = vmatpush.bf16.msra.mxu1 %v13688_v48  ;;  %v17472_v47 = vor.u32 %v19020_v41, %v17471_v23  ;;  %v14231_v48 = vld [vmem:[%s19479_s30 + $0x1280] sm:$0xf]  ;;  %v18840_v23 = vld [vmem:[%s19479_s30 + $0x26e0] sm:$0xf0] }
 0x23a   : > { %v14232_v55 = vor.u32 %v18210_v2, %v14231_v48  ;;  %v16752_v19 = vor.u32 %v18840_v23, %v16751_v40  ;;  %v17828_v23 = vld [vmem:[%s19479_s30 + $0x744] sm:$0xf] }
 0x23b   : > { %9936 = vmatpush.bf16.msra.mxu2 %v15308_v34  ;;  %9949 = vmatpush.bf16.msra.mxu3 %v16748_v49  ;;  %v18615_v34 = vld [vmem:[%s19479_s30 + $0x1fd8] sm:$0xf0]  ;;  %v17291_v49 = vld [vmem:[%s19479_s30 + $0x2a68] sm:$0xf] }
 0x23c   : > { %v15852_v60 = vor.u32 %v18615_v34, %v15851_v31  ;;  %v17292_v58 = vor.u32 %v18975_v50, %v17291_v49  ;;  %v18435_v31 = vld [vmem:[%s19479_s30 + $0x1a38] sm:$0xf0]  ;;  %v16571_v34 = vld [vmem:[%s19479_s30 + $0x24c8] sm:$0xf] }
 0x23d   : > { %9912 = vmatpush.bf16.msra.mxu0 %v12068_v59  ;;  %9925 = vmatpush.bf16.msra.mxu1 %v13508_v62  ;;  %v18165_v59 = vld [vmem:[%s19479_s30 + $0x11c8] sm:$0xf0]  ;;  %v15671_v62 = vld [vmem:[%s19479_s30 + $0x1dc0] sm:$0xf]  ;;  %v18795_v49 = vld [vmem:[%s19479_s30 + $0x2578] sm:$0xf0] }
 0x23e   : > { %v14052_v7 = vor.u32 %v18165_v59, %v14051_v13  ;;  %v15672_v10 = vor.u32 %v18570_v0, %v15671_v62  ;;  %v16572_v59 = vor.u32 %v18795_v49, %v16571_v34  ;;  %v17918_v62 = vld [vmem:[%s19479_s30 + $0xa14] sm:$0xf]  ;;  %v14593_v0 = vld [vmem:[%s19479_s30 + $0x1604] sm:$0xf0]  ;;  %v12613_v34 = vld [vmem:[%s19479_s30 + $0x68c] sm:$0xf0] }
 0x23f   : > { %9937 = vmatpush.bf16.msra.mxu2 %v15128_v3  ;;  %9950 = vmatpush.bf16.msra.mxu3 %v16568_v4  ;;  %v17111_v3 = vld [vmem:[%s19479_s30 + $0x2900] sm:$0xf]  ;;  %v18930_v4 = vld [vmem:[%s19479_s30 + $0x29b0] sm:$0xf0] }
 0x240   : > { %v17112_v14 = vor.u32 %v18930_v4, %v17111_v3  ;;  %v14951_v3 = vld [vmem:[%s19479_s30 + $0x1820] sm:$0xf]  ;;  %v18390_v4 = vld [vmem:[%s19479_s30 + $0x18d0] sm:$0xf0] }
 0x241   : > { %9913 = vmatpush.bf16.msra.mxu0 %v11888_v18  ;;  %9926 = vmatpush.bf16.msra.mxu1 %v13328_v20  ;;  %v9707_v63 = vpop.f32.mrf.mxu0  ;;  %v9720_v32 = vpop.f32.mrf.mxu1  ;;  %v18120_v18 = vld [vmem:[%s19479_s30 + $0x1060] sm:$0xf0]  ;;  %v15491_v20 = vld [vmem:[%s19479_s30 + $0x1c58] sm:$0xf] }
 0x242   : > { %v9708_v5 = vadd.f32 %v9707_v63, %v1917_v51  ;;  %v13872_v27 = vor.u32 %v18120_v18, %v13871_v17  ;;  %v11891_v51 = vld [vmem:[%s19479_s30 + $0x38] sm:$0xf]  ;;  %v13153_v63 = vld [vmem:[%s19479_s30 + $0xac4] sm:$0xf0]  ;;  %v17873_v17 = vld [vmem:[%s19479_s30 + $0x8ac] sm:$0xf] }
 0x243   : > { %9938 = vmatpush.bf16.msra.mxu2 %v14948_v30  ;;  %9951 = vmatpush.bf16.msra.mxu3 %v16388_v33  ;;  %v12251_v30 = vld [vmem:[%s19479_s30 + $0x308] sm:$0xf]  ;;  %v17715_v33 = vld [vmem:[%s19479_s30 + $0x3b8] sm:$0xf0]  ;;  %v11892_v8 = vor.u32 %v17625_v56, %v11891_v51  ;;  %v12973_v18 = vld [vmem:[%s19479_s30 + $0x95c] sm:$0xf0] }
 0x244   : > { %9914 = vmatmul.bf16.vlgmr.msra.gmra.mxu0 %v19627_v28  ;;  %9927 = vmatmul.bf16.vlgmr.msra.gmra.mxu1 %v19629_v29  ;;  %v9721_v9 = vadd.f32 %v9720_v32, %v9708_v5  ;;  %v12252_v41 = vor.u32 %v17715_v33, %v12251_v30  ;;  %v18278_v32 = vld [vmem:[%s19479_s30 + $0x1554] sm:$0xf]  ;;  %v14771_v30 = vld [vmem:[%s19479_s30 + $0x16b8] sm:$0xf]  ;;  %v18143_v51 = vld [vmem:[%s19479_s30 + $0x111c] sm:$0xf] }
 0x245   : > { %9958 = vmatpush.bf16.msrb.mxu0 %v13152_v21  ;;  %9971 = vmatpush.bf16.msrb.mxu1 %v14592_v24  ;;  %v18525_v21 = vld [vmem:[%s19479_s30 + $0x1d08] sm:$0xf0]  ;;  %v16931_v24 = vld [vmem:[%s19479_s30 + $0x2798] sm:$0xf] }
 0x246   : > { %v15492_v35 = vor.u32 %v18525_v21, %v15491_v20  ;;  %v16932_v22 = vor.u32 %v18885_v25, %v16931_v24  ;;  %v18233_v20 = vld [vmem:[%s19479_s30 + $0x13ec] sm:$0xf]  ;;  %v14952_v21 = vor.u32 %v18390_v4, %v14951_v3  ;;  %v16211_v33 = vld [vmem:[%s19479_s30 + $0x21f8] sm:$0xf]  ;;  %v18098_v4 = vld [vmem:[%s19479_s30 + $0xfb4] sm:$0xf] }
 0x247   : > { %9939 = vmatpush.bf16.msra.mxu2 %v14768_v43  ;;  %9952 = vmatpush.bf16.msra.mxu3 %v16208_v44  ;;  %v17670_v43 = vld [vmem:[%s19479_s30 + $0x250] sm:$0xf0]  ;;  %v15312_v44 = vor.u32 %v18480_v39, %v15311_v11  ;;  %v17473_v11 = vld [vmem:[%s19479_s30 + $0x2c84] sm:$0xf0] }
 0x249   : > { %9959 = vmatpush.bf16.msrb.mxu0 %v12972_v42  ;;  %9972 = vmatpush.bf16.msrb.mxu1 %v14412_v12  ;;  %v9709_v38 = vpop.f32.mrf.mxu0  ;;  %v9722_v15 = vpop.f32.mrf.mxu1  ;;  %v13692_v42 = vor.u32 %v18075_v37, %v13691_v36  ;;  %v12071_v12 = vld [vmem:[%s19479_s30 + $0x1a0] sm:$0xf]  ;;  %v16033_v36 = vld [vmem:[%s19479_s30 + $0x2144] sm:$0xf0]  ;;  %v18998_v37 = vld [vmem:[%s19479_s30 + $0x2bd4] sm:$0xf] }
 0x24a   : > { %9940 = vmatmul.bf16.vlgmr.msra.gmra.mxu2 %v19645_v53  ;;  %9953 = vmatmul.bf16.vlgmr.msra.gmra.mxu3 %v19647_v54  ;;  %v12976_v38 = vor.u32 %v17873_v17, %v12973_v18  ;;  %v17693_v17 = vld [vmem:[%s19479_s30 + $0x30c] sm:$0xf]  ;;  %v12253_v18 = vld [vmem:[%s19479_s30 + $0x3bc] sm:$0xf0] }
 0x24b   : > { %9984 = vmatpush.bf16.msrb.mxu2 %v16032_v46  ;;  %9997 = vmatpush.bf16.msrb.mxu3 %v17472_v47  ;;  %v18030_v46 = vld [vmem:[%s19479_s30 + $0xd90] sm:$0xf0]  ;;  %v15131_v47 = vld [vmem:[%s19479_s30 + $0x1988] sm:$0xf] }
 0x24c   : > { %v15132_v13 = vor.u32 %v18435_v31, %v15131_v47  ;;  %v17293_v47 = vld [vmem:[%s19479_s30 + $0x2b1c] sm:$0xf0]  ;;  %v17783_v31 = vld [vmem:[%s19479_s30 + $0x5dc] sm:$0xf] }
 0x24d   : > { %9960 = vmatpush.bf16.msrb.mxu0 %v12792_v16  ;;  %9973 = vmatpush.bf16.msrb.mxu1 %v14232_v55  ;;  %v9733_v48 = vpop.f32.mrf.mxu2  ;;  %v9746_v2 = vpop.f32.mrf.mxu3  ;;  %v12072_v16 = vor.u32 %v17670_v43, %v12071_v12  ;;  %v13512_v55 = vor.u32 %v18030_v46, %v13511_v45  ;;  %v17476_v12 = vor.u32 %v18998_v37, %v17473_v11  ;;  %v18188_v43 = vld [vmem:[%s19479_s30 + $0x1284] sm:$0xf]  ;;  %v15853_v45 = vld [vmem:[%s19479_s30 + $0x1fdc] sm:$0xf0]  ;;  %v18953_v46 = vld [vmem:[%s19479_s30 + $0x2a6c] sm:$0xf] }
 0x24e   : > { %v9734_v50 = vadd.f32 %v9733_v48, %v9721_v9  ;;  %v17648_v37 = vld [vmem:[%s19479_s30 + $0x1a4] sm:$0xf]  ;;  %v12073_v11 = vld [vmem:[%s19479_s30 + $0x254] sm:$0xf0] }
 0x24f   : > { %9985 = vmatpush.bf16.msrb.mxu2 %v15852_v60  ;;  %9998 = vmatpush.bf16.msrb.mxu3 %v17292_v58  ;;  %v17985_v60 = vld [vmem:[%s19479_s30 + $0xc28] sm:$0xf0] }
 0x250   : > { %v9747_v58 = vadd.f32 %v9746_v2, %v9734_v50  ;;  %v13332_v61 = vor.u32 %v17985_v60, %v13331_v57  ;;  %v17296_v50 = vor.u32 %v18953_v46, %v17293_v47  ;;  %v15673_v60 = vld [vmem:[%s19479_s30 + $0x1e74] sm:$0xf0]  ;;  %v17603_v46 = vld [vmem:[%s19479_s30 + $0x3c] sm:$0xf]  ;;  %v11893_v47 = vld [vmem:[%s19479_s30 + $0xec] sm:$0xf0] }
 0x251   : > { %9961 = vmatpush.bf16.msrb.mxu0 %v12612_v6  ;;  %9974 = vmatpush.bf16.msrb.mxu1 %v14052_v7  ;;  %v16391_v6 = vld [vmem:[%s19479_s30 + $0x2360] sm:$0xf]  ;;  %v18750_v7 = vld [vmem:[%s19479_s30 + $0x2410] sm:$0xf0] }
 0x252   : > { %v11620_v5 = vrot.slane %v9747_v58, 6  ;;  %v16392_v24 = vor.u32 %v18750_v7, %v16391_v6  ;;  %v18908_v58 = vld [vmem:[%s19479_s30 + $0x2904] sm:$0xf]  ;;  %v18503_v6 = vld [vmem:[%s19479_s30 + $0x1c5c] sm:$0xf] }
 0x253   : > { %9986 = vmatpush.bf16.msrb.mxu2 %v15672_v10  ;;  %9999 = vmatpush.bf16.msrb.mxu3 %v17112_v14  ;;  %v13156_v10 = vor.u32 %v17918_v62, %v13153_v63  ;;  %v14596_v14 = vor.u32 %v18278_v32, %v14593_v0  ;;  %v17738_v63 = vld [vmem:[%s19479_s30 + $0x474] sm:$0xf]  ;;  %v12433_v32 = vld [vmem:[%s19479_s30 + $0x524] sm:$0xf0]  ;;  %v15493_v7 = vld [vmem:[%s19479_s30 + $0x1d0c] sm:$0xf0] }
 0x254   : > { %v20621_v9 = vsel %vm11647_vm1, %v20539_v1, %v11620_v5  ;;  %v18345_v1 = vld [vmem:[%s19479_s30 + $0x1768] sm:$0xf0]  ;;  %v13873_v5 = vld [vmem:[%s19479_s30 + $0x1064] sm:$0xf0] }
 0x255   : > { %9962 = vmatpush.bf16.msrb.mxu0 %v12432_v26  ;;  %9975 = vmatpush.bf16.msrb.mxu1 %v13872_v27  ;;  %v9735_v25 = vpop.f32.mrf.mxu2  ;;  %v9748_v26 = vpop.f32.mrf.mxu3  ;;  %v14413_v27 = vld [vmem:[%s19479_s30 + $0x149c] sm:$0xf0]  ;;  %v14772_v39 = vor.u32 %v18345_v1, %v14771_v30  ;;  %v15313_v1 = vld [vmem:[%s19479_s30 + $0x1ba4] sm:$0xf0] }
 0x256   : > { %v14416_v15 = vor.u32 %v18233_v20, %v14413_v27  ;;  %v15496_v20 = vor.u32 %v18503_v6, %v15493_v7  ;;  %v13693_v25 = vld [vmem:[%s19479_s30 + $0xefc] sm:$0xf0]  ;;  %v18458_v26 = vld [vmem:[%s19479_s30 + $0x1af4] sm:$0xf] }
 0x257   : > { %9987 = vmatpush.bf16.msrb.mxu2 %v15492_v35  ;;  %10000 = vmatpush.bf16.msrb.mxu3 %v16932_v22  ;;  %v18705_v35 = vld [vmem:[%s19479_s30 + $0x22a8] sm:$0xf0]  ;;  %v18638_v22 = vld [vmem:[%s19479_s30 + $0x2094] sm:$0xf] }
 0x258   : > { %v16212_v40 = vor.u32 %v18705_v35, %v16211_v33  ;;  %v18818_v33 = vld [vmem:[%s19479_s30 + $0x2634] sm:$0xf]  ;;  %v16753_v35 = vld [vmem:[%s19479_s30 + $0x26e4] sm:$0xf0] }
 0x259   : > { %9963 = vmatpush.bf16.msrb.mxu0 %v12252_v41  ;;  %9976 = vmatpush.bf16.msrb.mxu1 %v13692_v42  ;;  %v12793_v41 = vld [vmem:[%s19479_s30 + $0x7f4] sm:$0xf0]  ;;  %v16036_v42 = vor.u32 %v18638_v22, %v16033_v36  ;;  %v12256_v22 = vor.u32 %v17693_v17, %v12253_v18  ;;  %v18683_v17 = vld [vmem:[%s19479_s30 + $0x21fc] sm:$0xf]  ;;  %v16213_v18 = vld [vmem:[%s19479_s30 + $0x22ac] sm:$0xf0] }
 0x25a   : > { %v12796_v48 = vor.u32 %v17828_v23, %v12793_v41  ;;  %v18413_v23 = vld [vmem:[%s19479_s30 + $0x198c] sm:$0xf] }
 0x25b   : > { %9988 = vmatpush.bf16.msrb.mxu2 %v15312_v44  ;;  %10001 = vmatpush.bf16.msrb.mxu3 %v16752_v19  ;;  %v14233_v44 = vld [vmem:[%s19479_s30 + $0x1334] sm:$0xf0]  ;;  %v18593_v19 = vld [vmem:[%s19479_s30 + $0x1f2c] sm:$0xf] }
 0x25c   : > { %v14236_v2 = vor.u32 %v18188_v43, %v14233_v44  ;;  %v15856_v49 = vor.u32 %v18593_v19, %v15853_v45  ;;  %v18773_v43 = vld [vmem:[%s19479_s30 + $0x24cc] sm:$0xf]  ;;  %v16573_v44 = vld [vmem:[%s19479_s30 + $0x257c] sm:$0xf0]  ;;  %v12076_v19 = vor.u32 %v17648_v37, %v12073_v11  ;;  %v14239_v37 = vld [vmem:[%s19479_s30 + $0x1288] sm:$0xf] }
 0x25d   : > { %9964 = vmatpush.bf16.msrb.mxu0 %v12072_v16  ;;  %9977 = vmatpush.bf16.msrb.mxu1 %v13512_v55  ;;  %v14053_v16 = vld [vmem:[%s19479_s30 + $0x11cc] sm:$0xf0]  ;;  %v18548_v55 = vld [vmem:[%s19479_s30 + $0x1dc4] sm:$0xf]  ;;  %v18211_v11 = vld [vmem:[%s19479_s30 + $0x1338] sm:$0xf0] }
 0x25e   : > { %v14056_v62 = vor.u32 %v18143_v51, %v14053_v16  ;;  %v15676_v0 = vor.u32 %v18548_v55, %v15673_v60  ;;  %v14599_v51 = vld [vmem:[%s19479_s30 + $0x1558] sm:$0xf]  ;;  %v18301_v16 = vld [vmem:[%s19479_s30 + $0x1608] sm:$0xf0]  ;;  %v18368_v55 = vld [vmem:[%s19479_s30 + $0x1824] sm:$0xf] }
 0x25f   : > { %9989 = vmatpush.bf16.msrb.mxu2 %v15132_v13  ;;  %10002 = vmatpush.bf16.msrb.mxu3 %v16572_v59  ;;  %v17113_v13 = vld [vmem:[%s19479_s30 + $0x29b4] sm:$0xf0]  ;;  %v12616_v59 = vor.u32 %v17783_v31, %v12613_v34  ;;  %v16576_v31 = vor.u32 %v18773_v43, %v16573_v44  ;;  %v13333_v34 = vld [vmem:[%s19479_s30 + $0xc2c] sm:$0xf0]  ;;  %v14240_v43 = vor.u32 %v18211_v11, %v14239_v37  ;;  %v12619_v44 = vld [vmem:[%s19479_s30 + $0x5e0] sm:$0xf] }
 0x260   : > { %v17116_v3 = vor.u32 %v18908_v58, %v17113_v13  ;;  %v14953_v60 = vld [vmem:[%s19479_s30 + $0x18d4] sm:$0xf0]  ;;  %v18728_v58 = vld [vmem:[%s19479_s30 + $0x2364] sm:$0xf] }
 0x261   : > { %9965 = vmatpush.bf16.msrb.mxu0 %v11892_v8  ;;  %9978 = vmatpush.bf16.msrb.mxu1 %v13332_v61  ;;  %v20650_v56 = vpop.f32.mrf.mxu0  ;;  %v20652_v57 = vpop.f32.mrf.mxu1  ;;  %v18863_v8 = vld [vmem:[%s19479_s30 + $0x279c] sm:$0xf]  ;;  %v16933_v61 = vld [vmem:[%s19479_s30 + $0x284c] sm:$0xf0]  ;;  %v16393_v13 = vld [vmem:[%s19479_s30 + $0x2414] sm:$0xf0] }
 0x262   : > { %v16396_v6 = vor.u32 %v18728_v58, %v16393_v13  ;;  %v12439_v13 = vld [vmem:[%s19479_s30 + $0x478] sm:$0xf] }
 0x263   : > { %9990 = vmatpush.bf16.msrb.mxu2 %v14952_v21  ;;  %10003 = vmatpush.bf16.msrb.mxu3 %v16392_v24  ;;  %v16936_v21 = vor.u32 %v18863_v8, %v16933_v61  ;;  %v18053_v24 = vld [vmem:[%s19479_s30 + $0xe4c] sm:$0xf]  ;;  %v18256_v61 = vld [vmem:[%s19479_s30 + $0x14a0] sm:$0xf0] }
 0x264   : > { %9966 = vmatmul.bf16.vlgmr.msrb.gmra.mxu0 %v19627_v28  ;;  %9979 = vmatmul.bf16.vlgmr.msrb.gmra.mxu1 %v19629_v29  ;;  %v13696_v36 = vor.u32 %v18053_v24, %v13693_v25  ;;  %v17479_v24 = vld [vmem:[%s19479_s30 + $0x2bd8] sm:$0xf]  ;;  %v19021_v25 = vld [vmem:[%s19479_s30 + $0x2c88] sm:$0xf0] }
 0x265   : > { %10010 = vmatpush.bf16.msra.mxu0 %v13156_v10  ;;  %10023 = vmatpush.bf16.msra.mxu1 %v14596_v14  ;;  %v12436_v10 = vor.u32 %v17738_v63, %v12433_v32  ;;  %v13876_v14 = vor.u32 %v18098_v4, %v13873_v5  ;;  %v14600_v32 = vor.u32 %v18301_v16, %v14599_v51  ;;  %v14419_v4 = vld [vmem:[%s19479_s30 + $0x13f0] sm:$0xf]  ;;  %v18931_v51 = vld [vmem:[%s19479_s30 + $0x29b8] sm:$0xf0] }
 0x266   : > { %v14956_v5 = vor.u32 %v18368_v55, %v14953_v60  ;;  %v1919_v55 = vperm.slane %v20491_v52, 3 }
 0x267   : > { %9991 = vmatpush.bf16.msrb.mxu2 %v14772_v39  ;;  %10004 = vmatpush.bf16.msrb.mxu3 %v16212_v40  ;;  %v18008_v39 = vld [vmem:[%s19479_s30 + $0xce4] sm:$0xf]  ;;  %v13513_v40 = vld [vmem:[%s19479_s30 + $0xd94] sm:$0xf0] }
 0x268   : > { %v13516_v45 = vor.u32 %v18008_v39, %v13513_v40  ;;  %v17299_v39 = vld [vmem:[%s19479_s30 + $0x2a70] sm:$0xf]  ;;  %v18976_v40 = vld [vmem:[%s19479_s30 + $0x2b20] sm:$0xf0] }
 0x269   : > { %10011 = vmatpush.bf16.msra.mxu0 %v12976_v38  ;;  %10024 = vmatpush.bf16.msra.mxu1 %v14416_v15  ;;  %v9761_v27 = vpop.f32.mrf.mxu0  ;;  %v9774_v30 = vpop.f32.mrf.mxu1  ;;  %v15316_v38 = vor.u32 %v18458_v26, %v15313_v1  ;;  %v16756_v15 = vor.u32 %v18818_v33, %v16753_v35  ;;  %v16216_v1 = vor.u32 %v18683_v17, %v16213_v18  ;;  %v12799_v33 = vld [vmem:[%s19479_s30 + $0x748] sm:$0xf]  ;;  %v17851_v35 = vld [vmem:[%s19479_s30 + $0x7f8] sm:$0xf0]  ;;  %v13699_v18 = vld [vmem:[%s19479_s30 + $0xe50] sm:$0xf] }
 0x26a   : > { %9992 = vmatmul.bf16.vlgmr.msrb.gmra.mxu2 %v19645_v53  ;;  %10005 = vmatmul.bf16.vlgmr.msrb.gmra.mxu3 %v19647_v54  ;;  %v14420_v27 = vor.u32 %v18256_v61, %v14419_v4  ;;  %v16939_v4 = vld [vmem:[%s19479_s30 + $0x27a0] sm:$0xf]  ;;  %v17716_v61 = vld [vmem:[%s19479_s30 + $0x3c0] sm:$0xf0] }
 0x26b   : > { %10036 = vmatpush.bf16.msra.mxu2 %v16036_v42  ;;  %10049 = vmatpush.bf16.msra.mxu3 %v17476_v12  ;;  %v15133_v12 = vld [vmem:[%s19479_s30 + $0x1a3c] sm:$0xf0] }
 0x26d   : > { %10012 = vmatpush.bf16.msra.mxu0 %v12796_v48  ;;  %10025 = vmatpush.bf16.msra.mxu1 %v14236_v2  ;;  %v20680_v41 = vpop.f32.mrf.mxu2  ;;  %v20682_v42 = vpop.f32.mrf.mxu3  ;;  %v17963_v48 = vld [vmem:[%s19479_s30 + $0xb7c] sm:$0xf]  ;;  %v15136_v2 = vor.u32 %v18413_v23, %v15133_v12  ;;  %v1918_v23 = vperm.slane %v20491_v52, 2  ;;  %v12800_v12 = vor.u32 %v17851_v35, %v12799_v33  ;;  %v12079_v35 = vld [vmem:[%s19479_s30 + $0x1a8] sm:$0xf] }
 0x26f   : > { %10037 = vmatpush.bf16.msra.mxu2 %v15856_v49  ;;  %10050 = vmatpush.bf16.msra.mxu3 %v17296_v50  ;;  %v13159_v49 = vld [vmem:[%s19479_s30 + $0xa18] sm:$0xf]  ;;  %v17941_v50 = vld [vmem:[%s19479_s30 + $0xac8] sm:$0xf0]  ;;  %v9760_v16 = vadd.f32 %v20650_v56, %v1918_v23  ;;  %v18526_v56 = vld [vmem:[%s19479_s30 + $0x1d10] sm:$0xf0] }
 0x270   : > { %v13160_v63 = vor.u32 %v17941_v50, %v13159_v49  ;;  %v18571_v49 = vld [vmem:[%s19479_s30 + $0x1e78] sm:$0xf0]  ;;  %v17119_v50 = vld [vmem:[%s19479_s30 + $0x2908] sm:$0xf]  ;;  %v18436_v23 = vld [vmem:[%s19479_s30 + $0x1a40] sm:$0xf0] }
 0x271   : > { %10013 = vmatpush.bf16.msra.mxu0 %v12616_v59  ;;  %10026 = vmatpush.bf16.msra.mxu1 %v14056_v62  ;;  %v11896_v59 = vor.u32 %v17603_v46, %v11893_v47  ;;  %v13336_v62 = vor.u32 %v17963_v48, %v13333_v34  ;;  %v17300_v46 = vor.u32 %v18976_v40, %v17299_v39  ;;  %v14059_v47 = vld [vmem:[%s19479_s30 + $0x1120] sm:$0xf]  ;;  %v18166_v48 = vld [vmem:[%s19479_s30 + $0x11d0] sm:$0xf0] }
 0x272   : > { %v14060_v58 = vor.u32 %v18166_v48, %v14059_v47  ;;  %v9773_v52 = vadd.f32 %v20652_v57, %v9760_v16  ;;  %v17626_v48 = vld [vmem:[%s19479_s30 + $0xf0] sm:$0xf0]  ;;  %v18279_v16 = vld [vmem:[%s19479_s30 + $0x155c] sm:$0xf] }
 0x273   : > { %10038 = vmatpush.bf16.msra.mxu2 %v15676_v0  ;;  %10051 = vmatpush.bf16.msra.mxu3 %v17116_v3  ;;  %v12979_v0 = vld [vmem:[%s19479_s30 + $0x8b0] sm:$0xf]  ;;  %v17896_v3 = vld [vmem:[%s19479_s30 + $0x960] sm:$0xf0] }
 0x274   : > { %v12980_v26 = vor.u32 %v17896_v3, %v12979_v0  ;;  %v18121_v0 = vld [vmem:[%s19479_s30 + $0x1068] sm:$0xf0]  ;;  %v15499_v3 = vld [vmem:[%s19479_s30 + $0x1c60] sm:$0xf] }
 0x275   : > { %10014 = vmatpush.bf16.msra.mxu0 %v12436_v10  ;;  %10027 = vmatpush.bf16.msra.mxu1 %v13876_v14  ;;  %v9787_v7 = vpop.f32.mrf.mxu2  ;;  %v9800_v8 = vpop.f32.mrf.mxu3  ;;  %v18323_v10 = vld [vmem:[%s19479_s30 + $0x16bc] sm:$0xf]  ;;  %v14773_v14 = vld [vmem:[%s19479_s30 + $0x176c] sm:$0xf0] }
 0x276   : > { %v14776_v30 = vor.u32 %v18323_v10, %v14773_v14  ;;  %v12259_v8 = vld [vmem:[%s19479_s30 + $0x310] sm:$0xf]  ;;  %v15500_v14 = vor.u32 %v18526_v56, %v15499_v3  ;;  %v17874_v3 = vld [vmem:[%s19479_s30 + $0x8b4] sm:$0xf] }
 0x277   : > { %10039 = vmatpush.bf16.msra.mxu2 %v15496_v20  ;;  %10052 = vmatpush.bf16.msra.mxu3 %v16936_v21  ;;  %v16039_v20 = vld [vmem:[%s19479_s30 + $0x2098] sm:$0xf]  ;;  %v18661_v21 = vld [vmem:[%s19479_s30 + $0x2148] sm:$0xf0] }
 0x279   : > { %10015 = vmatpush.bf16.msra.mxu0 %v12256_v22  ;;  %10028 = vmatpush.bf16.msra.mxu1 %v13696_v36  ;;  %v16040_v22 = vor.u32 %v18661_v21, %v16039_v20  ;;  %v17480_v36 = vor.u32 %v19021_v25, %v17479_v24  ;;  %v18076_v20 = vld [vmem:[%s19479_s30 + $0xf00] sm:$0xf0]  ;;  %v15319_v21 = vld [vmem:[%s19479_s30 + $0x1af8] sm:$0xf]  ;;  %v18481_v25 = vld [vmem:[%s19479_s30 + $0x1ba8] sm:$0xf0] }
 0x27a   : > { %v13700_v33 = vor.u32 %v18076_v20, %v13699_v18  ;;  %v15320_v37 = vor.u32 %v18481_v25, %v15319_v21  ;;  %v14779_v18 = vld [vmem:[%s19479_s30 + $0x16c0] sm:$0xf]  ;;  %v18346_v20 = vld [vmem:[%s19479_s30 + $0x1770] sm:$0xf0]  ;;  %v16041_v25 = vld [vmem:[%s19479_s30 + $0x214c] sm:$0xf0] }
 0x27b   : > { %10040 = vmatpush.bf16.msra.mxu2 %v15316_v38  ;;  %10053 = vmatpush.bf16.msra.mxu3 %v16756_v15  ;;  %v15859_v38 = vld [vmem:[%s19479_s30 + $0x1f30] sm:$0xf]  ;;  %v18616_v15 = vld [vmem:[%s19479_s30 + $0x1fe0] sm:$0xf0]  ;;  %v16219_v21 = vld [vmem:[%s19479_s30 + $0x2200] sm:$0xf] }
 0x27d   : > { %10016 = vmatpush.bf16.msra.mxu0 %v12076_v19  ;;  %10029 = vmatpush.bf16.msra.mxu1 %v13516_v45  ;;  %v17806_v19 = vld [vmem:[%s19479_s30 + $0x690] sm:$0xf0]  ;;  %v15860_v45 = vor.u32 %v18616_v15, %v15859_v38  ;;  %v13519_v38 = vld [vmem:[%s19479_s30 + $0xce8] sm:$0xf]  ;;  %v18031_v15 = vld [vmem:[%s19479_s30 + $0xd98] sm:$0xf0] }
 0x27e   : > { %v12620_v60 = vor.u32 %v17806_v19, %v12619_v44  ;;  %v13520_v47 = vor.u32 %v18031_v15, %v13519_v38  ;;  %v14241_v38 = vld [vmem:[%s19479_s30 + $0x133c] sm:$0xf0]  ;;  %v18594_v15 = vld [vmem:[%s19479_s30 + $0x1f34] sm:$0xf] }
 0x27f   : > { %10041 = vmatpush.bf16.msra.mxu2 %v15136_v2  ;;  %10054 = vmatpush.bf16.msra.mxu3 %v16576_v31  ;;  %v15679_v2 = vld [vmem:[%s19479_s30 + $0x1dc8] sm:$0xf] }
 0x281   : > { %10017 = vmatpush.bf16.msra.mxu0 %v11896_v59  ;;  %10030 = vmatpush.bf16.msra.mxu1 %v13336_v62  ;;  %v9811_v31 = vpop.f32.mrf.mxu0  ;;  %v9824_v34 = vpop.f32.mrf.mxu1  ;;  %v17761_v59 = vld [vmem:[%s19479_s30 + $0x528] sm:$0xf0]  ;;  %v15680_v62 = vor.u32 %v18571_v49, %v15679_v2  ;;  %v13339_v2 = vld [vmem:[%s19479_s30 + $0xb80] sm:$0xf] }
 0x282   : > { %v9812_v10 = vadd.f32 %v9811_v31, %v1919_v55  ;;  %v17986_v31 = vld [vmem:[%s19479_s30 + $0xc30] sm:$0xf0]  ;;  %v14601_v55 = vld [vmem:[%s19479_s30 + $0x160c] sm:$0xf0] }
 0x283   : > { %10042 = vmatpush.bf16.msra.mxu2 %v14956_v5  ;;  %10055 = vmatpush.bf16.msra.mxu3 %v16396_v6  ;;  %v18886_v5 = vld [vmem:[%s19479_s30 + $0x2850] sm:$0xf0]  ;;  %v12440_v6 = vor.u32 %v17761_v59, %v12439_v13 }
 0x284   : > { %10018 = vmatmul.bf16.vlgmr.msra.gmra.mxu0 %v19627_v28  ;;  %10031 = vmatmul.bf16.vlgmr.msra.gmra.mxu1 %v19629_v29  ;;  %v16940_v17 = vor.u32 %v18886_v5, %v16939_v4  ;;  %v14604_v5 = vor.u32 %v18279_v16, %v14601_v55 }
 0x285   : > { %10062 = vmatpush.bf16.msrb.mxu0 %v13160_v63  ;;  %10075 = vmatpush.bf16.msrb.mxu1 %v14600_v32  ;;  %v17120_v63 = vor.u32 %v18931_v51, %v17119_v50  ;;  %v13879_v32 = vld [vmem:[%s19479_s30 + $0xfb8] sm:$0xf]  ;;  %v17919_v50 = vld [vmem:[%s19479_s30 + $0xa1c] sm:$0xf]  ;;  %v13161_v51 = vld [vmem:[%s19479_s30 + $0xacc] sm:$0xf0] }
 0x286   : > { %v13880_v7 = vor.u32 %v18121_v0, %v13879_v32  ;;  %v13340_v0 = vor.u32 %v17986_v31, %v13339_v2  ;;  %v13164_v4 = vor.u32 %v17919_v50, %v13161_v51  ;;  %v14061_v2 = vld [vmem:[%s19479_s30 + $0x11d4] sm:$0xf0]  ;;  %v18549_v31 = vld [vmem:[%s19479_s30 + $0x1dcc] sm:$0xf]  ;;  %v17121_v51 = vld [vmem:[%s19479_s30 + $0x29bc] sm:$0xf0] }
 0x287   : > { %10043 = vmatpush.bf16.msra.mxu2 %v14776_v30  ;;  %10056 = vmatpush.bf16.msra.mxu3 %v16216_v1  ;;  %v9786_v30 = vadd.f32 %v20680_v41, %v9773_v52  ;;  %v12260_v1 = vor.u32 %v17716_v61, %v12259_v8  ;;  %v15139_v41 = vld [vmem:[%s19479_s30 + $0x1990] sm:$0xf]  ;;  %v12981_v52 = vld [vmem:[%s19479_s30 + $0x964] sm:$0xf0]  ;;  %v18909_v50 = vld [vmem:[%s19479_s30 + $0x290c] sm:$0xf] }
 0x289   : > { %10063 = vmatpush.bf16.msrb.mxu0 %v12980_v26  ;;  %10076 = vmatpush.bf16.msrb.mxu1 %v14420_v27  ;;  %v9813_v57 = vpop.f32.mrf.mxu0  ;;  %v9826_v24 = vpop.f32.mrf.mxu1  ;;  %v16759_v26 = vld [vmem:[%s19479_s30 + $0x2638] sm:$0xf]  ;;  %v18841_v27 = vld [vmem:[%s19479_s30 + $0x26e8] sm:$0xf0]  ;;  %v9799_v44 = vadd.f32 %v20682_v42, %v9786_v30  ;;  %v15140_v42 = vor.u32 %v18436_v23, %v15139_v41  ;;  %v15861_v41 = vld [vmem:[%s19479_s30 + $0x1fe4] sm:$0xf0] }
 0x28a   : > { %10044 = vmatmul.bf16.vlgmr.msra.gmra.mxu2 %v19645_v53  ;;  %10057 = vmatmul.bf16.vlgmr.msra.gmra.mxu3 %v19647_v54  ;;  %v16760_v11 = vor.u32 %v18841_v27, %v16759_v26  ;;  %v18706_v57 = vld [vmem:[%s19479_s30 + $0x22b0] sm:$0xf0]  ;;  %v18639_v24 = vld [vmem:[%s19479_s30 + $0x209c] sm:$0xf]  ;;  %v17481_v27 = vld [vmem:[%s19479_s30 + $0x2c8c] sm:$0xf0] }
 0x28b   : > { %10088 = vmatpush.bf16.msrb.mxu2 %v16040_v22  ;;  %10101 = vmatpush.bf16.msrb.mxu3 %v17480_v36  ;;  %v17671_v22 = vld [vmem:[%s19479_s30 + $0x258] sm:$0xf0]  ;;  %v9825_v36 = vadd.f32 %v9824_v34, %v9812_v10  ;;  %v11621_v13 = vrot.slane %v9799_v44, 4  ;;  %v20800_v23 = vld [vmem:[%s19921_s6 + $0x8] sm:$0xff] }
 0x28c   : > { %v18999_v26 = vld [vmem:[%s19479_s30 + $0x2bdc] sm:$0xf] }
 0x28d   : > { %10064 = vmatpush.bf16.msrb.mxu0 %v12800_v12  ;;  %10077 = vmatpush.bf16.msrb.mxu1 %v14240_v43  ;;  %v9837_v39 = vpop.f32.mrf.mxu2  ;;  %v9850_v40 = vpop.f32.mrf.mxu3  ;;  %v16579_v12 = vld [vmem:[%s19479_s30 + $0x24d0] sm:$0xf]  ;;  %v18796_v43 = vld [vmem:[%s19479_s30 + $0x2580] sm:$0xf0] }
 0x28e   : > { %v9838_v19 = vadd.f32 %v9837_v39, %v9825_v36  ;;  %v16580_v49 = vor.u32 %v18796_v43, %v16579_v12  ;;  %v16044_v36 = vor.u32 %v18639_v24, %v16041_v25  ;;  %v18954_v39 = vld [vmem:[%s19479_s30 + $0x2a74] sm:$0xf]  ;;  %v1920_v12 = vperm.slane %v20800_v23, 4  ;;  %v18819_v24 = vld [vmem:[%s19479_s30 + $0x263c] sm:$0xf] }
 0x28f   : > { %10089 = vmatpush.bf16.msrb.mxu2 %v15860_v45  ;;  %10102 = vmatpush.bf16.msrb.mxu3 %v17300_v46  ;;  %v11899_v45 = vld [vmem:[%s19479_s30 + $0x40] sm:$0xf]  ;;  %v12080_v46 = vor.u32 %v17671_v22, %v12079_v35  ;;  %v17829_v35 = vld [vmem:[%s19479_s30 + $0x74c] sm:$0xf]  ;;  %v16761_v25 = vld [vmem:[%s19479_s30 + $0x26ec] sm:$0xf0] }
 0x290   : > { %v9851_v34 = vadd.f32 %v9850_v40, %v9838_v19  ;;  %v11900_v32 = vor.u32 %v17626_v48, %v11899_v45  ;;  %v12801_v22 = vld [vmem:[%s19479_s30 + $0x7fc] sm:$0xf0]  ;;  %v17301_v40 = vld [vmem:[%s19479_s30 + $0x2b24] sm:$0xf0]  ;;  %v17784_v19 = vld [vmem:[%s19479_s30 + $0x5e4] sm:$0xf] }
 0x291   : > { %10065 = vmatpush.bf16.msrb.mxu0 %v12620_v60  ;;  %10078 = vmatpush.bf16.msrb.mxu1 %v14060_v58  ;;  %v14959_v60 = vld [vmem:[%s19479_s30 + $0x1828] sm:$0xf]  ;;  %v18391_v58 = vld [vmem:[%s19479_s30 + $0x18d8] sm:$0xf0]  ;;  %v12804_v43 = vor.u32 %v17829_v35, %v12801_v22  ;;  %v12621_v45 = vld [vmem:[%s19479_s30 + $0x694] sm:$0xf0] }
 0x292   : > { %v11622_v59 = vrot.slane %v9851_v34, 2  ;;  %v14960_v61 = vor.u32 %v18391_v58, %v14959_v60  ;;  %v18144_v48 = vld [vmem:[%s19479_s30 + $0x1124] sm:$0xf]  ;;  %v12624_v55 = vor.u32 %v17784_v19, %v12621_v45  ;;  %v17739_v58 = vld [vmem:[%s19479_s30 + $0x47c] sm:$0xf] }
 0x293   : > { %10090 = vmatpush.bf16.msrb.mxu2 %v15680_v62  ;;  %10103 = vmatpush.bf16.msrb.mxu3 %v17120_v63  ;;  %v16399_v62 = vld [vmem:[%s19479_s30 + $0x2368] sm:$0xf]  ;;  %v18751_v63 = vld [vmem:[%s19479_s30 + $0x2418] sm:$0xf0]  ;;  %v14064_v60 = vor.u32 %v18144_v48, %v14061_v2  ;;  %v18009_v35 = vld [vmem:[%s19479_s30 + $0xcec] sm:$0xf] }
 0x294   : > { %v11657_v56 = vsel %vm11649_vm2, %v11621_v13, %v11622_v59  ;;  %v16400_v10 = vor.u32 %v18751_v63, %v16399_v62  ;;  %v12441_v13 = vld [vmem:[%s19479_s30 + $0x52c] sm:$0xf0]  ;;  %v17124_v63 = vor.u32 %v18909_v50, %v17121_v51  ;;  %v13521_v22 = vld [vmem:[%s19479_s30 + $0xd9c] sm:$0xf0]  ;;  %v17964_v19 = vld [vmem:[%s19479_s30 + $0xb84] sm:$0xf] }
 0x295   : > { %10066 = vmatpush.bf16.msrb.mxu0 %v12440_v6  ;;  %10079 = vmatpush.bf16.msrb.mxu1 %v13880_v7  ;;  %v18234_v6 = vld [vmem:[%s19479_s30 + $0x13f4] sm:$0xf]  ;;  %v14421_v7 = vld [vmem:[%s19479_s30 + $0x14a4] sm:$0xf0]  ;;  %v11658_v8 = vsel %vm11651_vm3, %v20621_v9, %v11657_v56  ;;  %v12984_v9 = vor.u32 %v17874_v3, %v12981_v52  ;;  %v18504_v3 = vld [vmem:[%s19479_s30 + $0x1c64] sm:$0xf]  ;;  %v12444_v52 = vor.u32 %v17739_v58, %v12441_v13 }
 0x296   : > { %11696 = vst [vmem:[%s20170_s21 + $0x10] sm:$0xff] %v11658_v8  ;;  %v14424_v30 = vor.u32 %v18234_v6, %v14421_v7  ;;  %v15501_v56 = vld [vmem:[%s19479_s30 + $0x1d14] sm:$0xf0]  ;;  %v17694_v7 = vld [vmem:[%s19479_s30 + $0x314] sm:$0xf] }
 0x297   : > { %10091 = vmatpush.bf16.msrb.mxu2 %v15500_v14  ;;  %10104 = vmatpush.bf16.msrb.mxu3 %v16940_v17  ;;  %v9839_v14 = vpop.f32.mrf.mxu2  ;;  %v9852_v17 = vpop.f32.mrf.mxu3  ;;  %v12261_v8 = vld [vmem:[%s19479_s30 + $0x3c4] sm:$0xf0]  ;;  %v13341_v48 = vld [vmem:[%s19479_s30 + $0xc34] sm:$0xf0]  ;;  %v13167_v2 = vld [vmem:[%s19479_s30 + $0xa20] sm:$0xf] }
 0x298   : > { %v18054_v14 = vld [vmem:[%s19479_s30 + $0xe54] sm:$0xf]  ;;  %v13701_v17 = vld [vmem:[%s19479_s30 + $0xf04] sm:$0xf0]  ;;  %v14961_v50 = vld [vmem:[%s19479_s30 + $0x18dc] sm:$0xf0] }
 0x299   : > { %10067 = vmatpush.bf16.msrb.mxu0 %v12260_v1  ;;  %10080 = vmatpush.bf16.msrb.mxu1 %v13700_v33  ;;  %v14780_v1 = vor.u32 %v18346_v20, %v14779_v18  ;;  %v16220_v33 = vor.u32 %v18706_v57, %v16219_v21  ;;  %v18459_v18 = vld [vmem:[%s19479_s30 + $0x1afc] sm:$0xf]  ;;  %v15321_v57 = vld [vmem:[%s19479_s30 + $0x1bac] sm:$0xf0]  ;;  %v18729_v51 = vld [vmem:[%s19479_s30 + $0x236c] sm:$0xf] }
 0x29b   : > { %10092 = vmatpush.bf16.msrb.mxu2 %v15320_v37  ;;  %10105 = vmatpush.bf16.msrb.mxu3 %v16760_v11  ;;  %v17484_v37 = vor.u32 %v18999_v26, %v17481_v27  ;;  %v18189_v11 = vld [vmem:[%s19479_s30 + $0x128c] sm:$0xf]  ;;  %v12264_v26 = vor.u32 %v17694_v7, %v12261_v8  ;;  %v13704_v27 = vor.u32 %v18054_v14, %v13701_v17  ;;  %v16221_v7 = vld [vmem:[%s19479_s30 + $0x22b4] sm:$0xf0]  ;;  %v16047_v8 = vld [vmem:[%s19479_s30 + $0x20a0] sm:$0xf] }
 0x29c   : > { %v14244_v44 = vor.u32 %v18189_v11, %v14241_v38  ;;  %v15141_v38 = vld [vmem:[%s19479_s30 + $0x1a44] sm:$0xf0]  ;;  %v19022_v14 = vld [vmem:[%s19479_s30 + $0x2c90] sm:$0xf0] }
 0x29d   : > { %10068 = vmatpush.bf16.msrb.mxu0 %v12080_v46  ;;  %10081 = vmatpush.bf16.msrb.mxu1 %v13520_v47  ;;  %v15864_v46 = vor.u32 %v18594_v15, %v15861_v41  ;;  %v17304_v47 = vor.u32 %v18954_v39, %v17301_v40  ;;  %v18774_v15 = vld [vmem:[%s19479_s30 + $0x24d4] sm:$0xf]  ;;  %v16581_v41 = vld [vmem:[%s19479_s30 + $0x2584] sm:$0xf0] }
 0x29f   : > { %10093 = vmatpush.bf16.msrb.mxu2 %v15140_v42  ;;  %10106 = vmatpush.bf16.msrb.mxu3 %v16580_v49  ;;  %v15681_v49 = vld [vmem:[%s19479_s30 + $0x1e7c] sm:$0xf0] }
 0x2a0   : > { %v15684_v62 = vor.u32 %v18549_v31, %v15681_v49  ;;  %v17942_v31 = vld [vmem:[%s19479_s30 + $0xad0] sm:$0xf0]  ;;  %v18369_v49 = vld [vmem:[%s19479_s30 + $0x182c] sm:$0xf] }
 0x2a1   : > { %10069 = vmatpush.bf16.msrb.mxu0 %v11900_v32  ;;  %10082 = vmatpush.bf16.msrb.mxu1 %v13340_v0  ;;  %v9863_v34 = vpop.f32.mrf.mxu0  ;;  %v9876_v42 = vpop.f32.mrf.mxu1  ;;  %v18099_v32 = vld [vmem:[%s19479_s30 + $0xfbc] sm:$0xf]  ;;  %v13881_v0 = vld [vmem:[%s19479_s30 + $0x106c] sm:$0xf0]  ;;  %v13168_v58 = vor.u32 %v17942_v31, %v13167_v2 }
 0x2a2   : > { %v9864_v16 = vadd.f32 %v9863_v34, %v1920_v12  ;;  %v13884_v6 = vor.u32 %v18099_v32, %v13881_v0  ;;  %v13524_v12 = vor.u32 %v18009_v35, %v13521_v22  ;;  %v14607_v34 = vld [vmem:[%s19479_s30 + $0x1560] sm:$0xf]  ;;  %v14964_v32 = vor.u32 %v18369_v49, %v14961_v50  ;;  %v18977_v35 = vld [vmem:[%s19479_s30 + $0x2b28] sm:$0xf0] }
 0x2a3   : > { %10094 = vmatpush.bf16.msrb.mxu2 %v14960_v61  ;;  %10107 = vmatpush.bf16.msrb.mxu3 %v16400_v10  ;;  %v15504_v61 = vor.u32 %v18504_v3, %v15501_v56  ;;  %v1921_v22 = vperm.slane %v20800_v23, 5 }
 0x2a4   : > { %10070 = vmatmul.bf16.vlgmr.msrb.gmra.mxu0 %v19627_v28  ;;  %10083 = vmatmul.bf16.vlgmr.msrb.gmra.mxu1 %v19629_v29  ;;  %v9877_v59 = vadd.f32 %v9876_v42, %v9864_v16  ;;  %v18302_v42 = vld [vmem:[%s19479_s30 + $0x1610] sm:$0xf0]  ;;  %v16401_v16 = vld [vmem:[%s19479_s30 + $0x241c] sm:$0xf0] }
 0x2a5   : > { %10114 = vmatpush.bf16.msra.mxu0 %v13164_v4  ;;  %10127 = vmatpush.bf16.msra.mxu1 %v14604_v5  ;;  %v18864_v4 = vld [vmem:[%s19479_s30 + $0x27a4] sm:$0xf]  ;;  %v16941_v5 = vld [vmem:[%s19479_s30 + $0x2854] sm:$0xf0]  ;;  %v14608_v13 = vor.u32 %v18302_v42, %v14607_v34  ;;  %v16404_v0 = vor.u32 %v18729_v51, %v16401_v16  ;;  %v12447_v34 = vld [vmem:[%s19479_s30 + $0x480] sm:$0xf] }
 0x2a6   : > { %v16944_v10 = vor.u32 %v18864_v4, %v16941_v5  ;;  %v18257_v4 = vld [vmem:[%s19479_s30 + $0x14a8] sm:$0xf0]  ;;  %v18324_v5 = vld [vmem:[%s19479_s30 + $0x16c4] sm:$0xf]  ;;  %v17762_v42 = vld [vmem:[%s19479_s30 + $0x530] sm:$0xf0] }
 0x2a7   : > { %10095 = vmatpush.bf16.msrb.mxu2 %v14780_v1  ;;  %10108 = vmatpush.bf16.msrb.mxu3 %v16220_v33  ;;  %v15324_v1 = vor.u32 %v18459_v18, %v15321_v57  ;;  %v16764_v33 = vor.u32 %v18819_v24, %v16761_v25  ;;  %v12807_v57 = vld [vmem:[%s19479_s30 + $0x750] sm:$0xf]  ;;  %v17852_v24 = vld [vmem:[%s19479_s30 + $0x800] sm:$0xf0]  ;;  %v13887_v16 = vld [vmem:[%s19479_s30 + $0xfc0] sm:$0xf] }
 0x2a9   : > { %10115 = vmatpush.bf16.msra.mxu0 %v12984_v9  ;;  %10128 = vmatpush.bf16.msra.mxu1 %v14424_v30  ;;  %v9865_v20 = vpop.f32.mrf.mxu0  ;;  %v9878_v21 = vpop.f32.mrf.mxu1  ;;  %v17649_v9 = vld [vmem:[%s19479_s30 + $0x1ac] sm:$0xf]  ;;  %v12081_v30 = vld [vmem:[%s19479_s30 + $0x25c] sm:$0xf0] }
 0x2aa   : > { %10096 = vmatmul.bf16.vlgmr.msrb.gmra.mxu2 %v19645_v53  ;;  %10109 = vmatmul.bf16.vlgmr.msrb.gmra.mxu3 %v19647_v54  ;;  %v12084_v40 = vor.u32 %v17649_v9, %v12081_v30  ;;  %v18212_v9 = vld [vmem:[%s19479_s30 + $0x1340] sm:$0xf0]  ;;  %v15867_v30 = vld [vmem:[%s19479_s30 + $0x1f38] sm:$0xf] }
 0x2ab   : > { %10140 = vmatpush.bf16.msra.mxu2 %v16044_v36  ;;  %10153 = vmatpush.bf16.msra.mxu3 %v17484_v37  ;;  %v18414_v36 = vld [vmem:[%s19479_s30 + $0x1994] sm:$0xf] }
 0x2ad   : > { %10116 = vmatpush.bf16.msra.mxu0 %v12804_v43  ;;  %10129 = vmatpush.bf16.msra.mxu1 %v14244_v44  ;;  %v9889_v37 = vpop.f32.mrf.mxu2  ;;  %v9902_v11 = vpop.f32.mrf.mxu3  ;;  %v17604_v43 = vld [vmem:[%s19479_s30 + $0x44] sm:$0xf]  ;;  %v11901_v44 = vld [vmem:[%s19479_s30 + $0xf4] sm:$0xf0] }
 0x2ae   : > { %v9890_v39 = vadd.f32 %v9889_v37, %v9877_v59  ;;  %v12987_v59 = vld [vmem:[%s19479_s30 + $0x8b8] sm:$0xf] }
 0x2af   : > { %10141 = vmatpush.bf16.msra.mxu2 %v15864_v46  ;;  %10154 = vmatpush.bf16.msra.mxu3 %v17304_v47  ;;  %v15144_v46 = vor.u32 %v18414_v36, %v15141_v38  ;;  %v16584_v47 = vor.u32 %v18774_v15, %v16581_v41  ;;  %v12808_v36 = vor.u32 %v17852_v24, %v12807_v57  ;;  %v17807_v38 = vld [vmem:[%s19479_s30 + $0x698] sm:$0xf0]  ;;  %v13527_v24 = vld [vmem:[%s19479_s30 + $0xcf0] sm:$0xf] }
 0x2b0   : > { %v20840_v45 = vadd.f32 %v9902_v11, %v9890_v39  ;;  %v12627_v11 = vld [vmem:[%s19479_s30 + $0x5e8] sm:$0xf] }
 0x2b1   : > { %10117 = vmatpush.bf16.msra.mxu0 %v12624_v55  ;;  %10130 = vmatpush.bf16.msra.mxu1 %v14064_v60  ;;  %v11904_v55 = vor.u32 %v17604_v43, %v11901_v44  ;;  %v13344_v60 = vor.u32 %v17964_v19, %v13341_v48  ;;  %v14067_v39 = vld [vmem:[%s19479_s30 + $0x1128] sm:$0xf]  ;;  %v18572_v19 = vld [vmem:[%s19479_s30 + $0x1e80] sm:$0xf0]  ;;  %v12628_v2 = vor.u32 %v17807_v38, %v12627_v11  ;;  %v17627_v11 = vld [vmem:[%s19479_s30 + $0xf8] sm:$0xf0] }
 0x2b2   : > { %v13347_v38 = vld [vmem:[%s19479_s30 + $0xb88] sm:$0xf] }
 0x2b3   : > { %10142 = vmatpush.bf16.msra.mxu2 %v15684_v62  ;;  %10155 = vmatpush.bf16.msra.mxu3 %v17124_v63  ;;  %v17897_v62 = vld [vmem:[%s19479_s30 + $0x968] sm:$0xf0]  ;;  %v14427_v63 = vld [vmem:[%s19479_s30 + $0x13f8] sm:$0xf] }
 0x2b4   : > { %v12988_v17 = vor.u32 %v17897_v62, %v12987_v59  ;;  %v14428_v18 = vor.u32 %v18257_v4, %v14427_v63  ;;  %v18887_v59 = vld [vmem:[%s19479_s30 + $0x2858] sm:$0xf0]  ;;  %v12448_v62 = vor.u32 %v17762_v42, %v12447_v34  ;;  %v13707_v4 = vld [vmem:[%s19479_s30 + $0xe58] sm:$0xf] }
 0x2b5   : > { %10118 = vmatpush.bf16.msra.mxu0 %v12444_v52  ;;  %10131 = vmatpush.bf16.msra.mxu1 %v13884_v6  ;;  %v9891_v3 = vpop.f32.mrf.mxu2  ;;  %v9904_v56 = vpop.f32.mrf.mxu3  ;;  %v14781_v52 = vld [vmem:[%s19479_s30 + $0x1774] sm:$0xf0]  ;;  %v18684_v6 = vld [vmem:[%s19479_s30 + $0x2204] sm:$0xf] }
 0x2b6   : > { %v14784_v20 = vor.u32 %v18324_v5, %v14781_v52  ;;  %v16224_v21 = vor.u32 %v18684_v6, %v16221_v7  ;;  %v18077_v5 = vld [vmem:[%s19479_s30 + $0xf08] sm:$0xf0]  ;;  %v15327_v52 = vld [vmem:[%s19479_s30 + $0x1b00] sm:$0xf] }
 0x2b7   : > { %10143 = vmatpush.bf16.msra.mxu2 %v15504_v61  ;;  %10156 = vmatpush.bf16.msra.mxu3 %v16944_v10  ;;  %v18662_v61 = vld [vmem:[%s19479_s30 + $0x2150] sm:$0xf0]  ;;  %v17487_v10 = vld [vmem:[%s19479_s30 + $0x2be0] sm:$0xf] }
 0x2b8   : > { %v16048_v25 = vor.u32 %v18662_v61, %v16047_v8  ;;  %v18482_v8 = vld [vmem:[%s19479_s30 + $0x1bb0] sm:$0xf0]  ;;  %v16767_v61 = vld [vmem:[%s19479_s30 + $0x2640] sm:$0xf] }
 0x2b9   : > { %10119 = vmatpush.bf16.msra.mxu0 %v12264_v26  ;;  %10132 = vmatpush.bf16.msra.mxu1 %v13704_v27  ;;  %v17488_v26 = vor.u32 %v19022_v14, %v17487_v10  ;;  %v14247_v27 = vld [vmem:[%s19479_s30 + $0x1290] sm:$0xf]  ;;  %v18842_v10 = vld [vmem:[%s19479_s30 + $0x26f0] sm:$0xf0] }
 0x2ba   : > { %v14248_v37 = vor.u32 %v18212_v9, %v14247_v27  ;;  %v16768_v57 = vor.u32 %v18842_v10, %v16767_v61  ;;  %v17830_v10 = vld [vmem:[%s19479_s30 + $0x754] sm:$0xf] }
 0x2bb   : > { %10144 = vmatpush.bf16.msra.mxu2 %v15324_v1  ;;  %10157 = vmatpush.bf16.msra.mxu3 %v16764_v33  ;;  %v18617_v1 = vld [vmem:[%s19479_s30 + $0x1fe8] sm:$0xf0]  ;;  %v17307_v33 = vld [vmem:[%s19479_s30 + $0x2a78] sm:$0xf] }
 0x2bc   : > { %v15868_v15 = vor.u32 %v18617_v1, %v15867_v30  ;;  %v17308_v41 = vor.u32 %v18977_v35, %v17307_v33  ;;  %v18437_v30 = vld [vmem:[%s19479_s30 + $0x1a48] sm:$0xf0]  ;;  %v16587_v1 = vld [vmem:[%s19479_s30 + $0x24d8] sm:$0xf] }
 0x2bd   : > { %10120 = vmatpush.bf16.msra.mxu0 %v12084_v40  ;;  %10133 = vmatpush.bf16.msra.mxu1 %v13524_v12  ;;  %v18167_v40 = vld [vmem:[%s19479_s30 + $0x11d8] sm:$0xf0]  ;;  %v15687_v12 = vld [vmem:[%s19479_s30 + $0x1dd0] sm:$0xf]  ;;  %v18797_v33 = vld [vmem:[%s19479_s30 + $0x2588] sm:$0xf0] }
 0x2be   : > { %v14068_v31 = vor.u32 %v18167_v40, %v14067_v39  ;;  %v15688_v50 = vor.u32 %v18572_v19, %v15687_v12  ;;  %v16588_v40 = vor.u32 %v18797_v33, %v16587_v1  ;;  %v17920_v12 = vld [vmem:[%s19479_s30 + $0xa24] sm:$0xf]  ;;  %v14609_v19 = vld [vmem:[%s19479_s30 + $0x1614] sm:$0xf0]  ;;  %v12629_v1 = vld [vmem:[%s19479_s30 + $0x69c] sm:$0xf0] }
 0x2bf   : > { %10145 = vmatpush.bf16.msra.mxu2 %v15144_v46  ;;  %10158 = vmatpush.bf16.msra.mxu3 %v16584_v47  ;;  %v17127_v46 = vld [vmem:[%s19479_s30 + $0x2910] sm:$0xf]  ;;  %v18932_v47 = vld [vmem:[%s19479_s30 + $0x29c0] sm:$0xf0] }
 0x2c0   : > { %v17128_v51 = vor.u32 %v18932_v47, %v17127_v46  ;;  %v14967_v46 = vld [vmem:[%s19479_s30 + $0x1830] sm:$0xf]  ;;  %v18392_v47 = vld [vmem:[%s19479_s30 + $0x18e0] sm:$0xf0] }
 0x2c1   : > { %10121 = vmatpush.bf16.msra.mxu0 %v11904_v55  ;;  %10134 = vmatpush.bf16.msra.mxu1 %v13344_v60  ;;  %v9915_v43 = vpop.f32.mrf.mxu0  ;;  %v9928_v44 = vpop.f32.mrf.mxu1  ;;  %v18122_v55 = vld [vmem:[%s19479_s30 + $0x1070] sm:$0xf0]  ;;  %v15507_v60 = vld [vmem:[%s19479_s30 + $0x1c68] sm:$0xf] }
 0x2c2   : > { %v9916_v48 = vadd.f32 %v9915_v43, %v1921_v22  ;;  %v13888_v63 = vor.u32 %v18122_v55, %v13887_v16  ;;  %v11907_v22 = vld [vmem:[%s19479_s30 + $0x48] sm:$0xf]  ;;  %v13169_v43 = vld [vmem:[%s19479_s30 + $0xad4] sm:$0xf0]  ;;  %v17875_v16 = vld [vmem:[%s19479_s30 + $0x8bc] sm:$0xf] }
 0x2c3   : > { %10146 = vmatpush.bf16.msra.mxu2 %v14964_v32  ;;  %10159 = vmatpush.bf16.msra.mxu3 %v16404_v0  ;;  %v12267_v32 = vld [vmem:[%s19479_s30 + $0x318] sm:$0xf]  ;;  %v17717_v0 = vld [vmem:[%s19479_s30 + $0x3c8] sm:$0xf0]  ;;  %v11908_v34 = vor.u32 %v17627_v11, %v11907_v22  ;;  %v12989_v55 = vld [vmem:[%s19479_s30 + $0x96c] sm:$0xf0] }
 0x2c4   : > { %10122 = vmatmul.bf16.vlgmr.msra.gmra.mxu0 %v19627_v28  ;;  %10135 = vmatmul.bf16.vlgmr.msra.gmra.mxu1 %v19629_v29  ;;  %v9929_v49 = vadd.f32 %v9928_v44, %v9916_v48  ;;  %v12268_v14 = vor.u32 %v17717_v0, %v12267_v32  ;;  %v18280_v44 = vld [vmem:[%s19479_s30 + $0x1564] sm:$0xf]  ;;  %v14787_v32 = vld [vmem:[%s19479_s30 + $0x16c8] sm:$0xf]  ;;  %v18145_v22 = vld [vmem:[%s19479_s30 + $0x112c] sm:$0xf] }
 0x2c5   : > { %10166 = vmatpush.bf16.msrb.mxu0 %v13168_v58  ;;  %10179 = vmatpush.bf16.msrb.mxu1 %v14608_v13  ;;  %v18527_v58 = vld [vmem:[%s19479_s30 + $0x1d18] sm:$0xf0]  ;;  %v16947_v13 = vld [vmem:[%s19479_s30 + $0x27a8] sm:$0xf] }
 0x2c6   : > { %v15508_v3 = vor.u32 %v18527_v58, %v15507_v60  ;;  %v16948_v56 = vor.u32 %v18887_v59, %v16947_v13  ;;  %v18235_v60 = vld [vmem:[%s19479_s30 + $0x13fc] sm:$0xf]  ;;  %v14968_v58 = vor.u32 %v18392_v47, %v14967_v46  ;;  %v16227_v0 = vld [vmem:[%s19479_s30 + $0x2208] sm:$0xf]  ;;  %v18100_v47 = vld [vmem:[%s19479_s30 + $0xfc4] sm:$0xf] }
 0x2c7   : > { %10147 = vmatpush.bf16.msra.mxu2 %v14784_v20  ;;  %10160 = vmatpush.bf16.msra.mxu3 %v16224_v21  ;;  %v17672_v20 = vld [vmem:[%s19479_s30 + $0x260] sm:$0xf0]  ;;  %v15328_v21 = vor.u32 %v18482_v8, %v15327_v52  ;;  %v17489_v52 = vld [vmem:[%s19479_s30 + $0x2c94] sm:$0xf0] }
 0x2c9   : > { %10167 = vmatpush.bf16.msrb.mxu0 %v12988_v17  ;;  %10180 = vmatpush.bf16.msrb.mxu1 %v14428_v18  ;;  %v9917_v6 = vpop.f32.mrf.mxu0  ;;  %v9930_v7 = vpop.f32.mrf.mxu1  ;;  %v13708_v17 = vor.u32 %v18077_v5, %v13707_v4  ;;  %v12087_v18 = vld [vmem:[%s19479_s30 + $0x1b0] sm:$0xf]  ;;  %v16049_v4 = vld [vmem:[%s19479_s30 + $0x2154] sm:$0xf0]  ;;  %v19000_v5 = vld [vmem:[%s19479_s30 + $0x2be4] sm:$0xf] }
 0x2ca   : > { %10148 = vmatmul.bf16.vlgmr.msra.gmra.mxu2 %v19645_v53  ;;  %10161 = vmatmul.bf16.vlgmr.msra.gmra.mxu3 %v19647_v54  ;;  %v12992_v6 = vor.u32 %v17875_v16, %v12989_v55  ;;  %v17695_v16 = vld [vmem:[%s19479_s30 + $0x31c] sm:$0xf]  ;;  %v12269_v55 = vld [vmem:[%s19479_s30 + $0x3cc] sm:$0xf0] }
 0x2cb   : > { %10192 = vmatpush.bf16.msrb.mxu2 %v16048_v25  ;;  %10205 = vmatpush.bf16.msrb.mxu3 %v17488_v26  ;;  %v18032_v25 = vld [vmem:[%s19479_s30 + $0xda0] sm:$0xf0]  ;;  %v15147_v26 = vld [vmem:[%s19479_s30 + $0x1998] sm:$0xf] }
 0x2cc   : > { %v15148_v39 = vor.u32 %v18437_v30, %v15147_v26  ;;  %v17309_v26 = vld [vmem:[%s19479_s30 + $0x2b2c] sm:$0xf0]  ;;  %v17785_v30 = vld [vmem:[%s19479_s30 + $0x5ec] sm:$0xf] }
 0x2cd   : > { %10168 = vmatpush.bf16.msrb.mxu0 %v12808_v36  ;;  %10181 = vmatpush.bf16.msrb.mxu1 %v14248_v37  ;;  %v9941_v27 = vpop.f32.mrf.mxu2  ;;  %v9954_v9 = vpop.f32.mrf.mxu3  ;;  %v12088_v36 = vor.u32 %v17672_v20, %v12087_v18  ;;  %v13528_v37 = vor.u32 %v18032_v25, %v13527_v24  ;;  %v17492_v18 = vor.u32 %v19000_v5, %v17489_v52  ;;  %v18190_v20 = vld [vmem:[%s19479_s30 + $0x1294] sm:$0xf]  ;;  %v15869_v24 = vld [vmem:[%s19479_s30 + $0x1fec] sm:$0xf0]  ;;  %v18955_v25 = vld [vmem:[%s19479_s30 + $0x2a7c] sm:$0xf] }
 0x2ce   : > { %v9942_v35 = vadd.f32 %v9941_v27, %v9929_v49  ;;  %v17650_v5 = vld [vmem:[%s19479_s30 + $0x1b4] sm:$0xf]  ;;  %v12089_v52 = vld [vmem:[%s19479_s30 + $0x264] sm:$0xf0] }
 0x2cf   : > { %10193 = vmatpush.bf16.msrb.mxu2 %v15868_v15  ;;  %10206 = vmatpush.bf16.msrb.mxu3 %v17308_v41  ;;  %v17987_v15 = vld [vmem:[%s19479_s30 + $0xc38] sm:$0xf0] }
 0x2d0   : > { %v9955_v41 = vadd.f32 %v9954_v9, %v9942_v35  ;;  %v13348_v42 = vor.u32 %v17987_v15, %v13347_v38  ;;  %v17312_v35 = vor.u32 %v18955_v25, %v17309_v26  ;;  %v15689_v15 = vld [vmem:[%s19479_s30 + $0x1e84] sm:$0xf0]  ;;  %v17605_v25 = vld [vmem:[%s19479_s30 + $0x4c] sm:$0xf]  ;;  %v11909_v26 = vld [vmem:[%s19479_s30 + $0xfc] sm:$0xf0] }
 0x2d1   : > { %10169 = vmatpush.bf16.msrb.mxu0 %v12628_v2  ;;  %10182 = vmatpush.bf16.msrb.mxu1 %v14068_v31  ;;  %v16407_v2 = vld [vmem:[%s19479_s30 + $0x2370] sm:$0xf]  ;;  %v18752_v31 = vld [vmem:[%s19479_s30 + $0x2420] sm:$0xf0] }
 0x2d2   : > { %v11623_v48 = vrot.slane %v9955_v41, 6  ;;  %v16408_v13 = vor.u32 %v18752_v31, %v16407_v2  ;;  %v18910_v41 = vld [vmem:[%s19479_s30 + $0x2914] sm:$0xf]  ;;  %v18505_v2 = vld [vmem:[%s19479_s30 + $0x1c6c] sm:$0xf] }
 0x2d3   : > { %10194 = vmatpush.bf16.msrb.mxu2 %v15688_v50  ;;  %10207 = vmatpush.bf16.msrb.mxu3 %v17128_v51  ;;  %v13172_v50 = vor.u32 %v17920_v12, %v13169_v43  ;;  %v14612_v51 = vor.u32 %v18280_v44, %v14609_v19  ;;  %v17740_v43 = vld [vmem:[%s19479_s30 + $0x484] sm:$0xf]  ;;  %v12449_v44 = vld [vmem:[%s19479_s30 + $0x534] sm:$0xf0]  ;;  %v15509_v31 = vld [vmem:[%s19479_s30 + $0x1d1c] sm:$0xf0] }
 0x2d4   : > { %v20922_v49 = vsel %vm11647_vm1, %v20840_v45, %v11623_v48  ;;  %v18347_v45 = vld [vmem:[%s19479_s30 + $0x1778] sm:$0xf0]  ;;  %v13889_v48 = vld [vmem:[%s19479_s30 + $0x1074] sm:$0xf0] }
 0x2d5   : > { %10170 = vmatpush.bf16.msrb.mxu0 %v12448_v62  ;;  %10183 = vmatpush.bf16.msrb.mxu1 %v13888_v63  ;;  %v9943_v59 = vpop.f32.mrf.mxu2  ;;  %v9956_v62 = vpop.f32.mrf.mxu3  ;;  %v14429_v63 = vld [vmem:[%s19479_s30 + $0x14ac] sm:$0xf0]  ;;  %v14788_v8 = vor.u32 %v18347_v45, %v14787_v32  ;;  %v15329_v45 = vld [vmem:[%s19479_s30 + $0x1bb4] sm:$0xf0] }
 0x2d6   : > { %v14432_v7 = vor.u32 %v18235_v60, %v14429_v63  ;;  %v15512_v60 = vor.u32 %v18505_v2, %v15509_v31  ;;  %v13709_v59 = vld [vmem:[%s19479_s30 + $0xf0c] sm:$0xf0]  ;;  %v18460_v62 = vld [vmem:[%s19479_s30 + $0x1b04] sm:$0xf] }
 0x2d7   : > { %10195 = vmatpush.bf16.msrb.mxu2 %v15508_v3  ;;  %10208 = vmatpush.bf16.msrb.mxu3 %v16948_v56  ;;  %v18707_v3 = vld [vmem:[%s19479_s30 + $0x22b8] sm:$0xf0]  ;;  %v18640_v56 = vld [vmem:[%s19479_s30 + $0x20a4] sm:$0xf] }
 0x2d8   : > { %v16228_v61 = vor.u32 %v18707_v3, %v16227_v0  ;;  %v18820_v0 = vld [vmem:[%s19479_s30 + $0x2644] sm:$0xf]  ;;  %v16769_v3 = vld [vmem:[%s19479_s30 + $0x26f4] sm:$0xf0] }
 0x2d9   : > { %10171 = vmatpush.bf16.msrb.mxu0 %v12268_v14  ;;  %10184 = vmatpush.bf16.msrb.mxu1 %v13708_v17  ;;  %v12809_v14 = vld [vmem:[%s19479_s30 + $0x804] sm:$0xf0]  ;;  %v16052_v17 = vor.u32 %v18640_v56, %v16049_v4  ;;  %v12272_v56 = vor.u32 %v17695_v16, %v12269_v55  ;;  %v18685_v16 = vld [vmem:[%s19479_s30 + $0x220c] sm:$0xf]  ;;  %v16229_v55 = vld [vmem:[%s19479_s30 + $0x22bc] sm:$0xf0] }
 0x2da   : > { %v12812_v27 = vor.u32 %v17830_v10, %v12809_v14  ;;  %v18415_v10 = vld [vmem:[%s19479_s30 + $0x199c] sm:$0xf] }
 0x2db   : > { %10196 = vmatpush.bf16.msrb.mxu2 %v15328_v21  ;;  %10209 = vmatpush.bf16.msrb.mxu3 %v16768_v57  ;;  %v14249_v21 = vld [vmem:[%s19479_s30 + $0x1344] sm:$0xf0]  ;;  %v18595_v57 = vld [vmem:[%s19479_s30 + $0x1f3c] sm:$0xf] }
 0x2dc   : > { %v14252_v9 = vor.u32 %v18190_v20, %v14249_v21  ;;  %v15872_v33 = vor.u32 %v18595_v57, %v15869_v24  ;;  %v18775_v20 = vld [vmem:[%s19479_s30 + $0x24dc] sm:$0xf]  ;;  %v16589_v21 = vld [vmem:[%s19479_s30 + $0x258c] sm:$0xf0]  ;;  %v12092_v57 = vor.u32 %v17650_v5, %v12089_v52  ;;  %v14255_v5 = vld [vmem:[%s19479_s30 + $0x1298] sm:$0xf] }
 0x2dd   : > { %10172 = vmatpush.bf16.msrb.mxu0 %v12088_v36  ;;  %10185 = vmatpush.bf16.msrb.mxu1 %v13528_v37  ;;  %v14069_v36 = vld [vmem:[%s19479_s30 + $0x11dc] sm:$0xf0]  ;;  %v18550_v37 = vld [vmem:[%s19479_s30 + $0x1dd4] sm:$0xf]  ;;  %v18213_v52 = vld [vmem:[%s19479_s30 + $0x1348] sm:$0xf0] }
 0x2de   : > { %v14072_v12 = vor.u32 %v18145_v22, %v14069_v36  ;;  %v15692_v19 = vor.u32 %v18550_v37, %v15689_v15  ;;  %v14615_v22 = vld [vmem:[%s19479_s30 + $0x1568] sm:$0xf]  ;;  %v18303_v36 = vld [vmem:[%s19479_s30 + $0x1618] sm:$0xf0]  ;;  %v18370_v37 = vld [vmem:[%s19479_s30 + $0x1834] sm:$0xf] }
 0x2df   : > { %10197 = vmatpush.bf16.msrb.mxu2 %v15148_v39  ;;  %10210 = vmatpush.bf16.msrb.mxu3 %v16588_v40  ;;  %v17129_v39 = vld [vmem:[%s19479_s30 + $0x29c4] sm:$0xf0]  ;;  %v12632_v40 = vor.u32 %v17785_v30, %v12629_v1  ;;  %v16592_v30 = vor.u32 %v18775_v20, %v16589_v21  ;;  %v13349_v1 = vld [vmem:[%s19479_s30 + $0xc3c] sm:$0xf0]  ;;  %v14256_v20 = vor.u32 %v18213_v52, %v14255_v5  ;;  %v12635_v21 = vld [vmem:[%s19479_s30 + $0x5f0] sm:$0xf] }
 0x2e0   : > { %v17132_v46 = vor.u32 %v18910_v41, %v17129_v39  ;;  %v14969_v15 = vld [vmem:[%s19479_s30 + $0x18e4] sm:$0xf0]  ;;  %v18730_v41 = vld [vmem:[%s19479_s30 + $0x2374] sm:$0xf] }
 0x2e1   : > { %10173 = vmatpush.bf16.msrb.mxu0 %v11908_v34  ;;  %10186 = vmatpush.bf16.msrb.mxu1 %v13348_v42  ;;  %v20951_v11 = vpop.f32.mrf.mxu0  ;;  %v20953_v38 = vpop.f32.mrf.mxu1  ;;  %v18865_v34 = vld [vmem:[%s19479_s30 + $0x27ac] sm:$0xf]  ;;  %v16949_v42 = vld [vmem:[%s19479_s30 + $0x285c] sm:$0xf0]  ;;  %v16409_v39 = vld [vmem:[%s19479_s30 + $0x2424] sm:$0xf0] }
 0x2e2   : > { %v16412_v2 = vor.u32 %v18730_v41, %v16409_v39  ;;  %v12455_v39 = vld [vmem:[%s19479_s30 + $0x488] sm:$0xf] }
 0x2e3   : > { %10198 = vmatpush.bf16.msrb.mxu2 %v14968_v58  ;;  %10211 = vmatpush.bf16.msrb.mxu3 %v16408_v13  ;;  %v16952_v58 = vor.u32 %v18865_v34, %v16949_v42  ;;  %v18055_v13 = vld [vmem:[%s19479_s30 + $0xe5c] sm:$0xf]  ;;  %v18258_v42 = vld [vmem:[%s19479_s30 + $0x14b0] sm:$0xf0] }
 0x2e4   : > { %10174 = vmatmul.bf16.vlgmr.msrb.gmra.mxu0 %v19627_v28  ;;  %10187 = vmatmul.bf16.vlgmr.msrb.gmra.mxu1 %v19629_v29  ;;  %v13712_v4 = vor.u32 %v18055_v13, %v13709_v59  ;;  %v17495_v13 = vld [vmem:[%s19479_s30 + $0x2be8] sm:$0xf]  ;;  %v19023_v59 = vld [vmem:[%s19479_s30 + $0x2c98] sm:$0xf0] }
 0x2e5   : > { %10218 = vmatpush.bf16.msra.mxu0 %v13172_v50  ;;  %10231 = vmatpush.bf16.msra.mxu1 %v14612_v51  ;;  %v12452_v50 = vor.u32 %v17740_v43, %v12449_v44  ;;  %v13892_v51 = vor.u32 %v18100_v47, %v13889_v48  ;;  %v14616_v44 = vor.u32 %v18303_v36, %v14615_v22  ;;  %v14435_v47 = vld [vmem:[%s19479_s30 + $0x1400] sm:$0xf]  ;;  %v18933_v22 = vld [vmem:[%s19479_s30 + $0x29c8] sm:$0xf0] }
 0x2e6   : > { %v14972_v48 = vor.u32 %v18370_v37, %v14969_v15  ;;  %v1923_v37 = vperm.slane %v20800_v23, 7 }
 0x2e7   : > { %10199 = vmatpush.bf16.msrb.mxu2 %v14788_v8  ;;  %10212 = vmatpush.bf16.msrb.mxu3 %v16228_v61  ;;  %v18010_v8 = vld [vmem:[%s19479_s30 + $0xcf4] sm:$0xf]  ;;  %v13529_v61 = vld [vmem:[%s19479_s30 + $0xda4] sm:$0xf0] }
 0x2e8   : > { %v13532_v24 = vor.u32 %v18010_v8, %v13529_v61  ;;  %v17315_v8 = vld [vmem:[%s19479_s30 + $0x2a80] sm:$0xf]  ;;  %v18978_v61 = vld [vmem:[%s19479_s30 + $0x2b30] sm:$0xf0] }
 0x2e9   : > { %10219 = vmatpush.bf16.msra.mxu0 %v12992_v6  ;;  %10232 = vmatpush.bf16.msra.mxu1 %v14432_v7  ;;  %v9969_v63 = vpop.f32.mrf.mxu0  ;;  %v9982_v32 = vpop.f32.mrf.mxu1  ;;  %v15332_v6 = vor.u32 %v18460_v62, %v15329_v45  ;;  %v16772_v7 = vor.u32 %v18820_v0, %v16769_v3  ;;  %v16232_v45 = vor.u32 %v18685_v16, %v16229_v55  ;;  %v12815_v0 = vld [vmem:[%s19479_s30 + $0x758] sm:$0xf]  ;;  %v17853_v3 = vld [vmem:[%s19479_s30 + $0x808] sm:$0xf0]  ;;  %v13715_v55 = vld [vmem:[%s19479_s30 + $0xe60] sm:$0xf] }
 0x2ea   : > { %10200 = vmatmul.bf16.vlgmr.msrb.gmra.mxu2 %v19645_v53  ;;  %10213 = vmatmul.bf16.vlgmr.msrb.gmra.mxu3 %v19647_v54  ;;  %v14436_v63 = vor.u32 %v18258_v42, %v14435_v47  ;;  %v16955_v47 = vld [vmem:[%s19479_s30 + $0x27b0] sm:$0xf]  ;;  %v17718_v42 = vld [vmem:[%s19479_s30 + $0x3d0] sm:$0xf0] }
 0x2eb   : > { %10244 = vmatpush.bf16.msra.mxu2 %v16052_v17  ;;  %10257 = vmatpush.bf16.msra.mxu3 %v17492_v18  ;;  %v15149_v18 = vld [vmem:[%s19479_s30 + $0x1a4c] sm:$0xf0] }
 0x2ed   : > { %10220 = vmatpush.bf16.msra.mxu0 %v12812_v27  ;;  %10233 = vmatpush.bf16.msra.mxu1 %v14252_v9  ;;  %v20981_v14 = vpop.f32.mrf.mxu2  ;;  %v20983_v17 = vpop.f32.mrf.mxu3  ;;  %v17965_v27 = vld [vmem:[%s19479_s30 + $0xb8c] sm:$0xf]  ;;  %v15152_v9 = vor.u32 %v18415_v10, %v15149_v18  ;;  %v1922_v10 = vperm.slane %v20800_v23, 6  ;;  %v12816_v18 = vor.u32 %v17853_v3, %v12815_v0  ;;  %v12095_v3 = vld [vmem:[%s19479_s30 + $0x1b8] sm:$0xf] }
 0x2ef   : > { %10245 = vmatpush.bf16.msra.mxu2 %v15872_v33  ;;  %10258 = vmatpush.bf16.msra.mxu3 %v17312_v35  ;;  %v13175_v33 = vld [vmem:[%s19479_s30 + $0xa28] sm:$0xf]  ;;  %v17943_v35 = vld [vmem:[%s19479_s30 + $0xad8] sm:$0xf0]  ;;  %v9968_v36 = vadd.f32 %v20951_v11, %v1922_v10  ;;  %v18528_v11 = vld [vmem:[%s19479_s30 + $0x1d20] sm:$0xf0] }
 0x2f0   : > { %v13176_v43 = vor.u32 %v17943_v35, %v13175_v33  ;;  %v18573_v33 = vld [vmem:[%s19479_s30 + $0x1e88] sm:$0xf0]  ;;  %v17135_v35 = vld [vmem:[%s19479_s30 + $0x2918] sm:$0xf]  ;;  %v18438_v10 = vld [vmem:[%s19479_s30 + $0x1a50] sm:$0xf0] }
 0x2f1   : > { %10221 = vmatpush.bf16.msra.mxu0 %v12632_v40  ;;  %10234 = vmatpush.bf16.msra.mxu1 %v14072_v12  ;;  %v11912_v40 = vor.u32 %v17605_v25, %v11909_v26  ;;  %v13352_v12 = vor.u32 %v17965_v27, %v13349_v1  ;;  %v17316_v25 = vor.u32 %v18978_v61, %v17315_v8  ;;  %v14075_v26 = vld [vmem:[%s19479_s30 + $0x1130] sm:$0xf]  ;;  %v18168_v27 = vld [vmem:[%s19479_s30 + $0x11e0] sm:$0xf0] }
 0x2f2   : > { %v14076_v41 = vor.u32 %v18168_v27, %v14075_v26  ;;  %v9981_v23 = vadd.f32 %v20953_v38, %v9968_v36  ;;  %v17628_v27 = vld [vmem:[%s19479_s30 + $0x100] sm:$0xf0]  ;;  %v18281_v36 = vld [vmem:[%s19479_s30 + $0x156c] sm:$0xf] }
 0x2f3   : > { %10246 = vmatpush.bf16.msra.mxu2 %v15692_v19  ;;  %10259 = vmatpush.bf16.msra.mxu3 %v17132_v46  ;;  %v12995_v19 = vld [vmem:[%s19479_s30 + $0x8c0] sm:$0xf]  ;;  %v17898_v46 = vld [vmem:[%s19479_s30 + $0x970] sm:$0xf0] }
 0x2f4   : > { %v12996_v62 = vor.u32 %v17898_v46, %v12995_v19  ;;  %v18123_v19 = vld [vmem:[%s19479_s30 + $0x1078] sm:$0xf0]  ;;  %v15515_v46 = vld [vmem:[%s19479_s30 + $0x1c70] sm:$0xf] }
 0x2f5   : > { %10222 = vmatpush.bf16.msra.mxu0 %v12452_v50  ;;  %10235 = vmatpush.bf16.msra.mxu1 %v13892_v51  ;;  %v9995_v31 = vpop.f32.mrf.mxu2  ;;  %v10008_v34 = vpop.f32.mrf.mxu3  ;;  %v18325_v50 = vld [vmem:[%s19479_s30 + $0x16cc] sm:$0xf]  ;;  %v14789_v51 = vld [vmem:[%s19479_s30 + $0x177c] sm:$0xf0] }
 0x2f6   : > { %v14792_v32 = vor.u32 %v18325_v50, %v14789_v51  ;;  %v12275_v34 = vld [vmem:[%s19479_s30 + $0x320] sm:$0xf]  ;;  %v15516_v51 = vor.u32 %v18528_v11, %v15515_v46  ;;  %v17876_v46 = vld [vmem:[%s19479_s30 + $0x8c4] sm:$0xf] }
 0x2f7   : > { %10247 = vmatpush.bf16.msra.mxu2 %v15512_v60  ;;  %10260 = vmatpush.bf16.msra.mxu3 %v16952_v58  ;;  %v16055_v60 = vld [vmem:[%s19479_s30 + $0x20a8] sm:$0xf]  ;;  %v18663_v58 = vld [vmem:[%s19479_s30 + $0x2158] sm:$0xf0] }
 0x2f9   : > { %10223 = vmatpush.bf16.msra.mxu0 %v12272_v56  ;;  %10236 = vmatpush.bf16.msra.mxu1 %v13712_v4  ;;  %v16056_v56 = vor.u32 %v18663_v58, %v16055_v60  ;;  %v17496_v4 = vor.u32 %v19023_v59, %v17495_v13  ;;  %v18078_v60 = vld [vmem:[%s19479_s30 + $0xf10] sm:$0xf0]  ;;  %v15335_v58 = vld [vmem:[%s19479_s30 + $0x1b08] sm:$0xf]  ;;  %v18483_v59 = vld [vmem:[%s19479_s30 + $0x1bb8] sm:$0xf0] }
 0x2fa   : > { %v13716_v0 = vor.u32 %v18078_v60, %v13715_v55  ;;  %v15336_v5 = vor.u32 %v18483_v59, %v15335_v58  ;;  %v14795_v55 = vld [vmem:[%s19479_s30 + $0x16d0] sm:$0xf]  ;;  %v18348_v60 = vld [vmem:[%s19479_s30 + $0x1780] sm:$0xf0]  ;;  %v16057_v59 = vld [vmem:[%s19479_s30 + $0x215c] sm:$0xf0] }
 0x2fb   : > { %10248 = vmatpush.bf16.msra.mxu2 %v15332_v6  ;;  %10261 = vmatpush.bf16.msra.mxu3 %v16772_v7  ;;  %v15875_v6 = vld [vmem:[%s19479_s30 + $0x1f40] sm:$0xf]  ;;  %v18618_v7 = vld [vmem:[%s19479_s30 + $0x1ff0] sm:$0xf0]  ;;  %v16235_v58 = vld [vmem:[%s19479_s30 + $0x2210] sm:$0xf] }
 0x2fd   : > { %10224 = vmatpush.bf16.msra.mxu0 %v12092_v57  ;;  %10237 = vmatpush.bf16.msra.mxu1 %v13532_v24  ;;  %v17808_v57 = vld [vmem:[%s19479_s30 + $0x6a0] sm:$0xf0]  ;;  %v15876_v24 = vor.u32 %v18618_v7, %v15875_v6  ;;  %v13535_v6 = vld [vmem:[%s19479_s30 + $0xcf8] sm:$0xf]  ;;  %v18033_v7 = vld [vmem:[%s19479_s30 + $0xda8] sm:$0xf0] }
 0x2fe   : > { %v12636_v15 = vor.u32 %v17808_v57, %v12635_v21  ;;  %v13536_v26 = vor.u32 %v18033_v7, %v13535_v6  ;;  %v18191_v6 = vld [vmem:[%s19479_s30 + $0x129c] sm:$0xf]  ;;  %v14257_v7 = vld [vmem:[%s19479_s30 + $0x134c] sm:$0xf0] }
 0x2ff   : > { %10249 = vmatpush.bf16.msra.mxu2 %v15152_v9  ;;  %10262 = vmatpush.bf16.msra.mxu3 %v16592_v30  ;;  %v15695_v9 = vld [vmem:[%s19479_s30 + $0x1dd8] sm:$0xf] }
 0x301   : > { %10225 = vmatpush.bf16.msra.mxu0 %v11912_v40  ;;  %10238 = vmatpush.bf16.msra.mxu1 %v13352_v12  ;;  %v10019_v30 = vpop.f32.mrf.mxu0  ;;  %v10032_v1 = vpop.f32.mrf.mxu1  ;;  %v17763_v40 = vld [vmem:[%s19479_s30 + $0x538] sm:$0xf0]  ;;  %v15696_v12 = vor.u32 %v18573_v33, %v15695_v9  ;;  %v13355_v9 = vld [vmem:[%s19479_s30 + $0xb90] sm:$0xf] }
 0x302   : > { %v10020_v50 = vadd.f32 %v10019_v30, %v1923_v37  ;;  %v17988_v30 = vld [vmem:[%s19479_s30 + $0xc40] sm:$0xf0]  ;;  %v14617_v37 = vld [vmem:[%s19479_s30 + $0x161c] sm:$0xf0] }
 0x303   : > { %10250 = vmatpush.bf16.msra.mxu2 %v14972_v48  ;;  %10263 = vmatpush.bf16.msra.mxu3 %v16412_v2  ;;  %v18888_v48 = vld [vmem:[%s19479_s30 + $0x2860] sm:$0xf0]  ;;  %v12456_v2 = vor.u32 %v17763_v40, %v12455_v39 }
 0x304   : > { %10226 = vmatmul.bf16.vlgmr.msra.gmra.mxu0 %v19627_v28  ;;  %10239 = vmatmul.bf16.vlgmr.msra.gmra.mxu1 %v19629_v29  ;;  %v16956_v16 = vor.u32 %v18888_v48, %v16955_v47  ;;  %v14620_v48 = vor.u32 %v18281_v36, %v14617_v37 }
 0x305   : > { %10270 = vmatpush.bf16.msrb.mxu0 %v13176_v43  ;;  %10283 = vmatpush.bf16.msrb.mxu1 %v14616_v44  ;;  %v17136_v43 = vor.u32 %v18933_v22, %v17135_v35  ;;  %v13895_v44 = vld [vmem:[%s19479_s30 + $0xfc8] sm:$0xf]  ;;  %v17921_v35 = vld [vmem:[%s19479_s30 + $0xa2c] sm:$0xf]  ;;  %v13177_v22 = vld [vmem:[%s19479_s30 + $0xadc] sm:$0xf0] }
 0x306   : > { %v13896_v31 = vor.u32 %v18123_v19, %v13895_v44  ;;  %v13356_v19 = vor.u32 %v17988_v30, %v13355_v9  ;;  %v13180_v47 = vor.u32 %v17921_v35, %v13177_v22  ;;  %v14077_v9 = vld [vmem:[%s19479_s30 + $0x11e4] sm:$0xf0]  ;;  %v18551_v30 = vld [vmem:[%s19479_s30 + $0x1ddc] sm:$0xf]  ;;  %v17137_v22 = vld [vmem:[%s19479_s30 + $0x29cc] sm:$0xf0] }
 0x307   : > { %10251 = vmatpush.bf16.msra.mxu2 %v14792_v32  ;;  %10264 = vmatpush.bf16.msra.mxu3 %v16232_v45  ;;  %v9994_v32 = vadd.f32 %v20981_v14, %v9981_v23  ;;  %v12276_v45 = vor.u32 %v17718_v42, %v12275_v34  ;;  %v15155_v14 = vld [vmem:[%s19479_s30 + $0x19a0] sm:$0xf]  ;;  %v12997_v23 = vld [vmem:[%s19479_s30 + $0x974] sm:$0xf0]  ;;  %v18911_v35 = vld [vmem:[%s19479_s30 + $0x291c] sm:$0xf] }
 0x309   : > { %10271 = vmatpush.bf16.msrb.mxu0 %v12996_v62  ;;  %10284 = vmatpush.bf16.msrb.mxu1 %v14436_v63  ;;  %v10021_v38 = vpop.f32.mrf.mxu0  ;;  %v10034_v13 = vpop.f32.mrf.mxu1  ;;  %v16775_v62 = vld [vmem:[%s19479_s30 + $0x2648] sm:$0xf]  ;;  %v18843_v63 = vld [vmem:[%s19479_s30 + $0x26f8] sm:$0xf0]  ;;  %v10007_v21 = vadd.f32 %v20983_v17, %v9994_v32  ;;  %v15156_v17 = vor.u32 %v18438_v10, %v15155_v14  ;;  %v18596_v14 = vld [vmem:[%s19479_s30 + $0x1f44] sm:$0xf] }
 0x30a   : > { %10252 = vmatmul.bf16.vlgmr.msra.gmra.mxu2 %v19645_v53  ;;  %10265 = vmatmul.bf16.vlgmr.msra.gmra.mxu3 %v19647_v54  ;;  %v16776_v52 = vor.u32 %v18843_v63, %v16775_v62  ;;  %v18708_v38 = vld [vmem:[%s19479_s30 + $0x22c0] sm:$0xf0]  ;;  %v18641_v13 = vld [vmem:[%s19479_s30 + $0x20ac] sm:$0xf]  ;;  %v17497_v63 = vld [vmem:[%s19479_s30 + $0x2c9c] sm:$0xf0] }
 0x30b   : > { %10296 = vmatpush.bf16.msrb.mxu2 %v16056_v56  ;;  %10309 = vmatpush.bf16.msrb.mxu3 %v17496_v4  ;;  %v17673_v56 = vld [vmem:[%s19479_s30 + $0x268] sm:$0xf0]  ;;  %v10033_v4 = vadd.f32 %v10032_v1, %v10020_v50  ;;  %v11624_v39 = vrot.slane %v10007_v21, 4  ;;  %v17317_v10 = vld [vmem:[%s19479_s30 + $0x2b34] sm:$0xf0]  ;;  %v14260_v21 = vor.u32 %v18191_v6, %v14257_v7 }
 0x30c   : > { %v19001_v62 = vld [vmem:[%s19479_s30 + $0x2bec] sm:$0xf]  ;;  %v15157_v7 = vld [vmem:[%s19479_s30 + $0x1a54] sm:$0xf0] }
 0x30d   : > { %10272 = vmatpush.bf16.msrb.mxu0 %v12816_v18  ;;  %10285 = vmatpush.bf16.msrb.mxu1 %v14256_v20  ;;  %v10045_v8 = vpop.f32.mrf.mxu2  ;;  %v10058_v61 = vpop.f32.mrf.mxu3  ;;  %v16595_v18 = vld [vmem:[%s19479_s30 + $0x24e0] sm:$0xf]  ;;  %v18798_v20 = vld [vmem:[%s19479_s30 + $0x2590] sm:$0xf0] }
 0x30e   : > { %v10046_v57 = vadd.f32 %v10045_v8, %v10033_v4  ;;  %v16596_v33 = vor.u32 %v18798_v20, %v16595_v18  ;;  %v21093_v4 = vld [vmem:[%s19921_s6 + $0x10] sm:$0xff]  ;;  %v15877_v8 = vld [vmem:[%s19479_s30 + $0x1ff4] sm:$0xf0] }
 0x30f   : > { %10297 = vmatpush.bf16.msrb.mxu2 %v15876_v24  ;;  %10310 = vmatpush.bf16.msrb.mxu3 %v17316_v25  ;;  %v11915_v24 = vld [vmem:[%s19479_s30 + $0x50] sm:$0xf]  ;;  %v12096_v25 = vor.u32 %v17673_v56, %v12095_v3  ;;  %v17831_v3 = vld [vmem:[%s19479_s30 + $0x75c] sm:$0xf]  ;;  %v1924_v18 = vperm.slane %v21093_v4, 0 }
 0x310   : > { %v10059_v1 = vadd.f32 %v10058_v61, %v10046_v57  ;;  %v11916_v44 = vor.u32 %v17628_v27, %v11915_v24  ;;  %v12817_v56 = vld [vmem:[%s19479_s30 + $0x80c] sm:$0xf0]  ;;  %v18956_v61 = vld [vmem:[%s19479_s30 + $0x2a84] sm:$0xf]  ;;  %v17786_v57 = vld [vmem:[%s19479_s30 + $0x5f4] sm:$0xf] }
 0x311   : > { %10273 = vmatpush.bf16.msrb.mxu0 %v12636_v15  ;;  %10286 = vmatpush.bf16.msrb.mxu1 %v14076_v41  ;;  %v14975_v15 = vld [vmem:[%s19479_s30 + $0x1838] sm:$0xf]  ;;  %v18393_v41 = vld [vmem:[%s19479_s30 + $0x18e8] sm:$0xf0]  ;;  %v12820_v20 = vor.u32 %v17831_v3, %v12817_v56  ;;  %v12637_v24 = vld [vmem:[%s19479_s30 + $0x6a4] sm:$0xf0] }
 0x312   : > { %v11625_v40 = vrot.slane %v10059_v1, 2  ;;  %v14976_v42 = vor.u32 %v18393_v41, %v14975_v15  ;;  %v18146_v27 = vld [vmem:[%s19479_s30 + $0x1134] sm:$0xf]  ;;  %v12640_v37 = vor.u32 %v17786_v57, %v12637_v24  ;;  %v17741_v41 = vld [vmem:[%s19479_s30 + $0x48c] sm:$0xf] }
 0x313   : > { %10298 = vmatpush.bf16.msrb.mxu2 %v15696_v12  ;;  %10311 = vmatpush.bf16.msrb.mxu3 %v17136_v43  ;;  %v16415_v12 = vld [vmem:[%s19479_s30 + $0x2378] sm:$0xf]  ;;  %v18753_v43 = vld [vmem:[%s19479_s30 + $0x2428] sm:$0xf0]  ;;  %v14080_v15 = vor.u32 %v18146_v27, %v14077_v9  ;;  %v18011_v3 = vld [vmem:[%s19479_s30 + $0xcfc] sm:$0xf] }
 0x314   : > { %v11660_v11 = vsel %vm11649_vm2, %v11624_v39, %v11625_v40  ;;  %v16416_v50 = vor.u32 %v18753_v43, %v16415_v12  ;;  %v12457_v39 = vld [vmem:[%s19479_s30 + $0x53c] sm:$0xf0]  ;;  %v17140_v43 = vor.u32 %v18911_v35, %v17137_v22  ;;  %v13537_v56 = vld [vmem:[%s19479_s30 + $0xdac] sm:$0xf0]  ;;  %v17966_v57 = vld [vmem:[%s19479_s30 + $0xb94] sm:$0xf] }
 0x315   : > { %10274 = vmatpush.bf16.msrb.mxu0 %v12456_v2  ;;  %10287 = vmatpush.bf16.msrb.mxu1 %v13896_v31  ;;  %v18236_v2 = vld [vmem:[%s19479_s30 + $0x1404] sm:$0xf]  ;;  %v14437_v31 = vld [vmem:[%s19479_s30 + $0x14b4] sm:$0xf0]  ;;  %v11661_v34 = vsel %vm11651_vm3, %v20922_v49, %v11660_v11  ;;  %v13000_v49 = vor.u32 %v17876_v46, %v12997_v23  ;;  %v18506_v46 = vld [vmem:[%s19479_s30 + $0x1c74] sm:$0xf]  ;;  %v12460_v23 = vor.u32 %v17741_v41, %v12457_v39 }
 0x316   : > { %11697 = vst [vmem:[%s20170_s21 + $0x18] sm:$0xff] %v11661_v34  ;;  %v14440_v32 = vor.u32 %v18236_v2, %v14437_v31  ;;  %v15517_v11 = vld [vmem:[%s19479_s30 + $0x1d24] sm:$0xf0]  ;;  %v17696_v31 = vld [vmem:[%s19479_s30 + $0x324] sm:$0xf] }
 0x317   : > { %10299 = vmatpush.bf16.msrb.mxu2 %v15516_v51  ;;  %10312 = vmatpush.bf16.msrb.mxu3 %v16956_v16  ;;  %v10047_v51 = vpop.f32.mrf.mxu2  ;;  %v10060_v16 = vpop.f32.mrf.mxu3  ;;  %v12277_v34 = vld [vmem:[%s19479_s30 + $0x3d4] sm:$0xf0]  ;;  %v13357_v27 = vld [vmem:[%s19479_s30 + $0xc44] sm:$0xf0]  ;;  %v13183_v9 = vld [vmem:[%s19479_s30 + $0xa30] sm:$0xf] }
 0x318   : > { %v18056_v51 = vld [vmem:[%s19479_s30 + $0xe64] sm:$0xf]  ;;  %v13717_v16 = vld [vmem:[%s19479_s30 + $0xf14] sm:$0xf0]  ;;  %v14977_v35 = vld [vmem:[%s19479_s30 + $0x18ec] sm:$0xf0] }
 0x319   : > { %10275 = vmatpush.bf16.msrb.mxu0 %v12276_v45  ;;  %10288 = vmatpush.bf16.msrb.mxu1 %v13716_v0  ;;  %v14796_v45 = vor.u32 %v18348_v60, %v14795_v55  ;;  %v16236_v0 = vor.u32 %v18708_v38, %v16235_v58  ;;  %v18461_v55 = vld [vmem:[%s19479_s30 + $0x1b0c] sm:$0xf]  ;;  %v15337_v38 = vld [vmem:[%s19479_s30 + $0x1bbc] sm:$0xf0]  ;;  %v18731_v22 = vld [vmem:[%s19479_s30 + $0x237c] sm:$0xf] }
 0x31b   : > { %10300 = vmatpush.bf16.msrb.mxu2 %v15336_v5  ;;  %10313 = vmatpush.bf16.msrb.mxu3 %v16776_v52  ;;  %v16060_v5 = vor.u32 %v18641_v13, %v16057_v59  ;;  %v17500_v52 = vor.u32 %v19001_v62, %v17497_v63  ;;  %v18821_v13 = vld [vmem:[%s19479_s30 + $0x264c] sm:$0xf]  ;;  %v16777_v59 = vld [vmem:[%s19479_s30 + $0x26fc] sm:$0xf0]  ;;  %v12280_v62 = vor.u32 %v17696_v31, %v12277_v34  ;;  %v16237_v31 = vld [vmem:[%s19479_s30 + $0x22c4] sm:$0xf0] }
 0x31c   : > { %v13720_v63 = vor.u32 %v18056_v51, %v13717_v16  ;;  %v16063_v34 = vld [vmem:[%s19479_s30 + $0x20b0] sm:$0xf]  ;;  %v19024_v51 = vld [vmem:[%s19479_s30 + $0x2ca0] sm:$0xf0] }
 0x31d   : > { %10276 = vmatpush.bf16.msrb.mxu0 %v12096_v25  ;;  %10289 = vmatpush.bf16.msrb.mxu1 %v13536_v26  ;;  %v15880_v25 = vor.u32 %v18596_v14, %v15877_v8  ;;  %v17320_v26 = vor.u32 %v18956_v61, %v17317_v10  ;;  %v18776_v14 = vld [vmem:[%s19479_s30 + $0x24e4] sm:$0xf]  ;;  %v16597_v8 = vld [vmem:[%s19479_s30 + $0x2594] sm:$0xf0] }
 0x31f   : > { %10301 = vmatpush.bf16.msrb.mxu2 %v15156_v17  ;;  %10314 = vmatpush.bf16.msrb.mxu3 %v16596_v33  ;;  %v15697_v33 = vld [vmem:[%s19479_s30 + $0x1e8c] sm:$0xf0] }
 0x320   : > { %v15700_v12 = vor.u32 %v18551_v30, %v15697_v33  ;;  %v17944_v30 = vld [vmem:[%s19479_s30 + $0xae0] sm:$0xf0]  ;;  %v18371_v33 = vld [vmem:[%s19479_s30 + $0x183c] sm:$0xf] }
 0x321   : > { %10277 = vmatpush.bf16.msrb.mxu0 %v11916_v44  ;;  %10290 = vmatpush.bf16.msrb.mxu1 %v13356_v19  ;;  %v10071_v1 = vpop.f32.mrf.mxu0  ;;  %v10084_v17 = vpop.f32.mrf.mxu1  ;;  %v18101_v44 = vld [vmem:[%s19479_s30 + $0xfcc] sm:$0xf]  ;;  %v13897_v19 = vld [vmem:[%s19479_s30 + $0x107c] sm:$0xf0]  ;;  %v13184_v41 = vor.u32 %v17944_v30, %v13183_v9 }
 0x322   : > { %v10072_v36 = vadd.f32 %v10071_v1, %v1924_v18  ;;  %v13900_v2 = vor.u32 %v18101_v44, %v13897_v19  ;;  %v13540_v18 = vor.u32 %v18011_v3, %v13537_v56  ;;  %v14623_v1 = vld [vmem:[%s19479_s30 + $0x1570] sm:$0xf]  ;;  %v14980_v44 = vor.u32 %v18371_v33, %v14977_v35  ;;  %v18979_v3 = vld [vmem:[%s19479_s30 + $0x2b38] sm:$0xf0] }
 0x323   : > { %10302 = vmatpush.bf16.msrb.mxu2 %v14976_v42  ;;  %10315 = vmatpush.bf16.msrb.mxu3 %v16416_v50  ;;  %v15520_v42 = vor.u32 %v18506_v46, %v15517_v11  ;;  %v1925_v56 = vperm.slane %v21093_v4, 1 }
 0x324   : > { %10278 = vmatmul.bf16.vlgmr.msrb.gmra.mxu0 %v19627_v28  ;;  %10291 = vmatmul.bf16.vlgmr.msrb.gmra.mxu1 %v19629_v29  ;;  %v10085_v40 = vadd.f32 %v10084_v17, %v10072_v36  ;;  %v18304_v17 = vld [vmem:[%s19479_s30 + $0x1620] sm:$0xf0]  ;;  %v16417_v36 = vld [vmem:[%s19479_s30 + $0x242c] sm:$0xf0] }
 0x325   : > { %10322 = vmatpush.bf16.msra.mxu0 %v13180_v47  ;;  %10335 = vmatpush.bf16.msra.mxu1 %v14620_v48  ;;  %v18866_v47 = vld [vmem:[%s19479_s30 + $0x27b4] sm:$0xf]  ;;  %v16957_v48 = vld [vmem:[%s19479_s30 + $0x2864] sm:$0xf0]  ;;  %v14624_v39 = vor.u32 %v18304_v17, %v14623_v1  ;;  %v16420_v19 = vor.u32 %v18731_v22, %v16417_v36  ;;  %v12463_v1 = vld [vmem:[%s19479_s30 + $0x490] sm:$0xf] }
 0x326   : > { %v16960_v50 = vor.u32 %v18866_v47, %v16957_v48  ;;  %v18259_v47 = vld [vmem:[%s19479_s30 + $0x14b8] sm:$0xf0]  ;;  %v18326_v48 = vld [vmem:[%s19479_s30 + $0x16d4] sm:$0xf]  ;;  %v17764_v17 = vld [vmem:[%s19479_s30 + $0x540] sm:$0xf0] }
 0x327   : > { %10303 = vmatpush.bf16.msrb.mxu2 %v14796_v45  ;;  %10316 = vmatpush.bf16.msrb.mxu3 %v16236_v0  ;;  %v15340_v45 = vor.u32 %v18461_v55, %v15337_v38  ;;  %v16780_v0 = vor.u32 %v18821_v13, %v16777_v59  ;;  %v12823_v38 = vld [vmem:[%s19479_s30 + $0x760] sm:$0xf]  ;;  %v17854_v13 = vld [vmem:[%s19479_s30 + $0x810] sm:$0xf0]  ;;  %v13903_v36 = vld [vmem:[%s19479_s30 + $0xfd0] sm:$0xf] }
 0x329   : > { %10323 = vmatpush.bf16.msra.mxu0 %v13000_v49  ;;  %10336 = vmatpush.bf16.msra.mxu1 %v14440_v32  ;;  %v10073_v60 = vpop.f32.mrf.mxu0  ;;  %v10086_v58 = vpop.f32.mrf.mxu1  ;;  %v17651_v49 = vld [vmem:[%s19479_s30 + $0x1bc] sm:$0xf]  ;;  %v12097_v32 = vld [vmem:[%s19479_s30 + $0x26c] sm:$0xf0] }
 0x32a   : > { %10304 = vmatmul.bf16.vlgmr.msrb.gmra.mxu2 %v19645_v53  ;;  %10317 = vmatmul.bf16.vlgmr.msrb.gmra.mxu3 %v19647_v54  ;;  %v12100_v10 = vor.u32 %v17651_v49, %v12097_v32  ;;  %v18214_v49 = vld [vmem:[%s19479_s30 + $0x1350] sm:$0xf0]  ;;  %v15883_v32 = vld [vmem:[%s19479_s30 + $0x1f48] sm:$0xf] }
 0x32b   : > { %10348 = vmatpush.bf16.msra.mxu2 %v16060_v5  ;;  %10361 = vmatpush.bf16.msra.mxu3 %v17500_v52  ;;  %v18416_v5 = vld [vmem:[%s19479_s30 + $0x19a4] sm:$0xf] }
 0x32d   : > { %10324 = vmatpush.bf16.msra.mxu0 %v12820_v20  ;;  %10337 = vmatpush.bf16.msra.mxu1 %v14260_v21  ;;  %v10097_v52 = vpop.f32.mrf.mxu2  ;;  %v10110_v6 = vpop.f32.mrf.mxu3  ;;  %v17606_v20 = vld [vmem:[%s19479_s30 + $0x54] sm:$0xf]  ;;  %v11917_v21 = vld [vmem:[%s19479_s30 + $0x104] sm:$0xf0] }
 0x32e   : > { %v10098_v61 = vadd.f32 %v10097_v52, %v10085_v40  ;;  %v13003_v40 = vld [vmem:[%s19479_s30 + $0x8c8] sm:$0xf] }
 0x32f   : > { %10349 = vmatpush.bf16.msra.mxu2 %v15880_v25  ;;  %10362 = vmatpush.bf16.msra.mxu3 %v17320_v26  ;;  %v15160_v25 = vor.u32 %v18416_v5, %v15157_v7  ;;  %v16600_v26 = vor.u32 %v18776_v14, %v16597_v8  ;;  %v12824_v5 = vor.u32 %v17854_v13, %v12823_v38  ;;  %v17809_v7 = vld [vmem:[%s19479_s30 + $0x6a8] sm:$0xf0]  ;;  %v13543_v13 = vld [vmem:[%s19479_s30 + $0xd00] sm:$0xf] }
 0x330   : > { %v21141_v24 = vadd.f32 %v10110_v6, %v10098_v61  ;;  %v12643_v6 = vld [vmem:[%s19479_s30 + $0x5f8] sm:$0xf] }
 0x331   : > { %10325 = vmatpush.bf16.msra.mxu0 %v12640_v37  ;;  %10338 = vmatpush.bf16.msra.mxu1 %v14080_v15  ;;  %v11920_v37 = vor.u32 %v17606_v20, %v11917_v21  ;;  %v13360_v15 = vor.u32 %v17966_v57, %v13357_v27  ;;  %v14083_v61 = vld [vmem:[%s19479_s30 + $0x1138] sm:$0xf]  ;;  %v18574_v57 = vld [vmem:[%s19479_s30 + $0x1e90] sm:$0xf0]  ;;  %v12644_v9 = vor.u32 %v17809_v7, %v12643_v6  ;;  %v17629_v6 = vld [vmem:[%s19479_s30 + $0x108] sm:$0xf0] }
 0x332   : > { %v13363_v7 = vld [vmem:[%s19479_s30 + $0xb98] sm:$0xf] }
 0x333   : > { %10350 = vmatpush.bf16.msra.mxu2 %v15700_v12  ;;  %10363 = vmatpush.bf16.msra.mxu3 %v17140_v43  ;;  %v17899_v12 = vld [vmem:[%s19479_s30 + $0x978] sm:$0xf0]  ;;  %v14443_v43 = vld [vmem:[%s19479_s30 + $0x1408] sm:$0xf] }
 0x334   : > { %v13004_v16 = vor.u32 %v17899_v12, %v13003_v40  ;;  %v14444_v55 = vor.u32 %v18259_v47, %v14443_v43  ;;  %v18889_v40 = vld [vmem:[%s19479_s30 + $0x2868] sm:$0xf0]  ;;  %v12464_v12 = vor.u32 %v17764_v17, %v12463_v1  ;;  %v13723_v47 = vld [vmem:[%s19479_s30 + $0xe68] sm:$0xf] }
 0x335   : > { %10326 = vmatpush.bf16.msra.mxu0 %v12460_v23  ;;  %10339 = vmatpush.bf16.msra.mxu1 %v13900_v2  ;;  %v10099_v46 = vpop.f32.mrf.mxu2  ;;  %v10112_v11 = vpop.f32.mrf.mxu3  ;;  %v14797_v23 = vld [vmem:[%s19479_s30 + $0x1784] sm:$0xf0]  ;;  %v18686_v2 = vld [vmem:[%s19479_s30 + $0x2214] sm:$0xf] }
 0x336   : > { %v14800_v60 = vor.u32 %v18326_v48, %v14797_v23  ;;  %v16240_v58 = vor.u32 %v18686_v2, %v16237_v31  ;;  %v18079_v48 = vld [vmem:[%s19479_s30 + $0xf18] sm:$0xf0]  ;;  %v15343_v23 = vld [vmem:[%s19479_s30 + $0x1b10] sm:$0xf] }
 0x337   : > { %10351 = vmatpush.bf16.msra.mxu2 %v15520_v42  ;;  %10364 = vmatpush.bf16.msra.mxu3 %v16960_v50  ;;  %v18664_v42 = vld [vmem:[%s19479_s30 + $0x2160] sm:$0xf0]  ;;  %v17503_v50 = vld [vmem:[%s19479_s30 + $0x2bf0] sm:$0xf] }
 0x338   : > { %v16064_v59 = vor.u32 %v18664_v42, %v16063_v34  ;;  %v18484_v34 = vld [vmem:[%s19479_s30 + $0x1bc0] sm:$0xf0]  ;;  %v16783_v42 = vld [vmem:[%s19479_s30 + $0x2650] sm:$0xf] }
 0x339   : > { %10327 = vmatpush.bf16.msra.mxu0 %v12280_v62  ;;  %10340 = vmatpush.bf16.msra.mxu1 %v13720_v63  ;;  %v17504_v62 = vor.u32 %v19024_v51, %v17503_v50  ;;  %v14263_v63 = vld [vmem:[%s19479_s30 + $0x12a0] sm:$0xf]  ;;  %v18844_v50 = vld [vmem:[%s19479_s30 + $0x2700] sm:$0xf0] }
 0x33a   : > { %v14264_v52 = vor.u32 %v18214_v49, %v14263_v63  ;;  %v16784_v38 = vor.u32 %v18844_v50, %v16783_v42  ;;  %v17832_v50 = vld [vmem:[%s19479_s30 + $0x764] sm:$0xf] }
 0x33b   : > { %10352 = vmatpush.bf16.msra.mxu2 %v15340_v45  ;;  %10365 = vmatpush.bf16.msra.mxu3 %v16780_v0  ;;  %v18619_v45 = vld [vmem:[%s19479_s30 + $0x1ff8] sm:$0xf0]  ;;  %v17323_v0 = vld [vmem:[%s19479_s30 + $0x2a88] sm:$0xf] }
 0x33c   : > { %v15884_v14 = vor.u32 %v18619_v45, %v15883_v32  ;;  %v17324_v8 = vor.u32 %v18979_v3, %v17323_v0  ;;  %v18439_v32 = vld [vmem:[%s19479_s30 + $0x1a58] sm:$0xf0]  ;;  %v16603_v45 = vld [vmem:[%s19479_s30 + $0x24e8] sm:$0xf] }
 0x33d   : > { %10328 = vmatpush.bf16.msra.mxu0 %v12100_v10  ;;  %10341 = vmatpush.bf16.msra.mxu1 %v13540_v18  ;;  %v18169_v10 = vld [vmem:[%s19479_s30 + $0x11e8] sm:$0xf0]  ;;  %v15703_v18 = vld [vmem:[%s19479_s30 + $0x1de0] sm:$0xf]  ;;  %v18799_v0 = vld [vmem:[%s19479_s30 + $0x2598] sm:$0xf0] }
 0x33e   : > { %v14084_v30 = vor.u32 %v18169_v10, %v14083_v61  ;;  %v15704_v35 = vor.u32 %v18574_v57, %v15703_v18  ;;  %v16604_v10 = vor.u32 %v18799_v0, %v16603_v45  ;;  %v17922_v18 = vld [vmem:[%s19479_s30 + $0xa34] sm:$0xf]  ;;  %v14625_v57 = vld [vmem:[%s19479_s30 + $0x1624] sm:$0xf0]  ;;  %v12645_v45 = vld [vmem:[%s19479_s30 + $0x6ac] sm:$0xf0] }
 0x33f   : > { %10353 = vmatpush.bf16.msra.mxu2 %v15160_v25  ;;  %10366 = vmatpush.bf16.msra.mxu3 %v16600_v26  ;;  %v17143_v25 = vld [vmem:[%s19479_s30 + $0x2920] sm:$0xf]  ;;  %v18934_v26 = vld [vmem:[%s19479_s30 + $0x29d0] sm:$0xf0] }
 0x340   : > { %v17144_v22 = vor.u32 %v18934_v26, %v17143_v25  ;;  %v14983_v25 = vld [vmem:[%s19479_s30 + $0x1840] sm:$0xf]  ;;  %v18394_v26 = vld [vmem:[%s19479_s30 + $0x18f0] sm:$0xf0] }
 0x341   : > { %10329 = vmatpush.bf16.msra.mxu0 %v11920_v37  ;;  %10342 = vmatpush.bf16.msra.mxu1 %v13360_v15  ;;  %v10123_v20 = vpop.f32.mrf.mxu0  ;;  %v10136_v21 = vpop.f32.mrf.mxu1  ;;  %v18124_v37 = vld [vmem:[%s19479_s30 + $0x1080] sm:$0xf0]  ;;  %v15523_v15 = vld [vmem:[%s19479_s30 + $0x1c78] sm:$0xf] }
 0x342   : > { %v10124_v27 = vadd.f32 %v10123_v20, %v1925_v56  ;;  %v13904_v43 = vor.u32 %v18124_v37, %v13903_v36  ;;  %v11923_v56 = vld [vmem:[%s19479_s30 + $0x58] sm:$0xf]  ;;  %v13185_v20 = vld [vmem:[%s19479_s30 + $0xae4] sm:$0xf0]  ;;  %v17877_v36 = vld [vmem:[%s19479_s30 + $0x8cc] sm:$0xf] }
 0x343   : > { %10354 = vmatpush.bf16.msra.mxu2 %v14980_v44  ;;  %10367 = vmatpush.bf16.msra.mxu3 %v16420_v19  ;;  %v12283_v44 = vld [vmem:[%s19479_s30 + $0x328] sm:$0xf]  ;;  %v17719_v19 = vld [vmem:[%s19479_s30 + $0x3d8] sm:$0xf0]  ;;  %v11924_v1 = vor.u32 %v17629_v6, %v11923_v56  ;;  %v13005_v37 = vld [vmem:[%s19479_s30 + $0x97c] sm:$0xf0] }
 0x344   : > { %10330 = vmatmul.bf16.vlgmr.msra.gmra.mxu0 %v19627_v28  ;;  %10343 = vmatmul.bf16.vlgmr.msra.gmra.mxu1 %v19629_v29  ;;  %v10137_v33 = vadd.f32 %v10136_v21, %v10124_v27  ;;  %v12284_v51 = vor.u32 %v17719_v19, %v12283_v44  ;;  %v18282_v21 = vld [vmem:[%s19479_s30 + $0x1574] sm:$0xf]  ;;  %v14803_v44 = vld [vmem:[%s19479_s30 + $0x16d8] sm:$0xf]  ;;  %v18147_v56 = vld [vmem:[%s19479_s30 + $0x113c] sm:$0xf] }
 0x345   : > { %10374 = vmatpush.bf16.msrb.mxu0 %v13184_v41  ;;  %10387 = vmatpush.bf16.msrb.mxu1 %v14624_v39  ;;  %v18529_v41 = vld [vmem:[%s19479_s30 + $0x1d28] sm:$0xf0]  ;;  %v16963_v39 = vld [vmem:[%s19479_s30 + $0x27b8] sm:$0xf] }
 0x346   : > { %v15524_v46 = vor.u32 %v18529_v41, %v15523_v15  ;;  %v16964_v11 = vor.u32 %v18889_v40, %v16963_v39  ;;  %v18237_v15 = vld [vmem:[%s19479_s30 + $0x140c] sm:$0xf]  ;;  %v14984_v41 = vor.u32 %v18394_v26, %v14983_v25  ;;  %v16243_v19 = vld [vmem:[%s19479_s30 + $0x2218] sm:$0xf]  ;;  %v18102_v26 = vld [vmem:[%s19479_s30 + $0xfd4] sm:$0xf] }
 0x347   : > { %10355 = vmatpush.bf16.msra.mxu2 %v14800_v60  ;;  %10368 = vmatpush.bf16.msra.mxu3 %v16240_v58  ;;  %v17674_v60 = vld [vmem:[%s19479_s30 + $0x270] sm:$0xf0]  ;;  %v15344_v58 = vor.u32 %v18484_v34, %v15343_v23  ;;  %v17505_v23 = vld [vmem:[%s19479_s30 + $0x2ca4] sm:$0xf0] }
 0x349   : > { %10375 = vmatpush.bf16.msrb.mxu0 %v13004_v16  ;;  %10388 = vmatpush.bf16.msrb.mxu1 %v14444_v55  ;;  %v10125_v2 = vpop.f32.mrf.mxu0  ;;  %v10138_v31 = vpop.f32.mrf.mxu1  ;;  %v13724_v16 = vor.u32 %v18079_v48, %v13723_v47  ;;  %v12103_v55 = vld [vmem:[%s19479_s30 + $0x1c0] sm:$0xf]  ;;  %v16065_v47 = vld [vmem:[%s19479_s30 + $0x2164] sm:$0xf0]  ;;  %v19002_v48 = vld [vmem:[%s19479_s30 + $0x2bf4] sm:$0xf] }
 0x34a   : > { %10356 = vmatmul.bf16.vlgmr.msra.gmra.mxu2 %v19645_v53  ;;  %10369 = vmatmul.bf16.vlgmr.msra.gmra.mxu3 %v19647_v54  ;;  %v13008_v2 = vor.u32 %v17877_v36, %v13005_v37  ;;  %v17697_v36 = vld [vmem:[%s19479_s30 + $0x32c] sm:$0xf]  ;;  %v12285_v37 = vld [vmem:[%s19479_s30 + $0x3dc] sm:$0xf0] }
 0x34b   : > { %10400 = vmatpush.bf16.msrb.mxu2 %v16064_v59  ;;  %10413 = vmatpush.bf16.msrb.mxu3 %v17504_v62  ;;  %v18034_v59 = vld [vmem:[%s19479_s30 + $0xdb0] sm:$0xf0]  ;;  %v15163_v62 = vld [vmem:[%s19479_s30 + $0x19a8] sm:$0xf] }
 0x34c   : > { %v15164_v61 = vor.u32 %v18439_v32, %v15163_v62  ;;  %v17325_v62 = vld [vmem:[%s19479_s30 + $0x2b3c] sm:$0xf0]  ;;  %v17787_v32 = vld [vmem:[%s19479_s30 + $0x5fc] sm:$0xf] }
 0x34d   : > { %10376 = vmatpush.bf16.msrb.mxu0 %v12824_v5  ;;  %10389 = vmatpush.bf16.msrb.mxu1 %v14264_v52  ;;  %v10149_v63 = vpop.f32.mrf.mxu2  ;;  %v10162_v49 = vpop.f32.mrf.mxu3  ;;  %v12104_v5 = vor.u32 %v17674_v60, %v12103_v55  ;;  %v13544_v52 = vor.u32 %v18034_v59, %v13543_v13  ;;  %v17508_v55 = vor.u32 %v19002_v48, %v17505_v23  ;;  %v18192_v60 = vld [vmem:[%s19479_s30 + $0x12a4] sm:$0xf]  ;;  %v15885_v13 = vld [vmem:[%s19479_s30 + $0x1ffc] sm:$0xf0]  ;;  %v18957_v59 = vld [vmem:[%s19479_s30 + $0x2a8c] sm:$0xf] }
 0x34e   : > { %v10150_v3 = vadd.f32 %v10149_v63, %v10137_v33  ;;  %v17652_v48 = vld [vmem:[%s19479_s30 + $0x1c4] sm:$0xf]  ;;  %v12105_v23 = vld [vmem:[%s19479_s30 + $0x274] sm:$0xf0] }
 0x34f   : > { %10401 = vmatpush.bf16.msrb.mxu2 %v15884_v14  ;;  %10414 = vmatpush.bf16.msrb.mxu3 %v17324_v8  ;;  %v17989_v14 = vld [vmem:[%s19479_s30 + $0xc48] sm:$0xf0] }
 0x350   : > { %v10163_v8 = vadd.f32 %v10162_v49, %v10150_v3  ;;  %v13364_v17 = vor.u32 %v17989_v14, %v13363_v7  ;;  %v17328_v3 = vor.u32 %v18957_v59, %v17325_v62  ;;  %v15705_v14 = vld [vmem:[%s19479_s30 + $0x1e94] sm:$0xf0]  ;;  %v17607_v59 = vld [vmem:[%s19479_s30 + $0x5c] sm:$0xf]  ;;  %v11925_v62 = vld [vmem:[%s19479_s30 + $0x10c] sm:$0xf0] }
 0x351   : > { %10377 = vmatpush.bf16.msrb.mxu0 %v12644_v9  ;;  %10390 = vmatpush.bf16.msrb.mxu1 %v14084_v30  ;;  %v16423_v9 = vld [vmem:[%s19479_s30 + $0x2380] sm:$0xf]  ;;  %v18754_v30 = vld [vmem:[%s19479_s30 + $0x2430] sm:$0xf0] }
 0x352   : > { %v11626_v27 = vrot.slane %v10163_v8, 6  ;;  %v16424_v39 = vor.u32 %v18754_v30, %v16423_v9  ;;  %v18912_v8 = vld [vmem:[%s19479_s30 + $0x2924] sm:$0xf]  ;;  %v18507_v9 = vld [vmem:[%s19479_s30 + $0x1c7c] sm:$0xf] }
 0x353   : > { %10402 = vmatpush.bf16.msrb.mxu2 %v15704_v35  ;;  %10415 = vmatpush.bf16.msrb.mxu3 %v17144_v22  ;;  %v13188_v35 = vor.u32 %v17922_v18, %v13185_v20  ;;  %v14628_v22 = vor.u32 %v18282_v21, %v14625_v57  ;;  %v17742_v20 = vld [vmem:[%s19479_s30 + $0x494] sm:$0xf]  ;;  %v12465_v21 = vld [vmem:[%s19479_s30 + $0x544] sm:$0xf0]  ;;  %v15525_v30 = vld [vmem:[%s19479_s30 + $0x1d2c] sm:$0xf0] }
 0x354   : > { %v21223_v33 = vsel %vm11647_vm1, %v21141_v24, %v11626_v27  ;;  %v18349_v24 = vld [vmem:[%s19479_s30 + $0x1788] sm:$0xf0]  ;;  %v13905_v27 = vld [vmem:[%s19479_s30 + $0x1084] sm:$0xf0] }
 0x355   : > { %10378 = vmatpush.bf16.msrb.mxu0 %v12464_v12  ;;  %10391 = vmatpush.bf16.msrb.mxu1 %v13904_v43  ;;  %v10151_v40 = vpop.f32.mrf.mxu2  ;;  %v10164_v12 = vpop.f32.mrf.mxu3  ;;  %v14445_v43 = vld [vmem:[%s19479_s30 + $0x14bc] sm:$0xf0]  ;;  %v14804_v34 = vor.u32 %v18349_v24, %v14803_v44  ;;  %v15345_v24 = vld [vmem:[%s19479_s30 + $0x1bc4] sm:$0xf0] }
 0x356   : > { %v14448_v31 = vor.u32 %v18237_v15, %v14445_v43  ;;  %v15528_v15 = vor.u32 %v18507_v9, %v15525_v30  ;;  %v13725_v40 = vld [vmem:[%s19479_s30 + $0xf1c] sm:$0xf0]  ;;  %v18462_v12 = vld [vmem:[%s19479_s30 + $0x1b14] sm:$0xf] }
 0x357   : > { %10403 = vmatpush.bf16.msrb.mxu2 %v15524_v46  ;;  %10416 = vmatpush.bf16.msrb.mxu3 %v16964_v11  ;;  %v18709_v46 = vld [vmem:[%s19479_s30 + $0x22c8] sm:$0xf0]  ;;  %v18642_v11 = vld [vmem:[%s19479_s30 + $0x20b4] sm:$0xf] }
 0x358   : > { %v16244_v42 = vor.u32 %v18709_v46, %v16243_v19  ;;  %v18822_v19 = vld [vmem:[%s19479_s30 + $0x2654] sm:$0xf]  ;;  %v16785_v46 = vld [vmem:[%s19479_s30 + $0x2704] sm:$0xf0] }
 0x359   : > { %10379 = vmatpush.bf16.msrb.mxu0 %v12284_v51  ;;  %10392 = vmatpush.bf16.msrb.mxu1 %v13724_v16  ;;  %v12825_v51 = vld [vmem:[%s19479_s30 + $0x814] sm:$0xf0]  ;;  %v16068_v16 = vor.u32 %v18642_v11, %v16065_v47  ;;  %v12288_v11 = vor.u32 %v17697_v36, %v12285_v37  ;;  %v18687_v36 = vld [vmem:[%s19479_s30 + $0x221c] sm:$0xf]  ;;  %v16245_v37 = vld [vmem:[%s19479_s30 + $0x22cc] sm:$0xf0] }
 0x35a   : > { %v12828_v63 = vor.u32 %v17832_v50, %v12825_v51  ;;  %v18417_v50 = vld [vmem:[%s19479_s30 + $0x19ac] sm:$0xf] }
 0x35b   : > { %10404 = vmatpush.bf16.msrb.mxu2 %v15344_v58  ;;  %10417 = vmatpush.bf16.msrb.mxu3 %v16784_v38  ;;  %v14265_v58 = vld [vmem:[%s19479_s30 + $0x1354] sm:$0xf0]  ;;  %v18597_v38 = vld [vmem:[%s19479_s30 + $0x1f4c] sm:$0xf] }
 0x35c   : > { %v14268_v49 = vor.u32 %v18192_v60, %v14265_v58  ;;  %v15888_v0 = vor.u32 %v18597_v38, %v15885_v13  ;;  %v18777_v60 = vld [vmem:[%s19479_s30 + $0x24ec] sm:$0xf]  ;;  %v16605_v58 = vld [vmem:[%s19479_s30 + $0x259c] sm:$0xf0]  ;;  %v12108_v38 = vor.u32 %v17652_v48, %v12105_v23  ;;  %v14271_v48 = vld [vmem:[%s19479_s30 + $0x12a8] sm:$0xf] }
 0x35d   : > { %10380 = vmatpush.bf16.msrb.mxu0 %v12104_v5  ;;  %10393 = vmatpush.bf16.msrb.mxu1 %v13544_v52  ;;  %v14085_v5 = vld [vmem:[%s19479_s30 + $0x11ec] sm:$0xf0]  ;;  %v18552_v52 = vld [vmem:[%s19479_s30 + $0x1de4] sm:$0xf]  ;;  %v18215_v23 = vld [vmem:[%s19479_s30 + $0x1358] sm:$0xf0] }
 0x35e   : > { %v14088_v18 = vor.u32 %v18147_v56, %v14085_v5  ;;  %v15708_v57 = vor.u32 %v18552_v52, %v15705_v14  ;;  %v14631_v56 = vld [vmem:[%s19479_s30 + $0x1578] sm:$0xf]  ;;  %v18305_v5 = vld [vmem:[%s19479_s30 + $0x1628] sm:$0xf0]  ;;  %v18372_v52 = vld [vmem:[%s19479_s30 + $0x1844] sm:$0xf] }
 0x35f   : > { %10405 = vmatpush.bf16.msrb.mxu2 %v15164_v61  ;;  %10418 = vmatpush.bf16.msrb.mxu3 %v16604_v10  ;;  %v17145_v61 = vld [vmem:[%s19479_s30 + $0x29d4] sm:$0xf0]  ;;  %v12648_v10 = vor.u32 %v17787_v32, %v12645_v45  ;;  %v16608_v32 = vor.u32 %v18777_v60, %v16605_v58  ;;  %v13365_v45 = vld [vmem:[%s19479_s30 + $0xc4c] sm:$0xf0]  ;;  %v14272_v60 = vor.u32 %v18215_v23, %v14271_v48  ;;  %v12651_v58 = vld [vmem:[%s19479_s30 + $0x600] sm:$0xf] }
 0x360   : > { %v17148_v25 = vor.u32 %v18912_v8, %v17145_v61  ;;  %v14985_v14 = vld [vmem:[%s19479_s30 + $0x18f4] sm:$0xf0]  ;;  %v18732_v8 = vld [vmem:[%s19479_s30 + $0x2384] sm:$0xf] }
 0x361   : > { %10381 = vmatpush.bf16.msrb.mxu0 %v11924_v1  ;;  %10394 = vmatpush.bf16.msrb.mxu1 %v13364_v17  ;;  %v21252_v6 = vpop.f32.mrf.mxu0  ;;  %v21254_v7 = vpop.f32.mrf.mxu1  ;;  %v18867_v1 = vld [vmem:[%s19479_s30 + $0x27bc] sm:$0xf]  ;;  %v16965_v17 = vld [vmem:[%s19479_s30 + $0x286c] sm:$0xf0]  ;;  %v16425_v61 = vld [vmem:[%s19479_s30 + $0x2434] sm:$0xf0] }
 0x362   : > { %v16428_v9 = vor.u32 %v18732_v8, %v16425_v61  ;;  %v12471_v61 = vld [vmem:[%s19479_s30 + $0x498] sm:$0xf] }
 0x363   : > { %10406 = vmatpush.bf16.msrb.mxu2 %v14984_v41  ;;  %10419 = vmatpush.bf16.msrb.mxu3 %v16424_v39  ;;  %v16968_v41 = vor.u32 %v18867_v1, %v16965_v17  ;;  %v18057_v39 = vld [vmem:[%s19479_s30 + $0xe6c] sm:$0xf]  ;;  %v18260_v17 = vld [vmem:[%s19479_s30 + $0x14c0] sm:$0xf0] }
 0x364   : > { %10382 = vmatmul.bf16.vlgmr.msrb.gmra.mxu0 %v19627_v28  ;;  %10395 = vmatmul.bf16.vlgmr.msrb.gmra.mxu1 %v19629_v29  ;;  %v13728_v47 = vor.u32 %v18057_v39, %v13725_v40  ;;  %v17511_v39 = vld [vmem:[%s19479_s30 + $0x2bf8] sm:$0xf]  ;;  %v19025_v40 = vld [vmem:[%s19479_s30 + $0x2ca8] sm:$0xf0] }
 0x365   : > { %10426 = vmatpush.bf16.msra.mxu0 %v13188_v35  ;;  %10439 = vmatpush.bf16.msra.mxu1 %v14628_v22  ;;  %v12468_v35 = vor.u32 %v17742_v20, %v12465_v21  ;;  %v13908_v22 = vor.u32 %v18102_v26, %v13905_v27  ;;  %v14632_v21 = vor.u32 %v18305_v5, %v14631_v56  ;;  %v14451_v26 = vld [vmem:[%s19479_s30 + $0x1410] sm:$0xf]  ;;  %v18935_v56 = vld [vmem:[%s19479_s30 + $0x29d8] sm:$0xf0] }
 0x366   : > { %v14988_v27 = vor.u32 %v18372_v52, %v14985_v14  ;;  %v1927_v52 = vperm.slane %v21093_v4, 3 }
 0x367   : > { %10407 = vmatpush.bf16.msrb.mxu2 %v14804_v34  ;;  %10420 = vmatpush.bf16.msrb.mxu3 %v16244_v42  ;;  %v18012_v34 = vld [vmem:[%s19479_s30 + $0xd04] sm:$0xf]  ;;  %v13545_v42 = vld [vmem:[%s19479_s30 + $0xdb4] sm:$0xf0] }
 0x368   : > { %v13548_v13 = vor.u32 %v18012_v34, %v13545_v42  ;;  %v17331_v34 = vld [vmem:[%s19479_s30 + $0x2a90] sm:$0xf]  ;;  %v18980_v42 = vld [vmem:[%s19479_s30 + $0x2b40] sm:$0xf0] }
 0x369   : > { %10427 = vmatpush.bf16.msra.mxu0 %v13008_v2  ;;  %10440 = vmatpush.bf16.msra.mxu1 %v14448_v31  ;;  %v10177_v43 = vpop.f32.mrf.mxu0  ;;  %v10190_v44 = vpop.f32.mrf.mxu1  ;;  %v15348_v2 = vor.u32 %v18462_v12, %v15345_v24  ;;  %v16788_v31 = vor.u32 %v18822_v19, %v16785_v46  ;;  %v16248_v24 = vor.u32 %v18687_v36, %v16245_v37  ;;  %v12831_v19 = vld [vmem:[%s19479_s30 + $0x768] sm:$0xf]  ;;  %v17855_v46 = vld [vmem:[%s19479_s30 + $0x818] sm:$0xf0]  ;;  %v13731_v37 = vld [vmem:[%s19479_s30 + $0xe70] sm:$0xf] }
 0x36a   : > { %10408 = vmatmul.bf16.vlgmr.msrb.gmra.mxu2 %v19645_v53  ;;  %10421 = vmatmul.bf16.vlgmr.msrb.gmra.mxu3 %v19647_v54  ;;  %v14452_v43 = vor.u32 %v18260_v17, %v14451_v26  ;;  %v16971_v26 = vld [vmem:[%s19479_s30 + $0x27c0] sm:$0xf]  ;;  %v17720_v17 = vld [vmem:[%s19479_s30 + $0x3e0] sm:$0xf0] }
 0x36b   : > { %10452 = vmatpush.bf16.msra.mxu2 %v16068_v16  ;;  %10465 = vmatpush.bf16.msra.mxu3 %v17508_v55  ;;  %v15165_v55 = vld [vmem:[%s19479_s30 + $0x1a5c] sm:$0xf0] }
 0x36d   : > { %10428 = vmatpush.bf16.msra.mxu0 %v12828_v63  ;;  %10441 = vmatpush.bf16.msra.mxu1 %v14268_v49  ;;  %v21282_v51 = vpop.f32.mrf.mxu2  ;;  %v21284_v16 = vpop.f32.mrf.mxu3  ;;  %v17967_v63 = vld [vmem:[%s19479_s30 + $0xb9c] sm:$0xf]  ;;  %v15168_v49 = vor.u32 %v18417_v50, %v15165_v55  ;;  %v1926_v50 = vperm.slane %v21093_v4, 2  ;;  %v12832_v55 = vor.u32 %v17855_v46, %v12831_v19  ;;  %v12111_v46 = vld [vmem:[%s19479_s30 + $0x1c8] sm:$0xf] }
 0x36f   : > { %10453 = vmatpush.bf16.msra.mxu2 %v15888_v0  ;;  %10466 = vmatpush.bf16.msra.mxu3 %v17328_v3  ;;  %v13191_v0 = vld [vmem:[%s19479_s30 + $0xa38] sm:$0xf]  ;;  %v17945_v3 = vld [vmem:[%s19479_s30 + $0xae8] sm:$0xf0]  ;;  %v10176_v5 = vadd.f32 %v21252_v6, %v1926_v50  ;;  %v18530_v6 = vld [vmem:[%s19479_s30 + $0x1d30] sm:$0xf0] }
 0x370   : > { %v13192_v20 = vor.u32 %v17945_v3, %v13191_v0  ;;  %v18575_v0 = vld [vmem:[%s19479_s30 + $0x1e98] sm:$0xf0]  ;;  %v17151_v3 = vld [vmem:[%s19479_s30 + $0x2928] sm:$0xf]  ;;  %v18440_v50 = vld [vmem:[%s19479_s30 + $0x1a60] sm:$0xf0] }
 0x371   : > { %10429 = vmatpush.bf16.msra.mxu0 %v12648_v10  ;;  %10442 = vmatpush.bf16.msra.mxu1 %v14088_v18  ;;  %v11928_v10 = vor.u32 %v17607_v59, %v11925_v62  ;;  %v13368_v18 = vor.u32 %v17967_v63, %v13365_v45  ;;  %v17332_v59 = vor.u32 %v18980_v42, %v17331_v34  ;;  %v14091_v62 = vld [vmem:[%s19479_s30 + $0x1140] sm:$0xf]  ;;  %v18170_v63 = vld [vmem:[%s19479_s30 + $0x11f0] sm:$0xf0] }
 0x372   : > { %v14092_v8 = vor.u32 %v18170_v63, %v14091_v62  ;;  %v10189_v4 = vadd.f32 %v21254_v7, %v10176_v5  ;;  %v17630_v63 = vld [vmem:[%s19479_s30 + $0x110] sm:$0xf0]  ;;  %v18283_v5 = vld [vmem:[%s19479_s30 + $0x157c] sm:$0xf] }
 0x373   : > { %10454 = vmatpush.bf16.msra.mxu2 %v15708_v57  ;;  %10467 = vmatpush.bf16.msra.mxu3 %v17148_v25  ;;  %v13011_v57 = vld [vmem:[%s19479_s30 + $0x8d0] sm:$0xf]  ;;  %v17900_v25 = vld [vmem:[%s19479_s30 + $0x980] sm:$0xf0] }
 0x374   : > { %v13012_v12 = vor.u32 %v17900_v25, %v13011_v57  ;;  %v18125_v57 = vld [vmem:[%s19479_s30 + $0x1088] sm:$0xf0]  ;;  %v15531_v25 = vld [vmem:[%s19479_s30 + $0x1c80] sm:$0xf] }
 0x375   : > { %10430 = vmatpush.bf16.msra.mxu0 %v12468_v35  ;;  %10443 = vmatpush.bf16.msra.mxu1 %v13908_v22  ;;  %v10203_v30 = vpop.f32.mrf.mxu2  ;;  %v10216_v1 = vpop.f32.mrf.mxu3  ;;  %v18327_v35 = vld [vmem:[%s19479_s30 + $0x16dc] sm:$0xf]  ;;  %v14805_v22 = vld [vmem:[%s19479_s30 + $0x178c] sm:$0xf0] }
 0x376   : > { %v14808_v44 = vor.u32 %v18327_v35, %v14805_v22  ;;  %v12291_v1 = vld [vmem:[%s19479_s30 + $0x330] sm:$0xf]  ;;  %v15532_v22 = vor.u32 %v18530_v6, %v15531_v25  ;;  %v17878_v25 = vld [vmem:[%s19479_s30 + $0x8d4] sm:$0xf] }
 0x377   : > { %10455 = vmatpush.bf16.msra.mxu2 %v15528_v15  ;;  %10468 = vmatpush.bf16.msra.mxu3 %v16968_v41  ;;  %v16071_v15 = vld [vmem:[%s19479_s30 + $0x20b8] sm:$0xf]  ;;  %v18665_v41 = vld [vmem:[%s19479_s30 + $0x2168] sm:$0xf0] }
 0x379   : > { %10431 = vmatpush.bf16.msra.mxu0 %v12288_v11  ;;  %10444 = vmatpush.bf16.msra.mxu1 %v13728_v47  ;;  %v16072_v11 = vor.u32 %v18665_v41, %v16071_v15  ;;  %v17512_v47 = vor.u32 %v19025_v40, %v17511_v39  ;;  %v18080_v15 = vld [vmem:[%s19479_s30 + $0xf20] sm:$0xf0]  ;;  %v15351_v41 = vld [vmem:[%s19479_s30 + $0x1b18] sm:$0xf]  ;;  %v18485_v40 = vld [vmem:[%s19479_s30 + $0x1bc8] sm:$0xf0] }
 0x37a   : > { %v13732_v19 = vor.u32 %v18080_v15, %v13731_v37  ;;  %v15352_v48 = vor.u32 %v18485_v40, %v15351_v41  ;;  %v14811_v37 = vld [vmem:[%s19479_s30 + $0x16e0] sm:$0xf]  ;;  %v18350_v15 = vld [vmem:[%s19479_s30 + $0x1790] sm:$0xf0]  ;;  %v16073_v40 = vld [vmem:[%s19479_s30 + $0x216c] sm:$0xf0] }
 0x37b   : > { %10456 = vmatpush.bf16.msra.mxu2 %v15348_v2  ;;  %10469 = vmatpush.bf16.msra.mxu3 %v16788_v31  ;;  %v15891_v2 = vld [vmem:[%s19479_s30 + $0x1f50] sm:$0xf]  ;;  %v18620_v31 = vld [vmem:[%s19479_s30 + $0x2000] sm:$0xf0]  ;;  %v16251_v41 = vld [vmem:[%s19479_s30 + $0x2220] sm:$0xf] }
 0x37d   : > { %10432 = vmatpush.bf16.msra.mxu0 %v12108_v38  ;;  %10445 = vmatpush.bf16.msra.mxu1 %v13548_v13  ;;  %v17810_v38 = vld [vmem:[%s19479_s30 + $0x6b0] sm:$0xf0]  ;;  %v15892_v13 = vor.u32 %v18620_v31, %v15891_v2  ;;  %v13551_v2 = vld [vmem:[%s19479_s30 + $0xd08] sm:$0xf]  ;;  %v18035_v31 = vld [vmem:[%s19479_s30 + $0xdb8] sm:$0xf0] }
 0x37e   : > { %v12652_v14 = vor.u32 %v17810_v38, %v12651_v58  ;;  %v13552_v62 = vor.u32 %v18035_v31, %v13551_v2  ;;  %v14273_v2 = vld [vmem:[%s19479_s30 + $0x135c] sm:$0xf0]  ;;  %v18598_v31 = vld [vmem:[%s19479_s30 + $0x1f54] sm:$0xf] }
 0x37f   : > { %10457 = vmatpush.bf16.msra.mxu2 %v15168_v49  ;;  %10470 = vmatpush.bf16.msra.mxu3 %v16608_v32  ;;  %v15711_v49 = vld [vmem:[%s19479_s30 + $0x1de8] sm:$0xf] }
 0x381   : > { %10433 = vmatpush.bf16.msra.mxu0 %v11928_v10  ;;  %10446 = vmatpush.bf16.msra.mxu1 %v13368_v18  ;;  %v10227_v32 = vpop.f32.mrf.mxu0  ;;  %v10240_v45 = vpop.f32.mrf.mxu1  ;;  %v17765_v10 = vld [vmem:[%s19479_s30 + $0x548] sm:$0xf0]  ;;  %v15712_v18 = vor.u32 %v18575_v0, %v15711_v49  ;;  %v13371_v49 = vld [vmem:[%s19479_s30 + $0xba0] sm:$0xf] }
 0x382   : > { %v10228_v35 = vadd.f32 %v10227_v32, %v1927_v52  ;;  %v17990_v32 = vld [vmem:[%s19479_s30 + $0xc50] sm:$0xf0]  ;;  %v14633_v52 = vld [vmem:[%s19479_s30 + $0x162c] sm:$0xf0] }
 0x383   : > { %10458 = vmatpush.bf16.msra.mxu2 %v14988_v27  ;;  %10471 = vmatpush.bf16.msra.mxu3 %v16428_v9  ;;  %v18890_v27 = vld [vmem:[%s19479_s30 + $0x2870] sm:$0xf0]  ;;  %v12472_v9 = vor.u32 %v17765_v10, %v12471_v61 }
 0x384   : > { %10434 = vmatmul.bf16.vlgmr.msra.gmra.mxu0 %v19627_v28  ;;  %10447 = vmatmul.bf16.vlgmr.msra.gmra.mxu1 %v19629_v29  ;;  %v16972_v36 = vor.u32 %v18890_v27, %v16971_v26  ;;  %v14636_v27 = vor.u32 %v18283_v5, %v14633_v52 }
 0x385   : > { %10478 = vmatpush.bf16.msrb.mxu0 %v13192_v20  ;;  %10491 = vmatpush.bf16.msrb.mxu1 %v14632_v21  ;;  %v17152_v20 = vor.u32 %v18935_v56, %v17151_v3  ;;  %v13911_v21 = vld [vmem:[%s19479_s30 + $0xfd8] sm:$0xf]  ;;  %v17923_v3 = vld [vmem:[%s19479_s30 + $0xa3c] sm:$0xf]  ;;  %v13193_v56 = vld [vmem:[%s19479_s30 + $0xaec] sm:$0xf0] }
 0x386   : > { %v13912_v30 = vor.u32 %v18125_v57, %v13911_v21  ;;  %v13372_v57 = vor.u32 %v17990_v32, %v13371_v49  ;;  %v13196_v26 = vor.u32 %v17923_v3, %v13193_v56  ;;  %v14093_v49 = vld [vmem:[%s19479_s30 + $0x11f4] sm:$0xf0]  ;;  %v18553_v32 = vld [vmem:[%s19479_s30 + $0x1dec] sm:$0xf]  ;;  %v17153_v56 = vld [vmem:[%s19479_s30 + $0x29dc] sm:$0xf0] }
 0x387   : > { %10459 = vmatpush.bf16.msra.mxu2 %v14808_v44  ;;  %10472 = vmatpush.bf16.msra.mxu3 %v16248_v24  ;;  %v10202_v44 = vadd.f32 %v21282_v51, %v10189_v4  ;;  %v12292_v24 = vor.u32 %v17720_v17, %v12291_v1  ;;  %v15171_v51 = vld [vmem:[%s19479_s30 + $0x19b0] sm:$0xf]  ;;  %v13013_v4 = vld [vmem:[%s19479_s30 + $0x984] sm:$0xf0]  ;;  %v18913_v3 = vld [vmem:[%s19479_s30 + $0x292c] sm:$0xf] }
 0x389   : > { %10479 = vmatpush.bf16.msrb.mxu0 %v13012_v12  ;;  %10492 = vmatpush.bf16.msrb.mxu1 %v14452_v43  ;;  %v10229_v7 = vpop.f32.mrf.mxu0  ;;  %v10242_v39 = vpop.f32.mrf.mxu1  ;;  %v16791_v12 = vld [vmem:[%s19479_s30 + $0x2658] sm:$0xf]  ;;  %v18845_v43 = vld [vmem:[%s19479_s30 + $0x2708] sm:$0xf0]  ;;  %v10215_v58 = vadd.f32 %v21284_v16, %v10202_v44  ;;  %v15172_v16 = vor.u32 %v18440_v50, %v15171_v51  ;;  %v15893_v51 = vld [vmem:[%s19479_s30 + $0x2004] sm:$0xf0] }
 0x38a   : > { %10460 = vmatmul.bf16.vlgmr.msra.gmra.mxu2 %v19645_v53  ;;  %10473 = vmatmul.bf16.vlgmr.msra.gmra.mxu3 %v19647_v54  ;;  %v16792_v23 = vor.u32 %v18845_v43, %v16791_v12  ;;  %v18710_v7 = vld [vmem:[%s19479_s30 + $0x22d0] sm:$0xf0]  ;;  %v18643_v39 = vld [vmem:[%s19479_s30 + $0x20bc] sm:$0xf]  ;;  %v17513_v43 = vld [vmem:[%s19479_s30 + $0x2cac] sm:$0xf0] }
 0x38b   : > { %10504 = vmatpush.bf16.msrb.mxu2 %v16072_v11  ;;  %10517 = vmatpush.bf16.msrb.mxu3 %v17512_v47  ;;  %v17675_v11 = vld [vmem:[%s19479_s30 + $0x278] sm:$0xf0]  ;;  %v10241_v47 = vadd.f32 %v10240_v45, %v10228_v35  ;;  %v11627_v61 = vrot.slane %v10215_v58, 4  ;;  %v21402_v50 = vld [vmem:[%s19921_s6 + $0x10] sm:$0xff] }
 0x38c   : > { %v19003_v12 = vld [vmem:[%s19479_s30 + $0x2bfc] sm:$0xf] }
 0x38d   : > { %10480 = vmatpush.bf16.msrb.mxu0 %v12832_v55  ;;  %10493 = vmatpush.bf16.msrb.mxu1 %v14272_v60  ;;  %v10253_v34 = vpop.f32.mrf.mxu2  ;;  %v10266_v42 = vpop.f32.mrf.mxu3  ;;  %v16611_v55 = vld [vmem:[%s19479_s30 + $0x24f0] sm:$0xf]  ;;  %v18800_v60 = vld [vmem:[%s19479_s30 + $0x25a0] sm:$0xf0] }
 0x38e   : > { %v10254_v38 = vadd.f32 %v10253_v34, %v10241_v47  ;;  %v16612_v0 = vor.u32 %v18800_v60, %v16611_v55  ;;  %v16076_v47 = vor.u32 %v18643_v39, %v16073_v40  ;;  %v18958_v34 = vld [vmem:[%s19479_s30 + $0x2a94] sm:$0xf]  ;;  %v1928_v55 = vperm.slane %v21402_v50, 4  ;;  %v18823_v39 = vld [vmem:[%s19479_s30 + $0x265c] sm:$0xf] }
 0x38f   : > { %10505 = vmatpush.bf16.msrb.mxu2 %v15892_v13  ;;  %10518 = vmatpush.bf16.msrb.mxu3 %v17332_v59  ;;  %v11931_v13 = vld [vmem:[%s19479_s30 + $0x60] sm:$0xf]  ;;  %v12112_v59 = vor.u32 %v17675_v11, %v12111_v46  ;;  %v17833_v46 = vld [vmem:[%s19479_s30 + $0x76c] sm:$0xf]  ;;  %v16793_v40 = vld [vmem:[%s19479_s30 + $0x270c] sm:$0xf0] }
 0x390   : > { %v10267_v45 = vadd.f32 %v10266_v42, %v10254_v38  ;;  %v11932_v21 = vor.u32 %v17630_v63, %v11931_v13  ;;  %v12833_v11 = vld [vmem:[%s19479_s30 + $0x81c] sm:$0xf0]  ;;  %v17333_v42 = vld [vmem:[%s19479_s30 + $0x2b44] sm:$0xf0]  ;;  %v17788_v38 = vld [vmem:[%s19479_s30 + $0x604] sm:$0xf] }
 0x391   : > { %10481 = vmatpush.bf16.msrb.mxu0 %v12652_v14  ;;  %10494 = vmatpush.bf16.msrb.mxu1 %v14092_v8  ;;  %v14991_v14 = vld [vmem:[%s19479_s30 + $0x1848] sm:$0xf]  ;;  %v18395_v8 = vld [vmem:[%s19479_s30 + $0x18f8] sm:$0xf0]  ;;  %v12836_v60 = vor.u32 %v17833_v46, %v12833_v11  ;;  %v12653_v13 = vld [vmem:[%s19479_s30 + $0x6b4] sm:$0xf0] }
 0x392   : > { %v11628_v10 = vrot.slane %v10267_v45, 2  ;;  %v14992_v17 = vor.u32 %v18395_v8, %v14991_v14  ;;  %v18148_v63 = vld [vmem:[%s19479_s30 + $0x1144] sm:$0xf]  ;;  %v12656_v52 = vor.u32 %v17788_v38, %v12653_v13  ;;  %v17743_v8 = vld [vmem:[%s19479_s30 + $0x49c] sm:$0xf] }
 0x393   : > { %10506 = vmatpush.bf16.msrb.mxu2 %v15712_v18  ;;  %10519 = vmatpush.bf16.msrb.mxu3 %v17152_v20  ;;  %v16431_v18 = vld [vmem:[%s19479_s30 + $0x2388] sm:$0xf]  ;;  %v18755_v20 = vld [vmem:[%s19479_s30 + $0x2438] sm:$0xf0]  ;;  %v14096_v14 = vor.u32 %v18148_v63, %v14093_v49  ;;  %v18013_v46 = vld [vmem:[%s19479_s30 + $0xd0c] sm:$0xf] }
 0x394   : > { %v11663_v6 = vsel %vm11649_vm2, %v11627_v61, %v11628_v10  ;;  %v16432_v35 = vor.u32 %v18755_v20, %v16431_v18  ;;  %v12473_v61 = vld [vmem:[%s19479_s30 + $0x54c] sm:$0xf0]  ;;  %v17156_v20 = vor.u32 %v18913_v3, %v17153_v56  ;;  %v13553_v11 = vld [vmem:[%s19479_s30 + $0xdbc] sm:$0xf0]  ;;  %v17968_v38 = vld [vmem:[%s19479_s30 + $0xba4] sm:$0xf] }
 0x395   : > { %10482 = vmatpush.bf16.msrb.mxu0 %v12472_v9  ;;  %10495 = vmatpush.bf16.msrb.mxu1 %v13912_v30  ;;  %v18238_v9 = vld [vmem:[%s19479_s30 + $0x1414] sm:$0xf]  ;;  %v14453_v30 = vld [vmem:[%s19479_s30 + $0x14c4] sm:$0xf0]  ;;  %v11664_v1 = vsel %vm11651_vm3, %v21223_v33, %v11663_v6  ;;  %v13016_v33 = vor.u32 %v17878_v25, %v13013_v4  ;;  %v18508_v25 = vld [vmem:[%s19479_s30 + $0x1c84] sm:$0xf]  ;;  %v12476_v4 = vor.u32 %v17743_v8, %v12473_v61 }
 0x396   : > { %11698 = vst [vmem:[%s20170_s21 + $0x20] sm:$0xff] %v11664_v1  ;;  %v14456_v44 = vor.u32 %v18238_v9, %v14453_v30  ;;  %v15533_v6 = vld [vmem:[%s19479_s30 + $0x1d34] sm:$0xf0]  ;;  %v17698_v30 = vld [vmem:[%s19479_s30 + $0x334] sm:$0xf] }
 0x397   : > { %10507 = vmatpush.bf16.msrb.mxu2 %v15532_v22  ;;  %10520 = vmatpush.bf16.msrb.mxu3 %v16972_v36  ;;  %v10255_v22 = vpop.f32.mrf.mxu2  ;;  %v10268_v36 = vpop.f32.mrf.mxu3  ;;  %v12293_v1 = vld [vmem:[%s19479_s30 + $0x3e4] sm:$0xf0]  ;;  %v13373_v63 = vld [vmem:[%s19479_s30 + $0xc54] sm:$0xf0]  ;;  %v13199_v49 = vld [vmem:[%s19479_s30 + $0xa40] sm:$0xf] }
 0x398   : > { %v18058_v22 = vld [vmem:[%s19479_s30 + $0xe74] sm:$0xf]  ;;  %v13733_v36 = vld [vmem:[%s19479_s30 + $0xf24] sm:$0xf0]  ;;  %v14993_v3 = vld [vmem:[%s19479_s30 + $0x18fc] sm:$0xf0] }
 0x399   : > { %10483 = vmatpush.bf16.msrb.mxu0 %v12292_v24  ;;  %10496 = vmatpush.bf16.msrb.mxu1 %v13732_v19  ;;  %v14812_v24 = vor.u32 %v18350_v15, %v14811_v37  ;;  %v16252_v19 = vor.u32 %v18710_v7, %v16251_v41  ;;  %v18463_v37 = vld [vmem:[%s19479_s30 + $0x1b1c] sm:$0xf]  ;;  %v15353_v7 = vld [vmem:[%s19479_s30 + $0x1bcc] sm:$0xf0]  ;;  %v18733_v56 = vld [vmem:[%s19479_s30 + $0x238c] sm:$0xf] }
 0x39b   : > { %10508 = vmatpush.bf16.msrb.mxu2 %v15352_v48  ;;  %10521 = vmatpush.bf16.msrb.mxu3 %v16792_v23  ;;  %v17516_v48 = vor.u32 %v19003_v12, %v17513_v43  ;;  %v18193_v23 = vld [vmem:[%s19479_s30 + $0x12ac] sm:$0xf]  ;;  %v12296_v12 = vor.u32 %v17698_v30, %v12293_v1  ;;  %v13736_v43 = vor.u32 %v18058_v22, %v13733_v36  ;;  %v16253_v30 = vld [vmem:[%s19479_s30 + $0x22d4] sm:$0xf0]  ;;  %v16079_v1 = vld [vmem:[%s19479_s30 + $0x20c0] sm:$0xf] }
 0x39c   : > { %v14276_v58 = vor.u32 %v18193_v23, %v14273_v2  ;;  %v15173_v2 = vld [vmem:[%s19479_s30 + $0x1a64] sm:$0xf0]  ;;  %v19026_v22 = vld [vmem:[%s19479_s30 + $0x2cb0] sm:$0xf0] }
 0x39d   : > { %10484 = vmatpush.bf16.msrb.mxu0 %v12112_v59  ;;  %10497 = vmatpush.bf16.msrb.mxu1 %v13552_v62  ;;  %v15896_v59 = vor.u32 %v18598_v31, %v15893_v51  ;;  %v17336_v62 = vor.u32 %v18958_v34, %v17333_v42  ;;  %v18778_v31 = vld [vmem:[%s19479_s30 + $0x24f4] sm:$0xf]  ;;  %v16613_v51 = vld [vmem:[%s19479_s30 + $0x25a4] sm:$0xf0] }
 0x39f   : > { %10509 = vmatpush.bf16.msrb.mxu2 %v15172_v16  ;;  %10522 = vmatpush.bf16.msrb.mxu3 %v16612_v0  ;;  %v15713_v0 = vld [vmem:[%s19479_s30 + $0x1e9c] sm:$0xf0] }
 0x3a0   : > { %v15716_v18 = vor.u32 %v18553_v32, %v15713_v0  ;;  %v17946_v32 = vld [vmem:[%s19479_s30 + $0xaf0] sm:$0xf0]  ;;  %v18373_v0 = vld [vmem:[%s19479_s30 + $0x184c] sm:$0xf] }
 0x3a1   : > { %10485 = vmatpush.bf16.msrb.mxu0 %v11932_v21  ;;  %10498 = vmatpush.bf16.msrb.mxu1 %v13372_v57  ;;  %v10279_v45 = vpop.f32.mrf.mxu0  ;;  %v10292_v16 = vpop.f32.mrf.mxu1  ;;  %v18103_v21 = vld [vmem:[%s19479_s30 + $0xfdc] sm:$0xf]  ;;  %v13913_v57 = vld [vmem:[%s19479_s30 + $0x108c] sm:$0xf0]  ;;  %v13200_v8 = vor.u32 %v17946_v32, %v13199_v49 }
 0x3a2   : > { %v10280_v5 = vadd.f32 %v10279_v45, %v1928_v55  ;;  %v13916_v9 = vor.u32 %v18103_v21, %v13913_v57  ;;  %v13556_v55 = vor.u32 %v18013_v46, %v13553_v11  ;;  %v14639_v45 = vld [vmem:[%s19479_s30 + $0x1580] sm:$0xf]  ;;  %v14996_v21 = vor.u32 %v18373_v0, %v14993_v3  ;;  %v18981_v46 = vld [vmem:[%s19479_s30 + $0x2b48] sm:$0xf0] }
 0x3a3   : > { %10510 = vmatpush.bf16.msrb.mxu2 %v14992_v17  ;;  %10523 = vmatpush.bf16.msrb.mxu3 %v16432_v35  ;;  %v15536_v17 = vor.u32 %v18508_v25, %v15533_v6  ;;  %v1929_v11 = vperm.slane %v21402_v50, 5 }
 0x3a4   : > { %10486 = vmatmul.bf16.vlgmr.msrb.gmra.mxu0 %v19627_v28  ;;  %10499 = vmatmul.bf16.vlgmr.msrb.gmra.mxu1 %v19629_v29  ;;  %v10293_v10 = vadd.f32 %v10292_v16, %v10280_v5  ;;  %v18306_v16 = vld [vmem:[%s19479_s30 + $0x1630] sm:$0xf0]  ;;  %v16433_v5 = vld [vmem:[%s19479_s30 + $0x243c] sm:$0xf0] }
 0x3a5   : > { %10530 = vmatpush.bf16.msra.mxu0 %v13196_v26  ;;  %10543 = vmatpush.bf16.msra.mxu1 %v14636_v27  ;;  %v18868_v26 = vld [vmem:[%s19479_s30 + $0x27c4] sm:$0xf]  ;;  %v16973_v27 = vld [vmem:[%s19479_s30 + $0x2874] sm:$0xf0]  ;;  %v14640_v61 = vor.u32 %v18306_v16, %v14639_v45  ;;  %v16436_v57 = vor.u32 %v18733_v56, %v16433_v5  ;;  %v12479_v45 = vld [vmem:[%s19479_s30 + $0x4a0] sm:$0xf] }
 0x3a6   : > { %v16976_v35 = vor.u32 %v18868_v26, %v16973_v27  ;;  %v18261_v26 = vld [vmem:[%s19479_s30 + $0x14c8] sm:$0xf0]  ;;  %v18328_v27 = vld [vmem:[%s19479_s30 + $0x16e4] sm:$0xf]  ;;  %v17766_v16 = vld [vmem:[%s19479_s30 + $0x550] sm:$0xf0] }
 0x3a7   : > { %10511 = vmatpush.bf16.msrb.mxu2 %v14812_v24  ;;  %10524 = vmatpush.bf16.msrb.mxu3 %v16252_v19  ;;  %v15356_v24 = vor.u32 %v18463_v37, %v15353_v7  ;;  %v16796_v19 = vor.u32 %v18823_v39, %v16793_v40  ;;  %v12839_v7 = vld [vmem:[%s19479_s30 + $0x770] sm:$0xf]  ;;  %v17856_v39 = vld [vmem:[%s19479_s30 + $0x820] sm:$0xf0]  ;;  %v13919_v5 = vld [vmem:[%s19479_s30 + $0xfe0] sm:$0xf] }
 0x3a9   : > { %10531 = vmatpush.bf16.msra.mxu0 %v13016_v33  ;;  %10544 = vmatpush.bf16.msra.mxu1 %v14456_v44  ;;  %v10281_v15 = vpop.f32.mrf.mxu0  ;;  %v10294_v41 = vpop.f32.mrf.mxu1  ;;  %v17653_v33 = vld [vmem:[%s19479_s30 + $0x1cc] sm:$0xf]  ;;  %v12113_v44 = vld [vmem:[%s19479_s30 + $0x27c] sm:$0xf0] }
 0x3aa   : > { %10512 = vmatmul.bf16.vlgmr.msrb.gmra.mxu2 %v19645_v53  ;;  %10525 = vmatmul.bf16.vlgmr.msrb.gmra.mxu3 %v19647_v54  ;;  %v12116_v42 = vor.u32 %v17653_v33, %v12113_v44  ;;  %v18216_v33 = vld [vmem:[%s19479_s30 + $0x1360] sm:$0xf0]  ;;  %v15899_v44 = vld [vmem:[%s19479_s30 + $0x1f58] sm:$0xf] }
 0x3ab   : > { %10556 = vmatpush.bf16.msra.mxu2 %v16076_v47  ;;  %10569 = vmatpush.bf16.msra.mxu3 %v17516_v48  ;;  %v18418_v47 = vld [vmem:[%s19479_s30 + $0x19b4] sm:$0xf] }
 0x3ad   : > { %10532 = vmatpush.bf16.msra.mxu0 %v12836_v60  ;;  %10545 = vmatpush.bf16.msra.mxu1 %v14276_v58  ;;  %v10305_v48 = vpop.f32.mrf.mxu2  ;;  %v10318_v23 = vpop.f32.mrf.mxu3  ;;  %v17608_v60 = vld [vmem:[%s19479_s30 + $0x64] sm:$0xf]  ;;  %v11933_v58 = vld [vmem:[%s19479_s30 + $0x114] sm:$0xf0] }
 0x3ae   : > { %v10306_v34 = vadd.f32 %v10305_v48, %v10293_v10  ;;  %v13019_v10 = vld [vmem:[%s19479_s30 + $0x8d8] sm:$0xf] }
 0x3af   : > { %10557 = vmatpush.bf16.msra.mxu2 %v15896_v59  ;;  %10570 = vmatpush.bf16.msra.mxu3 %v17336_v62  ;;  %v15176_v59 = vor.u32 %v18418_v47, %v15173_v2  ;;  %v16616_v62 = vor.u32 %v18778_v31, %v16613_v51  ;;  %v12840_v47 = vor.u32 %v17856_v39, %v12839_v7  ;;  %v17811_v2 = vld [vmem:[%s19479_s30 + $0x6b8] sm:$0xf0]  ;;  %v13559_v39 = vld [vmem:[%s19479_s30 + $0xd10] sm:$0xf] }
 0x3b0   : > { %v21442_v13 = vadd.f32 %v10318_v23, %v10306_v34  ;;  %v12659_v23 = vld [vmem:[%s19479_s30 + $0x608] sm:$0xf] }
 0x3b1   : > { %10533 = vmatpush.bf16.msra.mxu0 %v12656_v52  ;;  %10546 = vmatpush.bf16.msra.mxu1 %v14096_v14  ;;  %v11936_v52 = vor.u32 %v17608_v60, %v11933_v58  ;;  %v13376_v14 = vor.u32 %v17968_v38, %v13373_v63  ;;  %v14099_v34 = vld [vmem:[%s19479_s30 + $0x1148] sm:$0xf]  ;;  %v18576_v38 = vld [vmem:[%s19479_s30 + $0x1ea0] sm:$0xf0]  ;;  %v12660_v49 = vor.u32 %v17811_v2, %v12659_v23  ;;  %v17631_v23 = vld [vmem:[%s19479_s30 + $0x118] sm:$0xf0] }
 0x3b2   : > { %v13379_v2 = vld [vmem:[%s19479_s30 + $0xba8] sm:$0xf] }
 0x3b3   : > { %10558 = vmatpush.bf16.msra.mxu2 %v15716_v18  ;;  %10571 = vmatpush.bf16.msra.mxu3 %v17156_v20  ;;  %v17901_v18 = vld [vmem:[%s19479_s30 + $0x988] sm:$0xf0]  ;;  %v14459_v20 = vld [vmem:[%s19479_s30 + $0x1418] sm:$0xf] }
 0x3b4   : > { %v13020_v36 = vor.u32 %v17901_v18, %v13019_v10  ;;  %v14460_v37 = vor.u32 %v18261_v26, %v14459_v20  ;;  %v18891_v10 = vld [vmem:[%s19479_s30 + $0x2878] sm:$0xf0]  ;;  %v12480_v18 = vor.u32 %v17766_v16, %v12479_v45  ;;  %v13739_v26 = vld [vmem:[%s19479_s30 + $0xe78] sm:$0xf] }
 0x3b5   : > { %10534 = vmatpush.bf16.msra.mxu0 %v12476_v4  ;;  %10547 = vmatpush.bf16.msra.mxu1 %v13916_v9  ;;  %v10307_v25 = vpop.f32.mrf.mxu2  ;;  %v10320_v6 = vpop.f32.mrf.mxu3  ;;  %v14813_v4 = vld [vmem:[%s19479_s30 + $0x1794] sm:$0xf0]  ;;  %v18688_v9 = vld [vmem:[%s19479_s30 + $0x2224] sm:$0xf] }
 0x3b6   : > { %v14816_v15 = vor.u32 %v18328_v27, %v14813_v4  ;;  %v16256_v41 = vor.u32 %v18688_v9, %v16253_v30  ;;  %v18081_v27 = vld [vmem:[%s19479_s30 + $0xf28] sm:$0xf0]  ;;  %v15359_v4 = vld [vmem:[%s19479_s30 + $0x1b20] sm:$0xf] }
 0x3b7   : > { %10559 = vmatpush.bf16.msra.mxu2 %v15536_v17  ;;  %10572 = vmatpush.bf16.msra.mxu3 %v16976_v35  ;;  %v18666_v17 = vld [vmem:[%s19479_s30 + $0x2170] sm:$0xf0]  ;;  %v17519_v35 = vld [vmem:[%s19479_s30 + $0x2c00] sm:$0xf] }
 0x3b8   : > { %v16080_v40 = vor.u32 %v18666_v17, %v16079_v1  ;;  %v18486_v1 = vld [vmem:[%s19479_s30 + $0x1bd0] sm:$0xf0]  ;;  %v16799_v17 = vld [vmem:[%s19479_s30 + $0x2660] sm:$0xf] }
 0x3b9   : > { %10535 = vmatpush.bf16.msra.mxu0 %v12296_v12  ;;  %10548 = vmatpush.bf16.msra.mxu1 %v13736_v43  ;;  %v17520_v12 = vor.u32 %v19026_v22, %v17519_v35  ;;  %v14279_v43 = vld [vmem:[%s19479_s30 + $0x12b0] sm:$0xf]  ;;  %v18846_v35 = vld [vmem:[%s19479_s30 + $0x2710] sm:$0xf0] }
 0x3ba   : > { %v14280_v48 = vor.u32 %v18216_v33, %v14279_v43  ;;  %v16800_v7 = vor.u32 %v18846_v35, %v16799_v17  ;;  %v17834_v35 = vld [vmem:[%s19479_s30 + $0x774] sm:$0xf] }
 0x3bb   : > { %10560 = vmatpush.bf16.msra.mxu2 %v15356_v24  ;;  %10573 = vmatpush.bf16.msra.mxu3 %v16796_v19  ;;  %v18621_v24 = vld [vmem:[%s19479_s30 + $0x2008] sm:$0xf0]  ;;  %v17339_v19 = vld [vmem:[%s19479_s30 + $0x2a98] sm:$0xf] }
 0x3bc   : > { %v15900_v31 = vor.u32 %v18621_v24, %v15899_v44  ;;  %v17340_v51 = vor.u32 %v18981_v46, %v17339_v19  ;;  %v18441_v44 = vld [vmem:[%s19479_s30 + $0x1a68] sm:$0xf0]  ;;  %v16619_v24 = vld [vmem:[%s19479_s30 + $0x24f8] sm:$0xf] }
 0x3bd   : > { %10536 = vmatpush.bf16.msra.mxu0 %v12116_v42  ;;  %10549 = vmatpush.bf16.msra.mxu1 %v13556_v55  ;;  %v18171_v42 = vld [vmem:[%s19479_s30 + $0x11f8] sm:$0xf0]  ;;  %v15719_v55 = vld [vmem:[%s19479_s30 + $0x1df0] sm:$0xf]  ;;  %v18801_v19 = vld [vmem:[%s19479_s30 + $0x25a8] sm:$0xf0] }
 0x3be   : > { %v14100_v32 = vor.u32 %v18171_v42, %v14099_v34  ;;  %v15720_v3 = vor.u32 %v18576_v38, %v15719_v55  ;;  %v16620_v42 = vor.u32 %v18801_v19, %v16619_v24  ;;  %v17924_v55 = vld [vmem:[%s19479_s30 + $0xa44] sm:$0xf]  ;;  %v14641_v38 = vld [vmem:[%s19479_s30 + $0x1634] sm:$0xf0]  ;;  %v12661_v24 = vld [vmem:[%s19479_s30 + $0x6bc] sm:$0xf0] }
 0x3bf   : > { %10561 = vmatpush.bf16.msra.mxu2 %v15176_v59  ;;  %10574 = vmatpush.bf16.msra.mxu3 %v16616_v62  ;;  %v17159_v59 = vld [vmem:[%s19479_s30 + $0x2930] sm:$0xf]  ;;  %v18936_v62 = vld [vmem:[%s19479_s30 + $0x29e0] sm:$0xf0] }
 0x3c0   : > { %v17160_v56 = vor.u32 %v18936_v62, %v17159_v59  ;;  %v14999_v59 = vld [vmem:[%s19479_s30 + $0x1850] sm:$0xf]  ;;  %v18396_v62 = vld [vmem:[%s19479_s30 + $0x1900] sm:$0xf0] }
 0x3c1   : > { %10537 = vmatpush.bf16.msra.mxu0 %v11936_v52  ;;  %10550 = vmatpush.bf16.msra.mxu1 %v13376_v14  ;;  %v10331_v60 = vpop.f32.mrf.mxu0  ;;  %v10344_v58 = vpop.f32.mrf.mxu1  ;;  %v18126_v52 = vld [vmem:[%s19479_s30 + $0x1090] sm:$0xf0]  ;;  %v15539_v14 = vld [vmem:[%s19479_s30 + $0x1c88] sm:$0xf] }
 0x3c2   : > { %v10332_v63 = vadd.f32 %v10331_v60, %v1929_v11  ;;  %v13920_v20 = vor.u32 %v18126_v52, %v13919_v5  ;;  %v11939_v11 = vld [vmem:[%s19479_s30 + $0x68] sm:$0xf]  ;;  %v13201_v60 = vld [vmem:[%s19479_s30 + $0xaf4] sm:$0xf0]  ;;  %v17879_v5 = vld [vmem:[%s19479_s30 + $0x8dc] sm:$0xf] }
 0x3c3   : > { %10562 = vmatpush.bf16.msra.mxu2 %v14996_v21  ;;  %10575 = vmatpush.bf16.msra.mxu3 %v16436_v57  ;;  %v12299_v21 = vld [vmem:[%s19479_s30 + $0x338] sm:$0xf]  ;;  %v17721_v57 = vld [vmem:[%s19479_s30 + $0x3e8] sm:$0xf0]  ;;  %v11940_v45 = vor.u32 %v17631_v23, %v11939_v11  ;;  %v13021_v52 = vld [vmem:[%s19479_s30 + $0x98c] sm:$0xf0] }
 0x3c4   : > { %10538 = vmatmul.bf16.vlgmr.msra.gmra.mxu0 %v19627_v28  ;;  %10551 = vmatmul.bf16.vlgmr.msra.gmra.mxu1 %v19629_v29  ;;  %v10345_v0 = vadd.f32 %v10344_v58, %v10332_v63  ;;  %v12300_v22 = vor.u32 %v17721_v57, %v12299_v21  ;;  %v18284_v58 = vld [vmem:[%s19479_s30 + $0x1584] sm:$0xf]  ;;  %v14819_v21 = vld [vmem:[%s19479_s30 + $0x16e8] sm:$0xf]  ;;  %v18149_v11 = vld [vmem:[%s19479_s30 + $0x114c] sm:$0xf] }
 0x3c5   : > { %10582 = vmatpush.bf16.msrb.mxu0 %v13200_v8  ;;  %10595 = vmatpush.bf16.msrb.mxu1 %v14640_v61  ;;  %v18531_v8 = vld [vmem:[%s19479_s30 + $0x1d38] sm:$0xf0]  ;;  %v16979_v61 = vld [vmem:[%s19479_s30 + $0x27c8] sm:$0xf] }
 0x3c6   : > { %v15540_v25 = vor.u32 %v18531_v8, %v15539_v14  ;;  %v16980_v6 = vor.u32 %v18891_v10, %v16979_v61  ;;  %v18239_v14 = vld [vmem:[%s19479_s30 + $0x141c] sm:$0xf]  ;;  %v15000_v8 = vor.u32 %v18396_v62, %v14999_v59  ;;  %v16259_v57 = vld [vmem:[%s19479_s30 + $0x2228] sm:$0xf]  ;;  %v18104_v62 = vld [vmem:[%s19479_s30 + $0xfe4] sm:$0xf] }
 0x3c7   : > { %10563 = vmatpush.bf16.msra.mxu2 %v14816_v15  ;;  %10576 = vmatpush.bf16.msra.mxu3 %v16256_v41  ;;  %v17676_v15 = vld [vmem:[%s19479_s30 + $0x280] sm:$0xf0]  ;;  %v15360_v41 = vor.u32 %v18486_v1, %v15359_v4  ;;  %v17521_v4 = vld [vmem:[%s19479_s30 + $0x2cb4] sm:$0xf0] }
 0x3c9   : > { %10583 = vmatpush.bf16.msrb.mxu0 %v13020_v36  ;;  %10596 = vmatpush.bf16.msrb.mxu1 %v14460_v37  ;;  %v10333_v9 = vpop.f32.mrf.mxu0  ;;  %v10346_v30 = vpop.f32.mrf.mxu1  ;;  %v13740_v36 = vor.u32 %v18081_v27, %v13739_v26  ;;  %v12119_v37 = vld [vmem:[%s19479_s30 + $0x1d0] sm:$0xf]  ;;  %v16081_v26 = vld [vmem:[%s19479_s30 + $0x2174] sm:$0xf0]  ;;  %v19004_v27 = vld [vmem:[%s19479_s30 + $0x2c04] sm:$0xf] }
 0x3ca   : > { %10564 = vmatmul.bf16.vlgmr.msra.gmra.mxu2 %v19645_v53  ;;  %10577 = vmatmul.bf16.vlgmr.msra.gmra.mxu3 %v19647_v54  ;;  %v13024_v9 = vor.u32 %v17879_v5, %v13021_v52  ;;  %v17699_v5 = vld [vmem:[%s19479_s30 + $0x33c] sm:$0xf]  ;;  %v12301_v52 = vld [vmem:[%s19479_s30 + $0x3ec] sm:$0xf0] }
 0x3cb   : > { %10608 = vmatpush.bf16.msrb.mxu2 %v16080_v40  ;;  %10621 = vmatpush.bf16.msrb.mxu3 %v17520_v12  ;;  %v18036_v40 = vld [vmem:[%s19479_s30 + $0xdc0] sm:$0xf0]  ;;  %v15179_v12 = vld [vmem:[%s19479_s30 + $0x19b8] sm:$0xf] }
 0x3cc   : > { %v15180_v34 = vor.u32 %v18441_v44, %v15179_v12  ;;  %v17341_v12 = vld [vmem:[%s19479_s30 + $0x2b4c] sm:$0xf0]  ;;  %v17789_v44 = vld [vmem:[%s19479_s30 + $0x60c] sm:$0xf] }
 0x3cd   : > { %10584 = vmatpush.bf16.msrb.mxu0 %v12840_v47  ;;  %10597 = vmatpush.bf16.msrb.mxu1 %v14280_v48  ;;  %v10357_v43 = vpop.f32.mrf.mxu2  ;;  %v10370_v33 = vpop.f32.mrf.mxu3  ;;  %v12120_v47 = vor.u32 %v17676_v15, %v12119_v37  ;;  %v13560_v48 = vor.u32 %v18036_v40, %v13559_v39  ;;  %v17524_v37 = vor.u32 %v19004_v27, %v17521_v4  ;;  %v18194_v15 = vld [vmem:[%s19479_s30 + $0x12b4] sm:$0xf]  ;;  %v15901_v39 = vld [vmem:[%s19479_s30 + $0x200c] sm:$0xf0]  ;;  %v18959_v40 = vld [vmem:[%s19479_s30 + $0x2a9c] sm:$0xf] }
 0x3ce   : > { %v10358_v46 = vadd.f32 %v10357_v43, %v10345_v0  ;;  %v17654_v27 = vld [vmem:[%s19479_s30 + $0x1d4] sm:$0xf]  ;;  %v12121_v4 = vld [vmem:[%s19479_s30 + $0x284] sm:$0xf0] }
 0x3cf   : > { %10609 = vmatpush.bf16.msrb.mxu2 %v15900_v31  ;;  %10622 = vmatpush.bf16.msrb.mxu3 %v17340_v51  ;;  %v17991_v31 = vld [vmem:[%s19479_s30 + $0xc58] sm:$0xf0] }
 0x3d0   : > { %v10371_v51 = vadd.f32 %v10370_v33, %v10358_v46  ;;  %v13380_v16 = vor.u32 %v17991_v31, %v13379_v2  ;;  %v17344_v46 = vor.u32 %v18959_v40, %v17341_v12  ;;  %v15721_v31 = vld [vmem:[%s19479_s30 + $0x1ea4] sm:$0xf0]  ;;  %v17609_v40 = vld [vmem:[%s19479_s30 + $0x6c] sm:$0xf]  ;;  %v11941_v12 = vld [vmem:[%s19479_s30 + $0x11c] sm:$0xf0] }
 0x3d1   : > { %10585 = vmatpush.bf16.msrb.mxu0 %v12660_v49  ;;  %10598 = vmatpush.bf16.msrb.mxu1 %v14100_v32  ;;  %v16439_v49 = vld [vmem:[%s19479_s30 + $0x2390] sm:$0xf]  ;;  %v18756_v32 = vld [vmem:[%s19479_s30 + $0x2440] sm:$0xf0] }
 0x3d2   : > { %v11629_v63 = vrot.slane %v10371_v51, 6  ;;  %v16440_v61 = vor.u32 %v18756_v32, %v16439_v49  ;;  %v18914_v51 = vld [vmem:[%s19479_s30 + $0x2934] sm:$0xf]  ;;  %v18509_v49 = vld [vmem:[%s19479_s30 + $0x1c8c] sm:$0xf] }
 0x3d3   : > { %10610 = vmatpush.bf16.msrb.mxu2 %v15720_v3  ;;  %10623 = vmatpush.bf16.msrb.mxu3 %v17160_v56  ;;  %v13204_v3 = vor.u32 %v17924_v55, %v13201_v60  ;;  %v14644_v56 = vor.u32 %v18284_v58, %v14641_v38  ;;  %v17744_v60 = vld [vmem:[%s19479_s30 + $0x4a4] sm:$0xf]  ;;  %v12481_v58 = vld [vmem:[%s19479_s30 + $0x554] sm:$0xf0]  ;;  %v15541_v32 = vld [vmem:[%s19479_s30 + $0x1d3c] sm:$0xf0] }
 0x3d4   : > { %v21524_v0 = vsel %vm11647_vm1, %v21442_v13, %v11629_v63  ;;  %v18351_v13 = vld [vmem:[%s19479_s30 + $0x1798] sm:$0xf0]  ;;  %v13921_v63 = vld [vmem:[%s19479_s30 + $0x1094] sm:$0xf0] }
 0x3d5   : > { %10586 = vmatpush.bf16.msrb.mxu0 %v12480_v18  ;;  %10599 = vmatpush.bf16.msrb.mxu1 %v13920_v20  ;;  %v10359_v10 = vpop.f32.mrf.mxu2  ;;  %v10372_v18 = vpop.f32.mrf.mxu3  ;;  %v14461_v20 = vld [vmem:[%s19479_s30 + $0x14cc] sm:$0xf0]  ;;  %v14820_v1 = vor.u32 %v18351_v13, %v14819_v21  ;;  %v15361_v13 = vld [vmem:[%s19479_s30 + $0x1bd4] sm:$0xf0] }
 0x3d6   : > { %v14464_v30 = vor.u32 %v18239_v14, %v14461_v20  ;;  %v15544_v14 = vor.u32 %v18509_v49, %v15541_v32  ;;  %v13741_v10 = vld [vmem:[%s19479_s30 + $0xf2c] sm:$0xf0]  ;;  %v18464_v18 = vld [vmem:[%s19479_s30 + $0x1b24] sm:$0xf] }
 0x3d7   : > { %10611 = vmatpush.bf16.msrb.mxu2 %v15540_v25  ;;  %10624 = vmatpush.bf16.msrb.mxu3 %v16980_v6  ;;  %v18711_v25 = vld [vmem:[%s19479_s30 + $0x22d8] sm:$0xf0]  ;;  %v18644_v6 = vld [vmem:[%s19479_s30 + $0x20c4] sm:$0xf] }
 0x3d8   : > { %v16260_v17 = vor.u32 %v18711_v25, %v16259_v57  ;;  %v18824_v57 = vld [vmem:[%s19479_s30 + $0x2664] sm:$0xf]  ;;  %v16801_v25 = vld [vmem:[%s19479_s30 + $0x2714] sm:$0xf0] }
 0x3d9   : > { %10587 = vmatpush.bf16.msrb.mxu0 %v12300_v22  ;;  %10600 = vmatpush.bf16.msrb.mxu1 %v13740_v36  ;;  %v12841_v22 = vld [vmem:[%s19479_s30 + $0x824] sm:$0xf0]  ;;  %v16084_v36 = vor.u32 %v18644_v6, %v16081_v26  ;;  %v12304_v6 = vor.u32 %v17699_v5, %v12301_v52  ;;  %v18689_v5 = vld [vmem:[%s19479_s30 + $0x222c] sm:$0xf]  ;;  %v16261_v52 = vld [vmem:[%s19479_s30 + $0x22dc] sm:$0xf0] }
 0x3da   : > { %v12844_v43 = vor.u32 %v17834_v35, %v12841_v22  ;;  %v18419_v35 = vld [vmem:[%s19479_s30 + $0x19bc] sm:$0xf] }
 0x3db   : > { %10612 = vmatpush.bf16.msrb.mxu2 %v15360_v41  ;;  %10625 = vmatpush.bf16.msrb.mxu3 %v16800_v7  ;;  %v14281_v41 = vld [vmem:[%s19479_s30 + $0x1364] sm:$0xf0]  ;;  %v18599_v7 = vld [vmem:[%s19479_s30 + $0x1f5c] sm:$0xf] }
 0x3dc   : > { %v14284_v33 = vor.u32 %v18194_v15, %v14281_v41  ;;  %v15904_v19 = vor.u32 %v18599_v7, %v15901_v39  ;;  %v18779_v15 = vld [vmem:[%s19479_s30 + $0x24fc] sm:$0xf]  ;;  %v16621_v41 = vld [vmem:[%s19479_s30 + $0x25ac] sm:$0xf0]  ;;  %v12124_v7 = vor.u32 %v17654_v27, %v12121_v4  ;;  %v14287_v27 = vld [vmem:[%s19479_s30 + $0x12b8] sm:$0xf] }
 0x3dd   : > { %10588 = vmatpush.bf16.msrb.mxu0 %v12120_v47  ;;  %10601 = vmatpush.bf16.msrb.mxu1 %v13560_v48  ;;  %v14101_v47 = vld [vmem:[%s19479_s30 + $0x11fc] sm:$0xf0]  ;;  %v18554_v48 = vld [vmem:[%s19479_s30 + $0x1df4] sm:$0xf]  ;;  %v18217_v4 = vld [vmem:[%s19479_s30 + $0x1368] sm:$0xf0] }
 0x3de   : > { %v14104_v55 = vor.u32 %v18149_v11, %v14101_v47  ;;  %v15724_v38 = vor.u32 %v18554_v48, %v15721_v31  ;;  %v14647_v11 = vld [vmem:[%s19479_s30 + $0x1588] sm:$0xf]  ;;  %v18307_v47 = vld [vmem:[%s19479_s30 + $0x1638] sm:$0xf0]  ;;  %v18374_v48 = vld [vmem:[%s19479_s30 + $0x1854] sm:$0xf] }
 0x3df   : > { %10613 = vmatpush.bf16.msrb.mxu2 %v15180_v34  ;;  %10626 = vmatpush.bf16.msrb.mxu3 %v16620_v42  ;;  %v17161_v34 = vld [vmem:[%s19479_s30 + $0x29e4] sm:$0xf0]  ;;  %v12664_v42 = vor.u32 %v17789_v44, %v12661_v24  ;;  %v16624_v44 = vor.u32 %v18779_v15, %v16621_v41  ;;  %v13381_v24 = vld [vmem:[%s19479_s30 + $0xc5c] sm:$0xf0]  ;;  %v14288_v15 = vor.u32 %v18217_v4, %v14287_v27  ;;  %v12667_v41 = vld [vmem:[%s19479_s30 + $0x610] sm:$0xf] }
 0x3e0   : > { %v17164_v59 = vor.u32 %v18914_v51, %v17161_v34  ;;  %v15001_v31 = vld [vmem:[%s19479_s30 + $0x1904] sm:$0xf0]  ;;  %v18734_v51 = vld [vmem:[%s19479_s30 + $0x2394] sm:$0xf] }
 0x3e1   : > { %10589 = vmatpush.bf16.msrb.mxu0 %v11940_v45  ;;  %10602 = vmatpush.bf16.msrb.mxu1 %v13380_v16  ;;  %v21553_v23 = vpop.f32.mrf.mxu0  ;;  %v21555_v2 = vpop.f32.mrf.mxu1  ;;  %v18869_v45 = vld [vmem:[%s19479_s30 + $0x27cc] sm:$0xf]  ;;  %v16981_v16 = vld [vmem:[%s19479_s30 + $0x287c] sm:$0xf0]  ;;  %v16441_v34 = vld [vmem:[%s19479_s30 + $0x2444] sm:$0xf0] }
 0x3e2   : > { %v16444_v49 = vor.u32 %v18734_v51, %v16441_v34  ;;  %v12487_v34 = vld [vmem:[%s19479_s30 + $0x4a8] sm:$0xf] }
 0x3e3   : > { %10614 = vmatpush.bf16.msrb.mxu2 %v15000_v8  ;;  %10627 = vmatpush.bf16.msrb.mxu3 %v16440_v61  ;;  %v16984_v8 = vor.u32 %v18869_v45, %v16981_v16  ;;  %v18059_v61 = vld [vmem:[%s19479_s30 + $0xe7c] sm:$0xf]  ;;  %v18262_v16 = vld [vmem:[%s19479_s30 + $0x14d0] sm:$0xf0] }
 0x3e4   : > { %10590 = vmatmul.bf16.vlgmr.msrb.gmra.mxu0 %v19627_v28  ;;  %10603 = vmatmul.bf16.vlgmr.msrb.gmra.mxu1 %v19629_v29  ;;  %v13744_v26 = vor.u32 %v18059_v61, %v13741_v10  ;;  %v17527_v61 = vld [vmem:[%s19479_s30 + $0x2c08] sm:$0xf]  ;;  %v19027_v10 = vld [vmem:[%s19479_s30 + $0x2cb8] sm:$0xf0] }
 0x3e5   : > { %10634 = vmatpush.bf16.msra.mxu0 %v13204_v3  ;;  %10647 = vmatpush.bf16.msra.mxu1 %v14644_v56  ;;  %v12484_v3 = vor.u32 %v17744_v60, %v12481_v58  ;;  %v13924_v56 = vor.u32 %v18104_v62, %v13921_v63  ;;  %v14648_v58 = vor.u32 %v18307_v47, %v14647_v11  ;;  %v14467_v62 = vld [vmem:[%s19479_s30 + $0x1420] sm:$0xf]  ;;  %v18937_v11 = vld [vmem:[%s19479_s30 + $0x29e8] sm:$0xf0] }
 0x3e6   : > { %v15004_v63 = vor.u32 %v18374_v48, %v15001_v31  ;;  %v1931_v48 = vperm.slane %v21402_v50, 7 }
 0x3e7   : > { %10615 = vmatpush.bf16.msrb.mxu2 %v14820_v1  ;;  %10628 = vmatpush.bf16.msrb.mxu3 %v16260_v17  ;;  %v18014_v1 = vld [vmem:[%s19479_s30 + $0xd14] sm:$0xf]  ;;  %v13561_v17 = vld [vmem:[%s19479_s30 + $0xdc4] sm:$0xf0] }
 0x3e8   : > { %v13564_v39 = vor.u32 %v18014_v1, %v13561_v17  ;;  %v17347_v1 = vld [vmem:[%s19479_s30 + $0x2aa0] sm:$0xf]  ;;  %v18982_v17 = vld [vmem:[%s19479_s30 + $0x2b50] sm:$0xf0] }
 0x3e9   : > { %10635 = vmatpush.bf16.msra.mxu0 %v13024_v9  ;;  %10648 = vmatpush.bf16.msra.mxu1 %v14464_v30  ;;  %v10385_v20 = vpop.f32.mrf.mxu0  ;;  %v10398_v21 = vpop.f32.mrf.mxu1  ;;  %v15364_v9 = vor.u32 %v18464_v18, %v15361_v13  ;;  %v16804_v30 = vor.u32 %v18824_v57, %v16801_v25  ;;  %v16264_v13 = vor.u32 %v18689_v5, %v16261_v52  ;;  %v12847_v57 = vld [vmem:[%s19479_s30 + $0x778] sm:$0xf]  ;;  %v17857_v25 = vld [vmem:[%s19479_s30 + $0x828] sm:$0xf0]  ;;  %v13747_v52 = vld [vmem:[%s19479_s30 + $0xe80] sm:$0xf] }
 0x3ea   : > { %10616 = vmatmul.bf16.vlgmr.msrb.gmra.mxu2 %v19645_v53  ;;  %10629 = vmatmul.bf16.vlgmr.msrb.gmra.mxu3 %v19647_v54  ;;  %v14468_v20 = vor.u32 %v18262_v16, %v14467_v62  ;;  %v16987_v62 = vld [vmem:[%s19479_s30 + $0x27d0] sm:$0xf]  ;;  %v17722_v16 = vld [vmem:[%s19479_s30 + $0x3f0] sm:$0xf0] }
 0x3eb   : > { %10660 = vmatpush.bf16.msra.mxu2 %v16084_v36  ;;  %10673 = vmatpush.bf16.msra.mxu3 %v17524_v37  ;;  %v15181_v37 = vld [vmem:[%s19479_s30 + $0x1a6c] sm:$0xf0] }
 0x3ed   : > { %10636 = vmatpush.bf16.msra.mxu0 %v12844_v43  ;;  %10649 = vmatpush.bf16.msra.mxu1 %v14284_v33  ;;  %v21583_v22 = vpop.f32.mrf.mxu2  ;;  %v21585_v36 = vpop.f32.mrf.mxu3  ;;  %v17969_v43 = vld [vmem:[%s19479_s30 + $0xbac] sm:$0xf]  ;;  %v15184_v33 = vor.u32 %v18419_v35, %v15181_v37  ;;  %v1930_v35 = vperm.slane %v21402_v50, 6  ;;  %v12848_v37 = vor.u32 %v17857_v25, %v12847_v57  ;;  %v12127_v25 = vld [vmem:[%s19479_s30 + $0x1d8] sm:$0xf] }
 0x3ef   : > { %10661 = vmatpush.bf16.msra.mxu2 %v15904_v19  ;;  %10674 = vmatpush.bf16.msra.mxu3 %v17344_v46  ;;  %v13207_v19 = vld [vmem:[%s19479_s30 + $0xa48] sm:$0xf]  ;;  %v17947_v46 = vld [vmem:[%s19479_s30 + $0xaf8] sm:$0xf0]  ;;  %v10384_v47 = vadd.f32 %v21553_v23, %v1930_v35  ;;  %v18532_v23 = vld [vmem:[%s19479_s30 + $0x1d40] sm:$0xf0] }
 0x3f0   : > { %v13208_v60 = vor.u32 %v17947_v46, %v13207_v19  ;;  %v18577_v19 = vld [vmem:[%s19479_s30 + $0x1ea8] sm:$0xf0]  ;;  %v17167_v46 = vld [vmem:[%s19479_s30 + $0x2938] sm:$0xf]  ;;  %v18442_v35 = vld [vmem:[%s19479_s30 + $0x1a70] sm:$0xf0] }
 0x3f1   : > { %10637 = vmatpush.bf16.msra.mxu0 %v12664_v42  ;;  %10650 = vmatpush.bf16.msra.mxu1 %v14104_v55  ;;  %v11944_v42 = vor.u32 %v17609_v40, %v11941_v12  ;;  %v13384_v55 = vor.u32 %v17969_v43, %v13381_v24  ;;  %v17348_v40 = vor.u32 %v18982_v17, %v17347_v1  ;;  %v14107_v12 = vld [vmem:[%s19479_s30 + $0x1150] sm:$0xf]  ;;  %v18172_v43 = vld [vmem:[%s19479_s30 + $0x1200] sm:$0xf0] }
 0x3f2   : > { %v14108_v51 = vor.u32 %v18172_v43, %v14107_v12  ;;  %v10397_v50 = vadd.f32 %v21555_v2, %v10384_v47  ;;  %v17632_v43 = vld [vmem:[%s19479_s30 + $0x120] sm:$0xf0]  ;;  %v18285_v47 = vld [vmem:[%s19479_s30 + $0x158c] sm:$0xf] }
 0x3f3   : > { %10662 = vmatpush.bf16.msra.mxu2 %v15724_v38  ;;  %10675 = vmatpush.bf16.msra.mxu3 %v17164_v59  ;;  %v13027_v38 = vld [vmem:[%s19479_s30 + $0x8e0] sm:$0xf]  ;;  %v17902_v59 = vld [vmem:[%s19479_s30 + $0x990] sm:$0xf0] }
 0x3f4   : > { %v13028_v18 = vor.u32 %v17902_v59, %v13027_v38  ;;  %v18127_v38 = vld [vmem:[%s19479_s30 + $0x1098] sm:$0xf0]  ;;  %v15547_v59 = vld [vmem:[%s19479_s30 + $0x1c90] sm:$0xf] }
 0x3f5   : > { %10638 = vmatpush.bf16.msra.mxu0 %v12484_v3  ;;  %10651 = vmatpush.bf16.msra.mxu1 %v13924_v56  ;;  %v10411_v32 = vpop.f32.mrf.mxu2  ;;  %v10424_v45 = vpop.f32.mrf.mxu3  ;;  %v18329_v3 = vld [vmem:[%s19479_s30 + $0x16ec] sm:$0xf]  ;;  %v14821_v56 = vld [vmem:[%s19479_s30 + $0x179c] sm:$0xf0] }
 0x3f6   : > { %v14824_v21 = vor.u32 %v18329_v3, %v14821_v56  ;;  %v12307_v45 = vld [vmem:[%s19479_s30 + $0x340] sm:$0xf]  ;;  %v15548_v56 = vor.u32 %v18532_v23, %v15547_v59  ;;  %v17880_v59 = vld [vmem:[%s19479_s30 + $0x8e4] sm:$0xf] }
 0x3f7   : > { %10663 = vmatpush.bf16.msra.mxu2 %v15544_v14  ;;  %10676 = vmatpush.bf16.msra.mxu3 %v16984_v8  ;;  %v16087_v14 = vld [vmem:[%s19479_s30 + $0x20c8] sm:$0xf]  ;;  %v18667_v8 = vld [vmem:[%s19479_s30 + $0x2178] sm:$0xf0] }
 0x3f9   : > { %10639 = vmatpush.bf16.msra.mxu0 %v12304_v6  ;;  %10652 = vmatpush.bf16.msra.mxu1 %v13744_v26  ;;  %v16088_v6 = vor.u32 %v18667_v8, %v16087_v14  ;;  %v17528_v26 = vor.u32 %v19027_v10, %v17527_v61  ;;  %v18082_v14 = vld [vmem:[%s19479_s30 + $0xf30] sm:$0xf0]  ;;  %v15367_v8 = vld [vmem:[%s19479_s30 + $0x1b28] sm:$0xf]  ;;  %v18487_v10 = vld [vmem:[%s19479_s30 + $0x1bd8] sm:$0xf0] }
 0x3fa   : > { %v13748_v57 = vor.u32 %v18082_v14, %v13747_v52  ;;  %v15368_v27 = vor.u32 %v18487_v10, %v15367_v8  ;;  %v14827_v52 = vld [vmem:[%s19479_s30 + $0x16f0] sm:$0xf]  ;;  %v18352_v14 = vld [vmem:[%s19479_s30 + $0x17a0] sm:$0xf0]  ;;  %v16089_v10 = vld [vmem:[%s19479_s30 + $0x217c] sm:$0xf0] }
 0x3fb   : > { %10664 = vmatpush.bf16.msra.mxu2 %v15364_v9  ;;  %10677 = vmatpush.bf16.msra.mxu3 %v16804_v30  ;;  %v15907_v9 = vld [vmem:[%s19479_s30 + $0x1f60] sm:$0xf]  ;;  %v18622_v30 = vld [vmem:[%s19479_s30 + $0x2010] sm:$0xf0]  ;;  %v16267_v8 = vld [vmem:[%s19479_s30 + $0x2230] sm:$0xf] }
 0x3fd   : > { %10640 = vmatpush.bf16.msra.mxu0 %v12124_v7  ;;  %10653 = vmatpush.bf16.msra.mxu1 %v13564_v39  ;;  %v17812_v7 = vld [vmem:[%s19479_s30 + $0x6c0] sm:$0xf0]  ;;  %v15908_v39 = vor.u32 %v18622_v30, %v15907_v9  ;;  %v13567_v9 = vld [vmem:[%s19479_s30 + $0xd18] sm:$0xf]  ;;  %v18037_v30 = vld [vmem:[%s19479_s30 + $0xdc8] sm:$0xf0] }
 0x3fe   : > { %v12668_v31 = vor.u32 %v17812_v7, %v12667_v41  ;;  %v13568_v12 = vor.u32 %v18037_v30, %v13567_v9  ;;  %v18195_v9 = vld [vmem:[%s19479_s30 + $0x12bc] sm:$0xf]  ;;  %v14289_v30 = vld [vmem:[%s19479_s30 + $0x136c] sm:$0xf0] }
 0x3ff   : > { %10665 = vmatpush.bf16.msra.mxu2 %v15184_v33  ;;  %10678 = vmatpush.bf16.msra.mxu3 %v16624_v44  ;;  %v15727_v33 = vld [vmem:[%s19479_s30 + $0x1df8] sm:$0xf] }
 0x401   : > { %10641 = vmatpush.bf16.msra.mxu0 %v11944_v42  ;;  %10654 = vmatpush.bf16.msra.mxu1 %v13384_v55  ;;  %v10435_v44 = vpop.f32.mrf.mxu0  ;;  %v10448_v24 = vpop.f32.mrf.mxu1  ;;  %v17767_v42 = vld [vmem:[%s19479_s30 + $0x558] sm:$0xf0]  ;;  %v15728_v55 = vor.u32 %v18577_v19, %v15727_v33  ;;  %v13387_v33 = vld [vmem:[%s19479_s30 + $0xbb0] sm:$0xf] }
 0x402   : > { %v10436_v3 = vadd.f32 %v10435_v44, %v1931_v48  ;;  %v17992_v44 = vld [vmem:[%s19479_s30 + $0xc60] sm:$0xf0]  ;;  %v14649_v48 = vld [vmem:[%s19479_s30 + $0x163c] sm:$0xf0] }
 0x403   : > { %10666 = vmatpush.bf16.msra.mxu2 %v15004_v63  ;;  %10679 = vmatpush.bf16.msra.mxu3 %v16444_v49  ;;  %v18892_v63 = vld [vmem:[%s19479_s30 + $0x2880] sm:$0xf0]  ;;  %v12488_v49 = vor.u32 %v17767_v42, %v12487_v34 }
 0x404   : > { %10642 = vmatmul.bf16.vlgmr.msra.gmra.mxu0 %v19627_v28  ;;  %10655 = vmatmul.bf16.vlgmr.msra.gmra.mxu1 %v19629_v29  ;;  %v16988_v5 = vor.u32 %v18892_v63, %v16987_v62  ;;  %v14652_v63 = vor.u32 %v18285_v47, %v14649_v48 }
 0x405   : > { %10686 = vmatpush.bf16.msrb.mxu0 %v13208_v60  ;;  %10699 = vmatpush.bf16.msrb.mxu1 %v14648_v58  ;;  %v17168_v60 = vor.u32 %v18937_v11, %v17167_v46  ;;  %v13927_v58 = vld [vmem:[%s19479_s30 + $0xfe8] sm:$0xf]  ;;  %v17925_v46 = vld [vmem:[%s19479_s30 + $0xa4c] sm:$0xf]  ;;  %v13209_v11 = vld [vmem:[%s19479_s30 + $0xafc] sm:$0xf0] }
 0x406   : > { %v13928_v32 = vor.u32 %v18127_v38, %v13927_v58  ;;  %v13388_v38 = vor.u32 %v17992_v44, %v13387_v33  ;;  %v13212_v62 = vor.u32 %v17925_v46, %v13209_v11  ;;  %v14109_v33 = vld [vmem:[%s19479_s30 + $0x1204] sm:$0xf0]  ;;  %v18555_v44 = vld [vmem:[%s19479_s30 + $0x1dfc] sm:$0xf]  ;;  %v17169_v11 = vld [vmem:[%s19479_s30 + $0x29ec] sm:$0xf0] }
 0x407   : > { %10667 = vmatpush.bf16.msra.mxu2 %v14824_v21  ;;  %10680 = vmatpush.bf16.msra.mxu3 %v16264_v13  ;;  %v10410_v21 = vadd.f32 %v21583_v22, %v10397_v50  ;;  %v12308_v13 = vor.u32 %v17722_v16, %v12307_v45  ;;  %v15187_v22 = vld [vmem:[%s19479_s30 + $0x19c0] sm:$0xf]  ;;  %v13029_v50 = vld [vmem:[%s19479_s30 + $0x994] sm:$0xf0]  ;;  %v18915_v46 = vld [vmem:[%s19479_s30 + $0x293c] sm:$0xf] }
 0x409   : > { %10687 = vmatpush.bf16.msrb.mxu0 %v13028_v18  ;;  %10700 = vmatpush.bf16.msrb.mxu1 %v14468_v20  ;;  %v10437_v2 = vpop.f32.mrf.mxu0  ;;  %v10450_v61 = vpop.f32.mrf.mxu1  ;;  %v16807_v18 = vld [vmem:[%s19479_s30 + $0x2668] sm:$0xf]  ;;  %v18847_v20 = vld [vmem:[%s19479_s30 + $0x2718] sm:$0xf0]  ;;  %v10423_v41 = vadd.f32 %v21585_v36, %v10410_v21  ;;  %v15188_v36 = vor.u32 %v18442_v35, %v15187_v22  ;;  %v18600_v22 = vld [vmem:[%s19479_s30 + $0x1f64] sm:$0xf] }
 0x40a   : > { %10668 = vmatmul.bf16.vlgmr.msra.gmra.mxu2 %v19645_v53  ;;  %10681 = vmatmul.bf16.vlgmr.msra.gmra.mxu3 %v19647_v54  ;;  %v16808_v4 = vor.u32 %v18847_v20, %v16807_v18  ;;  %v18712_v2 = vld [vmem:[%s19479_s30 + $0x22e0] sm:$0xf0]  ;;  %v18645_v61 = vld [vmem:[%s19479_s30 + $0x20cc] sm:$0xf]  ;;  %v17529_v20 = vld [vmem:[%s19479_s30 + $0x2cbc] sm:$0xf0] }
 0x40b   : > { %10712 = vmatpush.bf16.msrb.mxu2 %v16088_v6  ;;  %10725 = vmatpush.bf16.msrb.mxu3 %v17528_v26  ;;  %v17677_v6 = vld [vmem:[%s19479_s30 + $0x288] sm:$0xf0]  ;;  %v10449_v26 = vadd.f32 %v10448_v24, %v10436_v3  ;;  %v11630_v34 = vrot.slane %v10423_v41, 4  ;;  %v17349_v35 = vld [vmem:[%s19479_s30 + $0x2b54] sm:$0xf0]  ;;  %v14292_v41 = vor.u32 %v18195_v9, %v14289_v30 }
 0x40c   : > { %v19005_v18 = vld [vmem:[%s19479_s30 + $0x2c0c] sm:$0xf]  ;;  %v15189_v30 = vld [vmem:[%s19479_s30 + $0x1a74] sm:$0xf0] }
 0x40d   : > { %10688 = vmatpush.bf16.msrb.mxu0 %v12848_v37  ;;  %10701 = vmatpush.bf16.msrb.mxu1 %v14288_v15  ;;  %v10461_v1 = vpop.f32.mrf.mxu2  ;;  %v10474_v17 = vpop.f32.mrf.mxu3  ;;  %v16627_v37 = vld [vmem:[%s19479_s30 + $0x2500] sm:$0xf]  ;;  %v18802_v15 = vld [vmem:[%s19479_s30 + $0x25b0] sm:$0xf0] }
 0x40e   : > { %v10462_v7 = vadd.f32 %v10461_v1, %v10449_v26  ;;  %v16628_v19 = vor.u32 %v18802_v15, %v16627_v37  ;;  %v21695_v26 = vld [vmem:[%s19921_s6 + $0x18] sm:$0xff] }
 0x40f   : > { %10713 = vmatpush.bf16.msrb.mxu2 %v15908_v39  ;;  %10726 = vmatpush.bf16.msrb.mxu3 %v17348_v40  ;;  %v11947_v39 = vld [vmem:[%s19479_s30 + $0x70] sm:$0xf]  ;;  %v12128_v40 = vor.u32 %v17677_v6, %v12127_v25  ;;  %v17835_v25 = vld [vmem:[%s19479_s30 + $0x77c] sm:$0xf]  ;;  %v15909_v1 = vld [vmem:[%s19479_s30 + $0x2014] sm:$0xf0] }
 0x410   : > { %v10475_v24 = vadd.f32 %v10474_v17, %v10462_v7  ;;  %v11948_v58 = vor.u32 %v17632_v43, %v11947_v39  ;;  %v12849_v6 = vld [vmem:[%s19479_s30 + $0x82c] sm:$0xf0]  ;;  %v18960_v17 = vld [vmem:[%s19479_s30 + $0x2aa4] sm:$0xf]  ;;  %v1932_v37 = vperm.slane %v21695_v26, 0 }
 0x411   : > { %10689 = vmatpush.bf16.msrb.mxu0 %v12668_v31  ;;  %10702 = vmatpush.bf16.msrb.mxu1 %v14108_v51  ;;  %v15007_v31 = vld [vmem:[%s19479_s30 + $0x1858] sm:$0xf]  ;;  %v18397_v51 = vld [vmem:[%s19479_s30 + $0x1908] sm:$0xf0]  ;;  %v12852_v15 = vor.u32 %v17835_v25, %v12849_v6  ;;  %v17790_v7 = vld [vmem:[%s19479_s30 + $0x614] sm:$0xf] }
 0x412   : > { %v11631_v42 = vrot.slane %v10475_v24, 2  ;;  %v15008_v16 = vor.u32 %v18397_v51, %v15007_v31  ;;  %v12669_v39 = vld [vmem:[%s19479_s30 + $0x6c4] sm:$0xf0]  ;;  %v18150_v43 = vld [vmem:[%s19479_s30 + $0x1154] sm:$0xf] }
 0x413   : > { %10714 = vmatpush.bf16.msrb.mxu2 %v15728_v55  ;;  %10727 = vmatpush.bf16.msrb.mxu3 %v17168_v60  ;;  %v16447_v55 = vld [vmem:[%s19479_s30 + $0x2398] sm:$0xf]  ;;  %v18757_v60 = vld [vmem:[%s19479_s30 + $0x2448] sm:$0xf0]  ;;  %v12672_v48 = vor.u32 %v17790_v7, %v12669_v39  ;;  %v14112_v31 = vor.u32 %v18150_v43, %v14109_v33  ;;  %v18015_v25 = vld [vmem:[%s19479_s30 + $0xd1c] sm:$0xf] }
 0x414   : > { %v11666_v23 = vsel %vm11649_vm2, %v11630_v34, %v11631_v42  ;;  %v16448_v3 = vor.u32 %v18757_v60, %v16447_v55  ;;  %v17745_v51 = vld [vmem:[%s19479_s30 + $0x4ac] sm:$0xf]  ;;  %v12489_v34 = vld [vmem:[%s19479_s30 + $0x55c] sm:$0xf0]  ;;  %v17172_v60 = vor.u32 %v18915_v46, %v17169_v11  ;;  %v13569_v6 = vld [vmem:[%s19479_s30 + $0xdcc] sm:$0xf0] }
 0x415   : > { %10690 = vmatpush.bf16.msrb.mxu0 %v12488_v49  ;;  %10703 = vmatpush.bf16.msrb.mxu1 %v13928_v32  ;;  %v18240_v49 = vld [vmem:[%s19479_s30 + $0x1424] sm:$0xf]  ;;  %v14469_v32 = vld [vmem:[%s19479_s30 + $0x14d4] sm:$0xf0]  ;;  %v11667_v45 = vsel %vm11651_vm3, %v21524_v0, %v11666_v23  ;;  %v13032_v0 = vor.u32 %v17880_v59, %v13029_v50  ;;  %v18510_v59 = vld [vmem:[%s19479_s30 + $0x1c94] sm:$0xf]  ;;  %v12492_v50 = vor.u32 %v17745_v51, %v12489_v34 }
 0x416   : > { %11699 = vst [vmem:[%s20170_s21 + $0x28] sm:$0xff] %v11667_v45  ;;  %v14472_v21 = vor.u32 %v18240_v49, %v14469_v32  ;;  %v15549_v23 = vld [vmem:[%s19479_s30 + $0x1d44] sm:$0xf0]  ;;  %v17700_v32 = vld [vmem:[%s19479_s30 + $0x344] sm:$0xf] }
 0x417   : > { %10715 = vmatpush.bf16.msrb.mxu2 %v15548_v56  ;;  %10728 = vmatpush.bf16.msrb.mxu3 %v16988_v5  ;;  %v10463_v56 = vpop.f32.mrf.mxu2  ;;  %v10476_v5 = vpop.f32.mrf.mxu3  ;;  %v12309_v45 = vld [vmem:[%s19479_s30 + $0x3f4] sm:$0xf0]  ;;  %v17970_v7 = vld [vmem:[%s19479_s30 + $0xbb4] sm:$0xf]  ;;  %v13389_v43 = vld [vmem:[%s19479_s30 + $0xc64] sm:$0xf0] }
 0x418   : > { %v18060_v56 = vld [vmem:[%s19479_s30 + $0xe84] sm:$0xf]  ;;  %v13749_v5 = vld [vmem:[%s19479_s30 + $0xf34] sm:$0xf0]  ;;  %v13215_v33 = vld [vmem:[%s19479_s30 + $0xa50] sm:$0xf] }
 0x419   : > { %10691 = vmatpush.bf16.msrb.mxu0 %v12308_v13  ;;  %10704 = vmatpush.bf16.msrb.mxu1 %v13748_v57  ;;  %v14828_v13 = vor.u32 %v18352_v14, %v14827_v52  ;;  %v16268_v57 = vor.u32 %v18712_v2, %v16267_v8  ;;  %v18465_v52 = vld [vmem:[%s19479_s30 + $0x1b2c] sm:$0xf]  ;;  %v15369_v2 = vld [vmem:[%s19479_s30 + $0x1bdc] sm:$0xf0]  ;;  %v15009_v46 = vld [vmem:[%s19479_s30 + $0x190c] sm:$0xf0] }
 0x41a   : > { %v18735_v11 = vld [vmem:[%s19479_s30 + $0x239c] sm:$0xf] }
 0x41b   : > { %10716 = vmatpush.bf16.msrb.mxu2 %v15368_v27  ;;  %10729 = vmatpush.bf16.msrb.mxu3 %v16808_v4  ;;  %v16092_v27 = vor.u32 %v18645_v61, %v16089_v10  ;;  %v17532_v4 = vor.u32 %v19005_v18, %v17529_v20  ;;  %v18825_v61 = vld [vmem:[%s19479_s30 + $0x266c] sm:$0xf]  ;;  %v16809_v10 = vld [vmem:[%s19479_s30 + $0x271c] sm:$0xf0]  ;;  %v12312_v18 = vor.u32 %v17700_v32, %v12309_v45  ;;  %v16269_v32 = vld [vmem:[%s19479_s30 + $0x22e4] sm:$0xf0] }
 0x41c   : > { %v13752_v20 = vor.u32 %v18060_v56, %v13749_v5  ;;  %v16095_v45 = vld [vmem:[%s19479_s30 + $0x20d0] sm:$0xf]  ;;  %v19028_v56 = vld [vmem:[%s19479_s30 + $0x2cc0] sm:$0xf0] }
 0x41d   : > { %10692 = vmatpush.bf16.msrb.mxu0 %v12128_v40  ;;  %10705 = vmatpush.bf16.msrb.mxu1 %v13568_v12  ;;  %v15912_v40 = vor.u32 %v18600_v22, %v15909_v1  ;;  %v17352_v12 = vor.u32 %v18960_v17, %v17349_v35  ;;  %v18780_v22 = vld [vmem:[%s19479_s30 + $0x2504] sm:$0xf]  ;;  %v16629_v1 = vld [vmem:[%s19479_s30 + $0x25b4] sm:$0xf0] }
 0x41f   : > { %10717 = vmatpush.bf16.msrb.mxu2 %v15188_v36  ;;  %10730 = vmatpush.bf16.msrb.mxu3 %v16628_v19  ;;  %v15729_v19 = vld [vmem:[%s19479_s30 + $0x1eac] sm:$0xf0] }
 0x420   : > { %v15732_v55 = vor.u32 %v18555_v44, %v15729_v19  ;;  %v17948_v44 = vld [vmem:[%s19479_s30 + $0xb00] sm:$0xf0]  ;;  %v18375_v19 = vld [vmem:[%s19479_s30 + $0x185c] sm:$0xf] }
 0x421   : > { %10693 = vmatpush.bf16.msrb.mxu0 %v11948_v58  ;;  %10706 = vmatpush.bf16.msrb.mxu1 %v13388_v38  ;;  %v10487_v24 = vpop.f32.mrf.mxu0  ;;  %v10500_v36 = vpop.f32.mrf.mxu1  ;;  %v18105_v58 = vld [vmem:[%s19479_s30 + $0xfec] sm:$0xf]  ;;  %v13929_v38 = vld [vmem:[%s19479_s30 + $0x109c] sm:$0xf0]  ;;  %v13216_v51 = vor.u32 %v17948_v44, %v13215_v33 }
 0x422   : > { %v10488_v47 = vadd.f32 %v10487_v24, %v1932_v37  ;;  %v13932_v49 = vor.u32 %v18105_v58, %v13929_v38  ;;  %v13572_v37 = vor.u32 %v18015_v25, %v13569_v6  ;;  %v14655_v24 = vld [vmem:[%s19479_s30 + $0x1590] sm:$0xf]  ;;  %v15012_v58 = vor.u32 %v18375_v19, %v15009_v46  ;;  %v18983_v25 = vld [vmem:[%s19479_s30 + $0x2b58] sm:$0xf0] }
 0x423   : > { %10718 = vmatpush.bf16.msrb.mxu2 %v15008_v16  ;;  %10731 = vmatpush.bf16.msrb.mxu3 %v16448_v3  ;;  %v15552_v16 = vor.u32 %v18510_v59, %v15549_v23  ;;  %v1933_v6 = vperm.slane %v21695_v26, 1 }
 0x424   : > { %10694 = vmatmul.bf16.vlgmr.msrb.gmra.mxu0 %v19627_v28  ;;  %10707 = vmatmul.bf16.vlgmr.msrb.gmra.mxu1 %v19629_v29  ;;  %v10501_v42 = vadd.f32 %v10500_v36, %v10488_v47  ;;  %v18308_v36 = vld [vmem:[%s19479_s30 + $0x1640] sm:$0xf0]  ;;  %v16449_v47 = vld [vmem:[%s19479_s30 + $0x244c] sm:$0xf0] }
 0x425   : > { %10738 = vmatpush.bf16.msra.mxu0 %v13212_v62  ;;  %10751 = vmatpush.bf16.msra.mxu1 %v14652_v63  ;;  %v18870_v62 = vld [vmem:[%s19479_s30 + $0x27d4] sm:$0xf]  ;;  %v16989_v63 = vld [vmem:[%s19479_s30 + $0x2884] sm:$0xf0]  ;;  %v14656_v34 = vor.u32 %v18308_v36, %v14655_v24  ;;  %v16452_v38 = vor.u32 %v18735_v11, %v16449_v47  ;;  %v12495_v24 = vld [vmem:[%s19479_s30 + $0x4b0] sm:$0xf] }
 0x426   : > { %v16992_v3 = vor.u32 %v18870_v62, %v16989_v63  ;;  %v18263_v62 = vld [vmem:[%s19479_s30 + $0x14d8] sm:$0xf0]  ;;  %v18330_v63 = vld [vmem:[%s19479_s30 + $0x16f4] sm:$0xf]  ;;  %v17768_v36 = vld [vmem:[%s19479_s30 + $0x560] sm:$0xf0] }
 0x427   : > { %10719 = vmatpush.bf16.msrb.mxu2 %v14828_v13  ;;  %10732 = vmatpush.bf16.msrb.mxu3 %v16268_v57  ;;  %v15372_v13 = vor.u32 %v18465_v52, %v15369_v2  ;;  %v16812_v57 = vor.u32 %v18825_v61, %v16809_v10  ;;  %v12855_v2 = vld [vmem:[%s19479_s30 + $0x780] sm:$0xf]  ;;  %v17858_v61 = vld [vmem:[%s19479_s30 + $0x830] sm:$0xf0]  ;;  %v13935_v47 = vld [vmem:[%s19479_s30 + $0xff0] sm:$0xf] }
 0x429   : > { %10739 = vmatpush.bf16.msra.mxu0 %v13032_v0  ;;  %10752 = vmatpush.bf16.msra.mxu1 %v14472_v21  ;;  %v10489_v14 = vpop.f32.mrf.mxu0  ;;  %v10502_v8 = vpop.f32.mrf.mxu1  ;;  %v17655_v0 = vld [vmem:[%s19479_s30 + $0x1dc] sm:$0xf]  ;;  %v12129_v21 = vld [vmem:[%s19479_s30 + $0x28c] sm:$0xf0] }
 0x42a   : > { %10720 = vmatmul.bf16.vlgmr.msrb.gmra.mxu2 %v19645_v53  ;;  %10733 = vmatmul.bf16.vlgmr.msrb.gmra.mxu3 %v19647_v54  ;;  %v12132_v35 = vor.u32 %v17655_v0, %v12129_v21  ;;  %v18218_v0 = vld [vmem:[%s19479_s30 + $0x1370] sm:$0xf0]  ;;  %v15915_v21 = vld [vmem:[%s19479_s30 + $0x1f68] sm:$0xf] }
 0x42b   : > { %10764 = vmatpush.bf16.msra.mxu2 %v16092_v27  ;;  %10777 = vmatpush.bf16.msra.mxu3 %v17532_v4  ;;  %v18420_v27 = vld [vmem:[%s19479_s30 + $0x19c4] sm:$0xf] }
 0x42d   : > { %10740 = vmatpush.bf16.msra.mxu0 %v12852_v15  ;;  %10753 = vmatpush.bf16.msra.mxu1 %v14292_v41  ;;  %v10513_v4 = vpop.f32.mrf.mxu2  ;;  %v10526_v9 = vpop.f32.mrf.mxu3  ;;  %v17610_v15 = vld [vmem:[%s19479_s30 + $0x74] sm:$0xf]  ;;  %v11949_v41 = vld [vmem:[%s19479_s30 + $0x124] sm:$0xf0] }
 0x42e   : > { %v10514_v17 = vadd.f32 %v10513_v4, %v10501_v42  ;;  %v13035_v42 = vld [vmem:[%s19479_s30 + $0x8e8] sm:$0xf] }
 0x42f   : > { %10765 = vmatpush.bf16.msra.mxu2 %v15912_v40  ;;  %10778 = vmatpush.bf16.msra.mxu3 %v17352_v12  ;;  %v15192_v40 = vor.u32 %v18420_v27, %v15189_v30  ;;  %v16632_v12 = vor.u32 %v18780_v22, %v16629_v1  ;;  %v12856_v27 = vor.u32 %v17858_v61, %v12855_v2  ;;  %v17813_v30 = vld [vmem:[%s19479_s30 + $0x6c8] sm:$0xf0]  ;;  %v13575_v61 = vld [vmem:[%s19479_s30 + $0xd20] sm:$0xf] }
 0x430   : > { %v21743_v39 = vadd.f32 %v10526_v9, %v10514_v17  ;;  %v12675_v9 = vld [vmem:[%s19479_s30 + $0x618] sm:$0xf] }
 0x431   : > { %10741 = vmatpush.bf16.msra.mxu0 %v12672_v48  ;;  %10754 = vmatpush.bf16.msra.mxu1 %v14112_v31  ;;  %v11952_v48 = vor.u32 %v17610_v15, %v11949_v41  ;;  %v13392_v31 = vor.u32 %v17970_v7, %v13389_v43  ;;  %v14115_v17 = vld [vmem:[%s19479_s30 + $0x1158] sm:$0xf]  ;;  %v18578_v7 = vld [vmem:[%s19479_s30 + $0x1eb0] sm:$0xf0]  ;;  %v12676_v33 = vor.u32 %v17813_v30, %v12675_v9  ;;  %v17633_v9 = vld [vmem:[%s19479_s30 + $0x128] sm:$0xf0] }
 0x432   : > { %v13395_v30 = vld [vmem:[%s19479_s30 + $0xbb8] sm:$0xf] }
 0x433   : > { %10766 = vmatpush.bf16.msra.mxu2 %v15732_v55  ;;  %10779 = vmatpush.bf16.msra.mxu3 %v17172_v60  ;;  %v17903_v55 = vld [vmem:[%s19479_s30 + $0x998] sm:$0xf0]  ;;  %v14475_v60 = vld [vmem:[%s19479_s30 + $0x1428] sm:$0xf] }
 0x434   : > { %v13036_v5 = vor.u32 %v17903_v55, %v13035_v42  ;;  %v14476_v52 = vor.u32 %v18263_v62, %v14475_v60  ;;  %v18893_v42 = vld [vmem:[%s19479_s30 + $0x2888] sm:$0xf0]  ;;  %v12496_v55 = vor.u32 %v17768_v36, %v12495_v24  ;;  %v13755_v62 = vld [vmem:[%s19479_s30 + $0xe88] sm:$0xf] }
 0x435   : > { %10742 = vmatpush.bf16.msra.mxu0 %v12492_v50  ;;  %10755 = vmatpush.bf16.msra.mxu1 %v13932_v49  ;;  %v10515_v59 = vpop.f32.mrf.mxu2  ;;  %v10528_v23 = vpop.f32.mrf.mxu3  ;;  %v14829_v50 = vld [vmem:[%s19479_s30 + $0x17a4] sm:$0xf0]  ;;  %v18690_v49 = vld [vmem:[%s19479_s30 + $0x2234] sm:$0xf] }
 0x436   : > { %v14832_v14 = vor.u32 %v18330_v63, %v14829_v50  ;;  %v16272_v8 = vor.u32 %v18690_v49, %v16269_v32  ;;  %v18083_v63 = vld [vmem:[%s19479_s30 + $0xf38] sm:$0xf0]  ;;  %v15375_v50 = vld [vmem:[%s19479_s30 + $0x1b30] sm:$0xf] }
 0x437   : > { %10767 = vmatpush.bf16.msra.mxu2 %v15552_v16  ;;  %10780 = vmatpush.bf16.msra.mxu3 %v16992_v3  ;;  %v18668_v16 = vld [vmem:[%s19479_s30 + $0x2180] sm:$0xf0]  ;;  %v17535_v3 = vld [vmem:[%s19479_s30 + $0x2c10] sm:$0xf] }
 0x438   : > { %v16096_v10 = vor.u32 %v18668_v16, %v16095_v45  ;;  %v18488_v45 = vld [vmem:[%s19479_s30 + $0x1be0] sm:$0xf0]  ;;  %v16815_v16 = vld [vmem:[%s19479_s30 + $0x2670] sm:$0xf] }
 0x439   : > { %10743 = vmatpush.bf16.msra.mxu0 %v12312_v18  ;;  %10756 = vmatpush.bf16.msra.mxu1 %v13752_v20  ;;  %v17536_v18 = vor.u32 %v19028_v56, %v17535_v3  ;;  %v14295_v20 = vld [vmem:[%s19479_s30 + $0x12c0] sm:$0xf]  ;;  %v18848_v3 = vld [vmem:[%s19479_s30 + $0x2720] sm:$0xf0] }
 0x43a   : > { %v14296_v4 = vor.u32 %v18218_v0, %v14295_v20  ;;  %v16816_v2 = vor.u32 %v18848_v3, %v16815_v16  ;;  %v17836_v3 = vld [vmem:[%s19479_s30 + $0x784] sm:$0xf] }
 0x43b   : > { %10768 = vmatpush.bf16.msra.mxu2 %v15372_v13  ;;  %10781 = vmatpush.bf16.msra.mxu3 %v16812_v57  ;;  %v18623_v13 = vld [vmem:[%s19479_s30 + $0x2018] sm:$0xf0]  ;;  %v17355_v57 = vld [vmem:[%s19479_s30 + $0x2aa8] sm:$0xf] }
 0x43c   : > { %v15916_v22 = vor.u32 %v18623_v13, %v15915_v21  ;;  %v17356_v1 = vor.u32 %v18983_v25, %v17355_v57  ;;  %v18443_v21 = vld [vmem:[%s19479_s30 + $0x1a78] sm:$0xf0]  ;;  %v16635_v13 = vld [vmem:[%s19479_s30 + $0x2508] sm:$0xf] }
 0x43d   : > { %10744 = vmatpush.bf16.msra.mxu0 %v12132_v35  ;;  %10757 = vmatpush.bf16.msra.mxu1 %v13572_v37  ;;  %v18173_v35 = vld [vmem:[%s19479_s30 + $0x1208] sm:$0xf0]  ;;  %v15735_v37 = vld [vmem:[%s19479_s30 + $0x1e00] sm:$0xf]  ;;  %v18803_v57 = vld [vmem:[%s19479_s30 + $0x25b8] sm:$0xf0] }
 0x43e   : > { %v14116_v44 = vor.u32 %v18173_v35, %v14115_v17  ;;  %v15736_v46 = vor.u32 %v18578_v7, %v15735_v37  ;;  %v16636_v35 = vor.u32 %v18803_v57, %v16635_v13  ;;  %v17926_v37 = vld [vmem:[%s19479_s30 + $0xa54] sm:$0xf]  ;;  %v14657_v7 = vld [vmem:[%s19479_s30 + $0x1644] sm:$0xf0]  ;;  %v12677_v13 = vld [vmem:[%s19479_s30 + $0x6cc] sm:$0xf0] }
 0x43f   : > { %10769 = vmatpush.bf16.msra.mxu2 %v15192_v40  ;;  %10782 = vmatpush.bf16.msra.mxu3 %v16632_v12  ;;  %v17175_v40 = vld [vmem:[%s19479_s30 + $0x2940] sm:$0xf]  ;;  %v18938_v12 = vld [vmem:[%s19479_s30 + $0x29f0] sm:$0xf0] }
 0x440   : > { %v17176_v11 = vor.u32 %v18938_v12, %v17175_v40  ;;  %v15015_v40 = vld [vmem:[%s19479_s30 + $0x1860] sm:$0xf]  ;;  %v18398_v12 = vld [vmem:[%s19479_s30 + $0x1910] sm:$0xf0] }
 0x441   : > { %10745 = vmatpush.bf16.msra.mxu0 %v11952_v48  ;;  %10758 = vmatpush.bf16.msra.mxu1 %v13392_v31  ;;  %v10539_v15 = vpop.f32.mrf.mxu0  ;;  %v10552_v41 = vpop.f32.mrf.mxu1  ;;  %v18128_v48 = vld [vmem:[%s19479_s30 + $0x10a0] sm:$0xf0]  ;;  %v15555_v31 = vld [vmem:[%s19479_s30 + $0x1c98] sm:$0xf] }
 0x442   : > { %v10540_v43 = vadd.f32 %v10539_v15, %v1933_v6  ;;  %v13936_v60 = vor.u32 %v18128_v48, %v13935_v47  ;;  %v11955_v6 = vld [vmem:[%s19479_s30 + $0x78] sm:$0xf]  ;;  %v13217_v15 = vld [vmem:[%s19479_s30 + $0xb04] sm:$0xf0]  ;;  %v17881_v47 = vld [vmem:[%s19479_s30 + $0x8ec] sm:$0xf] }
 0x443   : > { %10770 = vmatpush.bf16.msra.mxu2 %v15012_v58  ;;  %10783 = vmatpush.bf16.msra.mxu3 %v16452_v38  ;;  %v12315_v58 = vld [vmem:[%s19479_s30 + $0x348] sm:$0xf]  ;;  %v17723_v38 = vld [vmem:[%s19479_s30 + $0x3f8] sm:$0xf0]  ;;  %v11956_v24 = vor.u32 %v17633_v9, %v11955_v6  ;;  %v13037_v48 = vld [vmem:[%s19479_s30 + $0x99c] sm:$0xf0] }
 0x444   : > { %10746 = vmatmul.bf16.vlgmr.msra.gmra.mxu0 %v19627_v28  ;;  %10759 = vmatmul.bf16.vlgmr.msra.gmra.mxu1 %v19629_v29  ;;  %v10553_v19 = vadd.f32 %v10552_v41, %v10540_v43  ;;  %v12316_v56 = vor.u32 %v17723_v38, %v12315_v58  ;;  %v18286_v41 = vld [vmem:[%s19479_s30 + $0x1594] sm:$0xf]  ;;  %v14835_v58 = vld [vmem:[%s19479_s30 + $0x16f8] sm:$0xf]  ;;  %v18151_v6 = vld [vmem:[%s19479_s30 + $0x115c] sm:$0xf] }
 0x445   : > { %10790 = vmatpush.bf16.msrb.mxu0 %v13216_v51  ;;  %10803 = vmatpush.bf16.msrb.mxu1 %v14656_v34  ;;  %v18533_v51 = vld [vmem:[%s19479_s30 + $0x1d48] sm:$0xf0]  ;;  %v16995_v34 = vld [vmem:[%s19479_s30 + $0x27d8] sm:$0xf] }
 0x446   : > { %v15556_v59 = vor.u32 %v18533_v51, %v15555_v31  ;;  %v16996_v23 = vor.u32 %v18893_v42, %v16995_v34  ;;  %v18241_v31 = vld [vmem:[%s19479_s30 + $0x142c] sm:$0xf]  ;;  %v15016_v51 = vor.u32 %v18398_v12, %v15015_v40  ;;  %v16275_v38 = vld [vmem:[%s19479_s30 + $0x2238] sm:$0xf]  ;;  %v18106_v12 = vld [vmem:[%s19479_s30 + $0xff4] sm:$0xf] }
 0x447   : > { %10771 = vmatpush.bf16.msra.mxu2 %v14832_v14  ;;  %10784 = vmatpush.bf16.msra.mxu3 %v16272_v8  ;;  %v17678_v14 = vld [vmem:[%s19479_s30 + $0x290] sm:$0xf0]  ;;  %v15376_v8 = vor.u32 %v18488_v45, %v15375_v50  ;;  %v17537_v50 = vld [vmem:[%s19479_s30 + $0x2cc4] sm:$0xf0] }
 0x449   : > { %10791 = vmatpush.bf16.msrb.mxu0 %v13036_v5  ;;  %10804 = vmatpush.bf16.msrb.mxu1 %v14476_v52  ;;  %v10541_v49 = vpop.f32.mrf.mxu0  ;;  %v10554_v32 = vpop.f32.mrf.mxu1  ;;  %v13756_v5 = vor.u32 %v18083_v63, %v13755_v62  ;;  %v12135_v52 = vld [vmem:[%s19479_s30 + $0x1e0] sm:$0xf]  ;;  %v16097_v62 = vld [vmem:[%s19479_s30 + $0x2184] sm:$0xf0]  ;;  %v19006_v63 = vld [vmem:[%s19479_s30 + $0x2c14] sm:$0xf] }
 0x44a   : > { %10772 = vmatmul.bf16.vlgmr.msra.gmra.mxu2 %v19645_v53  ;;  %10785 = vmatmul.bf16.vlgmr.msra.gmra.mxu3 %v19647_v54  ;;  %v13040_v49 = vor.u32 %v17881_v47, %v13037_v48  ;;  %v17701_v47 = vld [vmem:[%s19479_s30 + $0x34c] sm:$0xf]  ;;  %v12317_v48 = vld [vmem:[%s19479_s30 + $0x3fc] sm:$0xf0] }
 0x44b   : > { %10816 = vmatpush.bf16.msrb.mxu2 %v16096_v10  ;;  %10829 = vmatpush.bf16.msrb.mxu3 %v17536_v18  ;;  %v18038_v10 = vld [vmem:[%s19479_s30 + $0xdd0] sm:$0xf0]  ;;  %v15195_v18 = vld [vmem:[%s19479_s30 + $0x19c8] sm:$0xf] }
 0x44c   : > { %v15196_v17 = vor.u32 %v18443_v21, %v15195_v18  ;;  %v17357_v18 = vld [vmem:[%s19479_s30 + $0x2b5c] sm:$0xf0]  ;;  %v17791_v21 = vld [vmem:[%s19479_s30 + $0x61c] sm:$0xf] }
 0x44d   : > { %10792 = vmatpush.bf16.msrb.mxu0 %v12856_v27  ;;  %10805 = vmatpush.bf16.msrb.mxu1 %v14296_v4  ;;  %v10565_v20 = vpop.f32.mrf.mxu2  ;;  %v10578_v0 = vpop.f32.mrf.mxu3  ;;  %v12136_v27 = vor.u32 %v17678_v14, %v12135_v52  ;;  %v13576_v4 = vor.u32 %v18038_v10, %v13575_v61  ;;  %v17540_v52 = vor.u32 %v19006_v63, %v17537_v50  ;;  %v18196_v14 = vld [vmem:[%s19479_s30 + $0x12c4] sm:$0xf]  ;;  %v15917_v61 = vld [vmem:[%s19479_s30 + $0x201c] sm:$0xf0]  ;;  %v18961_v10 = vld [vmem:[%s19479_s30 + $0x2aac] sm:$0xf] }
 0x44e   : > { %v10566_v25 = vadd.f32 %v10565_v20, %v10553_v19  ;;  %v17656_v63 = vld [vmem:[%s19479_s30 + $0x1e4] sm:$0xf]  ;;  %v12137_v50 = vld [vmem:[%s19479_s30 + $0x294] sm:$0xf0] }
 0x44f   : > { %10817 = vmatpush.bf16.msrb.mxu2 %v15916_v22  ;;  %10830 = vmatpush.bf16.msrb.mxu3 %v17356_v1  ;;  %v17993_v22 = vld [vmem:[%s19479_s30 + $0xc68] sm:$0xf0] }
 0x450   : > { %v10579_v1 = vadd.f32 %v10578_v0, %v10566_v25  ;;  %v13396_v36 = vor.u32 %v17993_v22, %v13395_v30  ;;  %v17360_v25 = vor.u32 %v18961_v10, %v17357_v18  ;;  %v15737_v22 = vld [vmem:[%s19479_s30 + $0x1eb4] sm:$0xf0]  ;;  %v17611_v10 = vld [vmem:[%s19479_s30 + $0x7c] sm:$0xf]  ;;  %v11957_v18 = vld [vmem:[%s19479_s30 + $0x12c] sm:$0xf0] }
 0x451   : > { %10793 = vmatpush.bf16.msrb.mxu0 %v12676_v33  ;;  %10806 = vmatpush.bf16.msrb.mxu1 %v14116_v44  ;;  %v16455_v33 = vld [vmem:[%s19479_s30 + $0x23a0] sm:$0xf]  ;;  %v18758_v44 = vld [vmem:[%s19479_s30 + $0x2450] sm:$0xf0] }
 0x452   : > { %v11632_v43 = vrot.slane %v10579_v1, 6  ;;  %v16456_v34 = vor.u32 %v18758_v44, %v16455_v33  ;;  %v18916_v1 = vld [vmem:[%s19479_s30 + $0x2944] sm:$0xf]  ;;  %v18511_v33 = vld [vmem:[%s19479_s30 + $0x1c9c] sm:$0xf] }
 0x453   : > { %10818 = vmatpush.bf16.msrb.mxu2 %v15736_v46  ;;  %10831 = vmatpush.bf16.msrb.mxu3 %v17176_v11  ;;  %v13220_v46 = vor.u32 %v17926_v37, %v13217_v15  ;;  %v14660_v11 = vor.u32 %v18286_v41, %v14657_v7  ;;  %v17746_v15 = vld [vmem:[%s19479_s30 + $0x4b4] sm:$0xf]  ;;  %v12497_v41 = vld [vmem:[%s19479_s30 + $0x564] sm:$0xf0]  ;;  %v15557_v44 = vld [vmem:[%s19479_s30 + $0x1d4c] sm:$0xf0] }
 0x454   : > { %v21825_v19 = vsel %vm11647_vm1, %v21743_v39, %v11632_v43  ;;  %v18353_v39 = vld [vmem:[%s19479_s30 + $0x17a8] sm:$0xf0]  ;;  %v13937_v43 = vld [vmem:[%s19479_s30 + $0x10a4] sm:$0xf0] }
 0x455   : > { %10794 = vmatpush.bf16.msrb.mxu0 %v12496_v55  ;;  %10807 = vmatpush.bf16.msrb.mxu1 %v13936_v60  ;;  %v10567_v42 = vpop.f32.mrf.mxu2  ;;  %v10580_v55 = vpop.f32.mrf.mxu3  ;;  %v14477_v60 = vld [vmem:[%s19479_s30 + $0x14dc] sm:$0xf0]  ;;  %v14836_v45 = vor.u32 %v18353_v39, %v14835_v58  ;;  %v15377_v39 = vld [vmem:[%s19479_s30 + $0x1be4] sm:$0xf0] }
 0x456   : > { %v14480_v32 = vor.u32 %v18241_v31, %v14477_v60  ;;  %v15560_v31 = vor.u32 %v18511_v33, %v15557_v44  ;;  %v13757_v42 = vld [vmem:[%s19479_s30 + $0xf3c] sm:$0xf0]  ;;  %v18466_v55 = vld [vmem:[%s19479_s30 + $0x1b34] sm:$0xf] }
 0x457   : > { %10819 = vmatpush.bf16.msrb.mxu2 %v15556_v59  ;;  %10832 = vmatpush.bf16.msrb.mxu3 %v16996_v23  ;;  %v18713_v59 = vld [vmem:[%s19479_s30 + $0x22e8] sm:$0xf0]  ;;  %v18646_v23 = vld [vmem:[%s19479_s30 + $0x20d4] sm:$0xf] }
 0x458   : > { %v16276_v16 = vor.u32 %v18713_v59, %v16275_v38  ;;  %v18826_v38 = vld [vmem:[%s19479_s30 + $0x2674] sm:$0xf]  ;;  %v16817_v59 = vld [vmem:[%s19479_s30 + $0x2724] sm:$0xf0] }
 0x459   : > { %10795 = vmatpush.bf16.msrb.mxu0 %v12316_v56  ;;  %10808 = vmatpush.bf16.msrb.mxu1 %v13756_v5  ;;  %v12857_v56 = vld [vmem:[%s19479_s30 + $0x834] sm:$0xf0]  ;;  %v16100_v5 = vor.u32 %v18646_v23, %v16097_v62  ;;  %v12320_v23 = vor.u32 %v17701_v47, %v12317_v48  ;;  %v18691_v47 = vld [vmem:[%s19479_s30 + $0x223c] sm:$0xf]  ;;  %v16277_v48 = vld [vmem:[%s19479_s30 + $0x22ec] sm:$0xf0] }
 0x45a   : > { %v12860_v20 = vor.u32 %v17836_v3, %v12857_v56  ;;  %v18421_v3 = vld [vmem:[%s19479_s30 + $0x19cc] sm:$0xf] }
 0x45b   : > { %10820 = vmatpush.bf16.msrb.mxu2 %v15376_v8  ;;  %10833 = vmatpush.bf16.msrb.mxu3 %v16816_v2  ;;  %v14297_v8 = vld [vmem:[%s19479_s30 + $0x1374] sm:$0xf0]  ;;  %v18601_v2 = vld [vmem:[%s19479_s30 + $0x1f6c] sm:$0xf] }
 0x45c   : > { %v14300_v0 = vor.u32 %v18196_v14, %v14297_v8  ;;  %v15920_v57 = vor.u32 %v18601_v2, %v15917_v61  ;;  %v18781_v14 = vld [vmem:[%s19479_s30 + $0x250c] sm:$0xf]  ;;  %v16637_v8 = vld [vmem:[%s19479_s30 + $0x25bc] sm:$0xf0]  ;;  %v12140_v2 = vor.u32 %v17656_v63, %v12137_v50  ;;  %v14303_v63 = vld [vmem:[%s19479_s30 + $0x12c8] sm:$0xf] }
 0x45d   : > { %10796 = vmatpush.bf16.msrb.mxu0 %v12136_v27  ;;  %10809 = vmatpush.bf16.msrb.mxu1 %v13576_v4  ;;  %v14117_v27 = vld [vmem:[%s19479_s30 + $0x120c] sm:$0xf0]  ;;  %v18556_v4 = vld [vmem:[%s19479_s30 + $0x1e04] sm:$0xf]  ;;  %v18219_v50 = vld [vmem:[%s19479_s30 + $0x1378] sm:$0xf0] }
 0x45e   : > { %v14120_v37 = vor.u32 %v18151_v6, %v14117_v27  ;;  %v15740_v7 = vor.u32 %v18556_v4, %v15737_v22  ;;  %v14663_v6 = vld [vmem:[%s19479_s30 + $0x1598] sm:$0xf]  ;;  %v18309_v27 = vld [vmem:[%s19479_s30 + $0x1648] sm:$0xf0]  ;;  %v18376_v4 = vld [vmem:[%s19479_s30 + $0x1864] sm:$0xf] }
 0x45f   : > { %10821 = vmatpush.bf16.msrb.mxu2 %v15196_v17  ;;  %10834 = vmatpush.bf16.msrb.mxu3 %v16636_v35  ;;  %v17177_v17 = vld [vmem:[%s19479_s30 + $0x29f4] sm:$0xf0]  ;;  %v12680_v35 = vor.u32 %v17791_v21, %v12677_v13  ;;  %v16640_v21 = vor.u32 %v18781_v14, %v16637_v8  ;;  %v13397_v13 = vld [vmem:[%s19479_s30 + $0xc6c] sm:$0xf0]  ;;  %v14304_v14 = vor.u32 %v18219_v50, %v14303_v63  ;;  %v12683_v8 = vld [vmem:[%s19479_s30 + $0x620] sm:$0xf] }
 0x460   : > { %v17180_v40 = vor.u32 %v18916_v1, %v17177_v17  ;;  %v15017_v22 = vld [vmem:[%s19479_s30 + $0x1914] sm:$0xf0]  ;;  %v18736_v1 = vld [vmem:[%s19479_s30 + $0x23a4] sm:$0xf] }
 0x461   : > { %10797 = vmatpush.bf16.msrb.mxu0 %v11956_v24  ;;  %10810 = vmatpush.bf16.msrb.mxu1 %v13396_v36  ;;  %v21854_v9 = vpop.f32.mrf.mxu0  ;;  %v21856_v30 = vpop.f32.mrf.mxu1  ;;  %v18871_v24 = vld [vmem:[%s19479_s30 + $0x27dc] sm:$0xf]  ;;  %v16997_v36 = vld [vmem:[%s19479_s30 + $0x288c] sm:$0xf0]  ;;  %v16457_v17 = vld [vmem:[%s19479_s30 + $0x2454] sm:$0xf0] }
 0x462   : > { %v16460_v33 = vor.u32 %v18736_v1, %v16457_v17  ;;  %v12503_v17 = vld [vmem:[%s19479_s30 + $0x4b8] sm:$0xf] }
 0x463   : > { %10822 = vmatpush.bf16.msrb.mxu2 %v15016_v51  ;;  %10835 = vmatpush.bf16.msrb.mxu3 %v16456_v34  ;;  %v17000_v51 = vor.u32 %v18871_v24, %v16997_v36  ;;  %v18061_v34 = vld [vmem:[%s19479_s30 + $0xe8c] sm:$0xf]  ;;  %v18264_v36 = vld [vmem:[%s19479_s30 + $0x14e0] sm:$0xf0] }
 0x464   : > { %10798 = vmatmul.bf16.vlgmr.msrb.gmra.mxu0 %v19627_v28  ;;  %10811 = vmatmul.bf16.vlgmr.msrb.gmra.mxu1 %v19629_v29  ;;  %v13760_v62 = vor.u32 %v18061_v34, %v13757_v42  ;;  %v17543_v34 = vld [vmem:[%s19479_s30 + $0x2c18] sm:$0xf]  ;;  %v19029_v42 = vld [vmem:[%s19479_s30 + $0x2cc8] sm:$0xf0] }
 0x465   : > { %10842 = vmatpush.bf16.msra.mxu0 %v13220_v46  ;;  %10855 = vmatpush.bf16.msra.mxu1 %v14660_v11  ;;  %v12500_v46 = vor.u32 %v17746_v15, %v12497_v41  ;;  %v13940_v11 = vor.u32 %v18106_v12, %v13937_v43  ;;  %v14664_v41 = vor.u32 %v18309_v27, %v14663_v6  ;;  %v14483_v12 = vld [vmem:[%s19479_s30 + $0x1430] sm:$0xf]  ;;  %v18939_v6 = vld [vmem:[%s19479_s30 + $0x29f8] sm:$0xf0] }
 0x466   : > { %v15020_v43 = vor.u32 %v18376_v4, %v15017_v22  ;;  %v1935_v4 = vperm.slane %v21695_v26, 3 }
 0x467   : > { %10823 = vmatpush.bf16.msrb.mxu2 %v14836_v45  ;;  %10836 = vmatpush.bf16.msrb.mxu3 %v16276_v16  ;;  %v18016_v45 = vld [vmem:[%s19479_s30 + $0xd24] sm:$0xf]  ;;  %v13577_v16 = vld [vmem:[%s19479_s30 + $0xdd4] sm:$0xf0] }
 0x468   : > { %v13580_v61 = vor.u32 %v18016_v45, %v13577_v16  ;;  %v17363_v45 = vld [vmem:[%s19479_s30 + $0x2ab0] sm:$0xf]  ;;  %v18984_v16 = vld [vmem:[%s19479_s30 + $0x2b60] sm:$0xf0] }
 0x469   : > { %10843 = vmatpush.bf16.msra.mxu0 %v13040_v49  ;;  %10856 = vmatpush.bf16.msra.mxu1 %v14480_v32  ;;  %v10593_v60 = vpop.f32.mrf.mxu0  ;;  %v10606_v58 = vpop.f32.mrf.mxu1  ;;  %v15380_v49 = vor.u32 %v18466_v55, %v15377_v39  ;;  %v16820_v32 = vor.u32 %v18826_v38, %v16817_v59  ;;  %v16280_v39 = vor.u32 %v18691_v47, %v16277_v48  ;;  %v12863_v38 = vld [vmem:[%s19479_s30 + $0x788] sm:$0xf]  ;;  %v17859_v59 = vld [vmem:[%s19479_s30 + $0x838] sm:$0xf0]  ;;  %v13763_v48 = vld [vmem:[%s19479_s30 + $0xe90] sm:$0xf] }
 0x46a   : > { %10824 = vmatmul.bf16.vlgmr.msrb.gmra.mxu2 %v19645_v53  ;;  %10837 = vmatmul.bf16.vlgmr.msrb.gmra.mxu3 %v19647_v54  ;;  %v14484_v60 = vor.u32 %v18264_v36, %v14483_v12  ;;  %v17003_v12 = vld [vmem:[%s19479_s30 + $0x27e0] sm:$0xf]  ;;  %v17724_v36 = vld [vmem:[%s19479_s30 + $0x400] sm:$0xf0] }
 0x46b   : > { %10868 = vmatpush.bf16.msra.mxu2 %v16100_v5  ;;  %10881 = vmatpush.bf16.msra.mxu3 %v17540_v52  ;;  %v15197_v52 = vld [vmem:[%s19479_s30 + $0x1a7c] sm:$0xf0] }
 0x46d   : > { %10844 = vmatpush.bf16.msra.mxu0 %v12860_v20  ;;  %10857 = vmatpush.bf16.msra.mxu1 %v14300_v0  ;;  %v21884_v56 = vpop.f32.mrf.mxu2  ;;  %v21886_v5 = vpop.f32.mrf.mxu3  ;;  %v17971_v20 = vld [vmem:[%s19479_s30 + $0xbbc] sm:$0xf]  ;;  %v15200_v0 = vor.u32 %v18421_v3, %v15197_v52  ;;  %v1934_v3 = vperm.slane %v21695_v26, 2  ;;  %v12864_v52 = vor.u32 %v17859_v59, %v12863_v38  ;;  %v12143_v59 = vld [vmem:[%s19479_s30 + $0x1e8] sm:$0xf] }
 0x46f   : > { %10869 = vmatpush.bf16.msra.mxu2 %v15920_v57  ;;  %10882 = vmatpush.bf16.msra.mxu3 %v17360_v25  ;;  %v13223_v57 = vld [vmem:[%s19479_s30 + $0xa58] sm:$0xf]  ;;  %v17949_v25 = vld [vmem:[%s19479_s30 + $0xb08] sm:$0xf0]  ;;  %v10592_v27 = vadd.f32 %v21854_v9, %v1934_v3  ;;  %v18534_v9 = vld [vmem:[%s19479_s30 + $0x1d50] sm:$0xf0] }
 0x470   : > { %v13224_v15 = vor.u32 %v17949_v25, %v13223_v57  ;;  %v18579_v57 = vld [vmem:[%s19479_s30 + $0x1eb8] sm:$0xf0]  ;;  %v17183_v25 = vld [vmem:[%s19479_s30 + $0x2948] sm:$0xf]  ;;  %v18444_v3 = vld [vmem:[%s19479_s30 + $0x1a80] sm:$0xf0] }
 0x471   : > { %10845 = vmatpush.bf16.msra.mxu0 %v12680_v35  ;;  %10858 = vmatpush.bf16.msra.mxu1 %v14120_v37  ;;  %v11960_v35 = vor.u32 %v17611_v10, %v11957_v18  ;;  %v13400_v37 = vor.u32 %v17971_v20, %v13397_v13  ;;  %v17364_v10 = vor.u32 %v18984_v16, %v17363_v45  ;;  %v14123_v18 = vld [vmem:[%s19479_s30 + $0x1160] sm:$0xf]  ;;  %v18174_v20 = vld [vmem:[%s19479_s30 + $0x1210] sm:$0xf0] }
 0x472   : > { %v14124_v1 = vor.u32 %v18174_v20, %v14123_v18  ;;  %v10605_v26 = vadd.f32 %v21856_v30, %v10592_v27  ;;  %v17634_v20 = vld [vmem:[%s19479_s30 + $0x130] sm:$0xf0]  ;;  %v18287_v27 = vld [vmem:[%s19479_s30 + $0x159c] sm:$0xf] }
 0x473   : > { %10870 = vmatpush.bf16.msra.mxu2 %v15740_v7  ;;  %10883 = vmatpush.bf16.msra.mxu3 %v17180_v40  ;;  %v13043_v7 = vld [vmem:[%s19479_s30 + $0x8f0] sm:$0xf]  ;;  %v17904_v40 = vld [vmem:[%s19479_s30 + $0x9a0] sm:$0xf0] }
 0x474   : > { %v13044_v55 = vor.u32 %v17904_v40, %v13043_v7  ;;  %v18129_v7 = vld [vmem:[%s19479_s30 + $0x10a8] sm:$0xf0]  ;;  %v15563_v40 = vld [vmem:[%s19479_s30 + $0x1ca0] sm:$0xf] }
 0x475   : > { %10846 = vmatpush.bf16.msra.mxu0 %v12500_v46  ;;  %10859 = vmatpush.bf16.msra.mxu1 %v13940_v11  ;;  %v10619_v44 = vpop.f32.mrf.mxu2  ;;  %v10632_v24 = vpop.f32.mrf.mxu3  ;;  %v18331_v46 = vld [vmem:[%s19479_s30 + $0x16fc] sm:$0xf]  ;;  %v14837_v11 = vld [vmem:[%s19479_s30 + $0x17ac] sm:$0xf0] }
 0x476   : > { %v14840_v58 = vor.u32 %v18331_v46, %v14837_v11  ;;  %v12323_v24 = vld [vmem:[%s19479_s30 + $0x350] sm:$0xf]  ;;  %v15564_v11 = vor.u32 %v18534_v9, %v15563_v40  ;;  %v17882_v40 = vld [vmem:[%s19479_s30 + $0x8f4] sm:$0xf] }
 0x477   : > { %10871 = vmatpush.bf16.msra.mxu2 %v15560_v31  ;;  %10884 = vmatpush.bf16.msra.mxu3 %v17000_v51  ;;  %v16103_v31 = vld [vmem:[%s19479_s30 + $0x20d8] sm:$0xf]  ;;  %v18669_v51 = vld [vmem:[%s19479_s30 + $0x2188] sm:$0xf0] }
 0x479   : > { %10847 = vmatpush.bf16.msra.mxu0 %v12320_v23  ;;  %10860 = vmatpush.bf16.msra.mxu1 %v13760_v62  ;;  %v16104_v23 = vor.u32 %v18669_v51, %v16103_v31  ;;  %v17544_v62 = vor.u32 %v19029_v42, %v17543_v34  ;;  %v18084_v31 = vld [vmem:[%s19479_s30 + $0xf40] sm:$0xf0]  ;;  %v15383_v51 = vld [vmem:[%s19479_s30 + $0x1b38] sm:$0xf]  ;;  %v18489_v42 = vld [vmem:[%s19479_s30 + $0x1be8] sm:$0xf0] }
 0x47a   : > { %v13764_v38 = vor.u32 %v18084_v31, %v13763_v48  ;;  %v15384_v63 = vor.u32 %v18489_v42, %v15383_v51  ;;  %v14843_v48 = vld [vmem:[%s19479_s30 + $0x1700] sm:$0xf]  ;;  %v18354_v31 = vld [vmem:[%s19479_s30 + $0x17b0] sm:$0xf0]  ;;  %v16105_v42 = vld [vmem:[%s19479_s30 + $0x218c] sm:$0xf0] }
 0x47b   : > { %10872 = vmatpush.bf16.msra.mxu2 %v15380_v49  ;;  %10885 = vmatpush.bf16.msra.mxu3 %v16820_v32  ;;  %v15923_v49 = vld [vmem:[%s19479_s30 + $0x1f70] sm:$0xf]  ;;  %v18624_v32 = vld [vmem:[%s19479_s30 + $0x2020] sm:$0xf0]  ;;  %v16283_v51 = vld [vmem:[%s19479_s30 + $0x2240] sm:$0xf] }
 0x47d   : > { %10848 = vmatpush.bf16.msra.mxu0 %v12140_v2  ;;  %10861 = vmatpush.bf16.msra.mxu1 %v13580_v61  ;;  %v17814_v2 = vld [vmem:[%s19479_s30 + $0x6d0] sm:$0xf0]  ;;  %v15924_v61 = vor.u32 %v18624_v32, %v15923_v49  ;;  %v13583_v49 = vld [vmem:[%s19479_s30 + $0xd28] sm:$0xf]  ;;  %v18039_v32 = vld [vmem:[%s19479_s30 + $0xdd8] sm:$0xf0] }
 0x47e   : > { %v12684_v22 = vor.u32 %v17814_v2, %v12683_v8  ;;  %v13584_v18 = vor.u32 %v18039_v32, %v13583_v49  ;;  %v14305_v49 = vld [vmem:[%s19479_s30 + $0x137c] sm:$0xf0]  ;;  %v18602_v32 = vld [vmem:[%s19479_s30 + $0x1f74] sm:$0xf] }
 0x47f   : > { %10873 = vmatpush.bf16.msra.mxu2 %v15200_v0  ;;  %10886 = vmatpush.bf16.msra.mxu3 %v16640_v21  ;;  %v15743_v0 = vld [vmem:[%s19479_s30 + $0x1e08] sm:$0xf] }
 0x481   : > { %10849 = vmatpush.bf16.msra.mxu0 %v11960_v35  ;;  %10862 = vmatpush.bf16.msra.mxu1 %v13400_v37  ;;  %v10643_v21 = vpop.f32.mrf.mxu0  ;;  %v10656_v13 = vpop.f32.mrf.mxu1  ;;  %v17769_v35 = vld [vmem:[%s19479_s30 + $0x568] sm:$0xf0]  ;;  %v15744_v37 = vor.u32 %v18579_v57, %v15743_v0  ;;  %v13403_v0 = vld [vmem:[%s19479_s30 + $0xbc0] sm:$0xf] }
 0x482   : > { %v10644_v46 = vadd.f32 %v10643_v21, %v1935_v4  ;;  %v17994_v21 = vld [vmem:[%s19479_s30 + $0xc70] sm:$0xf0]  ;;  %v14665_v4 = vld [vmem:[%s19479_s30 + $0x164c] sm:$0xf0] }
 0x483   : > { %10874 = vmatpush.bf16.msra.mxu2 %v15020_v43  ;;  %10887 = vmatpush.bf16.msra.mxu3 %v16460_v33  ;;  %v18894_v43 = vld [vmem:[%s19479_s30 + $0x2890] sm:$0xf0]  ;;  %v12504_v33 = vor.u32 %v17769_v35, %v12503_v17 }
 0x484   : > { %10850 = vmatmul.bf16.vlgmr.msra.gmra.mxu0 %v19627_v28  ;;  %10863 = vmatmul.bf16.vlgmr.msra.gmra.mxu1 %v19629_v29  ;;  %v17004_v47 = vor.u32 %v18894_v43, %v17003_v12  ;;  %v14668_v43 = vor.u32 %v18287_v27, %v14665_v4 }
 0x485   : > { %10894 = vmatpush.bf16.msrb.mxu0 %v13224_v15  ;;  %10907 = vmatpush.bf16.msrb.mxu1 %v14664_v41  ;;  %v17184_v15 = vor.u32 %v18939_v6, %v17183_v25  ;;  %v13943_v41 = vld [vmem:[%s19479_s30 + $0xff8] sm:$0xf]  ;;  %v17927_v25 = vld [vmem:[%s19479_s30 + $0xa5c] sm:$0xf]  ;;  %v13225_v6 = vld [vmem:[%s19479_s30 + $0xb0c] sm:$0xf0] }
 0x486   : > { %v13944_v44 = vor.u32 %v18129_v7, %v13943_v41  ;;  %v13404_v7 = vor.u32 %v17994_v21, %v13403_v0  ;;  %v13228_v12 = vor.u32 %v17927_v25, %v13225_v6  ;;  %v14125_v0 = vld [vmem:[%s19479_s30 + $0x1214] sm:$0xf0]  ;;  %v18557_v21 = vld [vmem:[%s19479_s30 + $0x1e0c] sm:$0xf]  ;;  %v17185_v6 = vld [vmem:[%s19479_s30 + $0x29fc] sm:$0xf0] }
 0x487   : > { %10875 = vmatpush.bf16.msra.mxu2 %v14840_v58  ;;  %10888 = vmatpush.bf16.msra.mxu3 %v16280_v39  ;;  %v10618_v58 = vadd.f32 %v21884_v56, %v10605_v26  ;;  %v12324_v39 = vor.u32 %v17724_v36, %v12323_v24  ;;  %v15203_v56 = vld [vmem:[%s19479_s30 + $0x19d0] sm:$0xf]  ;;  %v13045_v26 = vld [vmem:[%s19479_s30 + $0x9a4] sm:$0xf0]  ;;  %v18917_v25 = vld [vmem:[%s19479_s30 + $0x294c] sm:$0xf] }
 0x489   : > { %10895 = vmatpush.bf16.msrb.mxu0 %v13044_v55  ;;  %10908 = vmatpush.bf16.msrb.mxu1 %v14484_v60  ;;  %v10645_v30 = vpop.f32.mrf.mxu0  ;;  %v10658_v34 = vpop.f32.mrf.mxu1  ;;  %v16823_v55 = vld [vmem:[%s19479_s30 + $0x2678] sm:$0xf]  ;;  %v18849_v60 = vld [vmem:[%s19479_s30 + $0x2728] sm:$0xf0]  ;;  %v10631_v8 = vadd.f32 %v21886_v5, %v10618_v58  ;;  %v15204_v5 = vor.u32 %v18444_v3, %v15203_v56  ;;  %v15925_v56 = vld [vmem:[%s19479_s30 + $0x2024] sm:$0xf0] }
 0x48a   : > { %10876 = vmatmul.bf16.vlgmr.msra.gmra.mxu2 %v19645_v53  ;;  %10889 = vmatmul.bf16.vlgmr.msra.gmra.mxu3 %v19647_v54  ;;  %v16824_v50 = vor.u32 %v18849_v60, %v16823_v55  ;;  %v18714_v30 = vld [vmem:[%s19479_s30 + $0x22f0] sm:$0xf0]  ;;  %v18647_v34 = vld [vmem:[%s19479_s30 + $0x20dc] sm:$0xf]  ;;  %v17545_v60 = vld [vmem:[%s19479_s30 + $0x2ccc] sm:$0xf0] }
 0x48b   : > { %10920 = vmatpush.bf16.msrb.mxu2 %v16104_v23  ;;  %10933 = vmatpush.bf16.msrb.mxu3 %v17544_v62  ;;  %v17679_v23 = vld [vmem:[%s19479_s30 + $0x298] sm:$0xf0]  ;;  %v10657_v62 = vadd.f32 %v10656_v13, %v10644_v46  ;;  %v11633_v17 = vrot.slane %v10631_v8, 4  ;;  %v22004_v3 = vld [vmem:[%s19921_s6 + $0x18] sm:$0xff] }
 0x48c   : > { %v19007_v55 = vld [vmem:[%s19479_s30 + $0x2c1c] sm:$0xf] }
 0x48d   : > { %10896 = vmatpush.bf16.msrb.mxu0 %v12864_v52  ;;  %10909 = vmatpush.bf16.msrb.mxu1 %v14304_v14  ;;  %v10669_v45 = vpop.f32.mrf.mxu2  ;;  %v10682_v16 = vpop.f32.mrf.mxu3  ;;  %v16643_v52 = vld [vmem:[%s19479_s30 + $0x2510] sm:$0xf]  ;;  %v18804_v14 = vld [vmem:[%s19479_s30 + $0x25c0] sm:$0xf0] }
 0x48e   : > { %v10670_v2 = vadd.f32 %v10669_v45, %v10657_v62  ;;  %v16644_v57 = vor.u32 %v18804_v14, %v16643_v52  ;;  %v16108_v62 = vor.u32 %v18647_v34, %v16105_v42  ;;  %v18962_v45 = vld [vmem:[%s19479_s30 + $0x2ab4] sm:$0xf]  ;;  %v1936_v52 = vperm.slane %v22004_v3, 4  ;;  %v18827_v34 = vld [vmem:[%s19479_s30 + $0x267c] sm:$0xf] }
 0x48f   : > { %10921 = vmatpush.bf16.msrb.mxu2 %v15924_v61  ;;  %10934 = vmatpush.bf16.msrb.mxu3 %v17364_v10  ;;  %v11963_v61 = vld [vmem:[%s19479_s30 + $0x80] sm:$0xf]  ;;  %v12144_v10 = vor.u32 %v17679_v23, %v12143_v59  ;;  %v17837_v59 = vld [vmem:[%s19479_s30 + $0x78c] sm:$0xf]  ;;  %v16825_v42 = vld [vmem:[%s19479_s30 + $0x272c] sm:$0xf0] }
 0x490   : > { %v10683_v13 = vadd.f32 %v10682_v16, %v10670_v2  ;;  %v11964_v41 = vor.u32 %v17634_v20, %v11963_v61  ;;  %v12865_v23 = vld [vmem:[%s19479_s30 + $0x83c] sm:$0xf0]  ;;  %v17365_v16 = vld [vmem:[%s19479_s30 + $0x2b64] sm:$0xf0]  ;;  %v17792_v2 = vld [vmem:[%s19479_s30 + $0x624] sm:$0xf] }
 0x491   : > { %10897 = vmatpush.bf16.msrb.mxu0 %v12684_v22  ;;  %10910 = vmatpush.bf16.msrb.mxu1 %v14124_v1  ;;  %v15023_v22 = vld [vmem:[%s19479_s30 + $0x1868] sm:$0xf]  ;;  %v18399_v1 = vld [vmem:[%s19479_s30 + $0x1918] sm:$0xf0]  ;;  %v12868_v14 = vor.u32 %v17837_v59, %v12865_v23  ;;  %v12685_v61 = vld [vmem:[%s19479_s30 + $0x6d4] sm:$0xf0] }
 0x492   : > { %v11634_v35 = vrot.slane %v10683_v13, 2  ;;  %v15024_v36 = vor.u32 %v18399_v1, %v15023_v22  ;;  %v18152_v20 = vld [vmem:[%s19479_s30 + $0x1164] sm:$0xf]  ;;  %v12688_v4 = vor.u32 %v17792_v2, %v12685_v61  ;;  %v17747_v1 = vld [vmem:[%s19479_s30 + $0x4bc] sm:$0xf] }
 0x493   : > { %10922 = vmatpush.bf16.msrb.mxu2 %v15744_v37  ;;  %10935 = vmatpush.bf16.msrb.mxu3 %v17184_v15  ;;  %v16463_v37 = vld [vmem:[%s19479_s30 + $0x23a8] sm:$0xf]  ;;  %v18759_v15 = vld [vmem:[%s19479_s30 + $0x2458] sm:$0xf0]  ;;  %v14128_v22 = vor.u32 %v18152_v20, %v14125_v0  ;;  %v18017_v59 = vld [vmem:[%s19479_s30 + $0xd2c] sm:$0xf] }
 0x494   : > { %v11669_v9 = vsel %vm11649_vm2, %v11633_v17, %v11634_v35  ;;  %v16464_v46 = vor.u32 %v18759_v15, %v16463_v37  ;;  %v12505_v17 = vld [vmem:[%s19479_s30 + $0x56c] sm:$0xf0]  ;;  %v17188_v15 = vor.u32 %v18917_v25, %v17185_v6  ;;  %v13585_v23 = vld [vmem:[%s19479_s30 + $0xddc] sm:$0xf0]  ;;  %v17972_v2 = vld [vmem:[%s19479_s30 + $0xbc4] sm:$0xf] }
 0x495   : > { %10898 = vmatpush.bf16.msrb.mxu0 %v12504_v33  ;;  %10911 = vmatpush.bf16.msrb.mxu1 %v13944_v44  ;;  %v18242_v33 = vld [vmem:[%s19479_s30 + $0x1434] sm:$0xf]  ;;  %v14485_v44 = vld [vmem:[%s19479_s30 + $0x14e4] sm:$0xf0]  ;;  %v11670_v24 = vsel %vm11651_vm3, %v21825_v19, %v11669_v9  ;;  %v13048_v19 = vor.u32 %v17882_v40, %v13045_v26  ;;  %v18512_v40 = vld [vmem:[%s19479_s30 + $0x1ca4] sm:$0xf]  ;;  %v12508_v26 = vor.u32 %v17747_v1, %v12505_v17 }
 0x496   : > { %11700 = vst [vmem:[%s20170_s21 + $0x30] sm:$0xff] %v11670_v24  ;;  %v14488_v58 = vor.u32 %v18242_v33, %v14485_v44  ;;  %v15565_v9 = vld [vmem:[%s19479_s30 + $0x1d54] sm:$0xf0]  ;;  %v17702_v44 = vld [vmem:[%s19479_s30 + $0x354] sm:$0xf] }
 0x497   : > { %10923 = vmatpush.bf16.msrb.mxu2 %v15564_v11  ;;  %10936 = vmatpush.bf16.msrb.mxu3 %v17004_v47  ;;  %v10671_v11 = vpop.f32.mrf.mxu2  ;;  %v10684_v47 = vpop.f32.mrf.mxu3  ;;  %v12325_v24 = vld [vmem:[%s19479_s30 + $0x404] sm:$0xf0]  ;;  %v13405_v20 = vld [vmem:[%s19479_s30 + $0xc74] sm:$0xf0]  ;;  %v13231_v0 = vld [vmem:[%s19479_s30 + $0xa60] sm:$0xf] }
 0x498   : > { %v18062_v11 = vld [vmem:[%s19479_s30 + $0xe94] sm:$0xf]  ;;  %v13765_v47 = vld [vmem:[%s19479_s30 + $0xf44] sm:$0xf0]  ;;  %v15025_v25 = vld [vmem:[%s19479_s30 + $0x191c] sm:$0xf0] }
 0x499   : > { %10899 = vmatpush.bf16.msrb.mxu0 %v12324_v39  ;;  %10912 = vmatpush.bf16.msrb.mxu1 %v13764_v38  ;;  %v14844_v39 = vor.u32 %v18354_v31, %v14843_v48  ;;  %v16284_v38 = vor.u32 %v18714_v30, %v16283_v51  ;;  %v18467_v48 = vld [vmem:[%s19479_s30 + $0x1b3c] sm:$0xf]  ;;  %v15385_v30 = vld [vmem:[%s19479_s30 + $0x1bec] sm:$0xf0]  ;;  %v18737_v6 = vld [vmem:[%s19479_s30 + $0x23ac] sm:$0xf] }
 0x49b   : > { %10924 = vmatpush.bf16.msrb.mxu2 %v15384_v63  ;;  %10937 = vmatpush.bf16.msrb.mxu3 %v16824_v50  ;;  %v17548_v63 = vor.u32 %v19007_v55, %v17545_v60  ;;  %v18197_v50 = vld [vmem:[%s19479_s30 + $0x12cc] sm:$0xf]  ;;  %v12328_v55 = vor.u32 %v17702_v44, %v12325_v24  ;;  %v13768_v60 = vor.u32 %v18062_v11, %v13765_v47  ;;  %v16285_v44 = vld [vmem:[%s19479_s30 + $0x22f4] sm:$0xf0]  ;;  %v16111_v24 = vld [vmem:[%s19479_s30 + $0x20e0] sm:$0xf] }
 0x49c   : > { %v14308_v8 = vor.u32 %v18197_v50, %v14305_v49  ;;  %v15205_v49 = vld [vmem:[%s19479_s30 + $0x1a84] sm:$0xf0]  ;;  %v19030_v11 = vld [vmem:[%s19479_s30 + $0x2cd0] sm:$0xf0] }
 0x49d   : > { %10900 = vmatpush.bf16.msrb.mxu0 %v12144_v10  ;;  %10913 = vmatpush.bf16.msrb.mxu1 %v13584_v18  ;;  %v15928_v10 = vor.u32 %v18602_v32, %v15925_v56  ;;  %v17368_v18 = vor.u32 %v18962_v45, %v17365_v16  ;;  %v18782_v32 = vld [vmem:[%s19479_s30 + $0x2514] sm:$0xf]  ;;  %v16645_v56 = vld [vmem:[%s19479_s30 + $0x25c4] sm:$0xf0] }
 0x49f   : > { %10925 = vmatpush.bf16.msrb.mxu2 %v15204_v5  ;;  %10938 = vmatpush.bf16.msrb.mxu3 %v16644_v57  ;;  %v15745_v57 = vld [vmem:[%s19479_s30 + $0x1ebc] sm:$0xf0] }
 0x4a0   : > { %v15748_v37 = vor.u32 %v18557_v21, %v15745_v57  ;;  %v17950_v21 = vld [vmem:[%s19479_s30 + $0xb10] sm:$0xf0]  ;;  %v18377_v57 = vld [vmem:[%s19479_s30 + $0x186c] sm:$0xf] }
 0x4a1   : > { %10901 = vmatpush.bf16.msrb.mxu0 %v11964_v41  ;;  %10914 = vmatpush.bf16.msrb.mxu1 %v13404_v7  ;;  %v10695_v13 = vpop.f32.mrf.mxu0  ;;  %v10708_v5 = vpop.f32.mrf.mxu1  ;;  %v18107_v41 = vld [vmem:[%s19479_s30 + $0xffc] sm:$0xf]  ;;  %v13945_v7 = vld [vmem:[%s19479_s30 + $0x10ac] sm:$0xf0]  ;;  %v13232_v1 = vor.u32 %v17950_v21, %v13231_v0 }
 0x4a2   : > { %v10696_v27 = vadd.f32 %v10695_v13, %v1936_v52  ;;  %v13948_v33 = vor.u32 %v18107_v41, %v13945_v7  ;;  %v13588_v52 = vor.u32 %v18017_v59, %v13585_v23  ;;  %v14671_v13 = vld [vmem:[%s19479_s30 + $0x15a0] sm:$0xf]  ;;  %v15028_v41 = vor.u32 %v18377_v57, %v15025_v25  ;;  %v18985_v59 = vld [vmem:[%s19479_s30 + $0x2b68] sm:$0xf0] }
 0x4a3   : > { %10926 = vmatpush.bf16.msrb.mxu2 %v15024_v36  ;;  %10939 = vmatpush.bf16.msrb.mxu3 %v16464_v46  ;;  %v15568_v36 = vor.u32 %v18512_v40, %v15565_v9  ;;  %v1937_v23 = vperm.slane %v22004_v3, 5 }
 0x4a4   : > { %10902 = vmatmul.bf16.vlgmr.msrb.gmra.mxu0 %v19627_v28  ;;  %10915 = vmatmul.bf16.vlgmr.msrb.gmra.mxu1 %v19629_v29  ;;  %v10709_v35 = vadd.f32 %v10708_v5, %v10696_v27  ;;  %v18310_v5 = vld [vmem:[%s19479_s30 + $0x1650] sm:$0xf0]  ;;  %v16465_v27 = vld [vmem:[%s19479_s30 + $0x245c] sm:$0xf0] }
 0x4a5   : > { %10946 = vmatpush.bf16.msra.mxu0 %v13228_v12  ;;  %10959 = vmatpush.bf16.msra.mxu1 %v14668_v43  ;;  %v18872_v12 = vld [vmem:[%s19479_s30 + $0x27e4] sm:$0xf]  ;;  %v17005_v43 = vld [vmem:[%s19479_s30 + $0x2894] sm:$0xf0]  ;;  %v14672_v17 = vor.u32 %v18310_v5, %v14671_v13  ;;  %v16468_v7 = vor.u32 %v18737_v6, %v16465_v27  ;;  %v12511_v13 = vld [vmem:[%s19479_s30 + $0x4c0] sm:$0xf] }
 0x4a6   : > { %v17008_v46 = vor.u32 %v18872_v12, %v17005_v43  ;;  %v18265_v12 = vld [vmem:[%s19479_s30 + $0x14e8] sm:$0xf0]  ;;  %v18332_v43 = vld [vmem:[%s19479_s30 + $0x1704] sm:$0xf]  ;;  %v17770_v5 = vld [vmem:[%s19479_s30 + $0x570] sm:$0xf0] }
 0x4a7   : > { %10927 = vmatpush.bf16.msrb.mxu2 %v14844_v39  ;;  %10940 = vmatpush.bf16.msrb.mxu3 %v16284_v38  ;;  %v15388_v39 = vor.u32 %v18467_v48, %v15385_v30  ;;  %v16828_v38 = vor.u32 %v18827_v34, %v16825_v42  ;;  %v12871_v30 = vld [vmem:[%s19479_s30 + $0x790] sm:$0xf]  ;;  %v17860_v34 = vld [vmem:[%s19479_s30 + $0x840] sm:$0xf0]  ;;  %v13951_v27 = vld [vmem:[%s19479_s30 + $0x1000] sm:$0xf] }
 0x4a9   : > { %10947 = vmatpush.bf16.msra.mxu0 %v13048_v19  ;;  %10960 = vmatpush.bf16.msra.mxu1 %v14488_v58  ;;  %v10697_v31 = vpop.f32.mrf.mxu0  ;;  %v10710_v51 = vpop.f32.mrf.mxu1  ;;  %v17657_v19 = vld [vmem:[%s19479_s30 + $0x1ec] sm:$0xf]  ;;  %v12145_v58 = vld [vmem:[%s19479_s30 + $0x29c] sm:$0xf0] }
 0x4aa   : > { %10928 = vmatmul.bf16.vlgmr.msrb.gmra.mxu2 %v19645_v53  ;;  %10941 = vmatmul.bf16.vlgmr.msrb.gmra.mxu3 %v19647_v54  ;;  %v12148_v16 = vor.u32 %v17657_v19, %v12145_v58  ;;  %v18220_v19 = vld [vmem:[%s19479_s30 + $0x1380] sm:$0xf0]  ;;  %v15931_v58 = vld [vmem:[%s19479_s30 + $0x1f78] sm:$0xf] }
 0x4ab   : > { %10972 = vmatpush.bf16.msra.mxu2 %v16108_v62  ;;  %10985 = vmatpush.bf16.msra.mxu3 %v17548_v63  ;;  %v18422_v62 = vld [vmem:[%s19479_s30 + $0x19d4] sm:$0xf] }
 0x4ad   : > { %10948 = vmatpush.bf16.msra.mxu0 %v12868_v14  ;;  %10961 = vmatpush.bf16.msra.mxu1 %v14308_v8  ;;  %v10721_v63 = vpop.f32.mrf.mxu2  ;;  %v10734_v50 = vpop.f32.mrf.mxu3  ;;  %v17612_v14 = vld [vmem:[%s19479_s30 + $0x84] sm:$0xf]  ;;  %v11965_v8 = vld [vmem:[%s19479_s30 + $0x134] sm:$0xf0] }
 0x4ae   : > { %v10722_v45 = vadd.f32 %v10721_v63, %v10709_v35  ;;  %v13051_v35 = vld [vmem:[%s19479_s30 + $0x8f8] sm:$0xf] }
 0x4af   : > { %10973 = vmatpush.bf16.msra.mxu2 %v15928_v10  ;;  %10986 = vmatpush.bf16.msra.mxu3 %v17368_v18  ;;  %v15208_v10 = vor.u32 %v18422_v62, %v15205_v49  ;;  %v16648_v18 = vor.u32 %v18782_v32, %v16645_v56  ;;  %v12872_v62 = vor.u32 %v17860_v34, %v12871_v30  ;;  %v17815_v49 = vld [vmem:[%s19479_s30 + $0x6d8] sm:$0xf0]  ;;  %v13591_v34 = vld [vmem:[%s19479_s30 + $0xd30] sm:$0xf] }
 0x4b0   : > { %v22044_v61 = vadd.f32 %v10734_v50, %v10722_v45  ;;  %v12691_v50 = vld [vmem:[%s19479_s30 + $0x628] sm:$0xf] }
 0x4b1   : > { %10949 = vmatpush.bf16.msra.mxu0 %v12688_v4  ;;  %10962 = vmatpush.bf16.msra.mxu1 %v14128_v22  ;;  %v11968_v4 = vor.u32 %v17612_v14, %v11965_v8  ;;  %v13408_v22 = vor.u32 %v17972_v2, %v13405_v20  ;;  %v14131_v45 = vld [vmem:[%s19479_s30 + $0x1168] sm:$0xf]  ;;  %v18580_v2 = vld [vmem:[%s19479_s30 + $0x1ec0] sm:$0xf0]  ;;  %v12692_v0 = vor.u32 %v17815_v49, %v12691_v50  ;;  %v17635_v50 = vld [vmem:[%s19479_s30 + $0x138] sm:$0xf0] }
 0x4b2   : > { %v13411_v49 = vld [vmem:[%s19479_s30 + $0xbc8] sm:$0xf] }
 0x4b3   : > { %10974 = vmatpush.bf16.msra.mxu2 %v15748_v37  ;;  %10987 = vmatpush.bf16.msra.mxu3 %v17188_v15  ;;  %v17905_v37 = vld [vmem:[%s19479_s30 + $0x9a8] sm:$0xf0]  ;;  %v14491_v15 = vld [vmem:[%s19479_s30 + $0x1438] sm:$0xf] }
 0x4b4   : > { %v13052_v47 = vor.u32 %v17905_v37, %v13051_v35  ;;  %v14492_v48 = vor.u32 %v18265_v12, %v14491_v15  ;;  %v18895_v35 = vld [vmem:[%s19479_s30 + $0x2898] sm:$0xf0]  ;;  %v12512_v37 = vor.u32 %v17770_v5, %v12511_v13  ;;  %v13771_v12 = vld [vmem:[%s19479_s30 + $0xe98] sm:$0xf] }
 0x4b5   : > { %10950 = vmatpush.bf16.msra.mxu0 %v12508_v26  ;;  %10963 = vmatpush.bf16.msra.mxu1 %v13948_v33  ;;  %v10723_v40 = vpop.f32.mrf.mxu2  ;;  %v10736_v9 = vpop.f32.mrf.mxu3  ;;  %v14845_v26 = vld [vmem:[%s19479_s30 + $0x17b4] sm:$0xf0]  ;;  %v18692_v33 = vld [vmem:[%s19479_s30 + $0x2244] sm:$0xf] }
 0x4b6   : > { %v14848_v31 = vor.u32 %v18332_v43, %v14845_v26  ;;  %v16288_v51 = vor.u32 %v18692_v33, %v16285_v44  ;;  %v18085_v43 = vld [vmem:[%s19479_s30 + $0xf48] sm:$0xf0]  ;;  %v15391_v26 = vld [vmem:[%s19479_s30 + $0x1b40] sm:$0xf] }
 0x4b7   : > { %10975 = vmatpush.bf16.msra.mxu2 %v15568_v36  ;;  %10988 = vmatpush.bf16.msra.mxu3 %v17008_v46  ;;  %v18670_v36 = vld [vmem:[%s19479_s30 + $0x2190] sm:$0xf0]  ;;  %v17551_v46 = vld [vmem:[%s19479_s30 + $0x2c20] sm:$0xf] }
 0x4b8   : > { %v16112_v42 = vor.u32 %v18670_v36, %v16111_v24  ;;  %v18490_v24 = vld [vmem:[%s19479_s30 + $0x1bf0] sm:$0xf0]  ;;  %v16831_v36 = vld [vmem:[%s19479_s30 + $0x2680] sm:$0xf] }
 0x4b9   : > { %10951 = vmatpush.bf16.msra.mxu0 %v12328_v55  ;;  %10964 = vmatpush.bf16.msra.mxu1 %v13768_v60  ;;  %v17552_v55 = vor.u32 %v19030_v11, %v17551_v46  ;;  %v14311_v60 = vld [vmem:[%s19479_s30 + $0x12d0] sm:$0xf]  ;;  %v18850_v46 = vld [vmem:[%s19479_s30 + $0x2730] sm:$0xf0] }
 0x4ba   : > { %v14312_v63 = vor.u32 %v18220_v19, %v14311_v60  ;;  %v16832_v30 = vor.u32 %v18850_v46, %v16831_v36  ;;  %v17838_v46 = vld [vmem:[%s19479_s30 + $0x794] sm:$0xf] }
 0x4bb   : > { %10976 = vmatpush.bf16.msra.mxu2 %v15388_v39  ;;  %10989 = vmatpush.bf16.msra.mxu3 %v16828_v38  ;;  %v18625_v39 = vld [vmem:[%s19479_s30 + $0x2028] sm:$0xf0]  ;;  %v17371_v38 = vld [vmem:[%s19479_s30 + $0x2ab8] sm:$0xf] }
 0x4bc   : > { %v15932_v32 = vor.u32 %v18625_v39, %v15931_v58  ;;  %v17372_v56 = vor.u32 %v18985_v59, %v17371_v38  ;;  %v18445_v58 = vld [vmem:[%s19479_s30 + $0x1a88] sm:$0xf0]  ;;  %v16651_v39 = vld [vmem:[%s19479_s30 + $0x2518] sm:$0xf] }
 0x4bd   : > { %10952 = vmatpush.bf16.msra.mxu0 %v12148_v16  ;;  %10965 = vmatpush.bf16.msra.mxu1 %v13588_v52  ;;  %v18175_v16 = vld [vmem:[%s19479_s30 + $0x1218] sm:$0xf0]  ;;  %v15751_v52 = vld [vmem:[%s19479_s30 + $0x1e10] sm:$0xf]  ;;  %v18805_v38 = vld [vmem:[%s19479_s30 + $0x25c8] sm:$0xf0] }
 0x4be   : > { %v14132_v21 = vor.u32 %v18175_v16, %v14131_v45  ;;  %v15752_v25 = vor.u32 %v18580_v2, %v15751_v52  ;;  %v16652_v16 = vor.u32 %v18805_v38, %v16651_v39  ;;  %v17928_v52 = vld [vmem:[%s19479_s30 + $0xa64] sm:$0xf]  ;;  %v14673_v2 = vld [vmem:[%s19479_s30 + $0x1654] sm:$0xf0]  ;;  %v12693_v39 = vld [vmem:[%s19479_s30 + $0x6dc] sm:$0xf0] }
 0x4bf   : > { %10977 = vmatpush.bf16.msra.mxu2 %v15208_v10  ;;  %10990 = vmatpush.bf16.msra.mxu3 %v16648_v18  ;;  %v17191_v10 = vld [vmem:[%s19479_s30 + $0x2950] sm:$0xf]  ;;  %v18940_v18 = vld [vmem:[%s19479_s30 + $0x2a00] sm:$0xf0] }
 0x4c0   : > { %v17192_v6 = vor.u32 %v18940_v18, %v17191_v10  ;;  %v15031_v10 = vld [vmem:[%s19479_s30 + $0x1870] sm:$0xf]  ;;  %v18400_v18 = vld [vmem:[%s19479_s30 + $0x1920] sm:$0xf0] }
 0x4c1   : > { %10953 = vmatpush.bf16.msra.mxu0 %v11968_v4  ;;  %10966 = vmatpush.bf16.msra.mxu1 %v13408_v22  ;;  %v10747_v14 = vpop.f32.mrf.mxu0  ;;  %v10760_v8 = vpop.f32.mrf.mxu1  ;;  %v18130_v4 = vld [vmem:[%s19479_s30 + $0x10b0] sm:$0xf0]  ;;  %v15571_v22 = vld [vmem:[%s19479_s30 + $0x1ca8] sm:$0xf] }
 0x4c2   : > { %v10748_v20 = vadd.f32 %v10747_v14, %v1937_v23  ;;  %v13952_v15 = vor.u32 %v18130_v4, %v13951_v27  ;;  %v11971_v23 = vld [vmem:[%s19479_s30 + $0x88] sm:$0xf]  ;;  %v13233_v14 = vld [vmem:[%s19479_s30 + $0xb14] sm:$0xf0]  ;;  %v17883_v27 = vld [vmem:[%s19479_s30 + $0x8fc] sm:$0xf] }
 0x4c3   : > { %10978 = vmatpush.bf16.msra.mxu2 %v15028_v41  ;;  %10991 = vmatpush.bf16.msra.mxu3 %v16468_v7  ;;  %v12331_v41 = vld [vmem:[%s19479_s30 + $0x358] sm:$0xf]  ;;  %v17725_v7 = vld [vmem:[%s19479_s30 + $0x408] sm:$0xf0]  ;;  %v11972_v13 = vor.u32 %v17635_v50, %v11971_v23  ;;  %v13053_v4 = vld [vmem:[%s19479_s30 + $0x9ac] sm:$0xf0] }
 0x4c4   : > { %10954 = vmatmul.bf16.vlgmr.msra.gmra.mxu0 %v19627_v28  ;;  %10967 = vmatmul.bf16.vlgmr.msra.gmra.mxu1 %v19629_v29  ;;  %v10761_v57 = vadd.f32 %v10760_v8, %v10748_v20  ;;  %v12332_v11 = vor.u32 %v17725_v7, %v12331_v41  ;;  %v18288_v8 = vld [vmem:[%s19479_s30 + $0x15a4] sm:$0xf]  ;;  %v14851_v41 = vld [vmem:[%s19479_s30 + $0x1708] sm:$0xf]  ;;  %v18153_v23 = vld [vmem:[%s19479_s30 + $0x116c] sm:$0xf] }
 0x4c5   : > { %10998 = vmatpush.bf16.msrb.mxu0 %v13232_v1  ;;  %11011 = vmatpush.bf16.msrb.mxu1 %v14672_v17  ;;  %v18535_v1 = vld [vmem:[%s19479_s30 + $0x1d58] sm:$0xf0]  ;;  %v17011_v17 = vld [vmem:[%s19479_s30 + $0x27e8] sm:$0xf] }
 0x4c6   : > { %v15572_v40 = vor.u32 %v18535_v1, %v15571_v22  ;;  %v17012_v9 = vor.u32 %v18895_v35, %v17011_v17  ;;  %v18243_v22 = vld [vmem:[%s19479_s30 + $0x143c] sm:$0xf]  ;;  %v15032_v1 = vor.u32 %v18400_v18, %v15031_v10  ;;  %v16291_v7 = vld [vmem:[%s19479_s30 + $0x2248] sm:$0xf]  ;;  %v18108_v18 = vld [vmem:[%s19479_s30 + $0x1004] sm:$0xf] }
 0x4c7   : > { %10979 = vmatpush.bf16.msra.mxu2 %v14848_v31  ;;  %10992 = vmatpush.bf16.msra.mxu3 %v16288_v51  ;;  %v17680_v31 = vld [vmem:[%s19479_s30 + $0x2a0] sm:$0xf0]  ;;  %v15392_v51 = vor.u32 %v18490_v24, %v15391_v26  ;;  %v17553_v26 = vld [vmem:[%s19479_s30 + $0x2cd4] sm:$0xf0] }
 0x4c9   : > { %10999 = vmatpush.bf16.msrb.mxu0 %v13052_v47  ;;  %11012 = vmatpush.bf16.msrb.mxu1 %v14492_v48  ;;  %v10749_v33 = vpop.f32.mrf.mxu0  ;;  %v10762_v44 = vpop.f32.mrf.mxu1  ;;  %v13772_v47 = vor.u32 %v18085_v43, %v13771_v12  ;;  %v12151_v48 = vld [vmem:[%s19479_s30 + $0x1f0] sm:$0xf]  ;;  %v16113_v12 = vld [vmem:[%s19479_s30 + $0x2194] sm:$0xf0]  ;;  %v19008_v43 = vld [vmem:[%s19479_s30 + $0x2c24] sm:$0xf] }
 0x4ca   : > { %10980 = vmatmul.bf16.vlgmr.msra.gmra.mxu2 %v19645_v53  ;;  %10993 = vmatmul.bf16.vlgmr.msra.gmra.mxu3 %v19647_v54  ;;  %v13056_v33 = vor.u32 %v17883_v27, %v13053_v4  ;;  %v17703_v27 = vld [vmem:[%s19479_s30 + $0x35c] sm:$0xf]  ;;  %v12333_v4 = vld [vmem:[%s19479_s30 + $0x40c] sm:$0xf0] }
 0x4cb   : > { %11024 = vmatpush.bf16.msrb.mxu2 %v16112_v42  ;;  %11037 = vmatpush.bf16.msrb.mxu3 %v17552_v55  ;;  %v18040_v42 = vld [vmem:[%s19479_s30 + $0xde0] sm:$0xf0]  ;;  %v15211_v55 = vld [vmem:[%s19479_s30 + $0x19d8] sm:$0xf] }
 0x4cc   : > { %v15212_v45 = vor.u32 %v18445_v58, %v15211_v55  ;;  %v17373_v55 = vld [vmem:[%s19479_s30 + $0x2b6c] sm:$0xf0]  ;;  %v17793_v58 = vld [vmem:[%s19479_s30 + $0x62c] sm:$0xf] }
 0x4cd   : > { %11000 = vmatpush.bf16.msrb.mxu0 %v12872_v62  ;;  %11013 = vmatpush.bf16.msrb.mxu1 %v14312_v63  ;;  %v10773_v60 = vpop.f32.mrf.mxu2  ;;  %v10786_v19 = vpop.f32.mrf.mxu3  ;;  %v12152_v62 = vor.u32 %v17680_v31, %v12151_v48  ;;  %v13592_v63 = vor.u32 %v18040_v42, %v13591_v34  ;;  %v17556_v48 = vor.u32 %v19008_v43, %v17553_v26  ;;  %v18198_v31 = vld [vmem:[%s19479_s30 + $0x12d4] sm:$0xf]  ;;  %v15933_v34 = vld [vmem:[%s19479_s30 + $0x202c] sm:$0xf0]  ;;  %v18963_v42 = vld [vmem:[%s19479_s30 + $0x2abc] sm:$0xf] }
 0x4ce   : > { %v10774_v59 = vadd.f32 %v10773_v60, %v10761_v57  ;;  %v17658_v43 = vld [vmem:[%s19479_s30 + $0x1f4] sm:$0xf]  ;;  %v12153_v26 = vld [vmem:[%s19479_s30 + $0x2a4] sm:$0xf0] }
 0x4cf   : > { %11025 = vmatpush.bf16.msrb.mxu2 %v15932_v32  ;;  %11038 = vmatpush.bf16.msrb.mxu3 %v17372_v56  ;;  %v17995_v32 = vld [vmem:[%s19479_s30 + $0xc78] sm:$0xf0] }
 0x4d0   : > { %v10787_v56 = vadd.f32 %v10786_v19, %v10774_v59  ;;  %v13412_v5 = vor.u32 %v17995_v32, %v13411_v49  ;;  %v17376_v59 = vor.u32 %v18963_v42, %v17373_v55  ;;  %v15753_v32 = vld [vmem:[%s19479_s30 + $0x1ec4] sm:$0xf0]  ;;  %v17613_v42 = vld [vmem:[%s19479_s30 + $0x8c] sm:$0xf]  ;;  %v11973_v55 = vld [vmem:[%s19479_s30 + $0x13c] sm:$0xf0] }
 0x4d1   : > { %11001 = vmatpush.bf16.msrb.mxu0 %v12692_v0  ;;  %11014 = vmatpush.bf16.msrb.mxu1 %v14132_v21  ;;  %v16471_v0 = vld [vmem:[%s19479_s30 + $0x23b0] sm:$0xf]  ;;  %v18760_v21 = vld [vmem:[%s19479_s30 + $0x2460] sm:$0xf0] }
 0x4d2   : > { %v11635_v20 = vrot.slane %v10787_v56, 6  ;;  %v16472_v17 = vor.u32 %v18760_v21, %v16471_v0  ;;  %v18918_v56 = vld [vmem:[%s19479_s30 + $0x2954] sm:$0xf]  ;;  %v18513_v0 = vld [vmem:[%s19479_s30 + $0x1cac] sm:$0xf] }
 0x4d3   : > { %11026 = vmatpush.bf16.msrb.mxu2 %v15752_v25  ;;  %11039 = vmatpush.bf16.msrb.mxu3 %v17192_v6  ;;  %v13236_v25 = vor.u32 %v17928_v52, %v13233_v14  ;;  %v14676_v6 = vor.u32 %v18288_v8, %v14673_v2  ;;  %v17748_v14 = vld [vmem:[%s19479_s30 + $0x4c4] sm:$0xf]  ;;  %v12513_v8 = vld [vmem:[%s19479_s30 + $0x574] sm:$0xf0]  ;;  %v15573_v21 = vld [vmem:[%s19479_s30 + $0x1d5c] sm:$0xf0] }
 0x4d4   : > { %v22126_v57 = vsel %vm11647_vm1, %v22044_v61, %v11635_v20  ;;  %v18355_v61 = vld [vmem:[%s19479_s30 + $0x17b8] sm:$0xf0]  ;;  %v13953_v20 = vld [vmem:[%s19479_s30 + $0x10b4] sm:$0xf0] }
 0x4d5   : > { %11002 = vmatpush.bf16.msrb.mxu0 %v12512_v37  ;;  %11015 = vmatpush.bf16.msrb.mxu1 %v13952_v15  ;;  %v10775_v35 = vpop.f32.mrf.mxu2  ;;  %v10788_v37 = vpop.f32.mrf.mxu3  ;;  %v14493_v15 = vld [vmem:[%s19479_s30 + $0x14ec] sm:$0xf0]  ;;  %v14852_v24 = vor.u32 %v18355_v61, %v14851_v41  ;;  %v15393_v61 = vld [vmem:[%s19479_s30 + $0x1bf4] sm:$0xf0] }
 0x4d6   : > { %v14496_v44 = vor.u32 %v18243_v22, %v14493_v15  ;;  %v15576_v22 = vor.u32 %v18513_v0, %v15573_v21  ;;  %v13773_v35 = vld [vmem:[%s19479_s30 + $0xf4c] sm:$0xf0]  ;;  %v18468_v37 = vld [vmem:[%s19479_s30 + $0x1b44] sm:$0xf] }
 0x4d7   : > { %11027 = vmatpush.bf16.msrb.mxu2 %v15572_v40  ;;  %11040 = vmatpush.bf16.msrb.mxu3 %v17012_v9  ;;  %v18715_v40 = vld [vmem:[%s19479_s30 + $0x22f8] sm:$0xf0]  ;;  %v18648_v9 = vld [vmem:[%s19479_s30 + $0x20e4] sm:$0xf] }
 0x4d8   : > { %v16292_v36 = vor.u32 %v18715_v40, %v16291_v7  ;;  %v18828_v7 = vld [vmem:[%s19479_s30 + $0x2684] sm:$0xf]  ;;  %v16833_v40 = vld [vmem:[%s19479_s30 + $0x2734] sm:$0xf0] }
 0x4d9   : > { %11003 = vmatpush.bf16.msrb.mxu0 %v12332_v11  ;;  %11016 = vmatpush.bf16.msrb.mxu1 %v13772_v47  ;;  %v12873_v11 = vld [vmem:[%s19479_s30 + $0x844] sm:$0xf0]  ;;  %v16116_v47 = vor.u32 %v18648_v9, %v16113_v12  ;;  %v12336_v9 = vor.u32 %v17703_v27, %v12333_v4  ;;  %v18693_v27 = vld [vmem:[%s19479_s30 + $0x224c] sm:$0xf]  ;;  %v16293_v4 = vld [vmem:[%s19479_s30 + $0x22fc] sm:$0xf0] }
 0x4da   : > { %v12876_v60 = vor.u32 %v17838_v46, %v12873_v11  ;;  %v18423_v46 = vld [vmem:[%s19479_s30 + $0x19dc] sm:$0xf] }
 0x4db   : > { %11028 = vmatpush.bf16.msrb.mxu2 %v15392_v51  ;;  %11041 = vmatpush.bf16.msrb.mxu3 %v16832_v30  ;;  %v14313_v51 = vld [vmem:[%s19479_s30 + $0x1384] sm:$0xf0]  ;;  %v18603_v30 = vld [vmem:[%s19479_s30 + $0x1f7c] sm:$0xf] }
 0x4dc   : > { %v14316_v19 = vor.u32 %v18198_v31, %v14313_v51  ;;  %v15936_v38 = vor.u32 %v18603_v30, %v15933_v34  ;;  %v18783_v31 = vld [vmem:[%s19479_s30 + $0x251c] sm:$0xf]  ;;  %v16653_v51 = vld [vmem:[%s19479_s30 + $0x25cc] sm:$0xf0]  ;;  %v12156_v30 = vor.u32 %v17658_v43, %v12153_v26  ;;  %v14319_v43 = vld [vmem:[%s19479_s30 + $0x12d8] sm:$0xf] }
 0x4dd   : > { %11004 = vmatpush.bf16.msrb.mxu0 %v12152_v62  ;;  %11017 = vmatpush.bf16.msrb.mxu1 %v13592_v63  ;;  %v14133_v62 = vld [vmem:[%s19479_s30 + $0x121c] sm:$0xf0]  ;;  %v18558_v63 = vld [vmem:[%s19479_s30 + $0x1e14] sm:$0xf]  ;;  %v18221_v26 = vld [vmem:[%s19479_s30 + $0x1388] sm:$0xf0] }
 0x4de   : > { %v14136_v52 = vor.u32 %v18153_v23, %v14133_v62  ;;  %v15756_v2 = vor.u32 %v18558_v63, %v15753_v32  ;;  %v14679_v23 = vld [vmem:[%s19479_s30 + $0x15a8] sm:$0xf]  ;;  %v18311_v62 = vld [vmem:[%s19479_s30 + $0x1658] sm:$0xf0]  ;;  %v18378_v63 = vld [vmem:[%s19479_s30 + $0x1874] sm:$0xf] }
 0x4df   : > { %11029 = vmatpush.bf16.msrb.mxu2 %v15212_v45  ;;  %11042 = vmatpush.bf16.msrb.mxu3 %v16652_v16  ;;  %v17193_v45 = vld [vmem:[%s19479_s30 + $0x2a04] sm:$0xf0]  ;;  %v12696_v16 = vor.u32 %v17793_v58, %v12693_v39  ;;  %v16656_v58 = vor.u32 %v18783_v31, %v16653_v51  ;;  %v13413_v39 = vld [vmem:[%s19479_s30 + $0xc7c] sm:$0xf0]  ;;  %v14320_v31 = vor.u32 %v18221_v26, %v14319_v43  ;;  %v12699_v51 = vld [vmem:[%s19479_s30 + $0x630] sm:$0xf] }
 0x4e0   : > { %v17196_v10 = vor.u32 %v18918_v56, %v17193_v45  ;;  %v15033_v32 = vld [vmem:[%s19479_s30 + $0x1924] sm:$0xf0]  ;;  %v18738_v56 = vld [vmem:[%s19479_s30 + $0x23b4] sm:$0xf] }
 0x4e1   : > { %11005 = vmatpush.bf16.msrb.mxu0 %v11972_v13  ;;  %11018 = vmatpush.bf16.msrb.mxu1 %v13412_v5  ;;  %v22155_v50 = vpop.f32.mrf.mxu0  ;;  %v22157_v49 = vpop.f32.mrf.mxu1  ;;  %v18873_v13 = vld [vmem:[%s19479_s30 + $0x27ec] sm:$0xf]  ;;  %v17013_v5 = vld [vmem:[%s19479_s30 + $0x289c] sm:$0xf0]  ;;  %v16473_v45 = vld [vmem:[%s19479_s30 + $0x2464] sm:$0xf0] }
 0x4e2   : > { %v16476_v0 = vor.u32 %v18738_v56, %v16473_v45  ;;  %v12519_v45 = vld [vmem:[%s19479_s30 + $0x4c8] sm:$0xf] }
 0x4e3   : > { %11030 = vmatpush.bf16.msrb.mxu2 %v15032_v1  ;;  %11043 = vmatpush.bf16.msrb.mxu3 %v16472_v17  ;;  %v17016_v1 = vor.u32 %v18873_v13, %v17013_v5  ;;  %v18063_v17 = vld [vmem:[%s19479_s30 + $0xe9c] sm:$0xf]  ;;  %v18266_v5 = vld [vmem:[%s19479_s30 + $0x14f0] sm:$0xf0] }
 0x4e4   : > { %11006 = vmatmul.bf16.vlgmr.msrb.gmra.mxu0 %v19627_v28  ;;  %11019 = vmatmul.bf16.vlgmr.msrb.gmra.mxu1 %v19629_v29  ;;  %v13776_v12 = vor.u32 %v18063_v17, %v13773_v35  ;;  %v17559_v17 = vld [vmem:[%s19479_s30 + $0x2c28] sm:$0xf]  ;;  %v19031_v35 = vld [vmem:[%s19479_s30 + $0x2cd8] sm:$0xf0] }
 0x4e5   : > { %11050 = vmatpush.bf16.msra.mxu0 %v13236_v25  ;;  %11063 = vmatpush.bf16.msra.mxu1 %v14676_v6  ;;  %v12516_v25 = vor.u32 %v17748_v14, %v12513_v8  ;;  %v13956_v6 = vor.u32 %v18108_v18, %v13953_v20  ;;  %v14680_v8 = vor.u32 %v18311_v62, %v14679_v23  ;;  %v14499_v18 = vld [vmem:[%s19479_s30 + $0x1440] sm:$0xf]  ;;  %v18941_v23 = vld [vmem:[%s19479_s30 + $0x2a08] sm:$0xf0] }
 0x4e6   : > { %v15036_v20 = vor.u32 %v18378_v63, %v15033_v32  ;;  %v1939_v63 = vperm.slane %v22004_v3, 7 }
 0x4e7   : > { %11031 = vmatpush.bf16.msrb.mxu2 %v14852_v24  ;;  %11044 = vmatpush.bf16.msrb.mxu3 %v16292_v36  ;;  %v18018_v24 = vld [vmem:[%s19479_s30 + $0xd34] sm:$0xf]  ;;  %v13593_v36 = vld [vmem:[%s19479_s30 + $0xde4] sm:$0xf0] }
 0x4e8   : > { %v13596_v34 = vor.u32 %v18018_v24, %v13593_v36  ;;  %v17379_v24 = vld [vmem:[%s19479_s30 + $0x2ac0] sm:$0xf]  ;;  %v18986_v36 = vld [vmem:[%s19479_s30 + $0x2b70] sm:$0xf0] }
 0x4e9   : > { %11051 = vmatpush.bf16.msra.mxu0 %v13056_v33  ;;  %11064 = vmatpush.bf16.msra.mxu1 %v14496_v44  ;;  %v10801_v15 = vpop.f32.mrf.mxu0  ;;  %v10814_v41 = vpop.f32.mrf.mxu1  ;;  %v15396_v33 = vor.u32 %v18468_v37, %v15393_v61  ;;  %v16836_v44 = vor.u32 %v18828_v7, %v16833_v40  ;;  %v16296_v61 = vor.u32 %v18693_v27, %v16293_v4  ;;  %v12879_v7 = vld [vmem:[%s19479_s30 + $0x798] sm:$0xf]  ;;  %v17861_v40 = vld [vmem:[%s19479_s30 + $0x848] sm:$0xf0]  ;;  %v13779_v4 = vld [vmem:[%s19479_s30 + $0xea0] sm:$0xf] }
 0x4ea   : > { %11032 = vmatmul.bf16.vlgmr.msrb.gmra.mxu2 %v19645_v53  ;;  %11045 = vmatmul.bf16.vlgmr.msrb.gmra.mxu3 %v19647_v54  ;;  %v14500_v15 = vor.u32 %v18266_v5, %v14499_v18  ;;  %v17019_v18 = vld [vmem:[%s19479_s30 + $0x27f0] sm:$0xf]  ;;  %v17726_v5 = vld [vmem:[%s19479_s30 + $0x410] sm:$0xf0] }
 0x4eb   : > { %11076 = vmatpush.bf16.msra.mxu2 %v16116_v47  ;;  %11089 = vmatpush.bf16.msra.mxu3 %v17556_v48  ;;  %v15213_v48 = vld [vmem:[%s19479_s30 + $0x1a8c] sm:$0xf0] }
 0x4ed   : > { %11052 = vmatpush.bf16.msra.mxu0 %v12876_v60  ;;  %11065 = vmatpush.bf16.msra.mxu1 %v14316_v19  ;;  %v22185_v11 = vpop.f32.mrf.mxu2  ;;  %v22187_v47 = vpop.f32.mrf.mxu3  ;;  %v17973_v60 = vld [vmem:[%s19479_s30 + $0xbcc] sm:$0xf]  ;;  %v15216_v19 = vor.u32 %v18423_v46, %v15213_v48  ;;  %v1938_v46 = vperm.slane %v22004_v3, 6  ;;  %v12880_v48 = vor.u32 %v17861_v40, %v12879_v7  ;;  %v12159_v40 = vld [vmem:[%s19479_s30 + $0x1f8] sm:$0xf] }
 0x4ef   : > { %11077 = vmatpush.bf16.msra.mxu2 %v15936_v38  ;;  %11090 = vmatpush.bf16.msra.mxu3 %v17376_v59  ;;  %v13239_v38 = vld [vmem:[%s19479_s30 + $0xa68] sm:$0xf]  ;;  %v17951_v59 = vld [vmem:[%s19479_s30 + $0xb18] sm:$0xf0]  ;;  %v10800_v62 = vadd.f32 %v22155_v50, %v1938_v46  ;;  %v18536_v50 = vld [vmem:[%s19479_s30 + $0x1d60] sm:$0xf0] }
 0x4f0   : > { %v13240_v14 = vor.u32 %v17951_v59, %v13239_v38  ;;  %v18581_v38 = vld [vmem:[%s19479_s30 + $0x1ec8] sm:$0xf0]  ;;  %v17199_v59 = vld [vmem:[%s19479_s30 + $0x2958] sm:$0xf]  ;;  %v18446_v46 = vld [vmem:[%s19479_s30 + $0x1a90] sm:$0xf0] }
 0x4f1   : > { %11053 = vmatpush.bf16.msra.mxu0 %v12696_v16  ;;  %11066 = vmatpush.bf16.msra.mxu1 %v14136_v52  ;;  %v11976_v16 = vor.u32 %v17613_v42, %v11973_v55  ;;  %v13416_v52 = vor.u32 %v17973_v60, %v13413_v39  ;;  %v17380_v42 = vor.u32 %v18986_v36, %v17379_v24  ;;  %v14139_v55 = vld [vmem:[%s19479_s30 + $0x1170] sm:$0xf]  ;;  %v18176_v60 = vld [vmem:[%s19479_s30 + $0x1220] sm:$0xf0] }
 0x4f2   : > { %v14140_v56 = vor.u32 %v18176_v60, %v14139_v55  ;;  %v10813_v3 = vadd.f32 %v22157_v49, %v10800_v62  ;;  %v17636_v60 = vld [vmem:[%s19479_s30 + $0x140] sm:$0xf0]  ;;  %v18289_v62 = vld [vmem:[%s19479_s30 + $0x15ac] sm:$0xf] }
 0x4f3   : > { %11078 = vmatpush.bf16.msra.mxu2 %v15756_v2  ;;  %11091 = vmatpush.bf16.msra.mxu3 %v17196_v10  ;;  %v13059_v2 = vld [vmem:[%s19479_s30 + $0x900] sm:$0xf]  ;;  %v17906_v10 = vld [vmem:[%s19479_s30 + $0x9b0] sm:$0xf0] }
 0x4f4   : > { %v13060_v37 = vor.u32 %v17906_v10, %v13059_v2  ;;  %v18131_v2 = vld [vmem:[%s19479_s30 + $0x10b8] sm:$0xf0]  ;;  %v15579_v10 = vld [vmem:[%s19479_s30 + $0x1cb0] sm:$0xf] }
 0x4f5   : > { %11054 = vmatpush.bf16.msra.mxu0 %v12516_v25  ;;  %11067 = vmatpush.bf16.msra.mxu1 %v13956_v6  ;;  %v10827_v21 = vpop.f32.mrf.mxu2  ;;  %v10840_v13 = vpop.f32.mrf.mxu3  ;;  %v18333_v25 = vld [vmem:[%s19479_s30 + $0x170c] sm:$0xf]  ;;  %v14853_v6 = vld [vmem:[%s19479_s30 + $0x17bc] sm:$0xf0] }
 0x4f6   : > { %v14856_v41 = vor.u32 %v18333_v25, %v14853_v6  ;;  %v12339_v13 = vld [vmem:[%s19479_s30 + $0x360] sm:$0xf]  ;;  %v15580_v6 = vor.u32 %v18536_v50, %v15579_v10  ;;  %v17884_v10 = vld [vmem:[%s19479_s30 + $0x904] sm:$0xf] }
 0x4f7   : > { %11079 = vmatpush.bf16.msra.mxu2 %v15576_v22  ;;  %11092 = vmatpush.bf16.msra.mxu3 %v17016_v1  ;;  %v16119_v22 = vld [vmem:[%s19479_s30 + $0x20e8] sm:$0xf]  ;;  %v18671_v1 = vld [vmem:[%s19479_s30 + $0x2198] sm:$0xf0] }
 0x4f9   : > { %11055 = vmatpush.bf16.msra.mxu0 %v12336_v9  ;;  %11068 = vmatpush.bf16.msra.mxu1 %v13776_v12  ;;  %v16120_v9 = vor.u32 %v18671_v1, %v16119_v22  ;;  %v17560_v12 = vor.u32 %v19031_v35, %v17559_v17  ;;  %v18086_v22 = vld [vmem:[%s19479_s30 + $0xf50] sm:$0xf0]  ;;  %v15399_v1 = vld [vmem:[%s19479_s30 + $0x1b48] sm:$0xf]  ;;  %v18491_v35 = vld [vmem:[%s19479_s30 + $0x1bf8] sm:$0xf0] }
 0x4fa   : > { %v13780_v7 = vor.u32 %v18086_v22, %v13779_v4  ;;  %v15400_v43 = vor.u32 %v18491_v35, %v15399_v1  ;;  %v14859_v4 = vld [vmem:[%s19479_s30 + $0x1710] sm:$0xf]  ;;  %v18356_v22 = vld [vmem:[%s19479_s30 + $0x17c0] sm:$0xf0]  ;;  %v16121_v35 = vld [vmem:[%s19479_s30 + $0x219c] sm:$0xf0] }
 0x4fb   : > { %11080 = vmatpush.bf16.msra.mxu2 %v15396_v33  ;;  %11093 = vmatpush.bf16.msra.mxu3 %v16836_v44  ;;  %v15939_v33 = vld [vmem:[%s19479_s30 + $0x1f80] sm:$0xf]  ;;  %v18626_v44 = vld [vmem:[%s19479_s30 + $0x2030] sm:$0xf0]  ;;  %v16299_v1 = vld [vmem:[%s19479_s30 + $0x2250] sm:$0xf] }
 0x4fd   : > { %11056 = vmatpush.bf16.msra.mxu0 %v12156_v30  ;;  %11069 = vmatpush.bf16.msra.mxu1 %v13596_v34  ;;  %v17816_v30 = vld [vmem:[%s19479_s30 + $0x6e0] sm:$0xf0]  ;;  %v15940_v34 = vor.u32 %v18626_v44, %v15939_v33  ;;  %v13599_v33 = vld [vmem:[%s19479_s30 + $0xd38] sm:$0xf]  ;;  %v18041_v44 = vld [vmem:[%s19479_s30 + $0xde8] sm:$0xf0] }
 0x4fe   : > { %v12700_v32 = vor.u32 %v17816_v30, %v12699_v51  ;;  %v13600_v55 = vor.u32 %v18041_v44, %v13599_v33  ;;  %v18199_v33 = vld [vmem:[%s19479_s30 + $0x12dc] sm:$0xf]  ;;  %v14321_v44 = vld [vmem:[%s19479_s30 + $0x138c] sm:$0xf0] }
 0x4ff   : > { %11081 = vmatpush.bf16.msra.mxu2 %v15216_v19  ;;  %11094 = vmatpush.bf16.msra.mxu3 %v16656_v58  ;;  %v15759_v19 = vld [vmem:[%s19479_s30 + $0x1e18] sm:$0xf] }
 0x501   : > { %11057 = vmatpush.bf16.msra.mxu0 %v11976_v16  ;;  %11070 = vmatpush.bf16.msra.mxu1 %v13416_v52  ;;  %v10851_v58 = vpop.f32.mrf.mxu0  ;;  %v10864_v39 = vpop.f32.mrf.mxu1  ;;  %v17771_v16 = vld [vmem:[%s19479_s30 + $0x578] sm:$0xf0]  ;;  %v15760_v52 = vor.u32 %v18581_v38, %v15759_v19  ;;  %v13419_v19 = vld [vmem:[%s19479_s30 + $0xbd0] sm:$0xf] }
 0x502   : > { %v10852_v25 = vadd.f32 %v10851_v58, %v1939_v63  ;;  %v17996_v58 = vld [vmem:[%s19479_s30 + $0xc80] sm:$0xf0]  ;;  %v14681_v63 = vld [vmem:[%s19479_s30 + $0x165c] sm:$0xf0] }
 0x503   : > { %11082 = vmatpush.bf16.msra.mxu2 %v15036_v20  ;;  %11095 = vmatpush.bf16.msra.mxu3 %v16476_v0  ;;  %v18896_v20 = vld [vmem:[%s19479_s30 + $0x28a0] sm:$0xf0]  ;;  %v12520_v0 = vor.u32 %v17771_v16, %v12519_v45 }
 0x504   : > { %11058 = vmatmul.bf16.vlgmr.msra.gmra.mxu0 %v19627_v28  ;;  %11071 = vmatmul.bf16.vlgmr.msra.gmra.mxu1 %v19629_v29  ;;  %v17020_v27 = vor.u32 %v18896_v20, %v17019_v18  ;;  %v14684_v20 = vor.u32 %v18289_v62, %v14681_v63 }
 0x505   : > { %11102 = vmatpush.bf16.msrb.mxu0 %v13240_v14  ;;  %11115 = vmatpush.bf16.msrb.mxu1 %v14680_v8  ;;  %v17200_v14 = vor.u32 %v18941_v23, %v17199_v59  ;;  %v13959_v8 = vld [vmem:[%s19479_s30 + $0x1008] sm:$0xf]  ;;  %v17929_v59 = vld [vmem:[%s19479_s30 + $0xa6c] sm:$0xf]  ;;  %v13241_v23 = vld [vmem:[%s19479_s30 + $0xb1c] sm:$0xf0] }
 0x506   : > { %v13960_v21 = vor.u32 %v18131_v2, %v13959_v8  ;;  %v13420_v2 = vor.u32 %v17996_v58, %v13419_v19  ;;  %v13244_v18 = vor.u32 %v17929_v59, %v13241_v23  ;;  %v14141_v19 = vld [vmem:[%s19479_s30 + $0x1224] sm:$0xf0]  ;;  %v18559_v58 = vld [vmem:[%s19479_s30 + $0x1e1c] sm:$0xf]  ;;  %v17201_v23 = vld [vmem:[%s19479_s30 + $0x2a0c] sm:$0xf0] }
 0x507   : > { %11083 = vmatpush.bf16.msra.mxu2 %v14856_v41  ;;  %11096 = vmatpush.bf16.msra.mxu3 %v16296_v61  ;;  %v10826_v41 = vadd.f32 %v22185_v11, %v10813_v3  ;;  %v12340_v61 = vor.u32 %v17726_v5, %v12339_v13  ;;  %v15219_v11 = vld [vmem:[%s19479_s30 + $0x19e0] sm:$0xf]  ;;  %v13061_v3 = vld [vmem:[%s19479_s30 + $0x9b4] sm:$0xf0]  ;;  %v18919_v59 = vld [vmem:[%s19479_s30 + $0x295c] sm:$0xf] }
 0x509   : > { %11103 = vmatpush.bf16.msrb.mxu0 %v13060_v37  ;;  %11116 = vmatpush.bf16.msrb.mxu1 %v14500_v15  ;;  %v10853_v49 = vpop.f32.mrf.mxu0  ;;  %v10866_v17 = vpop.f32.mrf.mxu1  ;;  %v16839_v37 = vld [vmem:[%s19479_s30 + $0x2688] sm:$0xf]  ;;  %v18851_v15 = vld [vmem:[%s19479_s30 + $0x2738] sm:$0xf0]  ;;  %v10839_v51 = vadd.f32 %v22187_v47, %v10826_v41  ;;  %v15220_v47 = vor.u32 %v18446_v46, %v15219_v11  ;;  %v18604_v11 = vld [vmem:[%s19479_s30 + $0x1f84] sm:$0xf] }
 0x50a   : > { %11084 = vmatmul.bf16.vlgmr.msra.gmra.mxu2 %v19645_v53  ;;  %11097 = vmatmul.bf16.vlgmr.msra.gmra.mxu3 %v19647_v54  ;;  %v16840_v26 = vor.u32 %v18851_v15, %v16839_v37  ;;  %v18716_v49 = vld [vmem:[%s19479_s30 + $0x2300] sm:$0xf0]  ;;  %v18649_v17 = vld [vmem:[%s19479_s30 + $0x20ec] sm:$0xf]  ;;  %v17561_v15 = vld [vmem:[%s19479_s30 + $0x2cdc] sm:$0xf0] }
 0x50b   : > { %11128 = vmatpush.bf16.msrb.mxu2 %v16120_v9  ;;  %11141 = vmatpush.bf16.msrb.mxu3 %v17560_v12  ;;  %v17681_v9 = vld [vmem:[%s19479_s30 + $0x2a8] sm:$0xf0]  ;;  %v10865_v12 = vadd.f32 %v10864_v39, %v10852_v25  ;;  %v11636_v45 = vrot.slane %v10839_v51, 4  ;;  %v17381_v46 = vld [vmem:[%s19479_s30 + $0x2b74] sm:$0xf0]  ;;  %v14324_v51 = vor.u32 %v18199_v33, %v14321_v44 }
 0x50c   : > { %v19009_v37 = vld [vmem:[%s19479_s30 + $0x2c2c] sm:$0xf]  ;;  %v15221_v44 = vld [vmem:[%s19479_s30 + $0x1a94] sm:$0xf0] }
 0x50d   : > { %11104 = vmatpush.bf16.msrb.mxu0 %v12880_v48  ;;  %11117 = vmatpush.bf16.msrb.mxu1 %v14320_v31  ;;  %v10877_v24 = vpop.f32.mrf.mxu2  ;;  %v10890_v36 = vpop.f32.mrf.mxu3  ;;  %v16659_v48 = vld [vmem:[%s19479_s30 + $0x2520] sm:$0xf]  ;;  %v18806_v31 = vld [vmem:[%s19479_s30 + $0x25d0] sm:$0xf0] }
 0x50e   : > { %v10878_v30 = vadd.f32 %v10877_v24, %v10865_v12  ;;  %v16660_v38 = vor.u32 %v18806_v31, %v16659_v48  ;;  %v22297_v12 = vld [vmem:[%s19921_s6 + $0x20] sm:$0xff] }
 0x50f   : > { %11129 = vmatpush.bf16.msrb.mxu2 %v15940_v34  ;;  %11142 = vmatpush.bf16.msrb.mxu3 %v17380_v42  ;;  %v11979_v34 = vld [vmem:[%s19479_s30 + $0x90] sm:$0xf]  ;;  %v12160_v42 = vor.u32 %v17681_v9, %v12159_v40  ;;  %v17839_v40 = vld [vmem:[%s19479_s30 + $0x79c] sm:$0xf]  ;;  %v15941_v24 = vld [vmem:[%s19479_s30 + $0x2034] sm:$0xf0] }
 0x510   : > { %v10891_v39 = vadd.f32 %v10890_v36, %v10878_v30  ;;  %v11980_v8 = vor.u32 %v17636_v60, %v11979_v34  ;;  %v12881_v9 = vld [vmem:[%s19479_s30 + $0x84c] sm:$0xf0]  ;;  %v18964_v36 = vld [vmem:[%s19479_s30 + $0x2ac4] sm:$0xf]  ;;  %v1940_v48 = vperm.slane %v22297_v12, 0 }
 0x511   : > { %11105 = vmatpush.bf16.msrb.mxu0 %v12700_v32  ;;  %11118 = vmatpush.bf16.msrb.mxu1 %v14140_v56  ;;  %v15039_v32 = vld [vmem:[%s19479_s30 + $0x1878] sm:$0xf]  ;;  %v18401_v56 = vld [vmem:[%s19479_s30 + $0x1928] sm:$0xf0]  ;;  %v12884_v31 = vor.u32 %v17839_v40, %v12881_v9  ;;  %v17794_v30 = vld [vmem:[%s19479_s30 + $0x634] sm:$0xf] }
 0x512   : > { %v11637_v16 = vrot.slane %v10891_v39, 2  ;;  %v15040_v5 = vor.u32 %v18401_v56, %v15039_v32  ;;  %v12701_v34 = vld [vmem:[%s19479_s30 + $0x6e4] sm:$0xf0]  ;;  %v18154_v60 = vld [vmem:[%s19479_s30 + $0x1174] sm:$0xf] }
 0x513   : > { %11130 = vmatpush.bf16.msrb.mxu2 %v15760_v52  ;;  %11143 = vmatpush.bf16.msrb.mxu3 %v17200_v14  ;;  %v16479_v52 = vld [vmem:[%s19479_s30 + $0x23b8] sm:$0xf]  ;;  %v18761_v14 = vld [vmem:[%s19479_s30 + $0x2468] sm:$0xf0]  ;;  %v12704_v63 = vor.u32 %v17794_v30, %v12701_v34  ;;  %v14144_v32 = vor.u32 %v18154_v60, %v14141_v19  ;;  %v18019_v40 = vld [vmem:[%s19479_s30 + $0xd3c] sm:$0xf] }
 0x514   : > { %v11672_v50 = vsel %vm11649_vm2, %v11636_v45, %v11637_v16  ;;  %v16480_v25 = vor.u32 %v18761_v14, %v16479_v52  ;;  %v17749_v56 = vld [vmem:[%s19479_s30 + $0x4cc] sm:$0xf]  ;;  %v12521_v45 = vld [vmem:[%s19479_s30 + $0x57c] sm:$0xf0]  ;;  %v17204_v14 = vor.u32 %v18919_v59, %v17201_v23  ;;  %v13601_v9 = vld [vmem:[%s19479_s30 + $0xdec] sm:$0xf0] }
 0x515   : > { %11106 = vmatpush.bf16.msrb.mxu0 %v12520_v0  ;;  %11119 = vmatpush.bf16.msrb.mxu1 %v13960_v21  ;;  %v18244_v0 = vld [vmem:[%s19479_s30 + $0x1444] sm:$0xf]  ;;  %v14501_v21 = vld [vmem:[%s19479_s30 + $0x14f4] sm:$0xf0]  ;;  %v11673_v13 = vsel %vm11651_vm3, %v22126_v57, %v11672_v50  ;;  %v13064_v57 = vor.u32 %v17884_v10, %v13061_v3  ;;  %v18514_v10 = vld [vmem:[%s19479_s30 + $0x1cb4] sm:$0xf]  ;;  %v12524_v3 = vor.u32 %v17749_v56, %v12521_v45 }
 0x516   : > { %11701 = vst [vmem:[%s20170_s21 + $0x38] sm:$0xff] %v11673_v13  ;;  %v14504_v41 = vor.u32 %v18244_v0, %v14501_v21  ;;  %v15581_v50 = vld [vmem:[%s19479_s30 + $0x1d64] sm:$0xf0]  ;;  %v17704_v21 = vld [vmem:[%s19479_s30 + $0x364] sm:$0xf] }
 0x517   : > { %11131 = vmatpush.bf16.msrb.mxu2 %v15580_v6  ;;  %11144 = vmatpush.bf16.msrb.mxu3 %v17020_v27  ;;  %v10879_v6 = vpop.f32.mrf.mxu2  ;;  %v10892_v27 = vpop.f32.mrf.mxu3  ;;  %v12341_v13 = vld [vmem:[%s19479_s30 + $0x414] sm:$0xf0]  ;;  %v17974_v30 = vld [vmem:[%s19479_s30 + $0xbd4] sm:$0xf]  ;;  %v13421_v60 = vld [vmem:[%s19479_s30 + $0xc84] sm:$0xf0] }
 0x518   : > { %v18064_v6 = vld [vmem:[%s19479_s30 + $0xea4] sm:$0xf]  ;;  %v13781_v27 = vld [vmem:[%s19479_s30 + $0xf54] sm:$0xf0]  ;;  %v13247_v19 = vld [vmem:[%s19479_s30 + $0xa70] sm:$0xf] }
 0x519   : > { %11107 = vmatpush.bf16.msrb.mxu0 %v12340_v61  ;;  %11120 = vmatpush.bf16.msrb.mxu1 %v13780_v7  ;;  %v14860_v61 = vor.u32 %v18356_v22, %v14859_v4  ;;  %v16300_v7 = vor.u32 %v18716_v49, %v16299_v1  ;;  %v18469_v4 = vld [vmem:[%s19479_s30 + $0x1b4c] sm:$0xf]  ;;  %v15401_v49 = vld [vmem:[%s19479_s30 + $0x1bfc] sm:$0xf0]  ;;  %v15041_v59 = vld [vmem:[%s19479_s30 + $0x192c] sm:$0xf0] }
 0x51a   : > { %v18739_v23 = vld [vmem:[%s19479_s30 + $0x23bc] sm:$0xf] }
 0x51b   : > { %11132 = vmatpush.bf16.msrb.mxu2 %v15400_v43  ;;  %11145 = vmatpush.bf16.msrb.mxu3 %v16840_v26  ;;  %v16124_v43 = vor.u32 %v18649_v17, %v16121_v35  ;;  %v17564_v26 = vor.u32 %v19009_v37, %v17561_v15  ;;  %v18829_v17 = vld [vmem:[%s19479_s30 + $0x268c] sm:$0xf]  ;;  %v16841_v35 = vld [vmem:[%s19479_s30 + $0x273c] sm:$0xf0]  ;;  %v12344_v37 = vor.u32 %v17704_v21, %v12341_v13  ;;  %v16301_v21 = vld [vmem:[%s19479_s30 + $0x2304] sm:$0xf0] }
 0x51c   : > { %v13784_v15 = vor.u32 %v18064_v6, %v13781_v27  ;;  %v16127_v13 = vld [vmem:[%s19479_s30 + $0x20f0] sm:$0xf]  ;;  %v19032_v6 = vld [vmem:[%s19479_s30 + $0x2ce0] sm:$0xf0] }
 0x51d   : > { %11108 = vmatpush.bf16.msrb.mxu0 %v12160_v42  ;;  %11121 = vmatpush.bf16.msrb.mxu1 %v13600_v55  ;;  %v15944_v42 = vor.u32 %v18604_v11, %v15941_v24  ;;  %v17384_v55 = vor.u32 %v18964_v36, %v17381_v46  ;;  %v18784_v11 = vld [vmem:[%s19479_s30 + $0x2524] sm:$0xf]  ;;  %v16661_v24 = vld [vmem:[%s19479_s30 + $0x25d4] sm:$0xf0] }
 0x51f   : > { %11133 = vmatpush.bf16.msrb.mxu2 %v15220_v47  ;;  %11146 = vmatpush.bf16.msrb.mxu3 %v16660_v38  ;;  %v15761_v38 = vld [vmem:[%s19479_s30 + $0x1ecc] sm:$0xf0] }
 0x520   : > { %v15764_v52 = vor.u32 %v18559_v58, %v15761_v38  ;;  %v17952_v58 = vld [vmem:[%s19479_s30 + $0xb20] sm:$0xf0]  ;;  %v18379_v38 = vld [vmem:[%s19479_s30 + $0x187c] sm:$0xf] }
 0x521   : > { %11109 = vmatpush.bf16.msrb.mxu0 %v11980_v8  ;;  %11122 = vmatpush.bf16.msrb.mxu1 %v13420_v2  ;;  %v10903_v39 = vpop.f32.mrf.mxu0  ;;  %v10916_v47 = vpop.f32.mrf.mxu1  ;;  %v18109_v8 = vld [vmem:[%s19479_s30 + $0x100c] sm:$0xf]  ;;  %v13961_v2 = vld [vmem:[%s19479_s30 + $0x10bc] sm:$0xf0]  ;;  %v13248_v56 = vor.u32 %v17952_v58, %v13247_v19 }
 0x522   : > { %v10904_v62 = vadd.f32 %v10903_v39, %v1940_v48  ;;  %v13964_v0 = vor.u32 %v18109_v8, %v13961_v2  ;;  %v13604_v48 = vor.u32 %v18019_v40, %v13601_v9  ;;  %v14687_v39 = vld [vmem:[%s19479_s30 + $0x15b0] sm:$0xf]  ;;  %v15044_v8 = vor.u32 %v18379_v38, %v15041_v59  ;;  %v18987_v40 = vld [vmem:[%s19479_s30 + $0x2b78] sm:$0xf0] }
 0x523   : > { %11134 = vmatpush.bf16.msrb.mxu2 %v15040_v5  ;;  %11147 = vmatpush.bf16.msrb.mxu3 %v16480_v25  ;;  %v15584_v5 = vor.u32 %v18514_v10, %v15581_v50  ;;  %v1941_v9 = vperm.slane %v22297_v12, 1 }
 0x524   : > { %11110 = vmatmul.bf16.vlgmr.msrb.gmra.mxu0 %v19627_v28  ;;  %11123 = vmatmul.bf16.vlgmr.msrb.gmra.mxu1 %v19629_v29  ;;  %v10917_v16 = vadd.f32 %v10916_v47, %v10904_v62  ;;  %v18312_v47 = vld [vmem:[%s19479_s30 + $0x1660] sm:$0xf0]  ;;  %v16481_v62 = vld [vmem:[%s19479_s30 + $0x246c] sm:$0xf0] }
 0x525   : > { %11154 = vmatpush.bf16.msra.mxu0 %v13244_v18  ;;  %11167 = vmatpush.bf16.msra.mxu1 %v14684_v20  ;;  %v18874_v18 = vld [vmem:[%s19479_s30 + $0x27f4] sm:$0xf]  ;;  %v17021_v20 = vld [vmem:[%s19479_s30 + $0x28a4] sm:$0xf0]  ;;  %v14688_v45 = vor.u32 %v18312_v47, %v14687_v39  ;;  %v16484_v2 = vor.u32 %v18739_v23, %v16481_v62  ;;  %v12527_v39 = vld [vmem:[%s19479_s30 + $0x4d0] sm:$0xf] }
 0x526   : > { %v17024_v25 = vor.u32 %v18874_v18, %v17021_v20  ;;  %v18267_v18 = vld [vmem:[%s19479_s30 + $0x14f8] sm:$0xf0]  ;;  %v18334_v20 = vld [vmem:[%s19479_s30 + $0x1714] sm:$0xf]  ;;  %v17772_v47 = vld [vmem:[%s19479_s30 + $0x580] sm:$0xf0] }
 0x527   : > { %11135 = vmatpush.bf16.msrb.mxu2 %v14860_v61  ;;  %11148 = vmatpush.bf16.msrb.mxu3 %v16300_v7  ;;  %v15404_v61 = vor.u32 %v18469_v4, %v15401_v49  ;;  %v16844_v7 = vor.u32 %v18829_v17, %v16841_v35  ;;  %v12887_v49 = vld [vmem:[%s19479_s30 + $0x7a0] sm:$0xf]  ;;  %v17862_v17 = vld [vmem:[%s19479_s30 + $0x850] sm:$0xf0]  ;;  %v13967_v62 = vld [vmem:[%s19479_s30 + $0x1010] sm:$0xf] }
 0x529   : > { %11155 = vmatpush.bf16.msra.mxu0 %v13064_v57  ;;  %11168 = vmatpush.bf16.msra.mxu1 %v14504_v41  ;;  %v10905_v22 = vpop.f32.mrf.mxu0  ;;  %v10918_v1 = vpop.f32.mrf.mxu1  ;;  %v17659_v57 = vld [vmem:[%s19479_s30 + $0x1fc] sm:$0xf]  ;;  %v12161_v41 = vld [vmem:[%s19479_s30 + $0x2ac] sm:$0xf0] }
 0x52a   : > { %11136 = vmatmul.bf16.vlgmr.msrb.gmra.mxu2 %v19645_v53  ;;  %11149 = vmatmul.bf16.vlgmr.msrb.gmra.mxu3 %v19647_v54  ;;  %v12164_v46 = vor.u32 %v17659_v57, %v12161_v41  ;;  %v18222_v57 = vld [vmem:[%s19479_s30 + $0x1390] sm:$0xf0]  ;;  %v15947_v41 = vld [vmem:[%s19479_s30 + $0x1f88] sm:$0xf] }
 0x52b   : > { %11180 = vmatpush.bf16.msra.mxu2 %v16124_v43  ;;  %11193 = vmatpush.bf16.msra.mxu3 %v17564_v26  ;;  %v18424_v43 = vld [vmem:[%s19479_s30 + $0x19e4] sm:$0xf] }
 0x52d   : > { %11156 = vmatpush.bf16.msra.mxu0 %v12884_v31  ;;  %11169 = vmatpush.bf16.msra.mxu1 %v14324_v51  ;;  %v10929_v26 = vpop.f32.mrf.mxu2  ;;  %v10942_v33 = vpop.f32.mrf.mxu3  ;;  %v17614_v31 = vld [vmem:[%s19479_s30 + $0x94] sm:$0xf]  ;;  %v11981_v51 = vld [vmem:[%s19479_s30 + $0x144] sm:$0xf0] }
 0x52e   : > { %v10930_v36 = vadd.f32 %v10929_v26, %v10917_v16  ;;  %v13067_v16 = vld [vmem:[%s19479_s30 + $0x908] sm:$0xf] }
 0x52f   : > { %11181 = vmatpush.bf16.msra.mxu2 %v15944_v42  ;;  %11194 = vmatpush.bf16.msra.mxu3 %v17384_v55  ;;  %v15224_v42 = vor.u32 %v18424_v43, %v15221_v44  ;;  %v16664_v55 = vor.u32 %v18784_v11, %v16661_v24  ;;  %v12888_v43 = vor.u32 %v17862_v17, %v12887_v49  ;;  %v17817_v44 = vld [vmem:[%s19479_s30 + $0x6e8] sm:$0xf0]  ;;  %v13607_v17 = vld [vmem:[%s19479_s30 + $0xd40] sm:$0xf] }
 0x530   : > { %v22345_v34 = vadd.f32 %v10942_v33, %v10930_v36  ;;  %v12707_v33 = vld [vmem:[%s19479_s30 + $0x638] sm:$0xf] }
 0x531   : > { %11157 = vmatpush.bf16.msra.mxu0 %v12704_v63  ;;  %11170 = vmatpush.bf16.msra.mxu1 %v14144_v32  ;;  %v11984_v63 = vor.u32 %v17614_v31, %v11981_v51  ;;  %v13424_v32 = vor.u32 %v17974_v30, %v13421_v60  ;;  %v14147_v36 = vld [vmem:[%s19479_s30 + $0x1178] sm:$0xf]  ;;  %v18582_v30 = vld [vmem:[%s19479_s30 + $0x1ed0] sm:$0xf0]  ;;  %v12708_v19 = vor.u32 %v17817_v44, %v12707_v33  ;;  %v17637_v33 = vld [vmem:[%s19479_s30 + $0x148] sm:$0xf0] }
 0x532   : > { %v13427_v44 = vld [vmem:[%s19479_s30 + $0xbd8] sm:$0xf] }
 0x533   : > { %11182 = vmatpush.bf16.msra.mxu2 %v15764_v52  ;;  %11195 = vmatpush.bf16.msra.mxu3 %v17204_v14  ;;  %v17907_v52 = vld [vmem:[%s19479_s30 + $0x9b8] sm:$0xf0]  ;;  %v14507_v14 = vld [vmem:[%s19479_s30 + $0x1448] sm:$0xf] }
 0x534   : > { %v13068_v27 = vor.u32 %v17907_v52, %v13067_v16  ;;  %v14508_v4 = vor.u32 %v18267_v18, %v14507_v14  ;;  %v18897_v16 = vld [vmem:[%s19479_s30 + $0x28a8] sm:$0xf0]  ;;  %v12528_v52 = vor.u32 %v17772_v47, %v12527_v39  ;;  %v13787_v18 = vld [vmem:[%s19479_s30 + $0xea8] sm:$0xf] }
 0x535   : > { %11158 = vmatpush.bf16.msra.mxu0 %v12524_v3  ;;  %11171 = vmatpush.bf16.msra.mxu1 %v13964_v0  ;;  %v10931_v10 = vpop.f32.mrf.mxu2  ;;  %v10944_v50 = vpop.f32.mrf.mxu3  ;;  %v14861_v3 = vld [vmem:[%s19479_s30 + $0x17c4] sm:$0xf0]  ;;  %v18694_v0 = vld [vmem:[%s19479_s30 + $0x2254] sm:$0xf] }
 0x536   : > { %v14864_v22 = vor.u32 %v18334_v20, %v14861_v3  ;;  %v16304_v1 = vor.u32 %v18694_v0, %v16301_v21  ;;  %v18087_v20 = vld [vmem:[%s19479_s30 + $0xf58] sm:$0xf0]  ;;  %v15407_v3 = vld [vmem:[%s19479_s30 + $0x1b50] sm:$0xf] }
 0x537   : > { %11183 = vmatpush.bf16.msra.mxu2 %v15584_v5  ;;  %11196 = vmatpush.bf16.msra.mxu3 %v17024_v25  ;;  %v18672_v5 = vld [vmem:[%s19479_s30 + $0x21a0] sm:$0xf0]  ;;  %v17567_v25 = vld [vmem:[%s19479_s30 + $0x2c30] sm:$0xf] }
 0x538   : > { %v16128_v35 = vor.u32 %v18672_v5, %v16127_v13  ;;  %v18492_v13 = vld [vmem:[%s19479_s30 + $0x1c00] sm:$0xf0]  ;;  %v16847_v5 = vld [vmem:[%s19479_s30 + $0x2690] sm:$0xf] }
 0x539   : > { %11159 = vmatpush.bf16.msra.mxu0 %v12344_v37  ;;  %11172 = vmatpush.bf16.msra.mxu1 %v13784_v15  ;;  %v17568_v37 = vor.u32 %v19032_v6, %v17567_v25  ;;  %v14327_v15 = vld [vmem:[%s19479_s30 + $0x12e0] sm:$0xf]  ;;  %v18852_v25 = vld [vmem:[%s19479_s30 + $0x2740] sm:$0xf0] }
 0x53a   : > { %v14328_v26 = vor.u32 %v18222_v57, %v14327_v15  ;;  %v16848_v49 = vor.u32 %v18852_v25, %v16847_v5  ;;  %v17840_v25 = vld [vmem:[%s19479_s30 + $0x7a4] sm:$0xf] }
 0x53b   : > { %11184 = vmatpush.bf16.msra.mxu2 %v15404_v61  ;;  %11197 = vmatpush.bf16.msra.mxu3 %v16844_v7  ;;  %v18627_v61 = vld [vmem:[%s19479_s30 + $0x2038] sm:$0xf0]  ;;  %v17387_v7 = vld [vmem:[%s19479_s30 + $0x2ac8] sm:$0xf] }
 0x53c   : > { %v15948_v11 = vor.u32 %v18627_v61, %v15947_v41  ;;  %v17388_v24 = vor.u32 %v18987_v40, %v17387_v7  ;;  %v18447_v41 = vld [vmem:[%s19479_s30 + $0x1a98] sm:$0xf0]  ;;  %v16667_v61 = vld [vmem:[%s19479_s30 + $0x2528] sm:$0xf] }
 0x53d   : > { %11160 = vmatpush.bf16.msra.mxu0 %v12164_v46  ;;  %11173 = vmatpush.bf16.msra.mxu1 %v13604_v48  ;;  %v18177_v46 = vld [vmem:[%s19479_s30 + $0x1228] sm:$0xf0]  ;;  %v15767_v48 = vld [vmem:[%s19479_s30 + $0x1e20] sm:$0xf]  ;;  %v18807_v7 = vld [vmem:[%s19479_s30 + $0x25d8] sm:$0xf0] }
 0x53e   : > { %v14148_v58 = vor.u32 %v18177_v46, %v14147_v36  ;;  %v15768_v59 = vor.u32 %v18582_v30, %v15767_v48  ;;  %v16668_v46 = vor.u32 %v18807_v7, %v16667_v61  ;;  %v17930_v48 = vld [vmem:[%s19479_s30 + $0xa74] sm:$0xf]  ;;  %v14689_v30 = vld [vmem:[%s19479_s30 + $0x1664] sm:$0xf0]  ;;  %v12709_v61 = vld [vmem:[%s19479_s30 + $0x6ec] sm:$0xf0] }
 0x53f   : > { %11185 = vmatpush.bf16.msra.mxu2 %v15224_v42  ;;  %11198 = vmatpush.bf16.msra.mxu3 %v16664_v55  ;;  %v17207_v42 = vld [vmem:[%s19479_s30 + $0x2960] sm:$0xf]  ;;  %v18942_v55 = vld [vmem:[%s19479_s30 + $0x2a10] sm:$0xf0] }
 0x540   : > { %v17208_v23 = vor.u32 %v18942_v55, %v17207_v42  ;;  %v15047_v42 = vld [vmem:[%s19479_s30 + $0x1880] sm:$0xf]  ;;  %v18402_v55 = vld [vmem:[%s19479_s30 + $0x1930] sm:$0xf0] }
 0x541   : > { %11161 = vmatpush.bf16.msra.mxu0 %v11984_v63  ;;  %11174 = vmatpush.bf16.msra.mxu1 %v13424_v32  ;;  %v10955_v31 = vpop.f32.mrf.mxu0  ;;  %v10968_v51 = vpop.f32.mrf.mxu1  ;;  %v18132_v63 = vld [vmem:[%s19479_s30 + $0x10c0] sm:$0xf0]  ;;  %v15587_v32 = vld [vmem:[%s19479_s30 + $0x1cb8] sm:$0xf] }
 0x542   : > { %v10956_v60 = vadd.f32 %v10955_v31, %v1941_v9  ;;  %v13968_v14 = vor.u32 %v18132_v63, %v13967_v62  ;;  %v11987_v9 = vld [vmem:[%s19479_s30 + $0x98] sm:$0xf]  ;;  %v13249_v31 = vld [vmem:[%s19479_s30 + $0xb24] sm:$0xf0]  ;;  %v17885_v62 = vld [vmem:[%s19479_s30 + $0x90c] sm:$0xf] }
 0x543   : > { %11186 = vmatpush.bf16.msra.mxu2 %v15044_v8  ;;  %11199 = vmatpush.bf16.msra.mxu3 %v16484_v2  ;;  %v12347_v8 = vld [vmem:[%s19479_s30 + $0x368] sm:$0xf]  ;;  %v17727_v2 = vld [vmem:[%s19479_s30 + $0x418] sm:$0xf0]  ;;  %v11988_v39 = vor.u32 %v17637_v33, %v11987_v9  ;;  %v13069_v63 = vld [vmem:[%s19479_s30 + $0x9bc] sm:$0xf0] }
 0x544   : > { %11162 = vmatmul.bf16.vlgmr.msra.gmra.mxu0 %v19627_v28  ;;  %11175 = vmatmul.bf16.vlgmr.msra.gmra.mxu1 %v19629_v29  ;;  %v10969_v38 = vadd.f32 %v10968_v51, %v10956_v60  ;;  %v12348_v6 = vor.u32 %v17727_v2, %v12347_v8  ;;  %v18290_v51 = vld [vmem:[%s19479_s30 + $0x15b4] sm:$0xf]  ;;  %v14867_v8 = vld [vmem:[%s19479_s30 + $0x1718] sm:$0xf]  ;;  %v18155_v9 = vld [vmem:[%s19479_s30 + $0x117c] sm:$0xf] }
 0x545   : > { %11206 = vmatpush.bf16.msrb.mxu0 %v13248_v56  ;;  %11219 = vmatpush.bf16.msrb.mxu1 %v14688_v45  ;;  %v18537_v56 = vld [vmem:[%s19479_s30 + $0x1d68] sm:$0xf0]  ;;  %v17027_v45 = vld [vmem:[%s19479_s30 + $0x27f8] sm:$0xf] }
 0x546   : > { %v15588_v10 = vor.u32 %v18537_v56, %v15587_v32  ;;  %v17028_v50 = vor.u32 %v18897_v16, %v17027_v45  ;;  %v18245_v32 = vld [vmem:[%s19479_s30 + $0x144c] sm:$0xf]  ;;  %v15048_v56 = vor.u32 %v18402_v55, %v15047_v42  ;;  %v16307_v2 = vld [vmem:[%s19479_s30 + $0x2258] sm:$0xf]  ;;  %v18110_v55 = vld [vmem:[%s19479_s30 + $0x1014] sm:$0xf] }
 0x547   : > { %11187 = vmatpush.bf16.msra.mxu2 %v14864_v22  ;;  %11200 = vmatpush.bf16.msra.mxu3 %v16304_v1  ;;  %v17682_v22 = vld [vmem:[%s19479_s30 + $0x2b0] sm:$0xf0]  ;;  %v15408_v1 = vor.u32 %v18492_v13, %v15407_v3  ;;  %v17569_v3 = vld [vmem:[%s19479_s30 + $0x2ce4] sm:$0xf0] }
 0x549   : > { %11207 = vmatpush.bf16.msrb.mxu0 %v13068_v27  ;;  %11220 = vmatpush.bf16.msrb.mxu1 %v14508_v4  ;;  %v10957_v0 = vpop.f32.mrf.mxu0  ;;  %v10970_v21 = vpop.f32.mrf.mxu1  ;;  %v13788_v27 = vor.u32 %v18087_v20, %v13787_v18  ;;  %v12167_v4 = vld [vmem:[%s19479_s30 + $0x200] sm:$0xf]  ;;  %v16129_v18 = vld [vmem:[%s19479_s30 + $0x21a4] sm:$0xf0]  ;;  %v19010_v20 = vld [vmem:[%s19479_s30 + $0x2c34] sm:$0xf] }
 0x54a   : > { %11188 = vmatmul.bf16.vlgmr.msra.gmra.mxu2 %v19645_v53  ;;  %11201 = vmatmul.bf16.vlgmr.msra.gmra.mxu3 %v19647_v54  ;;  %v13072_v0 = vor.u32 %v17885_v62, %v13069_v63  ;;  %v17705_v62 = vld [vmem:[%s19479_s30 + $0x36c] sm:$0xf]  ;;  %v12349_v63 = vld [vmem:[%s19479_s30 + $0x41c] sm:$0xf0] }
 0x54b   : > { %11232 = vmatpush.bf16.msrb.mxu2 %v16128_v35  ;;  %11245 = vmatpush.bf16.msrb.mxu3 %v17568_v37  ;;  %v18042_v35 = vld [vmem:[%s19479_s30 + $0xdf0] sm:$0xf0]  ;;  %v15227_v37 = vld [vmem:[%s19479_s30 + $0x19e8] sm:$0xf] }
 0x54c   : > { %v15228_v36 = vor.u32 %v18447_v41, %v15227_v37  ;;  %v17389_v37 = vld [vmem:[%s19479_s30 + $0x2b7c] sm:$0xf0]  ;;  %v17795_v41 = vld [vmem:[%s19479_s30 + $0x63c] sm:$0xf] }
 0x54d   : > { %11208 = vmatpush.bf16.msrb.mxu0 %v12888_v43  ;;  %11221 = vmatpush.bf16.msrb.mxu1 %v14328_v26  ;;  %v10981_v15 = vpop.f32.mrf.mxu2  ;;  %v10994_v57 = vpop.f32.mrf.mxu3  ;;  %v12168_v43 = vor.u32 %v17682_v22, %v12167_v4  ;;  %v13608_v26 = vor.u32 %v18042_v35, %v13607_v17  ;;  %v17572_v4 = vor.u32 %v19010_v20, %v17569_v3  ;;  %v18200_v22 = vld [vmem:[%s19479_s30 + $0x12e4] sm:$0xf]  ;;  %v15949_v17 = vld [vmem:[%s19479_s30 + $0x203c] sm:$0xf0]  ;;  %v18965_v35 = vld [vmem:[%s19479_s30 + $0x2acc] sm:$0xf] }
 0x54e   : > { %v10982_v40 = vadd.f32 %v10981_v15, %v10969_v38  ;;  %v17660_v20 = vld [vmem:[%s19479_s30 + $0x204] sm:$0xf]  ;;  %v12169_v3 = vld [vmem:[%s19479_s30 + $0x2b4] sm:$0xf0] }
 0x54f   : > { %11233 = vmatpush.bf16.msrb.mxu2 %v15948_v11  ;;  %11246 = vmatpush.bf16.msrb.mxu3 %v17388_v24  ;;  %v17997_v11 = vld [vmem:[%s19479_s30 + $0xc88] sm:$0xf0] }
 0x550   : > { %v10995_v24 = vadd.f32 %v10994_v57, %v10982_v40  ;;  %v13428_v47 = vor.u32 %v17997_v11, %v13427_v44  ;;  %v17392_v40 = vor.u32 %v18965_v35, %v17389_v37  ;;  %v15769_v11 = vld [vmem:[%s19479_s30 + $0x1ed4] sm:$0xf0]  ;;  %v17615_v35 = vld [vmem:[%s19479_s30 + $0x9c] sm:$0xf]  ;;  %v11989_v37 = vld [vmem:[%s19479_s30 + $0x14c] sm:$0xf0] }
 0x551   : > { %11209 = vmatpush.bf16.msrb.mxu0 %v12708_v19  ;;  %11222 = vmatpush.bf16.msrb.mxu1 %v14148_v58  ;;  %v16487_v19 = vld [vmem:[%s19479_s30 + $0x23c0] sm:$0xf]  ;;  %v18762_v58 = vld [vmem:[%s19479_s30 + $0x2470] sm:$0xf0] }
 0x552   : > { %v11638_v60 = vrot.slane %v10995_v24, 6  ;;  %v16488_v45 = vor.u32 %v18762_v58, %v16487_v19  ;;  %v18920_v24 = vld [vmem:[%s19479_s30 + $0x2964] sm:$0xf]  ;;  %v18515_v19 = vld [vmem:[%s19479_s30 + $0x1cbc] sm:$0xf] }
 0x553   : > { %11234 = vmatpush.bf16.msrb.mxu2 %v15768_v59  ;;  %11247 = vmatpush.bf16.msrb.mxu3 %v17208_v23  ;;  %v13252_v59 = vor.u32 %v17930_v48, %v13249_v31  ;;  %v14692_v23 = vor.u32 %v18290_v51, %v14689_v30  ;;  %v17750_v31 = vld [vmem:[%s19479_s30 + $0x4d4] sm:$0xf]  ;;  %v12529_v51 = vld [vmem:[%s19479_s30 + $0x584] sm:$0xf0]  ;;  %v15589_v58 = vld [vmem:[%s19479_s30 + $0x1d6c] sm:$0xf0] }
 0x554   : > { %v22427_v38 = vsel %vm11647_vm1, %v22345_v34, %v11638_v60  ;;  %v18357_v34 = vld [vmem:[%s19479_s30 + $0x17c8] sm:$0xf0]  ;;  %v13969_v60 = vld [vmem:[%s19479_s30 + $0x10c4] sm:$0xf0] }
 0x555   : > { %11210 = vmatpush.bf16.msrb.mxu0 %v12528_v52  ;;  %11223 = vmatpush.bf16.msrb.mxu1 %v13968_v14  ;;  %v10983_v16 = vpop.f32.mrf.mxu2  ;;  %v10996_v52 = vpop.f32.mrf.mxu3  ;;  %v14509_v14 = vld [vmem:[%s19479_s30 + $0x14fc] sm:$0xf0]  ;;  %v14868_v13 = vor.u32 %v18357_v34, %v14867_v8  ;;  %v15409_v34 = vld [vmem:[%s19479_s30 + $0x1c04] sm:$0xf0] }
 0x556   : > { %v14512_v21 = vor.u32 %v18245_v32, %v14509_v14  ;;  %v15592_v32 = vor.u32 %v18515_v19, %v15589_v58  ;;  %v13789_v16 = vld [vmem:[%s19479_s30 + $0xf5c] sm:$0xf0]  ;;  %v18470_v52 = vld [vmem:[%s19479_s30 + $0x1b54] sm:$0xf] }
 0x557   : > { %11235 = vmatpush.bf16.msrb.mxu2 %v15588_v10  ;;  %11248 = vmatpush.bf16.msrb.mxu3 %v17028_v50  ;;  %v18717_v10 = vld [vmem:[%s19479_s30 + $0x2308] sm:$0xf0]  ;;  %v18650_v50 = vld [vmem:[%s19479_s30 + $0x20f4] sm:$0xf] }
 0x558   : > { %v16308_v5 = vor.u32 %v18717_v10, %v16307_v2  ;;  %v18830_v2 = vld [vmem:[%s19479_s30 + $0x2694] sm:$0xf]  ;;  %v16849_v10 = vld [vmem:[%s19479_s30 + $0x2744] sm:$0xf0] }
 0x559   : > { %11211 = vmatpush.bf16.msrb.mxu0 %v12348_v6  ;;  %11224 = vmatpush.bf16.msrb.mxu1 %v13788_v27  ;;  %v12889_v6 = vld [vmem:[%s19479_s30 + $0x854] sm:$0xf0]  ;;  %v16132_v27 = vor.u32 %v18650_v50, %v16129_v18  ;;  %v12352_v50 = vor.u32 %v17705_v62, %v12349_v63  ;;  %v18695_v62 = vld [vmem:[%s19479_s30 + $0x225c] sm:$0xf]  ;;  %v16309_v63 = vld [vmem:[%s19479_s30 + $0x230c] sm:$0xf0] }
 0x55a   : > { %v12892_v15 = vor.u32 %v17840_v25, %v12889_v6  ;;  %v18425_v25 = vld [vmem:[%s19479_s30 + $0x19ec] sm:$0xf] }
 0x55b   : > { %11236 = vmatpush.bf16.msrb.mxu2 %v15408_v1  ;;  %11249 = vmatpush.bf16.msrb.mxu3 %v16848_v49  ;;  %v14329_v1 = vld [vmem:[%s19479_s30 + $0x1394] sm:$0xf0]  ;;  %v18605_v49 = vld [vmem:[%s19479_s30 + $0x1f8c] sm:$0xf] }
 0x55c   : > { %v14332_v57 = vor.u32 %v18200_v22, %v14329_v1  ;;  %v15952_v7 = vor.u32 %v18605_v49, %v15949_v17  ;;  %v18785_v22 = vld [vmem:[%s19479_s30 + $0x252c] sm:$0xf]  ;;  %v16669_v1 = vld [vmem:[%s19479_s30 + $0x25dc] sm:$0xf0]  ;;  %v12172_v49 = vor.u32 %v17660_v20, %v12169_v3  ;;  %v14335_v20 = vld [vmem:[%s19479_s30 + $0x12e8] sm:$0xf] }
 0x55d   : > { %11212 = vmatpush.bf16.msrb.mxu0 %v12168_v43  ;;  %11225 = vmatpush.bf16.msrb.mxu1 %v13608_v26  ;;  %v14149_v43 = vld [vmem:[%s19479_s30 + $0x122c] sm:$0xf0]  ;;  %v18560_v26 = vld [vmem:[%s19479_s30 + $0x1e24] sm:$0xf]  ;;  %v18223_v3 = vld [vmem:[%s19479_s30 + $0x1398] sm:$0xf0] }
 0x55e   : > { %v14152_v48 = vor.u32 %v18155_v9, %v14149_v43  ;;  %v15772_v30 = vor.u32 %v18560_v26, %v15769_v11  ;;  %v14695_v9 = vld [vmem:[%s19479_s30 + $0x15b8] sm:$0xf]  ;;  %v18313_v43 = vld [vmem:[%s19479_s30 + $0x1668] sm:$0xf0]  ;;  %v18380_v26 = vld [vmem:[%s19479_s30 + $0x1884] sm:$0xf] }
 0x55f   : > { %11237 = vmatpush.bf16.msrb.mxu2 %v15228_v36  ;;  %11250 = vmatpush.bf16.msrb.mxu3 %v16668_v46  ;;  %v17209_v36 = vld [vmem:[%s19479_s30 + $0x2a14] sm:$0xf0]  ;;  %v12712_v46 = vor.u32 %v17795_v41, %v12709_v61  ;;  %v16672_v41 = vor.u32 %v18785_v22, %v16669_v1  ;;  %v13429_v61 = vld [vmem:[%s19479_s30 + $0xc8c] sm:$0xf0]  ;;  %v14336_v22 = vor.u32 %v18223_v3, %v14335_v20  ;;  %v12715_v1 = vld [vmem:[%s19479_s30 + $0x640] sm:$0xf] }
 0x560   : > { %v17212_v42 = vor.u32 %v18920_v24, %v17209_v36  ;;  %v15049_v11 = vld [vmem:[%s19479_s30 + $0x1934] sm:$0xf0]  ;;  %v18740_v24 = vld [vmem:[%s19479_s30 + $0x23c4] sm:$0xf] }
 0x561   : > { %11213 = vmatpush.bf16.msrb.mxu0 %v11988_v39  ;;  %11226 = vmatpush.bf16.msrb.mxu1 %v13428_v47  ;;  %v22456_v33 = vpop.f32.mrf.mxu0  ;;  %v22458_v44 = vpop.f32.mrf.mxu1  ;;  %v18875_v39 = vld [vmem:[%s19479_s30 + $0x27fc] sm:$0xf]  ;;  %v17029_v47 = vld [vmem:[%s19479_s30 + $0x28ac] sm:$0xf0]  ;;  %v16489_v36 = vld [vmem:[%s19479_s30 + $0x2474] sm:$0xf0] }
 0x562   : > { %v16492_v19 = vor.u32 %v18740_v24, %v16489_v36  ;;  %v12535_v36 = vld [vmem:[%s19479_s30 + $0x4d8] sm:$0xf] }
 0x563   : > { %11238 = vmatpush.bf16.msrb.mxu2 %v15048_v56  ;;  %11251 = vmatpush.bf16.msrb.mxu3 %v16488_v45  ;;  %v17032_v56 = vor.u32 %v18875_v39, %v17029_v47  ;;  %v18065_v45 = vld [vmem:[%s19479_s30 + $0xeac] sm:$0xf]  ;;  %v18268_v47 = vld [vmem:[%s19479_s30 + $0x1500] sm:$0xf0] }
 0x564   : > { %11214 = vmatmul.bf16.vlgmr.msrb.gmra.mxu0 %v19627_v28  ;;  %11227 = vmatmul.bf16.vlgmr.msrb.gmra.mxu1 %v19629_v29  ;;  %v13792_v18 = vor.u32 %v18065_v45, %v13789_v16  ;;  %v17575_v45 = vld [vmem:[%s19479_s30 + $0x2c38] sm:$0xf]  ;;  %v19033_v16 = vld [vmem:[%s19479_s30 + $0x2ce8] sm:$0xf0] }
 0x565   : > { %11258 = vmatpush.bf16.msra.mxu0 %v13252_v59  ;;  %11271 = vmatpush.bf16.msra.mxu1 %v14692_v23  ;;  %v12532_v59 = vor.u32 %v17750_v31, %v12529_v51  ;;  %v13972_v23 = vor.u32 %v18110_v55, %v13969_v60  ;;  %v14696_v51 = vor.u32 %v18313_v43, %v14695_v9  ;;  %v14515_v55 = vld [vmem:[%s19479_s30 + $0x1450] sm:$0xf]  ;;  %v18943_v9 = vld [vmem:[%s19479_s30 + $0x2a18] sm:$0xf0] }
 0x566   : > { %v15052_v60 = vor.u32 %v18380_v26, %v15049_v11  ;;  %v1943_v26 = vperm.slane %v22297_v12, 3 }
 0x567   : > { %11239 = vmatpush.bf16.msrb.mxu2 %v14868_v13  ;;  %11252 = vmatpush.bf16.msrb.mxu3 %v16308_v5  ;;  %v18020_v13 = vld [vmem:[%s19479_s30 + $0xd44] sm:$0xf]  ;;  %v13609_v5 = vld [vmem:[%s19479_s30 + $0xdf4] sm:$0xf0] }
 0x568   : > { %v13612_v17 = vor.u32 %v18020_v13, %v13609_v5  ;;  %v17395_v13 = vld [vmem:[%s19479_s30 + $0x2ad0] sm:$0xf]  ;;  %v18988_v5 = vld [vmem:[%s19479_s30 + $0x2b80] sm:$0xf0] }
 0x569   : > { %11259 = vmatpush.bf16.msra.mxu0 %v13072_v0  ;;  %11272 = vmatpush.bf16.msra.mxu1 %v14512_v21  ;;  %v11009_v14 = vpop.f32.mrf.mxu0  ;;  %v11022_v8 = vpop.f32.mrf.mxu1  ;;  %v15412_v0 = vor.u32 %v18470_v52, %v15409_v34  ;;  %v16852_v21 = vor.u32 %v18830_v2, %v16849_v10  ;;  %v16312_v34 = vor.u32 %v18695_v62, %v16309_v63  ;;  %v12895_v2 = vld [vmem:[%s19479_s30 + $0x7a8] sm:$0xf]  ;;  %v17863_v10 = vld [vmem:[%s19479_s30 + $0x858] sm:$0xf0]  ;;  %v13795_v63 = vld [vmem:[%s19479_s30 + $0xeb0] sm:$0xf] }
 0x56a   : > { %11240 = vmatmul.bf16.vlgmr.msrb.gmra.mxu2 %v19645_v53  ;;  %11253 = vmatmul.bf16.vlgmr.msrb.gmra.mxu3 %v19647_v54  ;;  %v14516_v14 = vor.u32 %v18268_v47, %v14515_v55  ;;  %v17035_v55 = vld [vmem:[%s19479_s30 + $0x2800] sm:$0xf]  ;;  %v17728_v47 = vld [vmem:[%s19479_s30 + $0x420] sm:$0xf0] }
 0x56b   : > { %11284 = vmatpush.bf16.msra.mxu2 %v16132_v27  ;;  %11297 = vmatpush.bf16.msra.mxu3 %v17572_v4  ;;  %v15229_v4 = vld [vmem:[%s19479_s30 + $0x1a9c] sm:$0xf0] }
 0x56d   : > { %11260 = vmatpush.bf16.msra.mxu0 %v12892_v15  ;;  %11273 = vmatpush.bf16.msra.mxu1 %v14332_v57  ;;  %v22486_v6 = vpop.f32.mrf.mxu2  ;;  %v22488_v27 = vpop.f32.mrf.mxu3  ;;  %v17975_v15 = vld [vmem:[%s19479_s30 + $0xbdc] sm:$0xf]  ;;  %v15232_v57 = vor.u32 %v18425_v25, %v15229_v4  ;;  %v1942_v25 = vperm.slane %v22297_v12, 2  ;;  %v12896_v4 = vor.u32 %v17863_v10, %v12895_v2  ;;  %v12175_v10 = vld [vmem:[%s19479_s30 + $0x208] sm:$0xf] }
 0x56f   : > { %11285 = vmatpush.bf16.msra.mxu2 %v15952_v7  ;;  %11298 = vmatpush.bf16.msra.mxu3 %v17392_v40  ;;  %v13255_v7 = vld [vmem:[%s19479_s30 + $0xa78] sm:$0xf]  ;;  %v17953_v40 = vld [vmem:[%s19479_s30 + $0xb28] sm:$0xf0]  ;;  %v11008_v43 = vadd.f32 %v22456_v33, %v1942_v25  ;;  %v18538_v33 = vld [vmem:[%s19479_s30 + $0x1d70] sm:$0xf0] }
 0x570   : > { %v13256_v31 = vor.u32 %v17953_v40, %v13255_v7  ;;  %v18583_v7 = vld [vmem:[%s19479_s30 + $0x1ed8] sm:$0xf0]  ;;  %v17215_v40 = vld [vmem:[%s19479_s30 + $0x2968] sm:$0xf]  ;;  %v18448_v25 = vld [vmem:[%s19479_s30 + $0x1aa0] sm:$0xf0] }
 0x571   : > { %11261 = vmatpush.bf16.msra.mxu0 %v12712_v46  ;;  %11274 = vmatpush.bf16.msra.mxu1 %v14152_v48  ;;  %v11992_v46 = vor.u32 %v17615_v35, %v11989_v37  ;;  %v13432_v48 = vor.u32 %v17975_v15, %v13429_v61  ;;  %v17396_v35 = vor.u32 %v18988_v5, %v17395_v13  ;;  %v14155_v37 = vld [vmem:[%s19479_s30 + $0x1180] sm:$0xf]  ;;  %v18178_v15 = vld [vmem:[%s19479_s30 + $0x1230] sm:$0xf0] }
 0x572   : > { %v14156_v24 = vor.u32 %v18178_v15, %v14155_v37  ;;  %v11021_v12 = vadd.f32 %v22458_v44, %v11008_v43  ;;  %v17638_v15 = vld [vmem:[%s19479_s30 + $0x150] sm:$0xf0]  ;;  %v18291_v43 = vld [vmem:[%s19479_s30 + $0x15bc] sm:$0xf] }
 0x573   : > { %11286 = vmatpush.bf16.msra.mxu2 %v15772_v30  ;;  %11299 = vmatpush.bf16.msra.mxu3 %v17212_v42  ;;  %v13075_v30 = vld [vmem:[%s19479_s30 + $0x910] sm:$0xf]  ;;  %v17908_v42 = vld [vmem:[%s19479_s30 + $0x9c0] sm:$0xf0] }
 0x574   : > { %v13076_v52 = vor.u32 %v17908_v42, %v13075_v30  ;;  %v18133_v30 = vld [vmem:[%s19479_s30 + $0x10c8] sm:$0xf0]  ;;  %v15595_v42 = vld [vmem:[%s19479_s30 + $0x1cc0] sm:$0xf] }
 0x575   : > { %11262 = vmatpush.bf16.msra.mxu0 %v12532_v59  ;;  %11275 = vmatpush.bf16.msra.mxu1 %v13972_v23  ;;  %v11035_v58 = vpop.f32.mrf.mxu2  ;;  %v11048_v39 = vpop.f32.mrf.mxu3  ;;  %v18335_v59 = vld [vmem:[%s19479_s30 + $0x171c] sm:$0xf]  ;;  %v14869_v23 = vld [vmem:[%s19479_s30 + $0x17cc] sm:$0xf0] }
 0x576   : > { %v14872_v8 = vor.u32 %v18335_v59, %v14869_v23  ;;  %v12355_v39 = vld [vmem:[%s19479_s30 + $0x370] sm:$0xf]  ;;  %v15596_v23 = vor.u32 %v18538_v33, %v15595_v42  ;;  %v17886_v42 = vld [vmem:[%s19479_s30 + $0x914] sm:$0xf] }
 0x577   : > { %11287 = vmatpush.bf16.msra.mxu2 %v15592_v32  ;;  %11300 = vmatpush.bf16.msra.mxu3 %v17032_v56  ;;  %v16135_v32 = vld [vmem:[%s19479_s30 + $0x20f8] sm:$0xf]  ;;  %v18673_v56 = vld [vmem:[%s19479_s30 + $0x21a8] sm:$0xf0] }
 0x579   : > { %11263 = vmatpush.bf16.msra.mxu0 %v12352_v50  ;;  %11276 = vmatpush.bf16.msra.mxu1 %v13792_v18  ;;  %v16136_v50 = vor.u32 %v18673_v56, %v16135_v32  ;;  %v17576_v18 = vor.u32 %v19033_v16, %v17575_v45  ;;  %v18088_v32 = vld [vmem:[%s19479_s30 + $0xf60] sm:$0xf0]  ;;  %v15415_v56 = vld [vmem:[%s19479_s30 + $0x1b58] sm:$0xf]  ;;  %v18493_v16 = vld [vmem:[%s19479_s30 + $0x1c08] sm:$0xf0] }
 0x57a   : > { %v13796_v2 = vor.u32 %v18088_v32, %v13795_v63  ;;  %v15416_v20 = vor.u32 %v18493_v16, %v15415_v56  ;;  %v14875_v63 = vld [vmem:[%s19479_s30 + $0x1720] sm:$0xf]  ;;  %v18358_v32 = vld [vmem:[%s19479_s30 + $0x17d0] sm:$0xf0]  ;;  %v16137_v16 = vld [vmem:[%s19479_s30 + $0x21ac] sm:$0xf0] }
 0x57b   : > { %11288 = vmatpush.bf16.msra.mxu2 %v15412_v0  ;;  %11301 = vmatpush.bf16.msra.mxu3 %v16852_v21  ;;  %v15955_v0 = vld [vmem:[%s19479_s30 + $0x1f90] sm:$0xf]  ;;  %v18628_v21 = vld [vmem:[%s19479_s30 + $0x2040] sm:$0xf0]  ;;  %v16315_v56 = vld [vmem:[%s19479_s30 + $0x2260] sm:$0xf] }
 0x57d   : > { %11264 = vmatpush.bf16.msra.mxu0 %v12172_v49  ;;  %11277 = vmatpush.bf16.msra.mxu1 %v13612_v17  ;;  %v17818_v49 = vld [vmem:[%s19479_s30 + $0x6f0] sm:$0xf0]  ;;  %v15956_v17 = vor.u32 %v18628_v21, %v15955_v0  ;;  %v13615_v0 = vld [vmem:[%s19479_s30 + $0xd48] sm:$0xf]  ;;  %v18043_v21 = vld [vmem:[%s19479_s30 + $0xdf8] sm:$0xf0] }
 0x57e   : > { %v12716_v11 = vor.u32 %v17818_v49, %v12715_v1  ;;  %v13616_v37 = vor.u32 %v18043_v21, %v13615_v0  ;;  %v14337_v0 = vld [vmem:[%s19479_s30 + $0x139c] sm:$0xf0]  ;;  %v18606_v21 = vld [vmem:[%s19479_s30 + $0x1f94] sm:$0xf] }
 0x57f   : > { %11289 = vmatpush.bf16.msra.mxu2 %v15232_v57  ;;  %11302 = vmatpush.bf16.msra.mxu3 %v16672_v41  ;;  %v15775_v57 = vld [vmem:[%s19479_s30 + $0x1e28] sm:$0xf] }
 0x581   : > { %11265 = vmatpush.bf16.msra.mxu0 %v11992_v46  ;;  %11278 = vmatpush.bf16.msra.mxu1 %v13432_v48  ;;  %v11059_v41 = vpop.f32.mrf.mxu0  ;;  %v11072_v61 = vpop.f32.mrf.mxu1  ;;  %v17773_v46 = vld [vmem:[%s19479_s30 + $0x588] sm:$0xf0]  ;;  %v15776_v48 = vor.u32 %v18583_v7, %v15775_v57  ;;  %v13435_v57 = vld [vmem:[%s19479_s30 + $0xbe0] sm:$0xf] }
 0x582   : > { %v11060_v59 = vadd.f32 %v11059_v41, %v1943_v26  ;;  %v17998_v41 = vld [vmem:[%s19479_s30 + $0xc90] sm:$0xf0]  ;;  %v14697_v26 = vld [vmem:[%s19479_s30 + $0x166c] sm:$0xf0] }
 0x583   : > { %11290 = vmatpush.bf16.msra.mxu2 %v15052_v60  ;;  %11303 = vmatpush.bf16.msra.mxu3 %v16492_v19  ;;  %v18898_v60 = vld [vmem:[%s19479_s30 + $0x28b0] sm:$0xf0]  ;;  %v12536_v19 = vor.u32 %v17773_v46, %v12535_v36 }
 0x584   : > { %11266 = vmatmul.bf16.vlgmr.msra.gmra.mxu0 %v19627_v28  ;;  %11279 = vmatmul.bf16.vlgmr.msra.gmra.mxu1 %v19629_v29  ;;  %v17036_v62 = vor.u32 %v18898_v60, %v17035_v55  ;;  %v14700_v60 = vor.u32 %v18291_v43, %v14697_v26 }
 0x585   : > { %11310 = vmatpush.bf16.msrb.mxu0 %v13256_v31  ;;  %11323 = vmatpush.bf16.msrb.mxu1 %v14696_v51  ;;  %v17216_v31 = vor.u32 %v18943_v9, %v17215_v40  ;;  %v13975_v51 = vld [vmem:[%s19479_s30 + $0x1018] sm:$0xf]  ;;  %v17931_v40 = vld [vmem:[%s19479_s30 + $0xa7c] sm:$0xf]  ;;  %v13257_v9 = vld [vmem:[%s19479_s30 + $0xb2c] sm:$0xf0] }
 0x586   : > { %v13976_v58 = vor.u32 %v18133_v30, %v13975_v51  ;;  %v13436_v30 = vor.u32 %v17998_v41, %v13435_v57  ;;  %v13260_v55 = vor.u32 %v17931_v40, %v13257_v9  ;;  %v14157_v57 = vld [vmem:[%s19479_s30 + $0x1234] sm:$0xf0]  ;;  %v18561_v41 = vld [vmem:[%s19479_s30 + $0x1e2c] sm:$0xf]  ;;  %v17217_v9 = vld [vmem:[%s19479_s30 + $0x2a1c] sm:$0xf0] }
 0x587   : > { %11291 = vmatpush.bf16.msra.mxu2 %v14872_v8  ;;  %11304 = vmatpush.bf16.msra.mxu3 %v16312_v34  ;;  %v11034_v8 = vadd.f32 %v22486_v6, %v11021_v12  ;;  %v12356_v34 = vor.u32 %v17728_v47, %v12355_v39  ;;  %v15235_v6 = vld [vmem:[%s19479_s30 + $0x19f0] sm:$0xf]  ;;  %v13077_v12 = vld [vmem:[%s19479_s30 + $0x9c4] sm:$0xf0]  ;;  %v18921_v40 = vld [vmem:[%s19479_s30 + $0x296c] sm:$0xf] }
 0x589   : > { %11311 = vmatpush.bf16.msrb.mxu0 %v13076_v52  ;;  %11324 = vmatpush.bf16.msrb.mxu1 %v14516_v14  ;;  %v11061_v44 = vpop.f32.mrf.mxu0  ;;  %v11074_v45 = vpop.f32.mrf.mxu1  ;;  %v16855_v52 = vld [vmem:[%s19479_s30 + $0x2698] sm:$0xf]  ;;  %v18853_v14 = vld [vmem:[%s19479_s30 + $0x2748] sm:$0xf0]  ;;  %v11047_v1 = vadd.f32 %v22488_v27, %v11034_v8  ;;  %v15236_v27 = vor.u32 %v18448_v25, %v15235_v6  ;;  %v15957_v6 = vld [vmem:[%s19479_s30 + $0x2044] sm:$0xf0] }
 0x58a   : > { %11292 = vmatmul.bf16.vlgmr.msra.gmra.mxu2 %v19645_v53  ;;  %11305 = vmatmul.bf16.vlgmr.msra.gmra.mxu3 %v19647_v54  ;;  %v16856_v3 = vor.u32 %v18853_v14, %v16855_v52  ;;  %v18718_v44 = vld [vmem:[%s19479_s30 + $0x2310] sm:$0xf0]  ;;  %v18651_v45 = vld [vmem:[%s19479_s30 + $0x20fc] sm:$0xf]  ;;  %v17577_v14 = vld [vmem:[%s19479_s30 + $0x2cec] sm:$0xf0] }
 0x58b   : > { %11336 = vmatpush.bf16.msrb.mxu2 %v16136_v50  ;;  %11349 = vmatpush.bf16.msrb.mxu3 %v17576_v18  ;;  %v17683_v50 = vld [vmem:[%s19479_s30 + $0x2b8] sm:$0xf0]  ;;  %v11073_v18 = vadd.f32 %v11072_v61, %v11060_v59  ;;  %v11639_v36 = vrot.slane %v11047_v1, 4 }
 0x58c   : > { %v19011_v52 = vld [vmem:[%s19479_s30 + $0x2c3c] sm:$0xf] }
 0x58d   : > { %11312 = vmatpush.bf16.msrb.mxu0 %v12896_v4  ;;  %11325 = vmatpush.bf16.msrb.mxu1 %v14336_v22  ;;  %v11085_v13 = vpop.f32.mrf.mxu2  ;;  %v11098_v5 = vpop.f32.mrf.mxu3  ;;  %v16675_v4 = vld [vmem:[%s19479_s30 + $0x2530] sm:$0xf]  ;;  %v18808_v22 = vld [vmem:[%s19479_s30 + $0x25e0] sm:$0xf0]  ;;  %v22606_v25 = vld [vmem:[%s19921_s6 + $0x20] sm:$0xff] }
 0x58e   : > { %v11086_v49 = vadd.f32 %v11085_v13, %v11073_v18  ;;  %v16676_v7 = vor.u32 %v18808_v22, %v16675_v4  ;;  %v16140_v18 = vor.u32 %v18651_v45, %v16137_v16  ;;  %v18966_v13 = vld [vmem:[%s19479_s30 + $0x2ad4] sm:$0xf]  ;;  %v1944_v4 = vperm.slane %v22606_v25, 4  ;;  %v18831_v45 = vld [vmem:[%s19479_s30 + $0x269c] sm:$0xf] }
 0x58f   : > { %11337 = vmatpush.bf16.msrb.mxu2 %v15956_v17  ;;  %11350 = vmatpush.bf16.msrb.mxu3 %v17396_v35  ;;  %v11995_v17 = vld [vmem:[%s19479_s30 + $0xa0] sm:$0xf]  ;;  %v12176_v35 = vor.u32 %v17683_v50, %v12175_v10  ;;  %v17841_v10 = vld [vmem:[%s19479_s30 + $0x7ac] sm:$0xf]  ;;  %v16857_v16 = vld [vmem:[%s19479_s30 + $0x274c] sm:$0xf0] }
 0x590   : > { %v11099_v61 = vadd.f32 %v11098_v5, %v11086_v49  ;;  %v11996_v51 = vor.u32 %v17638_v15, %v11995_v17  ;;  %v12897_v50 = vld [vmem:[%s19479_s30 + $0x85c] sm:$0xf0]  ;;  %v17397_v5 = vld [vmem:[%s19479_s30 + $0x2b84] sm:$0xf0]  ;;  %v17796_v49 = vld [vmem:[%s19479_s30 + $0x644] sm:$0xf] }
 0x591   : > { %11313 = vmatpush.bf16.msrb.mxu0 %v12716_v11  ;;  %11326 = vmatpush.bf16.msrb.mxu1 %v14156_v24  ;;  %v15055_v11 = vld [vmem:[%s19479_s30 + $0x1888] sm:$0xf]  ;;  %v18403_v24 = vld [vmem:[%s19479_s30 + $0x1938] sm:$0xf0]  ;;  %v12900_v22 = vor.u32 %v17841_v10, %v12897_v50  ;;  %v12717_v17 = vld [vmem:[%s19479_s30 + $0x6f4] sm:$0xf0] }
 0x592   : > { %v11640_v46 = vrot.slane %v11099_v61, 2  ;;  %v15056_v47 = vor.u32 %v18403_v24, %v15055_v11  ;;  %v18156_v15 = vld [vmem:[%s19479_s30 + $0x1184] sm:$0xf]  ;;  %v12720_v26 = vor.u32 %v17796_v49, %v12717_v17  ;;  %v17751_v24 = vld [vmem:[%s19479_s30 + $0x4dc] sm:$0xf] }
 0x593   : > { %11338 = vmatpush.bf16.msrb.mxu2 %v15776_v48  ;;  %11351 = vmatpush.bf16.msrb.mxu3 %v17216_v31  ;;  %v16495_v48 = vld [vmem:[%s19479_s30 + $0x23c8] sm:$0xf]  ;;  %v18763_v31 = vld [vmem:[%s19479_s30 + $0x2478] sm:$0xf0]  ;;  %v14160_v11 = vor.u32 %v18156_v15, %v14157_v57  ;;  %v18021_v10 = vld [vmem:[%s19479_s30 + $0xd4c] sm:$0xf] }
 0x594   : > { %v11675_v33 = vsel %vm11649_vm2, %v11639_v36, %v11640_v46  ;;  %v16496_v59 = vor.u32 %v18763_v31, %v16495_v48  ;;  %v12537_v36 = vld [vmem:[%s19479_s30 + $0x58c] sm:$0xf0]  ;;  %v17220_v31 = vor.u32 %v18921_v40, %v17217_v9  ;;  %v13617_v50 = vld [vmem:[%s19479_s30 + $0xdfc] sm:$0xf0]  ;;  %v17976_v49 = vld [vmem:[%s19479_s30 + $0xbe4] sm:$0xf] }
 0x595   : > { %11314 = vmatpush.bf16.msrb.mxu0 %v12536_v19  ;;  %11327 = vmatpush.bf16.msrb.mxu1 %v13976_v58  ;;  %v18246_v19 = vld [vmem:[%s19479_s30 + $0x1454] sm:$0xf]  ;;  %v14517_v58 = vld [vmem:[%s19479_s30 + $0x1504] sm:$0xf0]  ;;  %v11676_v39 = vsel %vm11651_vm3, %v22427_v38, %v11675_v33  ;;  %v13080_v38 = vor.u32 %v17886_v42, %v13077_v12  ;;  %v18516_v42 = vld [vmem:[%s19479_s30 + $0x1cc4] sm:$0xf]  ;;  %v12540_v12 = vor.u32 %v17751_v24, %v12537_v36 }
 0x596   : > { %11702 = vst [vmem:[%s20170_s21 + $0x40] sm:$0xff] %v11676_v39  ;;  %v14520_v8 = vor.u32 %v18246_v19, %v14517_v58  ;;  %v15597_v33 = vld [vmem:[%s19479_s30 + $0x1d74] sm:$0xf0]  ;;  %v17706_v58 = vld [vmem:[%s19479_s30 + $0x374] sm:$0xf] }
 0x597   : > { %11339 = vmatpush.bf16.msrb.mxu2 %v15596_v23  ;;  %11352 = vmatpush.bf16.msrb.mxu3 %v17036_v62  ;;  %v11087_v23 = vpop.f32.mrf.mxu2  ;;  %v11100_v62 = vpop.f32.mrf.mxu3  ;;  %v12357_v39 = vld [vmem:[%s19479_s30 + $0x424] sm:$0xf0]  ;;  %v13437_v15 = vld [vmem:[%s19479_s30 + $0xc94] sm:$0xf0]  ;;  %v13263_v57 = vld [vmem:[%s19479_s30 + $0xa80] sm:$0xf] }
 0x598   : > { %v18066_v23 = vld [vmem:[%s19479_s30 + $0xeb4] sm:$0xf]  ;;  %v13797_v62 = vld [vmem:[%s19479_s30 + $0xf64] sm:$0xf0]  ;;  %v15057_v40 = vld [vmem:[%s19479_s30 + $0x193c] sm:$0xf0] }
 0x599   : > { %11315 = vmatpush.bf16.msrb.mxu0 %v12356_v34  ;;  %11328 = vmatpush.bf16.msrb.mxu1 %v13796_v2  ;;  %v14876_v34 = vor.u32 %v18358_v32, %v14875_v63  ;;  %v16316_v2 = vor.u32 %v18718_v44, %v16315_v56  ;;  %v18471_v63 = vld [vmem:[%s19479_s30 + $0x1b5c] sm:$0xf]  ;;  %v15417_v44 = vld [vmem:[%s19479_s30 + $0x1c0c] sm:$0xf0]  ;;  %v18741_v9 = vld [vmem:[%s19479_s30 + $0x23cc] sm:$0xf] }
 0x59b   : > { %11340 = vmatpush.bf16.msrb.mxu2 %v15416_v20  ;;  %11353 = vmatpush.bf16.msrb.mxu3 %v16856_v3  ;;  %v17580_v20 = vor.u32 %v19011_v52, %v17577_v14  ;;  %v18201_v3 = vld [vmem:[%s19479_s30 + $0x12ec] sm:$0xf]  ;;  %v12360_v52 = vor.u32 %v17706_v58, %v12357_v39  ;;  %v13800_v14 = vor.u32 %v18066_v23, %v13797_v62  ;;  %v16317_v58 = vld [vmem:[%s19479_s30 + $0x2314] sm:$0xf0]  ;;  %v16143_v39 = vld [vmem:[%s19479_s30 + $0x2100] sm:$0xf] }
 0x59c   : > { %v14340_v1 = vor.u32 %v18201_v3, %v14337_v0  ;;  %v15237_v0 = vld [vmem:[%s19479_s30 + $0x1aa4] sm:$0xf0]  ;;  %v19034_v23 = vld [vmem:[%s19479_s30 + $0x2cf0] sm:$0xf0] }
 0x59d   : > { %11316 = vmatpush.bf16.msrb.mxu0 %v12176_v35  ;;  %11329 = vmatpush.bf16.msrb.mxu1 %v13616_v37  ;;  %v15960_v35 = vor.u32 %v18606_v21, %v15957_v6  ;;  %v17400_v37 = vor.u32 %v18966_v13, %v17397_v5  ;;  %v18786_v21 = vld [vmem:[%s19479_s30 + $0x2534] sm:$0xf]  ;;  %v16677_v6 = vld [vmem:[%s19479_s30 + $0x25e4] sm:$0xf0] }
 0x59f   : > { %11341 = vmatpush.bf16.msrb.mxu2 %v15236_v27  ;;  %11354 = vmatpush.bf16.msrb.mxu3 %v16676_v7  ;;  %v15777_v7 = vld [vmem:[%s19479_s30 + $0x1edc] sm:$0xf0] }
 0x5a0   : > { %v15780_v48 = vor.u32 %v18561_v41, %v15777_v7  ;;  %v17954_v41 = vld [vmem:[%s19479_s30 + $0xb30] sm:$0xf0]  ;;  %v18381_v7 = vld [vmem:[%s19479_s30 + $0x188c] sm:$0xf] }
 0x5a1   : > { %11317 = vmatpush.bf16.msrb.mxu0 %v11996_v51  ;;  %11330 = vmatpush.bf16.msrb.mxu1 %v13436_v30  ;;  %v11111_v61 = vpop.f32.mrf.mxu0  ;;  %v11124_v27 = vpop.f32.mrf.mxu1  ;;  %v18111_v51 = vld [vmem:[%s19479_s30 + $0x101c] sm:$0xf]  ;;  %v13977_v30 = vld [vmem:[%s19479_s30 + $0x10cc] sm:$0xf0]  ;;  %v13264_v24 = vor.u32 %v17954_v41, %v13263_v57 }
 0x5a2   : > { %v11112_v43 = vadd.f32 %v11111_v61, %v1944_v4  ;;  %v13980_v19 = vor.u32 %v18111_v51, %v13977_v30  ;;  %v13620_v4 = vor.u32 %v18021_v10, %v13617_v50  ;;  %v14703_v61 = vld [vmem:[%s19479_s30 + $0x15c0] sm:$0xf]  ;;  %v15060_v51 = vor.u32 %v18381_v7, %v15057_v40  ;;  %v18989_v10 = vld [vmem:[%s19479_s30 + $0x2b88] sm:$0xf0] }
 0x5a3   : > { %11342 = vmatpush.bf16.msrb.mxu2 %v15056_v47  ;;  %11355 = vmatpush.bf16.msrb.mxu3 %v16496_v59  ;;  %v15600_v47 = vor.u32 %v18516_v42, %v15597_v33  ;;  %v1945_v50 = vperm.slane %v22606_v25, 5 }
 0x5a4   : > { %11318 = vmatmul.bf16.vlgmr.msrb.gmra.mxu0 %v19627_v28  ;;  %11331 = vmatmul.bf16.vlgmr.msrb.gmra.mxu1 %v19629_v29  ;;  %v11125_v46 = vadd.f32 %v11124_v27, %v11112_v43  ;;  %v18314_v27 = vld [vmem:[%s19479_s30 + $0x1670] sm:$0xf0]  ;;  %v16497_v43 = vld [vmem:[%s19479_s30 + $0x247c] sm:$0xf0] }
 0x5a5   : > { %11362 = vmatpush.bf16.msra.mxu0 %v13260_v55  ;;  %11375 = vmatpush.bf16.msra.mxu1 %v14700_v60  ;;  %v18876_v55 = vld [vmem:[%s19479_s30 + $0x2804] sm:$0xf]  ;;  %v17037_v60 = vld [vmem:[%s19479_s30 + $0x28b4] sm:$0xf0]  ;;  %v14704_v36 = vor.u32 %v18314_v27, %v14703_v61  ;;  %v16500_v30 = vor.u32 %v18741_v9, %v16497_v43  ;;  %v12543_v61 = vld [vmem:[%s19479_s30 + $0x4e0] sm:$0xf] }
 0x5a6   : > { %v17040_v59 = vor.u32 %v18876_v55, %v17037_v60  ;;  %v18269_v55 = vld [vmem:[%s19479_s30 + $0x1508] sm:$0xf0]  ;;  %v18336_v60 = vld [vmem:[%s19479_s30 + $0x1724] sm:$0xf]  ;;  %v17774_v27 = vld [vmem:[%s19479_s30 + $0x590] sm:$0xf0] }
 0x5a7   : > { %11343 = vmatpush.bf16.msrb.mxu2 %v14876_v34  ;;  %11356 = vmatpush.bf16.msrb.mxu3 %v16316_v2  ;;  %v15420_v34 = vor.u32 %v18471_v63, %v15417_v44  ;;  %v16860_v2 = vor.u32 %v18831_v45, %v16857_v16  ;;  %v12903_v44 = vld [vmem:[%s19479_s30 + $0x7b0] sm:$0xf]  ;;  %v17864_v45 = vld [vmem:[%s19479_s30 + $0x860] sm:$0xf0]  ;;  %v13983_v43 = vld [vmem:[%s19479_s30 + $0x1020] sm:$0xf] }
 0x5a9   : > { %11363 = vmatpush.bf16.msra.mxu0 %v13080_v38  ;;  %11376 = vmatpush.bf16.msra.mxu1 %v14520_v8  ;;  %v11113_v32 = vpop.f32.mrf.mxu0  ;;  %v11126_v56 = vpop.f32.mrf.mxu1  ;;  %v17661_v38 = vld [vmem:[%s19479_s30 + $0x20c] sm:$0xf]  ;;  %v12177_v8 = vld [vmem:[%s19479_s30 + $0x2bc] sm:$0xf0] }
 0x5aa   : > { %11344 = vmatmul.bf16.vlgmr.msrb.gmra.mxu2 %v19645_v53  ;;  %11357 = vmatmul.bf16.vlgmr.msrb.gmra.mxu3 %v19647_v54  ;;  %v12180_v5 = vor.u32 %v17661_v38, %v12177_v8  ;;  %v18224_v38 = vld [vmem:[%s19479_s30 + $0x13a0] sm:$0xf0]  ;;  %v15963_v8 = vld [vmem:[%s19479_s30 + $0x1f98] sm:$0xf] }
 0x5ab   : > { %11388 = vmatpush.bf16.msra.mxu2 %v16140_v18  ;;  %11401 = vmatpush.bf16.msra.mxu3 %v17580_v20  ;;  %v18426_v18 = vld [vmem:[%s19479_s30 + $0x19f4] sm:$0xf] }
 0x5ad   : > { %11364 = vmatpush.bf16.msra.mxu0 %v12900_v22  ;;  %11377 = vmatpush.bf16.msra.mxu1 %v14340_v1  ;;  %v11137_v20 = vpop.f32.mrf.mxu2  ;;  %v11150_v3 = vpop.f32.mrf.mxu3  ;;  %v17616_v22 = vld [vmem:[%s19479_s30 + $0xa4] sm:$0xf]  ;;  %v11997_v1 = vld [vmem:[%s19479_s30 + $0x154] sm:$0xf0] }
 0x5ae   : > { %v11138_v13 = vadd.f32 %v11137_v20, %v11125_v46  ;;  %v13083_v46 = vld [vmem:[%s19479_s30 + $0x918] sm:$0xf] }
 0x5af   : > { %11389 = vmatpush.bf16.msra.mxu2 %v15960_v35  ;;  %11402 = vmatpush.bf16.msra.mxu3 %v17400_v37  ;;  %v15240_v35 = vor.u32 %v18426_v18, %v15237_v0  ;;  %v16680_v37 = vor.u32 %v18786_v21, %v16677_v6  ;;  %v12904_v18 = vor.u32 %v17864_v45, %v12903_v44  ;;  %v17819_v0 = vld [vmem:[%s19479_s30 + $0x6f8] sm:$0xf0]  ;;  %v13623_v45 = vld [vmem:[%s19479_s30 + $0xd50] sm:$0xf] }
 0x5b0   : > { %v22646_v17 = vadd.f32 %v11150_v3, %v11138_v13  ;;  %v12723_v3 = vld [vmem:[%s19479_s30 + $0x648] sm:$0xf] }
 0x5b1   : > { %11365 = vmatpush.bf16.msra.mxu0 %v12720_v26  ;;  %11378 = vmatpush.bf16.msra.mxu1 %v14160_v11  ;;  %v12000_v26 = vor.u32 %v17616_v22, %v11997_v1  ;;  %v13440_v11 = vor.u32 %v17976_v49, %v13437_v15  ;;  %v14163_v13 = vld [vmem:[%s19479_s30 + $0x1188] sm:$0xf]  ;;  %v18584_v49 = vld [vmem:[%s19479_s30 + $0x1ee0] sm:$0xf0]  ;;  %v12724_v57 = vor.u32 %v17819_v0, %v12723_v3  ;;  %v17639_v3 = vld [vmem:[%s19479_s30 + $0x158] sm:$0xf0] }
 0x5b2   : > { %v13443_v0 = vld [vmem:[%s19479_s30 + $0xbe8] sm:$0xf] }
 0x5b3   : > { %11390 = vmatpush.bf16.msra.mxu2 %v15780_v48  ;;  %11403 = vmatpush.bf16.msra.mxu3 %v17220_v31  ;;  %v17909_v48 = vld [vmem:[%s19479_s30 + $0x9c8] sm:$0xf0]  ;;  %v14523_v31 = vld [vmem:[%s19479_s30 + $0x1458] sm:$0xf] }
 0x5b4   : > { %v13084_v62 = vor.u32 %v17909_v48, %v13083_v46  ;;  %v14524_v63 = vor.u32 %v18269_v55, %v14523_v31  ;;  %v18899_v46 = vld [vmem:[%s19479_s30 + $0x28b8] sm:$0xf0]  ;;  %v12544_v48 = vor.u32 %v17774_v27, %v12543_v61  ;;  %v13803_v55 = vld [vmem:[%s19479_s30 + $0xeb8] sm:$0xf] }
 0x5b5   : > { %11366 = vmatpush.bf16.msra.mxu0 %v12540_v12  ;;  %11379 = vmatpush.bf16.msra.mxu1 %v13980_v19  ;;  %v11139_v42 = vpop.f32.mrf.mxu2  ;;  %v11152_v33 = vpop.f32.mrf.mxu3  ;;  %v14877_v12 = vld [vmem:[%s19479_s30 + $0x17d4] sm:$0xf0]  ;;  %v18696_v19 = vld [vmem:[%s19479_s30 + $0x2264] sm:$0xf] }
 0x5b6   : > { %v14880_v32 = vor.u32 %v18336_v60, %v14877_v12  ;;  %v16320_v56 = vor.u32 %v18696_v19, %v16317_v58  ;;  %v18089_v60 = vld [vmem:[%s19479_s30 + $0xf68] sm:$0xf0]  ;;  %v15423_v12 = vld [vmem:[%s19479_s30 + $0x1b60] sm:$0xf] }
 0x5b7   : > { %11391 = vmatpush.bf16.msra.mxu2 %v15600_v47  ;;  %11404 = vmatpush.bf16.msra.mxu3 %v17040_v59  ;;  %v18674_v47 = vld [vmem:[%s19479_s30 + $0x21b0] sm:$0xf0]  ;;  %v17583_v59 = vld [vmem:[%s19479_s30 + $0x2c40] sm:$0xf] }
 0x5b8   : > { %v16144_v16 = vor.u32 %v18674_v47, %v16143_v39  ;;  %v18494_v39 = vld [vmem:[%s19479_s30 + $0x1c10] sm:$0xf0]  ;;  %v16863_v47 = vld [vmem:[%s19479_s30 + $0x26a0] sm:$0xf] }
 0x5b9   : > { %11367 = vmatpush.bf16.msra.mxu0 %v12360_v52  ;;  %11380 = vmatpush.bf16.msra.mxu1 %v13800_v14  ;;  %v17584_v52 = vor.u32 %v19034_v23, %v17583_v59  ;;  %v14343_v14 = vld [vmem:[%s19479_s30 + $0x12f0] sm:$0xf]  ;;  %v18854_v59 = vld [vmem:[%s19479_s30 + $0x2750] sm:$0xf0] }
 0x5ba   : > { %v14344_v20 = vor.u32 %v18224_v38, %v14343_v14  ;;  %v16864_v44 = vor.u32 %v18854_v59, %v16863_v47  ;;  %v17842_v59 = vld [vmem:[%s19479_s30 + $0x7b4] sm:$0xf] }
 0x5bb   : > { %11392 = vmatpush.bf16.msra.mxu2 %v15420_v34  ;;  %11405 = vmatpush.bf16.msra.mxu3 %v16860_v2  ;;  %v18629_v34 = vld [vmem:[%s19479_s30 + $0x2048] sm:$0xf0]  ;;  %v17403_v2 = vld [vmem:[%s19479_s30 + $0x2ad8] sm:$0xf] }
 0x5bc   : > { %v15964_v21 = vor.u32 %v18629_v34, %v15963_v8  ;;  %v17404_v6 = vor.u32 %v18989_v10, %v17403_v2  ;;  %v18449_v8 = vld [vmem:[%s19479_s30 + $0x1aa8] sm:$0xf0]  ;;  %v16683_v34 = vld [vmem:[%s19479_s30 + $0x2538] sm:$0xf] }
 0x5bd   : > { %11368 = vmatpush.bf16.msra.mxu0 %v12180_v5  ;;  %11381 = vmatpush.bf16.msra.mxu1 %v13620_v4  ;;  %v18179_v5 = vld [vmem:[%s19479_s30 + $0x1238] sm:$0xf0]  ;;  %v15783_v4 = vld [vmem:[%s19479_s30 + $0x1e30] sm:$0xf]  ;;  %v18809_v2 = vld [vmem:[%s19479_s30 + $0x25e8] sm:$0xf0] }
 0x5be   : > { %v14164_v41 = vor.u32 %v18179_v5, %v14163_v13  ;;  %v15784_v40 = vor.u32 %v18584_v49, %v15783_v4  ;;  %v16684_v5 = vor.u32 %v18809_v2, %v16683_v34  ;;  %v17932_v4 = vld [vmem:[%s19479_s30 + $0xa84] sm:$0xf]  ;;  %v14705_v49 = vld [vmem:[%s19479_s30 + $0x1674] sm:$0xf0]  ;;  %v12725_v34 = vld [vmem:[%s19479_s30 + $0x6fc] sm:$0xf0] }
 0x5bf   : > { %11393 = vmatpush.bf16.msra.mxu2 %v15240_v35  ;;  %11406 = vmatpush.bf16.msra.mxu3 %v16680_v37  ;;  %v17223_v35 = vld [vmem:[%s19479_s30 + $0x2970] sm:$0xf]  ;;  %v18944_v37 = vld [vmem:[%s19479_s30 + $0x2a20] sm:$0xf0] }
 0x5c0   : > { %v17224_v9 = vor.u32 %v18944_v37, %v17223_v35  ;;  %v15063_v35 = vld [vmem:[%s19479_s30 + $0x1890] sm:$0xf]  ;;  %v18404_v37 = vld [vmem:[%s19479_s30 + $0x1940] sm:$0xf0] }
 0x5c1   : > { %11369 = vmatpush.bf16.msra.mxu0 %v12000_v26  ;;  %11382 = vmatpush.bf16.msra.mxu1 %v13440_v11  ;;  %v11163_v22 = vpop.f32.mrf.mxu0  ;;  %v11176_v1 = vpop.f32.mrf.mxu1  ;;  %v18134_v26 = vld [vmem:[%s19479_s30 + $0x10d0] sm:$0xf0]  ;;  %v15603_v11 = vld [vmem:[%s19479_s30 + $0x1cc8] sm:$0xf] }
 0x5c2   : > { %v11164_v15 = vadd.f32 %v11163_v22, %v1945_v50  ;;  %v13984_v31 = vor.u32 %v18134_v26, %v13983_v43  ;;  %v12003_v50 = vld [vmem:[%s19479_s30 + $0xa8] sm:$0xf]  ;;  %v13265_v22 = vld [vmem:[%s19479_s30 + $0xb34] sm:$0xf0]  ;;  %v17887_v43 = vld [vmem:[%s19479_s30 + $0x91c] sm:$0xf] }
 0x5c3   : > { %11394 = vmatpush.bf16.msra.mxu2 %v15060_v51  ;;  %11407 = vmatpush.bf16.msra.mxu3 %v16500_v30  ;;  %v12363_v51 = vld [vmem:[%s19479_s30 + $0x378] sm:$0xf]  ;;  %v17729_v30 = vld [vmem:[%s19479_s30 + $0x428] sm:$0xf0]  ;;  %v12004_v61 = vor.u32 %v17639_v3, %v12003_v50  ;;  %v13085_v26 = vld [vmem:[%s19479_s30 + $0x9cc] sm:$0xf0] }
 0x5c4   : > { %11370 = vmatmul.bf16.vlgmr.msra.gmra.mxu0 %v19627_v28  ;;  %11383 = vmatmul.bf16.vlgmr.msra.gmra.mxu1 %v19629_v29  ;;  %v11177_v7 = vadd.f32 %v11176_v1, %v11164_v15  ;;  %v12364_v23 = vor.u32 %v17729_v30, %v12363_v51  ;;  %v18292_v1 = vld [vmem:[%s19479_s30 + $0x15c4] sm:$0xf]  ;;  %v14883_v51 = vld [vmem:[%s19479_s30 + $0x1728] sm:$0xf]  ;;  %v18157_v50 = vld [vmem:[%s19479_s30 + $0x118c] sm:$0xf] }
 0x5c5   : > { %11414 = vmatpush.bf16.msrb.mxu0 %v13264_v24  ;;  %11427 = vmatpush.bf16.msrb.mxu1 %v14704_v36  ;;  %v18539_v24 = vld [vmem:[%s19479_s30 + $0x1d78] sm:$0xf0]  ;;  %v17043_v36 = vld [vmem:[%s19479_s30 + $0x2808] sm:$0xf] }
 0x5c6   : > { %v15604_v42 = vor.u32 %v18539_v24, %v15603_v11  ;;  %v17044_v33 = vor.u32 %v18899_v46, %v17043_v36  ;;  %v18247_v11 = vld [vmem:[%s19479_s30 + $0x145c] sm:$0xf]  ;;  %v15064_v24 = vor.u32 %v18404_v37, %v15063_v35  ;;  %v16323_v30 = vld [vmem:[%s19479_s30 + $0x2268] sm:$0xf]  ;;  %v18112_v37 = vld [vmem:[%s19479_s30 + $0x1024] sm:$0xf] }
 0x5c7   : > { %11395 = vmatpush.bf16.msra.mxu2 %v14880_v32  ;;  %11408 = vmatpush.bf16.msra.mxu3 %v16320_v56  ;;  %v17684_v32 = vld [vmem:[%s19479_s30 + $0x2c0] sm:$0xf0]  ;;  %v15424_v56 = vor.u32 %v18494_v39, %v15423_v12  ;;  %v17585_v12 = vld [vmem:[%s19479_s30 + $0x2cf4] sm:$0xf0] }
 0x5c9   : > { %11415 = vmatpush.bf16.msrb.mxu0 %v13084_v62  ;;  %11428 = vmatpush.bf16.msrb.mxu1 %v14524_v63  ;;  %v11165_v19 = vpop.f32.mrf.mxu0  ;;  %v11178_v58 = vpop.f32.mrf.mxu1  ;;  %v13804_v62 = vor.u32 %v18089_v60, %v13803_v55  ;;  %v12183_v63 = vld [vmem:[%s19479_s30 + $0x210] sm:$0xf]  ;;  %v16145_v55 = vld [vmem:[%s19479_s30 + $0x21b4] sm:$0xf0]  ;;  %v19012_v60 = vld [vmem:[%s19479_s30 + $0x2c44] sm:$0xf] }
 0x5ca   : > { %11396 = vmatmul.bf16.vlgmr.msra.gmra.mxu2 %v19645_v53  ;;  %11409 = vmatmul.bf16.vlgmr.msra.gmra.mxu3 %v19647_v54  ;;  %v13088_v19 = vor.u32 %v17887_v43, %v13085_v26  ;;  %v17707_v43 = vld [vmem:[%s19479_s30 + $0x37c] sm:$0xf]  ;;  %v12365_v26 = vld [vmem:[%s19479_s30 + $0x42c] sm:$0xf0] }
 0x5cb   : > { %11440 = vmatpush.bf16.msrb.mxu2 %v16144_v16  ;;  %11453 = vmatpush.bf16.msrb.mxu3 %v17584_v52  ;;  %v18044_v16 = vld [vmem:[%s19479_s30 + $0xe00] sm:$0xf0]  ;;  %v15243_v52 = vld [vmem:[%s19479_s30 + $0x19f8] sm:$0xf] }
 0x5cc   : > { %v15244_v13 = vor.u32 %v18449_v8, %v15243_v52  ;;  %v17405_v52 = vld [vmem:[%s19479_s30 + $0x2b8c] sm:$0xf0]  ;;  %v17797_v8 = vld [vmem:[%s19479_s30 + $0x64c] sm:$0xf] }
 0x5cd   : > { %11416 = vmatpush.bf16.msrb.mxu0 %v12904_v18  ;;  %11429 = vmatpush.bf16.msrb.mxu1 %v14344_v20  ;;  %v11189_v14 = vpop.f32.mrf.mxu2  ;;  %v11202_v38 = vpop.f32.mrf.mxu3  ;;  %v12184_v18 = vor.u32 %v17684_v32, %v12183_v63  ;;  %v13624_v20 = vor.u32 %v18044_v16, %v13623_v45  ;;  %v17588_v63 = vor.u32 %v19012_v60, %v17585_v12  ;;  %v18202_v32 = vld [vmem:[%s19479_s30 + $0x12f4] sm:$0xf]  ;;  %v15965_v45 = vld [vmem:[%s19479_s30 + $0x204c] sm:$0xf0]  ;;  %v18967_v16 = vld [vmem:[%s19479_s30 + $0x2adc] sm:$0xf] }
 0x5ce   : > { %v11190_v10 = vadd.f32 %v11189_v14, %v11177_v7  ;;  %v17662_v60 = vld [vmem:[%s19479_s30 + $0x214] sm:$0xf]  ;;  %v12185_v12 = vld [vmem:[%s19479_s30 + $0x2c4] sm:$0xf0] }
 0x5cf   : > { %11441 = vmatpush.bf16.msrb.mxu2 %v15964_v21  ;;  %11454 = vmatpush.bf16.msrb.mxu3 %v17404_v6  ;;  %v17999_v21 = vld [vmem:[%s19479_s30 + $0xc98] sm:$0xf0] }
 0x5d0   : > { %v11203_v6 = vadd.f32 %v11202_v38, %v11190_v10  ;;  %v13444_v27 = vor.u32 %v17999_v21, %v13443_v0  ;;  %v17408_v10 = vor.u32 %v18967_v16, %v17405_v52  ;;  %v15785_v21 = vld [vmem:[%s19479_s30 + $0x1ee4] sm:$0xf0]  ;;  %v17617_v16 = vld [vmem:[%s19479_s30 + $0xac] sm:$0xf]  ;;  %v12005_v52 = vld [vmem:[%s19479_s30 + $0x15c] sm:$0xf0] }
 0x5d1   : > { %11417 = vmatpush.bf16.msrb.mxu0 %v12724_v57  ;;  %11430 = vmatpush.bf16.msrb.mxu1 %v14164_v41  ;;  %v16503_v57 = vld [vmem:[%s19479_s30 + $0x23d0] sm:$0xf]  ;;  %v18764_v41 = vld [vmem:[%s19479_s30 + $0x2480] sm:$0xf0] }
 0x5d2   : > { %v11641_v15 = vrot.slane %v11203_v6, 6  ;;  %v16504_v36 = vor.u32 %v18764_v41, %v16503_v57  ;;  %v18922_v6 = vld [vmem:[%s19479_s30 + $0x2974] sm:$0xf]  ;;  %v18517_v57 = vld [vmem:[%s19479_s30 + $0x1ccc] sm:$0xf] }
 0x5d3   : > { %11442 = vmatpush.bf16.msrb.mxu2 %v15784_v40  ;;  %11455 = vmatpush.bf16.msrb.mxu3 %v17224_v9  ;;  %v13268_v40 = vor.u32 %v17932_v4, %v13265_v22  ;;  %v14708_v9 = vor.u32 %v18292_v1, %v14705_v49  ;;  %v17752_v22 = vld [vmem:[%s19479_s30 + $0x4e4] sm:$0xf]  ;;  %v12545_v1 = vld [vmem:[%s19479_s30 + $0x594] sm:$0xf0]  ;;  %v15605_v41 = vld [vmem:[%s19479_s30 + $0x1d7c] sm:$0xf0] }
 0x5d4   : > { %v22728_v7 = vsel %vm11647_vm1, %v22646_v17, %v11641_v15  ;;  %v18359_v17 = vld [vmem:[%s19479_s30 + $0x17d8] sm:$0xf0]  ;;  %v13985_v15 = vld [vmem:[%s19479_s30 + $0x10d4] sm:$0xf0] }
 0x5d5   : > { %11418 = vmatpush.bf16.msrb.mxu0 %v12544_v48  ;;  %11431 = vmatpush.bf16.msrb.mxu1 %v13984_v31  ;;  %v11191_v46 = vpop.f32.mrf.mxu2  ;;  %v11204_v48 = vpop.f32.mrf.mxu3  ;;  %v14525_v31 = vld [vmem:[%s19479_s30 + $0x150c] sm:$0xf0]  ;;  %v14884_v39 = vor.u32 %v18359_v17, %v14883_v51  ;;  %v15425_v17 = vld [vmem:[%s19479_s30 + $0x1c14] sm:$0xf0] }
 0x5d6   : > { %v14528_v58 = vor.u32 %v18247_v11, %v14525_v31  ;;  %v15608_v11 = vor.u32 %v18517_v57, %v15605_v41  ;;  %v13805_v46 = vld [vmem:[%s19479_s30 + $0xf6c] sm:$0xf0]  ;;  %v18472_v48 = vld [vmem:[%s19479_s30 + $0x1b64] sm:$0xf] }
 0x5d7   : > { %11443 = vmatpush.bf16.msrb.mxu2 %v15604_v42  ;;  %11456 = vmatpush.bf16.msrb.mxu3 %v17044_v33  ;;  %v18719_v42 = vld [vmem:[%s19479_s30 + $0x2318] sm:$0xf0]  ;;  %v18652_v33 = vld [vmem:[%s19479_s30 + $0x2104] sm:$0xf] }
 0x5d8   : > { %v16324_v47 = vor.u32 %v18719_v42, %v16323_v30  ;;  %v18832_v30 = vld [vmem:[%s19479_s30 + $0x26a4] sm:$0xf]  ;;  %v16865_v42 = vld [vmem:[%s19479_s30 + $0x2754] sm:$0xf0] }
 0x5d9   : > { %11419 = vmatpush.bf16.msrb.mxu0 %v12364_v23  ;;  %11432 = vmatpush.bf16.msrb.mxu1 %v13804_v62  ;;  %v12905_v23 = vld [vmem:[%s19479_s30 + $0x864] sm:$0xf0]  ;;  %v16148_v62 = vor.u32 %v18652_v33, %v16145_v55  ;;  %v12368_v33 = vor.u32 %v17707_v43, %v12365_v26  ;;  %v18697_v43 = vld [vmem:[%s19479_s30 + $0x226c] sm:$0xf]  ;;  %v16325_v26 = vld [vmem:[%s19479_s30 + $0x231c] sm:$0xf0] }
 0x5da   : > { %v12908_v14 = vor.u32 %v17842_v59, %v12905_v23  ;;  %v18427_v59 = vld [vmem:[%s19479_s30 + $0x19fc] sm:$0xf] }
 0x5db   : > { %11444 = vmatpush.bf16.msrb.mxu2 %v15424_v56  ;;  %11457 = vmatpush.bf16.msrb.mxu3 %v16864_v44  ;;  %v14345_v56 = vld [vmem:[%s19479_s30 + $0x13a4] sm:$0xf0]  ;;  %v18607_v44 = vld [vmem:[%s19479_s30 + $0x1f9c] sm:$0xf] }
 0x5dc   : > { %v14348_v38 = vor.u32 %v18202_v32, %v14345_v56  ;;  %v15968_v2 = vor.u32 %v18607_v44, %v15965_v45  ;;  %v18787_v32 = vld [vmem:[%s19479_s30 + $0x253c] sm:$0xf]  ;;  %v16685_v56 = vld [vmem:[%s19479_s30 + $0x25ec] sm:$0xf0]  ;;  %v12188_v44 = vor.u32 %v17662_v60, %v12185_v12  ;;  %v14351_v60 = vld [vmem:[%s19479_s30 + $0x12f8] sm:$0xf] }
 0x5dd   : > { %11420 = vmatpush.bf16.msrb.mxu0 %v12184_v18  ;;  %11433 = vmatpush.bf16.msrb.mxu1 %v13624_v20  ;;  %v14165_v18 = vld [vmem:[%s19479_s30 + $0x123c] sm:$0xf0]  ;;  %v18562_v20 = vld [vmem:[%s19479_s30 + $0x1e34] sm:$0xf]  ;;  %v18225_v12 = vld [vmem:[%s19479_s30 + $0x13a8] sm:$0xf0] }
 0x5de   : > { %v14168_v4 = vor.u32 %v18157_v50, %v14165_v18  ;;  %v15788_v49 = vor.u32 %v18562_v20, %v15785_v21  ;;  %v14711_v50 = vld [vmem:[%s19479_s30 + $0x15c8] sm:$0xf]  ;;  %v18315_v18 = vld [vmem:[%s19479_s30 + $0x1678] sm:$0xf0]  ;;  %v18382_v20 = vld [vmem:[%s19479_s30 + $0x1894] sm:$0xf] }
 0x5df   : > { %11445 = vmatpush.bf16.msrb.mxu2 %v15244_v13  ;;  %11458 = vmatpush.bf16.msrb.mxu3 %v16684_v5  ;;  %v17225_v13 = vld [vmem:[%s19479_s30 + $0x2a24] sm:$0xf0]  ;;  %v12728_v5 = vor.u32 %v17797_v8, %v12725_v34  ;;  %v16688_v8 = vor.u32 %v18787_v32, %v16685_v56  ;;  %v13445_v34 = vld [vmem:[%s19479_s30 + $0xc9c] sm:$0xf0]  ;;  %v14352_v32 = vor.u32 %v18225_v12, %v14351_v60  ;;  %v12731_v56 = vld [vmem:[%s19479_s30 + $0x650] sm:$0xf] }
 0x5e0   : > { %v17228_v35 = vor.u32 %v18922_v6, %v17225_v13  ;;  %v15065_v21 = vld [vmem:[%s19479_s30 + $0x1944] sm:$0xf0]  ;;  %v18742_v6 = vld [vmem:[%s19479_s30 + $0x23d4] sm:$0xf] }
 0x5e1   : > { %11421 = vmatpush.bf16.msrb.mxu0 %v12004_v61  ;;  %11434 = vmatpush.bf16.msrb.mxu1 %v13444_v27  ;;  %v22757_v3 = vpop.f32.mrf.mxu0  ;;  %v22759_v0 = vpop.f32.mrf.mxu1  ;;  %v18877_v61 = vld [vmem:[%s19479_s30 + $0x280c] sm:$0xf]  ;;  %v17045_v27 = vld [vmem:[%s19479_s30 + $0x28bc] sm:$0xf0]  ;;  %v16505_v13 = vld [vmem:[%s19479_s30 + $0x2484] sm:$0xf0] }
 0x5e2   : > { %v16508_v57 = vor.u32 %v18742_v6, %v16505_v13  ;;  %v12551_v13 = vld [vmem:[%s19479_s30 + $0x4e8] sm:$0xf] }
 0x5e3   : > { %11446 = vmatpush.bf16.msrb.mxu2 %v15064_v24  ;;  %11459 = vmatpush.bf16.msrb.mxu3 %v16504_v36  ;;  %v17048_v24 = vor.u32 %v18877_v61, %v17045_v27  ;;  %v18067_v36 = vld [vmem:[%s19479_s30 + $0xebc] sm:$0xf]  ;;  %v18270_v27 = vld [vmem:[%s19479_s30 + $0x1510] sm:$0xf0] }
 0x5e4   : > { %11422 = vmatmul.bf16.vlgmr.msrb.gmra.mxu0 %v19627_v28  ;;  %11435 = vmatmul.bf16.vlgmr.msrb.gmra.mxu1 %v19629_v29  ;;  %v13808_v55 = vor.u32 %v18067_v36, %v13805_v46  ;;  %v17591_v36 = vld [vmem:[%s19479_s30 + $0x2c48] sm:$0xf]  ;;  %v19035_v46 = vld [vmem:[%s19479_s30 + $0x2cf8] sm:$0xf0] }
 0x5e5   : > { %11466 = vmatpush.bf16.msra.mxu0 %v13268_v40  ;;  %11479 = vmatpush.bf16.msra.mxu1 %v14708_v9  ;;  %v12548_v40 = vor.u32 %v17752_v22, %v12545_v1  ;;  %v13988_v9 = vor.u32 %v18112_v37, %v13985_v15  ;;  %v14712_v1 = vor.u32 %v18315_v18, %v14711_v50  ;;  %v14531_v37 = vld [vmem:[%s19479_s30 + $0x1460] sm:$0xf]  ;;  %v18945_v50 = vld [vmem:[%s19479_s30 + $0x2a28] sm:$0xf0] }
 0x5e6   : > { %v15068_v15 = vor.u32 %v18382_v20, %v15065_v21  ;;  %v1947_v20 = vperm.slane %v22606_v25, 7 }
 0x5e7   : > { %11447 = vmatpush.bf16.msrb.mxu2 %v14884_v39  ;;  %11460 = vmatpush.bf16.msrb.mxu3 %v16324_v47  ;;  %v18022_v39 = vld [vmem:[%s19479_s30 + $0xd54] sm:$0xf]  ;;  %v13625_v47 = vld [vmem:[%s19479_s30 + $0xe04] sm:$0xf0] }
 0x5e8   : > { %v13628_v45 = vor.u32 %v18022_v39, %v13625_v47  ;;  %v17411_v39 = vld [vmem:[%s19479_s30 + $0x2ae0] sm:$0xf]  ;;  %v18990_v47 = vld [vmem:[%s19479_s30 + $0x2b90] sm:$0xf0] }
 0x5e9   : > { %11467 = vmatpush.bf16.msra.mxu0 %v13088_v19  ;;  %11480 = vmatpush.bf16.msra.mxu1 %v14528_v58  ;;  %v11217_v31 = vpop.f32.mrf.mxu0  ;;  %v11230_v51 = vpop.f32.mrf.mxu1  ;;  %v15428_v19 = vor.u32 %v18472_v48, %v15425_v17  ;;  %v16868_v58 = vor.u32 %v18832_v30, %v16865_v42  ;;  %v16328_v17 = vor.u32 %v18697_v43, %v16325_v26  ;;  %v12911_v30 = vld [vmem:[%s19479_s30 + $0x7b8] sm:$0xf]  ;;  %v17865_v42 = vld [vmem:[%s19479_s30 + $0x868] sm:$0xf0]  ;;  %v13811_v26 = vld [vmem:[%s19479_s30 + $0xec0] sm:$0xf] }
 0x5ea   : > { %11448 = vmatmul.bf16.vlgmr.msrb.gmra.mxu2 %v19645_v53  ;;  %11461 = vmatmul.bf16.vlgmr.msrb.gmra.mxu3 %v19647_v54  ;;  %v14532_v31 = vor.u32 %v18270_v27, %v14531_v37  ;;  %v17051_v37 = vld [vmem:[%s19479_s30 + $0x2810] sm:$0xf]  ;;  %v17730_v27 = vld [vmem:[%s19479_s30 + $0x430] sm:$0xf0] }
 0x5eb   : > { %11492 = vmatpush.bf16.msra.mxu2 %v16148_v62  ;;  %11505 = vmatpush.bf16.msra.mxu3 %v17588_v63  ;;  %v15245_v63 = vld [vmem:[%s19479_s30 + $0x1aac] sm:$0xf0] }
 0x5ed   : > { %11468 = vmatpush.bf16.msra.mxu0 %v12908_v14  ;;  %11481 = vmatpush.bf16.msra.mxu1 %v14348_v38  ;;  %v22787_v23 = vpop.f32.mrf.mxu2  ;;  %v22789_v62 = vpop.f32.mrf.mxu3  ;;  %v17977_v14 = vld [vmem:[%s19479_s30 + $0xbec] sm:$0xf]  ;;  %v15248_v38 = vor.u32 %v18427_v59, %v15245_v63  ;;  %v1946_v59 = vperm.slane %v22606_v25, 6  ;;  %v12912_v63 = vor.u32 %v17865_v42, %v12911_v30  ;;  %v12191_v42 = vld [vmem:[%s19479_s30 + $0x218] sm:$0xf] }
 0x5ef   : > { %11493 = vmatpush.bf16.msra.mxu2 %v15968_v2  ;;  %11506 = vmatpush.bf16.msra.mxu3 %v17408_v10  ;;  %v13271_v2 = vld [vmem:[%s19479_s30 + $0xa88] sm:$0xf]  ;;  %v17955_v10 = vld [vmem:[%s19479_s30 + $0xb38] sm:$0xf0]  ;;  %v11216_v18 = vadd.f32 %v22757_v3, %v1946_v59  ;;  %v18540_v3 = vld [vmem:[%s19479_s30 + $0x1d80] sm:$0xf0] }
 0x5f0   : > { %v13272_v22 = vor.u32 %v17955_v10, %v13271_v2  ;;  %v18585_v2 = vld [vmem:[%s19479_s30 + $0x1ee8] sm:$0xf0]  ;;  %v17231_v10 = vld [vmem:[%s19479_s30 + $0x2978] sm:$0xf]  ;;  %v18450_v59 = vld [vmem:[%s19479_s30 + $0x1ab0] sm:$0xf0] }
 0x5f1   : > { %11469 = vmatpush.bf16.msra.mxu0 %v12728_v5  ;;  %11482 = vmatpush.bf16.msra.mxu1 %v14168_v4  ;;  %v12008_v5 = vor.u32 %v17617_v16, %v12005_v52  ;;  %v13448_v4 = vor.u32 %v17977_v14, %v13445_v34  ;;  %v17412_v16 = vor.u32 %v18990_v47, %v17411_v39  ;;  %v14171_v52 = vld [vmem:[%s19479_s30 + $0x1190] sm:$0xf]  ;;  %v18180_v14 = vld [vmem:[%s19479_s30 + $0x1240] sm:$0xf0]  ;;  %v15251_v39 = vld [vmem:[%s19479_s30 + $0x1a00] sm:$0xf] }
 0x5f2   : > { %v14172_v6 = vor.u32 %v18180_v14, %v14171_v52  ;;  %v11229_v25 = vadd.f32 %v22759_v0, %v11216_v18  ;;  %v12011_v52 = vld [vmem:[%s19479_s30 + $0xb0] sm:$0xf]  ;;  %v17640_v14 = vld [vmem:[%s19479_s30 + $0x160] sm:$0xf0]  ;;  %v16511_v18 = vld [vmem:[%s19479_s30 + $0x23d8] sm:$0xf] }
 0x5f3   : > { %11494 = vmatpush.bf16.msra.mxu2 %v15788_v49  ;;  %11507 = vmatpush.bf16.msra.mxu3 %v17228_v35  ;;  %v13091_v49 = vld [vmem:[%s19479_s30 + $0x920] sm:$0xf]  ;;  %v17910_v35 = vld [vmem:[%s19479_s30 + $0x9d0] sm:$0xf0] }
 0x5f4   : > { %v13092_v48 = vor.u32 %v17910_v35, %v13091_v49  ;;  %v18135_v49 = vld [vmem:[%s19479_s30 + $0x10d8] sm:$0xf0]  ;;  %v15611_v35 = vld [vmem:[%s19479_s30 + $0x1cd0] sm:$0xf] }
 0x5f5   : > { %11470 = vmatpush.bf16.msra.mxu0 %v12548_v40  ;;  %11483 = vmatpush.bf16.msra.mxu1 %v13988_v9  ;;  %v11243_v41 = vpop.f32.mrf.mxu2  ;;  %v11256_v61 = vpop.f32.mrf.mxu3  ;;  %v18337_v40 = vld [vmem:[%s19479_s30 + $0x172c] sm:$0xf]  ;;  %v14885_v9 = vld [vmem:[%s19479_s30 + $0x17dc] sm:$0xf0] }
 0x5f6   : > { %v14888_v51 = vor.u32 %v18337_v40, %v14885_v9  ;;  %v12371_v61 = vld [vmem:[%s19479_s30 + $0x380] sm:$0xf]  ;;  %v15612_v9 = vor.u32 %v18540_v3, %v15611_v35 }
 0x5f7   : > { %11495 = vmatpush.bf16.msra.mxu2 %v15608_v11  ;;  %11508 = vmatpush.bf16.msra.mxu3 %v17048_v24  ;;  %v16151_v11 = vld [vmem:[%s19479_s30 + $0x2108] sm:$0xf]  ;;  %v18675_v24 = vld [vmem:[%s19479_s30 + $0x21b8] sm:$0xf0] }
 0x5f9   : > { %11471 = vmatpush.bf16.msra.mxu0 %v12368_v33  ;;  %11484 = vmatpush.bf16.msra.mxu1 %v13808_v55  ;;  %v16152_v33 = vor.u32 %v18675_v24, %v16151_v11  ;;  %v17592_v55 = vor.u32 %v19035_v46, %v17591_v36  ;;  %v18090_v11 = vld [vmem:[%s19479_s30 + $0xf70] sm:$0xf0]  ;;  %v15431_v24 = vld [vmem:[%s19479_s30 + $0x1b68] sm:$0xf]  ;;  %v18495_v46 = vld [vmem:[%s19479_s30 + $0x1c18] sm:$0xf0] }
 0x5fa   : > { %v13812_v30 = vor.u32 %v18090_v11, %v13811_v26  ;;  %v15432_v60 = vor.u32 %v18495_v46, %v15431_v24 }
 0x5fb   : > { %11496 = vmatpush.bf16.msra.mxu2 %v15428_v19  ;;  %11509 = vmatpush.bf16.msra.mxu3 %v16868_v58  ;;  %v15971_v19 = vld [vmem:[%s19479_s30 + $0x1fa0] sm:$0xf]  ;;  %v18630_v58 = vld [vmem:[%s19479_s30 + $0x2050] sm:$0xf0] }
 0x5fd   : > { %11472 = vmatpush.bf16.msra.mxu0 %v12188_v44  ;;  %11485 = vmatpush.bf16.msra.mxu1 %v13628_v45  ;;  %v17820_v44 = vld [vmem:[%s19479_s30 + $0x700] sm:$0xf0]  ;;  %v15972_v45 = vor.u32 %v18630_v58, %v15971_v19  ;;  %v13631_v19 = vld [vmem:[%s19479_s30 + $0xd58] sm:$0xf]  ;;  %v18045_v58 = vld [vmem:[%s19479_s30 + $0xe08] sm:$0xf0] }
 0x5fe   : > { %v12732_v21 = vor.u32 %v17820_v44, %v12731_v56 }
 0x5ff   : > { %11497 = vmatpush.bf16.msra.mxu2 %v15248_v38  ;;  %11510 = vmatpush.bf16.msra.mxu3 %v16688_v8  ;;  %v15791_v38 = vld [vmem:[%s19479_s30 + $0x1e38] sm:$0xf] }
 0x601   : > { %11473 = vmatpush.bf16.msra.mxu0 %v12008_v5  ;;  %11486 = vmatpush.bf16.msra.mxu1 %v13448_v4  ;;  %v11267_v8 = vpop.f32.mrf.mxu0  ;;  %v11280_v34 = vpop.f32.mrf.mxu1  ;;  %v17775_v5 = vld [vmem:[%s19479_s30 + $0x598] sm:$0xf0]  ;;  %v15792_v4 = vor.u32 %v18585_v2, %v15791_v38  ;;  %v13451_v2 = vld [vmem:[%s19479_s30 + $0xbf0] sm:$0xf] }
 0x602   : > { %v11268_v40 = vadd.f32 %v11267_v8, %v1947_v20  ;;  %v15252_v8 = vor.u32 %v18450_v59, %v15251_v39  ;;  %v18765_v20 = vld [vmem:[%s19479_s30 + $0x2488] sm:$0xf0] }
 0x603   : > { %11498 = vmatpush.bf16.msra.mxu2 %v15068_v15  ;;  %11511 = vmatpush.bf16.msra.mxu3 %v16508_v57  ;;  %v18900_v15 = vld [vmem:[%s19479_s30 + $0x28c0] sm:$0xf0]  ;;  %v12552_v57 = vor.u32 %v17775_v5, %v12551_v13  ;;  %v12012_v13 = vor.u32 %v17640_v14, %v12011_v52 }
 0x604   : > { %11474 = vmatmul.bf16.vlgmr.msra.gmra.mxu0 %v19627_v28  ;;  %11487 = vmatmul.bf16.vlgmr.msra.gmra.mxu1 %v19629_v29  ;;  %v17052_v43 = vor.u32 %v18900_v15, %v17051_v37  ;;  %v18360_v15 = vld [vmem:[%s19479_s30 + $0x17e0] sm:$0xf0] }
 0x605   : > { %11518 = vmatpush.bf16.msrb.mxu0 %v13272_v22  ;;  %11531 = vmatpush.bf16.msrb.mxu1 %v14712_v1  ;;  %v17232_v22 = vor.u32 %v18945_v50, %v17231_v10  ;;  %v13991_v1 = vld [vmem:[%s19479_s30 + $0x1028] sm:$0xf]  ;;  %v18000_v10 = vld [vmem:[%s19479_s30 + $0xca0] sm:$0xf0]  ;;  %v15071_v50 = vld [vmem:[%s19479_s30 + $0x1898] sm:$0xf] }
 0x606   : > { %v13992_v41 = vor.u32 %v18135_v49, %v13991_v1  ;;  %v13452_v5 = vor.u32 %v18000_v10, %v13451_v2  ;;  %v16512_v1 = vor.u32 %v18765_v20, %v16511_v18  ;;  %v14891_v49 = vld [vmem:[%s19479_s30 + $0x1730] sm:$0xf] }
 0x607   : > { %11499 = vmatpush.bf16.msra.mxu2 %v14888_v51  ;;  %11512 = vmatpush.bf16.msra.mxu3 %v16328_v17  ;;  %v11242_v51 = vadd.f32 %v22787_v23, %v11229_v25  ;;  %v12372_v17 = vor.u32 %v17730_v27, %v12371_v61  ;;  %v16331_v25 = vld [vmem:[%s19479_s30 + $0x2270] sm:$0xf]  ;;  %v22885_v27 = vld [vmem:[%s19921_s6 + $0x28] sm:$0x1f] }
 0x608   : > { %v1950_v52 = vperm.slane %v22885_v27, 2 }
 0x609   : > { %11519 = vmatpush.bf16.msrb.mxu0 %v13092_v48  ;;  %11532 = vmatpush.bf16.msrb.mxu1 %v14532_v31  ;;  %v11269_v0 = vpop.f32.mrf.mxu0  ;;  %v11282_v36 = vpop.f32.mrf.mxu1  ;;  %v16871_v48 = vld [vmem:[%s19479_s30 + $0x26a8] sm:$0xf]  ;;  %v18855_v31 = vld [vmem:[%s19479_s30 + $0x2758] sm:$0xf0]  ;;  %v11255_v56 = vadd.f32 %v22789_v62, %v11242_v51  ;;  %v18405_v62 = vld [vmem:[%s19479_s30 + $0x1948] sm:$0xf0] }
 0x60a   : > { %11500 = vmatmul.bf16.vlgmr.msra.gmra.mxu2 %v19645_v53  ;;  %11513 = vmatmul.bf16.vlgmr.msra.gmra.mxu3 %v19647_v54  ;;  %v16872_v12 = vor.u32 %v18855_v31, %v16871_v48  ;;  %v1949_v31 = vperm.slane %v22885_v27, 1 }
 0x60b   : > { %11544 = vmatpush.bf16.msrb.mxu2 %v16152_v33  ;;  %11557 = vmatpush.bf16.msrb.mxu3 %v17592_v55  ;;  %v17685_v33 = vld [vmem:[%s19479_s30 + $0x2c8] sm:$0xf0]  ;;  %v11281_v55 = vadd.f32 %v11280_v34, %v11268_v40 }
 0x60d   : > { %11520 = vmatpush.bf16.msrb.mxu0 %v12912_v63  ;;  %11533 = vmatpush.bf16.msrb.mxu1 %v14352_v32  ;;  %v11293_v23 = vpop.f32.mrf.mxu2  ;;  %v11306_v47 = vpop.f32.mrf.mxu3  ;;  %v16691_v63 = vld [vmem:[%s19479_s30 + $0x2540] sm:$0xf]  ;;  %v18810_v32 = vld [vmem:[%s19479_s30 + $0x25f0] sm:$0xf0] }
 0x60e   : > { %v11294_v44 = vadd.f32 %v11293_v23, %v11281_v55  ;;  %v16692_v34 = vor.u32 %v18810_v32, %v16691_v63 }
 0x60f   : > { %11545 = vmatpush.bf16.msrb.mxu2 %v15972_v45  ;;  %11558 = vmatpush.bf16.msrb.mxu3 %v17412_v16  ;;  %v12192_v45 = vor.u32 %v17685_v33, %v12191_v42  ;;  %v13632_v16 = vor.u32 %v18045_v58, %v13631_v19 }
 0x610   : > { %v11307_v38 = vadd.f32 %v11306_v47, %v11294_v44 }
 0x611   : > { %11521 = vmatpush.bf16.msrb.mxu0 %v12732_v21  ;;  %11534 = vmatpush.bf16.msrb.mxu1 %v14172_v6  ;;  %v11642_v21 = vrot.slane %v11255_v56, 4 }
 0x612   : > { %v11643_v6 = vrot.slane %v11307_v38, 2 }
 0x613   : > { %11546 = vmatpush.bf16.msrb.mxu2 %v15792_v4  ;;  %11559 = vmatpush.bf16.msrb.mxu3 %v17232_v22  ;;  %v15072_v22 = vor.u32 %v18405_v62, %v15071_v50 }
 0x614   : > { %v11678_v4 = vsel %vm11649_vm2, %v11642_v21, %v11643_v6 }
 0x615   : > { %11522 = vmatpush.bf16.msrb.mxu0 %v12552_v57  ;;  %11535 = vmatpush.bf16.msrb.mxu1 %v13992_v41  ;;  %v11679_v35 = vsel %vm11651_vm3, %v22728_v7, %v11678_v4  ;;  %v11295_v3 = vpop.f32.mrf.mxu2  ;;  %v11308_v37 = vpop.f32.mrf.mxu3  ;;  %v18720_v57 = vld [vmem:[%s19479_s30 + $0x2320] sm:$0xf0]  ;;  %v14892_v41 = vor.u32 %v18360_v15, %v14891_v49  ;;  %v1948_v7 = vperm.slane %v22885_v27, 0 }
 0x616   : > { %11703 = vst [vmem:[%s20170_s21 + $0x48] sm:$0xff] %v11679_v35  ;;  %v16332_v61 = vor.u32 %v18720_v57, %v16331_v25  ;;  %v1952_v57 = vperm.slane %v22885_v27, 4 }
 0x617   : > { %11547 = vmatpush.bf16.msrb.mxu2 %v15612_v9  ;;  %11560 = vmatpush.bf16.msrb.mxu3 %v17052_v43 }
 0x619   : > { %11523 = vmatpush.bf16.msrb.mxu0 %v12372_v17  ;;  %11536 = vmatpush.bf16.msrb.mxu1 %v13812_v30 }
 0x61b   : > { %11548 = vmatpush.bf16.msrb.mxu2 %v15432_v60  ;;  %11561 = vmatpush.bf16.msrb.mxu3 %v16872_v12 }
 0x61d   : > { %11524 = vmatpush.bf16.msrb.mxu0 %v12192_v45  ;;  %11537 = vmatpush.bf16.msrb.mxu1 %v13632_v16 }
 0x61f   : > { %11549 = vmatpush.bf16.msrb.mxu2 %v15252_v8  ;;  %11562 = vmatpush.bf16.msrb.mxu3 %v16692_v34  ;;  %v1951_v34 = vperm.slane %v22885_v27, 3 }
 0x621   : > { %11525 = vmatpush.bf16.msrb.mxu0 %v12012_v13  ;;  %11538 = vmatpush.bf16.msrb.mxu1 %v13452_v5  ;;  %v11319_v40 = vpop.f32.mrf.mxu0  ;;  %v11332_v9 = vpop.f32.mrf.mxu1 }
 0x622   : > { %v11320_v43 = vadd.f32 %v11319_v40, %v1948_v7 }
 0x623   : > { %11550 = vmatpush.bf16.msrb.mxu2 %v15072_v22  ;;  %11563 = vmatpush.bf16.msrb.mxu3 %v16512_v1 }
 0x624   : > { %11526 = vmatmul.bf16.vlgmr.msrb.gmra.mxu0 %v19627_v28  ;;  %11539 = vmatmul.bf16.vlgmr.msrb.gmra.mxu1 %v19629_v29  ;;  %v11333_v26 = vadd.f32 %v11332_v9, %v11320_v43 }
 0x627   : > { %11551 = vmatpush.bf16.msrb.mxu2 %v14892_v41  ;;  %11564 = vmatpush.bf16.msrb.mxu3 %v16332_v61 }
 0x629   : > { %v11321_v11 = vpop.f32.mrf.mxu0  ;;  %v11334_v24 = vpop.f32.mrf.mxu1 }
 0x62a   : > { %11552 = vmatmul.bf16.vlgmr.msrb.gmra.mxu2 %v19645_v53  ;;  %11565 = vmatmul.bf16.vlgmr.msrb.gmra.mxu3 %v19647_v54 }
 0x62d   : > { %v11345_v0 = vpop.f32.mrf.mxu2  ;;  %v11358_v36 = vpop.f32.mrf.mxu3 }
 0x62e   : > { %v11346_v46 = vadd.f32 %v11345_v0, %v11333_v26 }
 0x630   : > { %v11359_v28 = vadd.f32 %v11358_v36, %v11346_v46 }
 0x635   : > { %v11347_v48 = vpop.f32.mrf.mxu2  ;;  %v11360_v29 = vpop.f32.mrf.mxu3 }
 0x641   : > { %v11371_v51 = vpop.f32.mrf.mxu0  ;;  %v11384_v17 = vpop.f32.mrf.mxu1 }
 0x642   : > { %v11372_v30 = vadd.f32 %v11371_v51, %v1949_v31 }
 0x644   : > { %v11385_v53 = vadd.f32 %v11384_v17, %v11372_v30 }
 0x649   : > { %v11373_v42 = vpop.f32.mrf.mxu0  ;;  %v11386_v54 = vpop.f32.mrf.mxu1 }
 0x64d   : > { %v11397_v33 = vpop.f32.mrf.mxu2  ;;  %v11410_v55 = vpop.f32.mrf.mxu3 }
 0x64e   : > { %v11398_v60 = vadd.f32 %v11397_v33, %v11385_v53 }
 0x650   : > { %v11411_v12 = vadd.f32 %v11410_v55, %v11398_v60 }
 0x652   : > { %v11644_v19 = vrot.slane %v11411_v12, 6 }
 0x654   : > { %v11680_v58 = vsel %vm11647_vm1, %v11359_v28, %v11644_v19 }
 0x655   : > { %v11399_v39 = vpop.f32.mrf.mxu2  ;;  %v11412_v23 = vpop.f32.mrf.mxu3 }
 0x661   : > { %v11423_v47 = vpop.f32.mrf.mxu0  ;;  %v11436_v59 = vpop.f32.mrf.mxu1 }
 0x662   : > { %v11424_v8 = vadd.f32 %v11423_v47, %v1950_v52 }
 0x664   : > { %v11437_v2 = vadd.f32 %v11436_v59, %v11424_v8 }
 0x669   : > { %v11425_v63 = vpop.f32.mrf.mxu0  ;;  %v11438_v32 = vpop.f32.mrf.mxu1 }
 0x66d   : > { %v11449_v56 = vpop.f32.mrf.mxu2  ;;  %v11462_v44 = vpop.f32.mrf.mxu3 }
 0x66e   : > { %v11450_v18 = vadd.f32 %v11449_v56, %v11437_v2 }
 0x670   : > { %v11463_v13 = vadd.f32 %v11462_v44, %v11450_v18 }
 0x672   : > { %v11645_v22 = vrot.slane %v11463_v13, 4 }
 0x675   : > { %v11451_v45 = vpop.f32.mrf.mxu2  ;;  %v11464_v16 = vpop.f32.mrf.mxu3 }
 0x681   : > { %v11475_v14 = vpop.f32.mrf.mxu0  ;;  %v11488_v38 = vpop.f32.mrf.mxu1 }
 0x682   : > { %v11476_v10 = vadd.f32 %v11475_v14, %v1951_v34 }
 0x684   : > { %v11489_v20 = vadd.f32 %v11488_v38, %v11476_v10 }
 0x689   : > { %v11477_v50 = vpop.f32.mrf.mxu0  ;;  %v11490_v62 = vpop.f32.mrf.mxu1 }
 0x68d   : > { %v11501_v21 = vpop.f32.mrf.mxu2  ;;  %v11514_v6 = vpop.f32.mrf.mxu3 }
 0x68e   : > { %v11502_v5 = vadd.f32 %v11501_v21, %v11489_v20 }
 0x690   : > { %v11515_v4 = vadd.f32 %v11514_v6, %v11502_v5 }
 0x692   : > { %v11646_v1 = vrot.slane %v11515_v4, 2 }
 0x694   : > { %v11681_v49 = vsel %vm11649_vm2, %v11645_v22, %v11646_v1 }
 0x695   : > { %v11682_v35 = vsel %vm11651_vm3, %v11680_v58, %v11681_v49  ;;  %v11503_v3 = vpop.f32.mrf.mxu2  ;;  %v11516_v37 = vpop.f32.mrf.mxu3 }
 0x696   : > { %11704 = vst [vmem:[%s20170_s21 + $0x50] sm:$0xff] %v11682_v35 }
 0x6a1   : > { %v11527_v15 = vpop.f32.mrf.mxu0  ;;  %v11540_v25 = vpop.f32.mrf.mxu1 }
 0x6a2   : > { %v11528_v41 = vadd.f32 %v11527_v15, %v1952_v57 }
 0x6a4   : > { %v11541_v40 = vadd.f32 %v11540_v25, %v11528_v41 }
 0x6a9   : > { %v11529_v61 = vpop.f32.mrf.mxu0  ;;  %v11542_v7 = vpop.f32.mrf.mxu1 }
 0x6ad   : > { %v11553_v9 = vpop.f32.mrf.mxu2  ;;  %v11566_v43 = vpop.f32.mrf.mxu3 }
 0x6ae   : > { %v11554_v26 = vadd.f32 %v11553_v9, %v11541_v40 }
 0x6b0   : > { %v11567_v11 = vadd.f32 %v11566_v43, %v11554_v26 }
 0x6b2   : > { %11705 = vst [vmem:[%s20170_s21 + $0x58] sm:$0x3] %v11567_v11 }
 0x6b5   : > { %v11555_v24 = vpop.f32.mrf.mxu2  ;;  %v11568_v0 = vpop.f32.mrf.mxu3 }
 0x6b6 PF: > { %p17_p8 = scmp.ge.s32.totalorder %s19387_s23, 4   ;;  %s22926_s18 = smov %s19316_s19 }
 0x6b7   : > { %s22927_s19 = smov %s19320_s20  ;;  %s22928_s20 = smov %s19397_s26 }
 0x6b8   : > { %s22929_s21 = smov %s19387_s23  ;;  %19 = sbr.rel (!%p17_p8) target bundleno = 5 (0x5), region = 98 }
 0x6bd   :  { %11728 = vsyncpa [#allocation3], 1 }
 0x6be   :  { %11730 = vsyncpa [#allocation3 + $0x1], 1 }
 0x6bf   :  { %11731 = vsyncpa [#allocation5], 1 }
 0x6c0   :  { %11732 = vsyncpa [#allocation8], 1 }
 0x6c1   :  { %11734 = vsyncpa [#allocation8 + $0x1], 1 }

</bundles_post_ra>
